<compile_context>
chip_gen: v6e
topology: v6e:2x2x1
jax: 0.10.0
libtpu: 0.0.40
codegen_flags: <defaults>
</compile_context>

<pallas_src>
import numpy as np
import jax
import jax.numpy as jnp
from jax.experimental import pallas as pl
from jax.experimental.pallas import tpu as pltpu

WINDOW_SIZE = 11
SIGMA = 1.5
PAD = WINDOW_SIZE // 2
C1 = 0.01 ** 2
C2 = 0.03 ** 2
_HIGHEST = jax.lax.Precision.HIGHEST


def _gaussian_1d(window_size: int, sigma: float) -> np.ndarray:
    # Identical to the PyTorch `gaussian()` helper.
    x = np.arange(window_size, dtype=np.float64)
    g = np.exp(-((x - window_size // 2) ** 2) / (2.0 * sigma ** 2))
    return (g / g.sum()).astype(np.float32)


_G1D = _gaussian_1d(WINDOW_SIZE, SIGMA)


def _band_matrix(n: int) -> np.ndarray:
    """(n, n) matrix B with B[i, j] = taps[j - i + PAD]; B @ x is exactly the
    zero-padded 1D Gaussian conv along the leading axis of x."""
    b = np.zeros((n, n), dtype=np.float32)
    for i in range(n):
        for k in range(WINDOW_SIZE):
            j = i + k - PAD
            if 0 <= j < n:
                b[i, j] = _G1D[k]
    return b


def _pick_group(n_imgs: int, h: int, w: int) -> int:
    """Largest divisor of B*C to batch per grid step, bounded so the
    block-diagonal BandV and the per-step f32 temporaries stay small."""
    best = 1
    for g in range(1, n_imgs + 1):
        if n_imgs % g != 0:
            continue
        if g * h > 512:                  # bound block-diag BandV / sublane count
            continue
        if g * h * w * 4 > (2 << 20):    # ~2 MiB per full-tile f32 temporary
            continue
        best = g
    return best


def _ssim_kernel(bvd_ref, bh_ref, x1_ref, x2_ref, out_ref):
    bvd = bvd_ref[...]                     # (G*H, G*H) block-diag vertical taps
    bh = bh_ref[...]                       # (W, W) horizontal taps
    x1 = x1_ref[...].astype(jnp.float32)   # (G*H, W)
    x2 = x2_ref[...].astype(jnp.float32)

    def conv(x):
        # Vertical (rows within each packed image) then horizontal (lanes),
        # both on the MXU; band matrices encode the zero padding exactly.
        t = jnp.dot(bvd, x, precision=_HIGHEST,
                    preferred_element_type=jnp.float32)
        return jnp.dot(t, bh, precision=_HIGHEST,
                       preferred_element_type=jnp.float32)

    mu1 = conv(x1)
    mu2 = conv(x2)
    mu1_sq = mu1 * mu1
    mu2_sq = mu2 * mu2
    mu1_mu2 = mu1 * mu2

    sigma1_sq = conv(x1 * x1) - mu1_sq
    sigma2_sq = conv(x2 * x2) - mu2_sq
    sigma12 = conv(x1 * x2) - mu1_mu2

    ssim_map = ((2.0 * mu1_mu2 + C1) * (2.0 * sigma12 + C2)) / (
        (mu1_sq + mu2_sq + C1) * (sigma1_sq + sigma2_sq + C2))

    # Per-step spatial sum; the tiny final mean + epilogue stay in JAX.
    out_ref[0, 0] = jnp.sum(ssim_map)


def ssim_loss(img1: jax.Array, img2: jax.Array) -> jax.Array:
    """SSIMLoss.forward equivalent (size_average=True). img1/img2: (B,C,H,W)."""
    assert img1.shape == img2.shape and img1.ndim == 4
    B, C, H, W = img1.shape
    N = B * C
    G = _pick_group(N, H, W)
    steps = N // G

    # TODO(synk): for very large images (per-plane f32 temporaries >> 2 MiB),
    # add a row-tiled variant with a 2*PAD halo so VMEM stays bounded.

    band_v = _band_matrix(H)                                            # (H, H)
    bvd = jnp.asarray(np.kron(np.eye(G, dtype=np.float32), band_v))     # (G*H, G*H)
    bh = jnp.asarray(_band_matrix(W).T)                                 # (W, W)

    # Pure reshape (no data movement): pack G consecutive (H, W) planes per step.
    x1 = img1.reshape(steps, G * H, W)
    x2 = img2.reshape(steps, G * H, W)

    bvd_spec = pl.BlockSpec((G * H, G * H), lambda n: (0, 0))
    bh_spec = pl.BlockSpec((W, W), lambda n: (0, 0))
    img_spec = pl.BlockSpec((None, G * H, W), lambda n: (n, 0, 0))
    out_spec = pl.BlockSpec((1, 1), lambda n: (n, 0),
                            memory_space=pltpu.MemorySpace.SMEM)

    partial_sums = pl.pallas_call(
        _ssim_kernel,
        out_shape=jax.ShapeDtypeStruct((steps, 1), jnp.float32),
        grid=(steps,),
        in_specs=[bvd_spec, bh_spec, img_spec, img_spec],
        out_specs=out_spec,
        compiler_params=pltpu.CompilerParams(
            dimension_semantics=("parallel",)),
    )(bvd, bh, x1, x2)

    ssim_mean = jnp.sum(partial_sums) / jnp.float32(N * H * W)
    return 1.0 - (1.0 + ssim_mean) / 2.0


def _ref_ssim_loss(img1, img2):
    """Pure-JAX reference (depthwise conv2d), for correctness checking."""
    B, C, H, W = img1.shape
    w2d = jnp.asarray(np.outer(_G1D, _G1D), jnp.float32)
    window = jnp.broadcast_to(w2d[None, None], (C, 1, WINDOW_SIZE, WINDOW_SIZE))

    def conv(x):
        return jax.lax.conv_general_dilated(
            x, window, window_strides=(1, 1),
            padding=[(PAD, PAD), (PAD, PAD)],
            feature_group_count=C,
            dimension_numbers=("NCHW", "OIHW", "NCHW"),
            precision=_HIGHEST)

    i1 = img1.astype(jnp.float32)
    i2 = img2.astype(jnp.float32)
    mu1, mu2 = conv(i1), conv(i2)
    mu1_sq, mu2_sq, mu1_mu2 = mu1 * mu1, mu2 * mu2, mu1 * mu2
    s1 = conv(i1 * i1) - mu1_sq
    s2 = conv(i2 * i2) - mu2_sq
    s12 = conv(i1 * i2) - mu1_mu2
    ssim_map = ((2 * mu1_mu2 + C1) * (2 * s12 + C2)) / (
        (mu1_sq + mu2_sq + C1) * (s1 + s2 + C2))
    return 1.0 - (1.0 + jnp.mean(ssim_map)) / 2.0


if __name__ == "__main__":
    key = jax.random.PRNGKey(0)
    k1, k2 = jax.random.split(key)
    B, C, H, W = 2, 4, 16, 16
    img1 = jax.random.uniform(k1, (B, C, H, W), dtype=jnp.float32)
    img2 = jax.random.uniform(k2, (B, C, H, W), dtype=jnp.float32)

    loss = jax.jit(ssim_loss)(img1, img2)
    jax.block_until_ready(loss)

    ref = _ref_ssim_loss(img1, img2)
    np.testing.assert_allclose(np.asarray(loss), np.asarray(ref),
                               rtol=1e-5, atol=1e-5)

    print("KERNEL_OK")
</pallas_src>

<mosaic_0001>
module attributes {stable_mosaic.version = 11 : i64} {
  func.func @_ssim_kernel(%arg0: i32, %arg1: memref<128x128xf32, #tpu.memory_space<vmem>>, %arg2: memref<16x16xf32, #tpu.memory_space<vmem>>, %arg3: memref<1x128x16xf32, #tpu.memory_space<vmem>>, %arg4: memref<1x128x16xf32, #tpu.memory_space<vmem>>, %arg5: memref<1x1xf32, #tpu.memory_space<smem>>) attributes {dimension_semantics = [#tpu.dimension_semantics<parallel>], iteration_bounds = array<i64: 1>, scalar_prefetch = 0 : i64, scratch_operands = 0 : i64, tpu.core_type = #tpu.core_type<tc>, window_params = [{pipeline_mode = #tpu.pipeline_mode<synchronous>, transform_indices = @transform_0, window_bounds = array<i64: 128, 128>}, {pipeline_mode = #tpu.pipeline_mode<synchronous>, transform_indices = @transform_1, window_bounds = array<i64: 16, 16>}, {transform_indices = @transform_2, window_bounds = array<i64: 1, 128, 16>}, {transform_indices = @transform_3, window_bounds = array<i64: 1, 128, 16>}, {transform_indices = @transform_4, window_bounds = array<i64: 1, 1>}]} {
    %c0 = arith.constant 0 : index
    %c0_0 = arith.constant 0 : index
    %0 = vector.load %arg1[%c0, %c0_0] : memref<128x128xf32, #tpu.memory_space<vmem>>, vector<128x128xf32>
    %c0_1 = arith.constant 0 : index
    %c0_2 = arith.constant 0 : index
    %1 = vector.load %arg2[%c0_1, %c0_2] : memref<16x16xf32, #tpu.memory_space<vmem>>, vector<16x16xf32>
    %c0_3 = arith.constant 0 : index
    %c0_4 = arith.constant 0 : index
    %c0_5 = arith.constant 0 : index
    %2 = vector.load %arg3[%c0_3, %c0_4, %c0_5] : memref<1x128x16xf32, #tpu.memory_space<vmem>>, vector<1x128x16xf32>
    %3 = vector.shape_cast %2 : vector<1x128x16xf32> to vector<128x16xf32>
    %c0_6 = arith.constant 0 : index
    %c0_7 = arith.constant 0 : index
    %c0_8 = arith.constant 0 : index
    %4 = vector.load %arg4[%c0_6, %c0_7, %c0_8] : memref<1x128x16xf32, #tpu.memory_space<vmem>>, vector<1x128x16xf32>
    %5 = vector.shape_cast %4 : vector<1x128x16xf32> to vector<128x16xf32>
    %cst = arith.constant dense<0.000000e+00> : vector<128x16xf32>
    %6 = tpu.matmul %0, %3, %cst {dimension_numbers = #tpu.dot_dimension_numbers<[1], [0], [0], [1], [0, 0, 1, 1], [], []>, precision = #tpu.contract_precision<fp32>} : vector<128x128xf32>, vector<128x16xf32>, vector<128x16xf32> -> vector<128x16xf32>
    %cst_9 = arith.constant dense<0.000000e+00> : vector<128x16xf32>
    %7 = tpu.matmul %6, %1, %cst_9 {dimension_numbers = #tpu.dot_dimension_numbers<[1], [0], [0], [1], [0, 0, 1, 1], [], []>, precision = #tpu.contract_precision<fp32>} : vector<128x16xf32>, vector<16x16xf32>, vector<128x16xf32> -> vector<128x16xf32>
    %cst_10 = arith.constant dense<0.000000e+00> : vector<128x16xf32>
    %8 = tpu.matmul %0, %5, %cst_10 {dimension_numbers = #tpu.dot_dimension_numbers<[1], [0], [0], [1], [0, 0, 1, 1], [], []>, precision = #tpu.contract_precision<fp32>} : vector<128x128xf32>, vector<128x16xf32>, vector<128x16xf32> -> vector<128x16xf32>
    %cst_11 = arith.constant dense<0.000000e+00> : vector<128x16xf32>
    %9 = tpu.matmul %8, %1, %cst_11 {dimension_numbers = #tpu.dot_dimension_numbers<[1], [0], [0], [1], [0, 0, 1, 1], [], []>, precision = #tpu.contract_precision<fp32>} : vector<128x16xf32>, vector<16x16xf32>, vector<128x16xf32> -> vector<128x16xf32>
    %10 = arith.mulf %7, %7 : vector<128x16xf32>
    %11 = arith.mulf %9, %9 : vector<128x16xf32>
    %12 = arith.mulf %7, %9 : vector<128x16xf32>
    %13 = arith.mulf %3, %3 : vector<128x16xf32>
    %cst_12 = arith.constant dense<0.000000e+00> : vector<128x16xf32>
    %14 = tpu.matmul %0, %13, %cst_12 {dimension_numbers = #tpu.dot_dimension_numbers<[1], [0], [0], [1], [0, 0, 1, 1], [], []>, precision = #tpu.contract_precision<fp32>} : vector<128x128xf32>, vector<128x16xf32>, vector<128x16xf32> -> vector<128x16xf32>
    %cst_13 = arith.constant dense<0.000000e+00> : vector<128x16xf32>
    %15 = tpu.matmul %14, %1, %cst_13 {dimension_numbers = #tpu.dot_dimension_numbers<[1], [0], [0], [1], [0, 0, 1, 1], [], []>, precision = #tpu.contract_precision<fp32>} : vector<128x16xf32>, vector<16x16xf32>, vector<128x16xf32> -> vector<128x16xf32>
    %16 = arith.subf %15, %10 : vector<128x16xf32>
    %17 = arith.mulf %5, %5 : vector<128x16xf32>
    %cst_14 = arith.constant dense<0.000000e+00> : vector<128x16xf32>
    %18 = tpu.matmul %0, %17, %cst_14 {dimension_numbers = #tpu.dot_dimension_numbers<[1], [0], [0], [1], [0, 0, 1, 1], [], []>, precision = #tpu.contract_precision<fp32>} : vector<128x128xf32>, vector<128x16xf32>, vector<128x16xf32> -> vector<128x16xf32>
    %cst_15 = arith.constant dense<0.000000e+00> : vector<128x16xf32>
    %19 = tpu.matmul %18, %1, %cst_15 {dimension_numbers = #tpu.dot_dimension_numbers<[1], [0], [0], [1], [0, 0, 1, 1], [], []>, precision = #tpu.contract_precision<fp32>} : vector<128x16xf32>, vector<16x16xf32>, vector<128x16xf32> -> vector<128x16xf32>
    %20 = arith.subf %19, %11 : vector<128x16xf32>
    %21 = arith.mulf %3, %5 : vector<128x16xf32>
    %cst_16 = arith.constant dense<0.000000e+00> : vector<128x16xf32>
    %22 = tpu.matmul %0, %21, %cst_16 {dimension_numbers = #tpu.dot_dimension_numbers<[1], [0], [0], [1], [0, 0, 1, 1], [], []>, precision = #tpu.contract_precision<fp32>} : vector<128x128xf32>, vector<128x16xf32>, vector<128x16xf32> -> vector<128x16xf32>
    %cst_17 = arith.constant dense<0.000000e+00> : vector<128x16xf32>
    %23 = tpu.matmul %22, %1, %cst_17 {dimension_numbers = #tpu.dot_dimension_numbers<[1], [0], [0], [1], [0, 0, 1, 1], [], []>, precision = #tpu.contract_precision<fp32>} : vector<128x16xf32>, vector<16x16xf32>, vector<128x16xf32> -> vector<128x16xf32>
    %24 = arith.subf %23, %12 : vector<128x16xf32>
    %cst_18 = arith.constant 2.000000e+00 : f32
    %25 = vector.broadcast %cst_18 : f32 to vector<128x16xf32>
    %26 = arith.mulf %25, %12 : vector<128x16xf32>
    %cst_19 = arith.constant 9.99999974E-5 : f32
    %27 = vector.broadcast %cst_19 : f32 to vector<128x16xf32>
    %28 = arith.addf %26, %27 : vector<128x16xf32>
    %cst_20 = arith.constant 2.000000e+00 : f32
    %29 = vector.broadcast %cst_20 : f32 to vector<128x16xf32>
    %30 = arith.mulf %29, %24 : vector<128x16xf32>
    %cst_21 = arith.constant 8.99999984E-4 : f32
    %31 = vector.broadcast %cst_21 : f32 to vector<128x16xf32>
    %32 = arith.addf %30, %31 : vector<128x16xf32>
    %33 = arith.mulf %28, %32 : vector<128x16xf32>
    %34 = arith.addf %10, %11 : vector<128x16xf32>
    %cst_22 = arith.constant 9.99999974E-5 : f32
    %35 = vector.broadcast %cst_22 : f32 to vector<128x16xf32>
    %36 = arith.addf %34, %35 : vector<128x16xf32>
    %37 = arith.addf %16, %20 : vector<128x16xf32>
    %cst_23 = arith.constant 8.99999984E-4 : f32
    %38 = vector.broadcast %cst_23 : f32 to vector<128x16xf32>
    %39 = arith.addf %37, %38 : vector<128x16xf32>
    %40 = arith.mulf %36, %39 : vector<128x16xf32>
    %41 = arith.divf %33, %40 : vector<128x16xf32>
    %42 = vector.shape_cast %41 : vector<128x16xf32> to vector<1x128x16xf32>
    %cst_24 = arith.constant dense<0.000000e+00> : vector<1xf32>
    %43 = vector.multi_reduction <add>, %42, %cst_24 [1, 2] : vector<1x128x16xf32> to vector<1xf32>
    %44 = vector.shape_cast %43 : vector<1xf32> to vector<1x1x1xf32>
    %45 = vector.extract %44[0, 0, 0] : f32 from vector<1x1x1xf32>
    %c0_25 = arith.constant 0 : index
    %c0_26 = arith.constant 0 : index
    %46 = memref.load %arg5[%c0_25, %c0_26] : memref<1x1xf32, #tpu.memory_space<smem>>
    memref.store %45, %arg5[%c0_25, %c0_26] : memref<1x1xf32, #tpu.memory_space<smem>>
    return
  }
  func.func @transform_0(%arg0: i32) -> (i32, i32) {
    %c0_i32 = arith.constant 0 : i32
    %c0_i32_0 = arith.constant 0 : i32
    %c0_i32_1 = arith.constant 0 : i32
    return %c0_i32, %c0_i32_0 : i32, i32
  }
  func.func @transform_1(%arg0: i32) -> (i32, i32) {
    %c0_i32 = arith.constant 0 : i32
    %c0_i32_0 = arith.constant 0 : i32
    %c0_i32_1 = arith.constant 0 : i32
    return %c0_i32, %c0_i32_0 : i32, i32
  }
  func.func @transform_2(%arg0: i32) -> (i32, i32, i32) {
    %c0_i32 = arith.constant 0 : i32
    %c0_i32_0 = arith.constant 0 : i32
    %c0_i32_1 = arith.constant 0 : i32
    return %arg0, %c0_i32, %c0_i32_0 : i32, i32, i32
  }
  func.func @transform_3(%arg0: i32) -> (i32, i32, i32) {
    %c0_i32 = arith.constant 0 : i32
    %c0_i32_0 = arith.constant 0 : i32
    %c0_i32_1 = arith.constant 0 : i32
    return %arg0, %c0_i32, %c0_i32_0 : i32, i32, i32
  }
  func.func @transform_4(%arg0: i32) -> (i32, i32) {
    %c0_i32 = arith.constant 0 : i32
    %c0_i32_0 = arith.constant 0 : i32
    return %arg0, %c0_i32 : i32, i32
  }
}

</mosaic_0001>

<bundles_post_ra>
// kernel: ssim_loss.1
= control target key start
LH: loop header
LB: loop body
LE: loop exit
PB: predicated region body
PF: predicated region fallthrough
CT: control target
= control target key end

     0   :  { %9 = vsyncpa [#allocation3], 0  ;;  %s22253_s0 = inlined_call_operand.hbm [shape: f32[128,128], index: 0, kind: input, shape index: {}]   ;;  %s22254_s1 = inlined_call_operand.hbm [shape: f32[16,16], index: 1, kind: input, shape index: {}]   ;;  %s22255_s2 = inlined_call_operand.hbm [shape: f32[1,128,16], index: 2, kind: input, shape index: {}]   ;;  %s22256_s3 = inlined_call_operand.hbm [shape: f32[1,128,16], index: 3, kind: input, shape index: {}]   ;;  %s22257_s4 = inlined_call_operand.hbm [shape: f32[1,1], index: 4, kind: output, shape index: {}]  }
   0x1   :  { %10 = vsyncpa [#allocation6], 0 }
   0x2   :  { %11 = vsyncpa [#allocation9], 0 }
   0x3   :  { %12 = vsyncpa [#allocation4], 0  ;;  %s16929_s15 = smov [#allocation5]   ;;  %s16930_s17 = smov [#allocation2]  }
   0x4   :  { %s30_s16 = sshll.u32 %s16929_s15, 4  ;;  %s18_s18 = sshll.u32 %s16930_s17, 4  ;;  %s31_s16 = int_to_ptr.vmem [resolvable:$true] %s30_s16  ;;  %s19_s18 = int_to_ptr.vmem [resolvable:$true] %s18_s18 }
   0x5   :  { %s16841_s19 = scalar_lea.vmem %s31_s16, 256  ;;  %p16846_p1 = scmp.lt.s32.totalorder %s31_s16, %s31_s16 }
   0x6   :  { %p16842_p0 = scmp.ne.s32.totalorder %s31_s16, %s16841_s19  ;;  %p16847_p2 = scmp.lt.s32.totalorder %s16841_s19, %s16841_s19 }
   0x8   :  { %p16848_p3 = por %p16847_p2, %p16846_p1 }
   0xa   :  { %p16849_p4 = pnand %p16848_p3, %p16842_p0 }
   0xc   :  { %16852 = shalt.err (!%p16849_p4)
}
   0xd   :  { %s16931_s20 = smov 128   ;;  %s16932_s21 = smov 8  }
   0xe   :  { %36 = dma.hbm_to_vmem [thread:$0]  %s22254_s1, 256, %s31_s16, [#allocation6], %s16931_s20, %s16931_s20, %s16932_s21  }
   0xf   :  { %s16861_s24 = scalar_lea.vmem %s19_s18, 2048  ;;  %p16866_p6 = scmp.lt.s32.totalorder %s19_s18, %s19_s18 }
  0x10   :  { %p16862_p5 = scmp.ne.s32.totalorder %s19_s18, %s16861_s24  ;;  %p16867_p7 = scmp.lt.s32.totalorder %s16861_s24, %s16861_s24 }
  0x12   :  { %p16868_p8 = por %p16867_p7, %p16866_p6 }
  0x14   :  { %p16869_p9 = pnand %p16868_p8, %p16862_p5 }
  0x16   :  { %16872 = shalt.err (!%p16869_p9)
}
  0x17   :  { %24 = dma.hbm_to_vmem [thread:$0]  %s22253_s0, 2048, %s19_s18, [#allocation3], %s16931_s20, %s16931_s20, %s16932_s21  }
  0x18   :  { %s16933_s27 = smov [#allocation7]   ;;  %s16934_s29 = smov [#allocation8]  }
  0x19   :  { %s42_s28 = sshll.u32 %s16933_s27, 4  ;;  %s54_s30 = sshll.u32 %s16934_s29, 4  ;;  %s43_s28 = int_to_ptr.vmem [resolvable:$true] %s42_s28  ;;  %s55_s30 = int_to_ptr.vmem [resolvable:$true] %s54_s30 }
  0x1a   :  { %s16881_s1 = scalar_lea.vmem %s43_s28, 2048  ;;  %p16886_p11 = scmp.lt.s32.totalorder %s43_s28, %s43_s28 }
  0x1b   :  { %p16882_p10 = scmp.ne.s32.totalorder %s43_s28, %s16881_s1  ;;  %p16887_p12 = scmp.lt.s32.totalorder %s16881_s1, %s16881_s1 }
  0x1d   :  { %p16888_p13 = por %p16887_p12, %p16886_p11 }
  0x1f   :  { %p16889_p0 = pnand %p16888_p13, %p16882_p10 }
  0x21   :  { %16892 = shalt.err (!%p16889_p0)
}
  0x22   :  { %48 = dma.hbm_to_vmem [thread:$0]  %s22255_s2, 2048, %s43_s28, [#allocation6], %s16931_s20, %s16931_s20, %s16932_s21  }
  0x23   :  { %s16901_s0 = scalar_lea.vmem %s55_s30, 2048  ;;  %p16906_p2 = scmp.lt.s32.totalorder %s55_s30, %s55_s30 }
  0x24   :  { %p16902_p1 = scmp.ne.s32.totalorder %s55_s30, %s16901_s0  ;;  %p16907_p3 = scmp.lt.s32.totalorder %s16901_s0, %s16901_s0 }
  0x26   :  { %p16908_p4 = por %p16907_p3, %p16906_p2 }
  0x28   :  { %p16909_p5 = pnand %p16908_p4, %p16902_p1 }
  0x2a   :  { %16912 = shalt.err (!%p16909_p5)
}
  0x2b   :  { %60 = dma.hbm_to_vmem [thread:$0]  %s22256_s3, 2048, %s55_s30, [#allocation9], %s16931_s20, %s16931_s20, %s16932_s21  }
  0x2c   :  { %16921 = dma.done.wait [#allocation3], 2048  }
  0x2d   :  { %16922 = vsyncadd [#allocation3], 4294965248 }
  0x2e   :  { %16923 = dma.done.wait [#allocation6], 2304  }
  0x2f   :  { %16924 = vsyncadd [#allocation6], 4294964992 }
  0x30   :  { %16925 = dma.done.wait [#allocation9], 2048  }
  0x31   :  { %16926 = vsyncadd [#allocation9], 4294965248  ;;  %v106_v0 = vld [vmem:[#allocation7 + $0x78] sm:$0xff]  ;;  %v105_v1 = vld [vmem:[#allocation7 + $0x70] sm:$0xff]  ;;  %vm1409_vm0 = vcmask 130048   ;;  %s16935_s3 = smov [#allocation10]  }
  0x32   :  { %v104_v2 = vld [vmem:[#allocation7 + $0x68] sm:$0xff]  ;;  %v16985_v3 = vand.u32 4294901760, %v106_v0  ;;  %v16987_v4 = vand.u32 4294901760, %v105_v1  ;;  %v103_v6 = vld [vmem:[#allocation7 + $0x60] sm:$0xff]  ;;  %v102_v7 = vld [vmem:[#allocation7 + $0x58] sm:$0xff] }
  0x33   :  { %v16989_v5 = vand.u32 4294901760, %v104_v2  ;;  %v101_v8 = vld [vmem:[#allocation7 + $0x50] sm:$0xff]  ;;  %v16991_v9 = vand.u32 4294901760, %v103_v6  ;;  %v16993_v10 = vand.u32 4294901760, %v102_v7  ;;  %v100_v12 = vld [vmem:[#allocation7 + $0x48] sm:$0xff]  ;;  %v99_v13 = vld [vmem:[#allocation7 + $0x40] sm:$0xff] }
  0x34   :  { %v16995_v11 = vand.u32 4294901760, %v101_v8  ;;  %14208 = vmatprep.subr.mxu0 %v16985_v3  ;;  %v16999_v14 = vsub.f32 %v106_v0, %v16985_v3  ;;  %v17002_v15 = vsub.f32 %v105_v1, %v16987_v4  ;;  %v17004_v16 = vand.u32 4294901760, %v100_v12  ;;  %v98_v18 = vld [vmem:[#allocation7 + $0x38] sm:$0xff]  ;;  %v97_v25 = vld [vmem:[#allocation7 + $0x30] sm:$0xff]  ;;  %v96_v35 = vld [vmem:[#allocation7 + $0x28] sm:$0xff] }
  0x35   :  { %v17007_v17 = vsub.f32 %v104_v2, %v16989_v5  ;;  %14209 = vmatpush3.msra.mxu0 %v16985_v3  ;;  %v17011_v19 = vsub.f32 %v103_v6, %v16991_v9  ;;  %v17014_v20 = vsub.f32 %v102_v7, %v16993_v10  ;;  %v17026_v24 = vand.u32 4294901760, %v99_v13  ;;  %v95_v40 = vld [vmem:[#allocation7 + $0x20] sm:$0xff]  ;;  %v73_v47 = vld [vmem:[#allocation2] sm:$0xff]  ;;  %v74_v49 = vld [vmem:[#allocation2 + $0x8] sm:$0xff] }
  0x36   :  { %14210 = vmatprep.subr.mxu0 %v16987_v4  ;;  %v17018_v21 = vand.u32 4294901760, %v16999_v14  ;;  %v17021_v22 = vand.u32 4294901760, %v17002_v15  ;;  %v17032_v27 = vand.u32 4294901760, %v98_v18  ;;  %v17038_v29 = vsub.f32 %v101_v8, %v16995_v11  ;;  %v94_v53 = vld [vmem:[#allocation7 + $0x18] sm:$0xff]  ;;  %v93_v59 = vld [vmem:[#allocation7 + $0x10] sm:$0xff]  ;;  %v75_v63 = vld [vmem:[#allocation2 + $0x10] sm:$0xff] }
  0x37   :  { %v17024_v23 = vand.u32 4294901760, %v17007_v17  ;;  %14211 = vmatpush3.msra.mxu0 %v16987_v4  ;;  %v17030_v26 = vand.u32 4294901760, %v17011_v19  ;;  %v17035_v28 = vand.u32 4294901760, %v17014_v20  ;;  %v17048_v33 = vsub.f32 %v100_v12, %v17004_v16  ;;  %v92_v6 = vld [vmem:[#allocation7 + $0x8] sm:$0xff] }
  0x38   :  { %22577 = vst [vmem:[#allocation15_spill] sm:$0xff] %v17021_v22  ;;  %14212 = vmatprep.subr.mxu0 %v16989_v5  ;;  %v368_v30 = vsub.f32 %v16999_v14, %v17018_v21  ;;  %v375_v31 = vsub.f32 %v17002_v15, %v17021_v22  ;;  %v17051_v34 = vand.u32 4294901760, %v97_v25  ;;  %v17057_v39 = vand.u32 4294901760, %v17038_v29 }
  0x39   :  { %22578 = vst [vmem:[#allocation16_spill] sm:$0xff] %v17024_v23  ;;  %22579 = vst [vmem:[#allocation17_spill] sm:$0xff] %v17030_v26  ;;  %v382_v32 = vsub.f32 %v17007_v17, %v17024_v23  ;;  %14213 = vmatpush3.msra.mxu0 %v16989_v5  ;;  %v389_v38 = vsub.f32 %v17011_v19, %v17030_v26  ;;  %v17061_v41 = vand.u32 4294901760, %v17048_v33  ;;  %v17069_v45 = vand.u32 4294901760, %v96_v35 }
  0x3a   :  { %22580 = vst [vmem:[#allocation18_spill] sm:$0xff] %v17035_v28  ;;  %14214 = vmatprep.subr.mxu0 %v16991_v9  ;;  %v369_v36 = vand.u32 4294901760, %v368_v30  ;;  %v376_v37 = vand.u32 4294901760, %v375_v31  ;;  %22581 = vst [vmem:[#allocation19_spill] sm:$0xff] %v17057_v39  ;;  %v17064_v42 = vsub.f32 %v99_v13, %v17026_v24  ;;  %v396_v44 = vsub.f32 %v17014_v20, %v17035_v28  ;;  %v91_v31 = vld [vmem:[#allocation7] sm:$0xff] }
  0x3b   :  { %14215 = vmatpush3.msra.mxu0 %v16991_v9  ;;  %22582 = vst [vmem:[#allocation20_spill] sm:$0xff] %v17061_v41  ;;  %v383_v43 = vand.u32 4294901760, %v382_v32  ;;  %v17072_v46 = vsub.f32 %v98_v18, %v17032_v27  ;;  %v17075_v48 = vand.u32 4294901760, %v95_v40  ;;  %v390_v50 = vand.u32 4294901760, %v389_v38  ;;  %v76_v18 = vld [vmem:[#allocation2 + $0x18] sm:$0xff] }
  0x3c   :  { %14216 = vmatprep.subr.mxu0 %v16993_v10  ;;  %14264 = vmatprep.subr.mxu1 %v369_v36  ;;  %v403_v51 = vsub.f32 %v17038_v29, %v17057_v39  ;;  %v17081_v52 = vand.u32 4294901760, %v17064_v42  ;;  %v17084_v54 = vsub.f32 %v97_v25, %v17051_v34  ;;  %v410_v55 = vsub.f32 %v17048_v33, %v17061_v41  ;;  %v79_v41 = vld [vmem:[#allocation2 + $0x30] sm:$0xff] }
  0x3d   :  { %14217 = vmatpush3.msra.mxu0 %v16993_v10  ;;  %14265 = vmatpush3.msra.mxu1 %v369_v36  ;;  %v17089_v56 = vand.u32 4294901760, %v73_v47  ;;  %v397_v57 = vand.u32 4294901760, %v396_v44  ;;  %v17093_v58 = vand.u32 4294901760, %v17072_v46  ;;  %v17096_v60 = vsub.f32 %v96_v35, %v17069_v45 }
  0x3e   :  { %14218 = vmatprep.subr.mxu0 %v16995_v11  ;;  %14266 = vmatprep.subr.mxu1 %v376_v37  ;;  %22583 = vst [vmem:[#allocation21_spill] sm:$0xff] %v17081_v52  ;;  %v17098_v61 = vand.u32 4294901760, %v74_v49  ;;  %v17101_v62 = vand.u32 4294901760, %v94_v53  ;;  %v404_v0 = vand.u32 4294901760, %v403_v51  ;;  %v417_v1 = vsub.f32 %v17064_v42, %v17081_v52 }
  0x3f   :  { %14219 = vmatpush3.msra.mxu0 %v16995_v11  ;;  %14267 = vmatpush3.msra.mxu1 %v376_v37  ;;  %22584 = vst [vmem:[#allocation22_spill] sm:$0xff] %v17089_v56  ;;  %22585 = vst [vmem:[#allocation23_spill] sm:$0xff] %v17093_v58  ;;  %v17107_v2 = vand.u32 4294901760, %v17084_v54  ;;  %v17110_v7 = vsub.f32 %v95_v40, %v17075_v48  ;;  %v411_v8 = vand.u32 4294901760, %v410_v55  ;;  %v17113_v12 = vand.u32 4294901760, %v93_v59 }
  0x40   :  { %14220 = vmatprep.subr.mxu0 %v17004_v16  ;;  %14268 = vmatprep.subr.mxu1 %v383_v43  ;;  %22586 = vst [vmem:[#allocation24_spill] sm:$0xff] %v17098_v61  ;;  %v17116_v13 = vsub.f32 %v73_v47, %v17089_v56  ;;  %v424_v25 = vsub.f32 %v17072_v46, %v17093_v58  ;;  %v17122_v30 = vand.u32 4294901760, %v17096_v60  ;;  %v17127_v35 = vand.u32 4294901760, %v75_v63  ;;  %v77_v47 = vld [vmem:[#allocation2 + $0x20] sm:$0xff] }
  0x41   :  { %14221 = vmatpush3.msra.mxu0 %v17004_v16  ;;  %14269 = vmatpush3.msra.mxu1 %v383_v43  ;;  %22587 = vst [vmem:[#allocation25_spill] sm:$0xff] %v17107_v2  ;;  %v17125_v32 = vsub.f32 %v74_v49, %v17098_v61  ;;  %v17130_v36 = vand.u32 4294901760, %v92_v6  ;;  %v17133_v37 = vsub.f32 %v94_v53, %v17101_v62  ;;  %v418_v38 = vand.u32 4294901760, %v417_v1  ;;  %v78_v1 = vld [vmem:[#allocation2 + $0x28] sm:$0xff] }
  0x42   :  { %14222 = vmatprep.subr.mxu0 %v17026_v24  ;;  %14270 = vmatprep.subr.mxu1 %v390_v50  ;;  %22588 = vst [vmem:[#allocation26_spill] sm:$0xff] %v17116_v13  ;;  %22589 = vst [vmem:[#allocation27_spill] sm:$0xff] %v17122_v30  ;;  %v431_v40 = vsub.f32 %v17084_v54, %v17107_v2  ;;  %v17139_v43 = vand.u32 4294901760, %v17110_v7  ;;  %v17141_v44 = vand.u32 4294901760, %v76_v18  ;;  %v17144_v49 = vand.u32 4294901760, %v91_v31 }
  0x43   :  { %14223 = vmatpush3.msra.mxu0 %v17026_v24  ;;  %14271 = vmatpush3.msra.mxu1 %v390_v50  ;;  %22590 = vst [vmem:[#allocation28_spill] sm:$0xff] %v17125_v32  ;;  %22591 = vst [vmem:[#allocation29_spill] sm:$0xff] %v17127_v35  ;;  %v17147_v50 = vand.u32 4294901760, %v17116_v13  ;;  %v17150_v51 = vsub.f32 %v93_v59, %v17113_v12  ;;  %v425_v53 = vand.u32 4294901760, %v424_v25  ;;  %v17163_v59 = vand.u32 4294901760, %v17133_v37 }
  0x44   :  { %14224 = vmatprep.subr.mxu0 %v17032_v27  ;;  %14272 = vmatprep.subr.mxu1 %v397_v57  ;;  %22592 = vst [vmem:[#allocation30_spill] sm:$0xff] %v17130_v36  ;;  %22593 = vst [vmem:[#allocation31_spill] sm:$0xff] %v17139_v43  ;;  %v438_v55 = vsub.f32 %v17096_v60, %v17122_v30  ;;  %v17166_v2 = vsub.f32 %v92_v6, %v17130_v36  ;;  %v17168_v25 = vand.u32 4294901760, %v77_v47 }
  0x45   :  { %14225 = vmatpush3.msra.mxu0 %v17032_v27  ;;  %14273 = vmatpush3.msra.mxu1 %v397_v57  ;;  %22594 = vst [vmem:[#allocation32_spill] sm:$0xff] %v17141_v44  ;;  %22595 = vst [vmem:[#allocation33_spill] sm:$0xff] %v17144_v49  ;;  %v17156_v57 = vand.u32 4294901760, %v17125_v32  ;;  %v432_v30 = vand.u32 4294901760, %v431_v40  ;;  %v17174_v58 = vsub.f32 %v76_v18, %v17141_v44  ;;  %v17180_v6 = vand.u32 4294901760, %v17150_v51 }
  0x46   :  { %14226 = vmatprep.subr.mxu0 %v17051_v34  ;;  %14274 = vmatprep.subr.mxu1 %v404_v0  ;;  %22596 = vst [vmem:[#allocation34_spill] sm:$0xff] %v17147_v50  ;;  %22599 = vst [vmem:[#allocation37_spill] sm:$0xff] %v17163_v59  ;;  %v17182_v52 = vand.u32 4294901760, %v78_v1  ;;  %v439_v40 = vand.u32 4294901760, %v438_v55  ;;  %v452_v39 = vsub.f32 %v17133_v37, %v17163_v59  ;;  %v17197_v28 = vand.u32 4294901760, %v17166_v2 }
  0x47   :  { %14227 = vmatpush3.msra.mxu0 %v17051_v34  ;;  %14275 = vmatpush3.msra.mxu1 %v404_v0  ;;  %22597 = vst [vmem:[#allocation35_spill] sm:$0xff] %v17156_v57  ;;  %v17159_v0 = vsub.f32 %v75_v63, %v17127_v35  ;;  %22600 = vst [vmem:[#allocation38_spill] sm:$0xff] %v17168_v25  ;;  %v445_v63 = vsub.f32 %v17110_v7, %v17139_v43 }
  0x48   :  { %14228 = vmatprep.subr.mxu0 %v17069_v45  ;;  %14276 = vmatprep.subr.mxu1 %v411_v8  ;;  %22601 = vst [vmem:[#allocation39_spill] sm:$0xff] %v17174_v58  ;;  %22602 = vst [vmem:[#allocation40_spill] sm:$0xff] %v17180_v6  ;;  %v217_v43 = vsub.f32 %v17125_v32, %v17156_v57  ;;  %v17200_v55 = vsub.f32 %v77_v47, %v17168_v25  ;;  %v17214_v47 = vand.u32 4294901760, %v79_v41 }
  0x49   :  { %22598 = vst [vmem:[#allocation36_spill] sm:$0xff] %v17159_v0  ;;  %14229 = vmatpush3.msra.mxu0 %v17069_v45  ;;  %14277 = vmatpush3.msra.mxu1 %v411_v8  ;;  %v207_v8 = vsub.f32 %v17116_v13, %v17147_v50  ;;  %22603 = vst [vmem:[#allocation41_spill] sm:$0xff] %v17182_v52  ;;  %v17188_v18 = vand.u32 4294901760, %v17159_v0  ;;  %v446_v57 = vand.u32 4294901760, %v445_v63  ;;  %v80_v50 = vld [vmem:[#allocation2 + $0x38] sm:$0xff] }
  0x4a   :  { %14230 = vmatprep.subr.mxu0 %v17075_v48  ;;  %14278 = vmatprep.subr.mxu1 %v418_v38  ;;  %22605 = vst [vmem:[#allocation43_spill] sm:$0xff] %v17197_v28  ;;  %22606 = vst [vmem:[#allocation44_spill] sm:$0xff] %v17200_v55  ;;  %v459_v59 = vsub.f32 %v17150_v51, %v17180_v6  ;;  %v17212_v26 = vsub.f32 %v78_v1, %v17182_v52  ;;  %v17217_v63 = vand.u32 4294901760, %v217_v43 }
  0x4b   :  { %14231 = vmatpush3.msra.mxu0 %v17075_v48  ;;  %14279 = vmatpush3.msra.mxu1 %v418_v38  ;;  %22604 = vst [vmem:[#allocation42_spill] sm:$0xff] %v17188_v18  ;;  %v17191_v38 = vsub.f32 %v91_v31, %v17144_v49  ;;  %v17204_v31 = vand.u32 4294901760, %v17174_v58  ;;  %22610 = vst [vmem:[#allocation48_spill] sm:$0xff] %v17214_v47  ;;  %v227_v23 = vsub.f32 %v17159_v0, %v17188_v18  ;;  %v81_v18 = vld [vmem:[#allocation2 + $0x40] sm:$0xff] }
  0x4c   :  { %14232 = vmatprep.subr.mxu0 %v17101_v62  ;;  %14280 = vmatprep.subr.mxu1 %v425_v53  ;;  %22609 = vst [vmem:[#allocation47_spill] sm:$0xff] %v17212_v26  ;;  %22611 = vst [vmem:[#allocation49_spill] sm:$0xff] %v17217_v63  ;;  %v466_v1 = vsub.f32 %v17166_v2, %v17197_v28  ;;  %v17228_v6 = vand.u32 4294901760, %v17200_v55  ;;  %v17230_v22 = vand.u32 4294901760, %v80_v50 }
  0x4d   :  { %14233 = vmatpush3.msra.mxu0 %v17101_v62  ;;  %14281 = vmatpush3.msra.mxu1 %v425_v53  ;;  %22607 = vst [vmem:[#allocation45_spill] sm:$0xff] %v17204_v31  ;;  %v17207_v53 = vand.u32 4294901760, %v207_v8  ;;  %v453_v8 = vand.u32 4294901760, %v452_v39  ;;  %v237_v43 = vsub.f32 %v17174_v58, %v17204_v31  ;;  %v460_v39 = vand.u32 4294901760, %v459_v59  ;;  %v82_v58 = vld [vmem:[#allocation2 + $0x48] sm:$0xff] }
  0x4e   :  { %14234 = vmatprep.subr.mxu0 %v17113_v12  ;;  %14282 = vmatprep.subr.mxu1 %v432_v30  ;;  %22613 = vst [vmem:[#allocation51_spill] sm:$0xff] %v17228_v6  ;;  %22614 = vst [vmem:[#allocation52_spill] sm:$0xff] %v17230_v22  ;;  %v17241_v28 = vsub.f32 %v79_v41, %v17214_v47  ;;  %v247_v59 = vsub.f32 %v17200_v55, %v17228_v6  ;;  %v17254_v41 = vand.u32 4294901760, %v81_v18 }
  0x4f   :  { %14235 = vmatpush3.msra.mxu0 %v17113_v12  ;;  %14283 = vmatpush3.msra.mxu1 %v432_v30  ;;  %22608 = vst [vmem:[#allocation46_spill] sm:$0xff] %v17207_v53  ;;  %v17222_v30 = vand.u32 4294901760, %v17191_v38 }
  0x50   :  { %14236 = vmatprep.subr.mxu0 %v17130_v36  ;;  %14284 = vmatprep.subr.mxu1 %v439_v40  ;;  %22616 = vst [vmem:[#allocation54_spill] sm:$0xff] %v17241_v28  ;;  %22619 = vst [vmem:[#allocation57_spill] sm:$0xff] %v17254_v41 }
  0x51   :  { %22612 = vst [vmem:[#allocation50_spill] sm:$0xff] %v17222_v30  ;;  %14237 = vmatpush3.msra.mxu0 %v17130_v36  ;;  %14285 = vmatpush3.msra.mxu1 %v439_v40  ;;  %v17238_v40 = vand.u32 4294901760, %v17212_v26  ;;  %v17244_v36 = vand.u32 4294901760, %v227_v23  ;;  %v473_v31 = vsub.f32 %v17191_v38, %v17222_v30  ;;  %v17257_v23 = vand.u32 4294901760, %v237_v43 }
  0x52   :  { %14238 = vmatprep.subr.mxu0 %v17144_v49  ;;  %14286 = vmatprep.subr.mxu1 %v446_v57  ;;  %v17275_v30 = vsub.f32 %v81_v18, %v17254_v41 }
  0x53   :  { %14239 = vmatpush3.msra.mxu0 %v17144_v49  ;;  %14240 = vmatprep.mubr.f32.mxu0 %v17207_v53  ;;  %22615 = vst [vmem:[#allocation53_spill] sm:$0xff] %v17238_v40  ;;  %22617 = vst [vmem:[#allocation55_spill] sm:$0xff] %v17244_v36  ;;  %v467_v53 = vand.u32 4294901760, %v466_v1  ;;  %v17252_v49 = vsub.f32 %v80_v50, %v17230_v22  ;;  %v17263_v1 = vand.u32 4294901760, %v17241_v28  ;;  %v474_v50 = vand.u32 4294901760, %v473_v31 }
  0x54   :  { %14287 = vmatpush3.msra.mxu1 %v446_v57  ;;  %14241 = vmatmul.mubr.f32.vlgmr.msra.gmra.mxu0 %v17217_v63  ;;  %22620 = vst [vmem:[#allocation58_spill] sm:$0xff] %v17257_v23  ;;  %v257_v57 = vsub.f32 %v17212_v26, %v17238_v40  ;;  %v17265_v63 = vand.u32 4294901760, %v82_v58  ;;  %22625 = vst [vmem:[#allocation63_spill] sm:$0xff] %v17275_v30  ;;  %v84_v40 = vld [vmem:[#allocation2 + $0x58] sm:$0xff] }
  0x55   :  { %14288 = vmatprep.subr.mxu1 %v453_v8  ;;  %14320 = vmatprep.subr.mxu0 %v16999_v14  ;;  %22618 = vst [vmem:[#allocation56_spill] sm:$0xff] %v17252_v49  ;;  %22621 = vst [vmem:[#allocation59_spill] sm:$0xff] %v17263_v1  ;;  %v17272_v43 = vand.u32 4294901760, %v17252_v49 }
  0x56   :  { %14289 = vmatpush3.msra.mxu1 %v453_v8  ;;  %14321 = vmatpush3.msra.mxu0 %v16999_v14  ;;  %22622 = vst [vmem:[#allocation60_spill] sm:$0xff] %v17265_v63  ;;  %v83_v8 = vld [vmem:[#allocation2 + $0x50] sm:$0xff]  ;;  %v17269_v14 = vand.u32 4294901760, %v247_v59  ;;  %v17280_v31 = vand.u32 4294901760, %v257_v57 }
  0x57   :  { %14290 = vmatprep.subr.mxu1 %v460_v39  ;;  %14322 = vmatprep.subr.mxu0 %v17002_v15  ;;  %22624 = vst [vmem:[#allocation62_spill] sm:$0xff] %v17272_v43  ;;  %v17287_v59 = vand.u32 4294901760, %v83_v8  ;;  %v277_v18 = vsub.f32 %v17252_v49, %v17272_v43 }
  0x58   :  { %14243 = vmatprep.mubr.f32.mxu0 %v17244_v36  ;;  %14291 = vmatpush3.msra.mxu1 %v460_v39  ;;  %22623 = vst [vmem:[#allocation61_spill] sm:$0xff] %v17269_v14  ;;  %22626 = vst [vmem:[#allocation64_spill] sm:$0xff] %v17280_v31  ;;  %v17285_v39 = vsub.f32 %v82_v58, %v17265_v63  ;;  %v85_v58 = vld [vmem:[#allocation2 + $0x60] sm:$0xff] }
  0x59   :  { %14323 = vmatpush3.msra.mxu0 %v17002_v15  ;;  %14292 = vmatprep.subr.mxu1 %v467_v53  ;;  %v267_v15 = vsub.f32 %v17241_v28, %v17263_v1  ;;  %22628 = vst [vmem:[#allocation66_spill] sm:$0xff] %v17287_v59  ;;  %v17321_v36 = vand.u32 4294901760, %v85_v58 }
  0x5a   :  { %14244 = vmatmul.mubr.f32.gmra.mxu0 %v17257_v23  ;;  %14324 = vmatprep.subr.mxu0 %v17007_v17  ;;  %22627 = vst [vmem:[#allocation65_spill] sm:$0xff] %v17285_v39  ;;  %v86_v23 = vld [vmem:[#allocation2 + $0x68] sm:$0xff] }
  0x5b   :  { %14293 = vmatpush3.msra.mxu1 %v467_v53  ;;  %14325 = vmatpush3.msra.mxu0 %v17007_v17  ;;  %v17294_v17 = vand.u32 4294901760, %v17275_v30  ;;  %v17296_v53 = vand.u32 4294901760, %v84_v40  ;;  %v17302_v57 = vand.u32 4294901760, %v267_v15  ;;  %22636 = vst [vmem:[#allocation74_spill] sm:$0xff] %v17321_v36 }
  0x5c   :  { %14294 = vmatprep.subr.mxu1 %v474_v50  ;;  %14326 = vmatprep.subr.mxu0 %v17011_v19 }
  0x5d   :  { %14246 = vmatprep.mubr.f32.mxu0 %v17269_v14  ;;  %14295 = vmatpush3.msra.mxu1 %v474_v50  ;;  %22629 = vst [vmem:[#allocation67_spill] sm:$0xff] %v17294_v17  ;;  %22630 = vst [vmem:[#allocation68_spill] sm:$0xff] %v17296_v53  ;;  %v17305_v50 = vand.u32 4294901760, %v17285_v39  ;;  %v17308_v14 = vsub.f32 %v83_v8, %v17287_v59  ;;  %v287_v15 = vsub.f32 %v17275_v30, %v17294_v17 }
  0x5e   :  { %14296 = vmatprep.mubr.f32.mxu1 %v17089_v56  ;;  %14327 = vmatpush3.msra.mxu0 %v17011_v19  ;;  %22631 = vst [vmem:[#allocation69_spill] sm:$0xff] %v17302_v57  ;;  %v17314_v19 = vand.u32 4294901760, %v277_v18  ;;  %v17332_v18 = vand.u32 4294901760, %v86_v23 }
  0x5f   :  { %14247 = vmatmul.mubr.f32.gmra.mxu0 %v17280_v31  ;;  %14297 = vmatmul.mubr.f32.vlgmr.msra.gmra.mxu1 %v17098_v61  ;;  %22632 = vst [vmem:[#allocation70_spill] sm:$0xff] %v17305_v50  ;;  %22633 = vst [vmem:[#allocation71_spill] sm:$0xff] %v17308_v14  ;;  %v17319_v31 = vsub.f32 %v84_v40, %v17296_v53  ;;  %v17330_v8 = vand.u32 4294901760, %v17308_v14  ;;  %v87_v40 = vld [vmem:[#allocation2 + $0x70] sm:$0xff]  ;;  %v17344_v61 = vsub.f32 %v85_v58, %v17321_v36 }
  0x60   :  { %14328 = vmatprep.subr.mxu0 %v17014_v20  ;;  %14376 = vmatprep.subr.mxu1 %v16985_v3  ;;  %22634 = vst [vmem:[#allocation72_spill] sm:$0xff] %v17314_v19  ;;  %22638 = vst [vmem:[#allocation76_spill] sm:$0xff] %v17332_v18  ;;  %v17357_v56 = vand.u32 4294901760, %v87_v40 }
  0x61   :  { %14329 = vmatpush3.msra.mxu0 %v17014_v20  ;;  %14377 = vmatpush3.msra.mxu1 %v16985_v3  ;;  %22635 = vst [vmem:[#allocation73_spill] sm:$0xff] %v17319_v31  ;;  %v297_v20 = vsub.f32 %v17285_v39, %v17305_v50  ;;  %22637 = vst [vmem:[#allocation75_spill] sm:$0xff] %v17330_v8  ;;  %v17366_v58 = vand.u32 4294901760, %v17344_v61 }
  0x62   :  { %14330 = vmatprep.subr.mxu0 %v17038_v29  ;;  %14378 = vmatprep.subr.mxu1 %v16987_v4  ;;  %22641 = vst [vmem:[#allocation79_spill] sm:$0xff] %v17344_v61  ;;  %22644 = vst [vmem:[#allocation82_spill] sm:$0xff] %v17357_v56 }
  0x63   :  { %14249 = vmatprep.mubr.f32.mxu0 %v17302_v57  ;;  %14299 = vmatprep.mubr.f32.mxu1 %v17127_v35  ;;  %v17338_v57 = vand.u32 4294901760, %v287_v15  ;;  %v17341_v35 = vand.u32 4294901760, %v17319_v31  ;;  %v307_v15 = vsub.f32 %v17308_v14, %v17330_v8  ;;  %22645 = vst [vmem:[#allocation83_spill] sm:$0xff] %v17366_v58 }
  0x64   :  { %14331 = vmatpush3.msra.mxu0 %v17038_v29  ;;  %14379 = vmatpush3.msra.mxu1 %v16987_v4  ;;  %v88_v29 = vld [vmem:[#allocation2 + $0x78] sm:$0xff] }
  0x65   :  { %14250 = vmatmul.mubr.f32.gmra.mxu0 %v17314_v19  ;;  %14300 = vmatmul.mubr.f32.gmra.mxu1 %v17141_v44  ;;  %22639 = vst [vmem:[#allocation77_spill] sm:$0xff] %v17338_v57  ;;  %22640 = vst [vmem:[#allocation78_spill] sm:$0xff] %v17341_v35  ;;  %v17350_v19 = vand.u32 4294901760, %v297_v20  ;;  %v17355_v44 = vsub.f32 %v86_v23, %v17332_v18  ;;  %v17368_v20 = vand.u32 4294901760, %v88_v29  ;;  %v17374_v23 = vand.u32 4294901760, %v307_v15 }
  0x66   :  { %14332 = vmatprep.subr.mxu0 %v17048_v33  ;;  %14380 = vmatprep.subr.mxu1 %v16989_v5  ;;  %v327_v15 = vsub.f32 %v17344_v61, %v17366_v58 }
  0x67   :  { %14333 = vmatpush3.msra.mxu0 %v17048_v33  ;;  %14381 = vmatpush3.msra.mxu1 %v16989_v5  ;;  %22642 = vst [vmem:[#allocation80_spill] sm:$0xff] %v17350_v19  ;;  %22643 = vst [vmem:[#allocation81_spill] sm:$0xff] %v17355_v44  ;;  %v317_v33 = vsub.f32 %v17319_v31, %v17341_v35 }
  0x68   :  { %14334 = vmatprep.subr.mxu0 %v17064_v42  ;;  %14382 = vmatprep.subr.mxu1 %v16991_v9  ;;  %22646 = vst [vmem:[#allocation84_spill] sm:$0xff] %v17368_v20  ;;  %22647 = vst [vmem:[#allocation85_spill] sm:$0xff] %v17374_v23 }
  0x69   :  { %14252 = vmatprep.mubr.f32.mxu0 %v17338_v57  ;;  %14302 = vmatprep.mubr.f32.mxu1 %v17168_v25  ;;  %v17377_v57 = vand.u32 4294901760, %v17355_v44  ;;  %v17380_v25 = vsub.f32 %v87_v40, %v17357_v56 }
  0x6a   :  { %14335 = vmatpush3.msra.mxu0 %v17064_v42  ;;  %14383 = vmatpush3.msra.mxu1 %v16991_v9  ;;  %v17386_v42 = vand.u32 4294901760, %v317_v33 }
  0x6b   :  { %14253 = vmatmul.mubr.f32.gmra.mxu0 %v17350_v19  ;;  %14303 = vmatmul.mubr.f32.gmra.mxu1 %v17182_v52  ;;  %22648 = vst [vmem:[#allocation86_spill] sm:$0xff] %v17377_v57  ;;  %22649 = vst [vmem:[#allocation87_spill] sm:$0xff] %v17380_v25  ;;  %v17391_v19 = vsub.f32 %v88_v29, %v17368_v20  ;;  %v17400_v40 = vand.u32 4294901760, %v17380_v25  ;;  %v17406_v29 = vand.u32 4294901760, %v327_v15 }
  0x6c   :  { %14336 = vmatprep.subr.mxu0 %v17072_v46  ;;  %14384 = vmatprep.subr.mxu1 %v16993_v10  ;;  %22650 = vst [vmem:[#allocation88_spill] sm:$0xff] %v17386_v42 }
  0x6d   :  { %14337 = vmatpush3.msra.mxu0 %v17072_v46  ;;  %14385 = vmatpush3.msra.mxu1 %v16993_v10  ;;  %22651 = vst [vmem:[#allocation89_spill] sm:$0xff] %v17391_v19  ;;  %v337_v46 = vsub.f32 %v17355_v44, %v17377_v57  ;;  %22652 = vst [vmem:[#allocation90_spill] sm:$0xff] %v17400_v40  ;;  %v17409_v33 = vand.u32 4294901760, %v17391_v19 }
  0x6e   :  { %14338 = vmatprep.subr.mxu0 %v17084_v54  ;;  %14386 = vmatprep.subr.mxu1 %v16995_v11  ;;  %22653 = vst [vmem:[#allocation91_spill] sm:$0xff] %v17406_v29 }
  0x6f   :  { %14255 = vmatprep.mubr.f32.mxu0 %v17374_v23  ;;  %14305 = vmatprep.mubr.f32.mxu1 %v17214_v47  ;;  %22654 = vst [vmem:[#allocation92_spill] sm:$0xff] %v17409_v33  ;;  %v357_v15 = vsub.f32 %v17391_v19, %v17409_v33 }
  0x70   :  { %14339 = vmatpush3.msra.mxu0 %v17084_v54  ;;  %14387 = vmatpush3.msra.mxu1 %v16995_v11  ;;  %v17415_v54 = vand.u32 4294901760, %v337_v46 }
  0x71   :  { %14256 = vmatmul.mubr.f32.gmra.mxu0 %v17386_v42  ;;  %14306 = vmatmul.mubr.f32.gmra.mxu1 %v17230_v22  ;;  %v347_v42 = vsub.f32 %v17380_v25, %v17400_v40  ;;  %v17435_v46 = vand.u32 4294901760, %v357_v15  ;;  %v22665_v15 = vld [vmem:[#allocation35_spill] sm:$0xff] }
  0x72   :  { %14340 = vmatprep.subr.mxu0 %v17096_v60  ;;  %14388 = vmatprep.subr.mxu1 %v17004_v16  ;;  %22655 = vst [vmem:[#allocation93_spill] sm:$0xff] %v17415_v54 }
  0x73   :  { %14341 = vmatpush3.msra.mxu0 %v17096_v60  ;;  %14389 = vmatpush3.msra.mxu1 %v17004_v16  ;;  %v17429_v60 = vand.u32 4294901760, %v347_v42  ;;  %22657 = vst [vmem:[#allocation95_spill] sm:$0xff] %v17435_v46  ;;  %v22664_v42 = vld [vmem:[#allocation34_spill] sm:$0xff] }
  0x74   :  { %14342 = vmatprep.subr.mxu0 %v17110_v7  ;;  %14390 = vmatprep.subr.mxu1 %v17026_v24 }
  0x75   :  { %14258 = vmatprep.mubr.f32.mxu0 %v17406_v29  ;;  %14308 = vmatprep.mubr.f32.mxu1 %v17254_v41  ;;  %22656 = vst [vmem:[#allocation94_spill] sm:$0xff] %v17429_v60 }
  0x76   :  { %14343 = vmatpush3.msra.mxu0 %v17110_v7  ;;  %14391 = vmatpush3.msra.mxu1 %v17026_v24  ;;  %v22659_v7 = vld [vmem:[#allocation39_spill] sm:$0xff] }
  0x77   :  { %14259 = vmatmul.mubr.f32.gmra.mxu0 %v17415_v54  ;;  %14309 = vmatmul.mubr.f32.gmra.mxu1 %v17265_v63 }
  0x78   :  { %14344 = vmatprep.subr.mxu0 %v17133_v37  ;;  %14392 = vmatprep.subr.mxu1 %v17032_v27 }
  0x79   :  { %14345 = vmatpush3.msra.mxu0 %v17133_v37  ;;  %14393 = vmatpush3.msra.mxu1 %v17032_v27  ;;  %v22660_v37 = vld [vmem:[#allocation30_spill] sm:$0xff] }
  0x7a   :  { %14346 = vmatprep.subr.mxu0 %v17150_v51  ;;  %14394 = vmatprep.subr.mxu1 %v17051_v34 }
  0x7b   :  { %14261 = vmatprep.mubr.f32.mxu0 %v17429_v60  ;;  %14311 = vmatprep.mubr.f32.mxu1 %v17287_v59 }
  0x7c   :  { %14347 = vmatpush3.msra.mxu0 %v17150_v51  ;;  %14395 = vmatpush3.msra.mxu1 %v17051_v34  ;;  %v22661_v51 = vld [vmem:[#allocation16_spill] sm:$0xff] }
  0x7d   :  { %14262 = vmatmul.mubr.f32.gmra.mxu0 %v17435_v46  ;;  %14312 = vmatmul.mubr.f32.gmra.mxu1 %v17296_v53 }
  0x7e   :  { %14348 = vmatprep.subr.mxu0 %v17166_v2  ;;  %14396 = vmatprep.subr.mxu1 %v17069_v45 }
  0x7f   :  { %14349 = vmatpush3.msra.mxu0 %v17166_v2  ;;  %14397 = vmatpush3.msra.mxu1 %v17069_v45  ;;  %v22658_v2 = vld [vmem:[#allocation15_spill] sm:$0xff] }
  0x80   :  { %14350 = vmatprep.subr.mxu0 %v17191_v38  ;;  %14398 = vmatprep.subr.mxu1 %v17075_v48 }
  0x81   :  { %14314 = vmatprep.mubr.f32.mxu1 %v17321_v36  ;;  %14351 = vmatpush3.msra.mxu0 %v17191_v38  ;;  %v22663_v38 = vld [vmem:[#allocation17_spill] sm:$0xff] }
  0x82   :  { %14352 = vmatprep.mubr.f32.mxu0 %v17116_v13  ;;  %14399 = vmatpush3.msra.mxu1 %v17075_v48 }
  0x83   :  { %14315 = vmatmul.mubr.f32.gmra.mxu1 %v17332_v18  ;;  %14353 = vmatmul.mubr.f32.vlgmr.msra.gmra.mxu0 %v17125_v32 }
  0x84   :  { %14400 = vmatprep.subr.mxu1 %v17101_v62  ;;  %14432 = vmatprep.subr.mxu0 %v17018_v21 }
  0x85   :  { %14401 = vmatpush3.msra.mxu1 %v17101_v62  ;;  %14433 = vmatpush3.msra.mxu0 %v17018_v21  ;;  %v22662_v21 = vld [vmem:[#allocation33_spill] sm:$0xff] }
  0x86   :  { %14402 = vmatprep.subr.mxu1 %v17113_v12  ;;  %14434 = vmatprep.subr.mxu0 %v22658_v2 }
  0x87   :  { %14317 = vmatprep.mubr.f32.mxu1 %v17357_v56  ;;  %14355 = vmatprep.mubr.f32.mxu0 %v17159_v0 }
  0x88   :  { %14403 = vmatpush3.msra.mxu1 %v17113_v12  ;;  %14435 = vmatpush3.msra.mxu0 %v22658_v2  ;;  %v22666_v2 = vld [vmem:[#allocation18_spill] sm:$0xff] }
  0x89   :  { %14318 = vmatmul.mubr.f32.gmra.mxu1 %v17368_v20  ;;  %14356 = vmatmul.mubr.f32.gmra.mxu0 %v22659_v7 }
  0x8a   :  { %14404 = vmatprep.subr.mxu1 %v22660_v37  ;;  %14436 = vmatprep.subr.mxu0 %v22661_v51 }
  0x8b   :  { %14405 = vmatpush3.msra.mxu1 %v22660_v37  ;;  %14437 = vmatpush3.msra.mxu0 %v22661_v51  ;;  %v22667_v51 = vld [vmem:[#allocation19_spill] sm:$0xff] }
  0x8c   :  { %14406 = vmatprep.subr.mxu1 %v22662_v21  ;;  %14438 = vmatprep.subr.mxu0 %v22663_v38 }
  0x8d   :  { %14358 = vmatprep.mubr.f32.mxu0 %v17200_v55  ;;  %14407 = vmatpush3.msra.mxu1 %v22662_v21  ;;  %v22668_v55 = vld [vmem:[#allocation42_spill] sm:$0xff] }
  0x8e   :  { %14408 = vmatprep.mubr.f32.mxu1 %v22664_v42  ;;  %14439 = vmatpush3.msra.mxu0 %v22663_v38  ;;  %v22669_v38 = vld [vmem:[#allocation45_spill] sm:$0xff] }
  0x8f   :  { %14359 = vmatmul.mubr.f32.gmra.mxu0 %v17212_v26  ;;  %14409 = vmatmul.mubr.f32.vlgmr.msra.gmra.mxu1 %v22665_v15  ;;  %v22670_v26 = vld [vmem:[#allocation20_spill] sm:$0xff] }
  0x90   :  { %14440 = vmatprep.subr.mxu0 %v22666_v2  ;;  %14488 = vmatprep.subr.mxu1 %v16985_v3 }
  0x91   :  { %14441 = vmatpush3.msra.mxu0 %v22666_v2  ;;  %14489 = vmatpush3.msra.mxu1 %v16985_v3  ;;  %v22671_v3 = vld [vmem:[#allocation21_spill] sm:$0xff]  ;;  %v22673_v2 = vld [vmem:[#allocation23_spill] sm:$0xff] }
  0x92   :  { %14442 = vmatprep.subr.mxu0 %v22667_v51  ;;  %14490 = vmatprep.subr.mxu1 %v16987_v4 }
  0x93   :  { %14361 = vmatprep.mubr.f32.mxu0 %v17241_v28  ;;  %14411 = vmatprep.mubr.f32.mxu1 %v22668_v55 }
  0x94   :  { %14443 = vmatpush3.msra.mxu0 %v22667_v51  ;;  %14491 = vmatpush3.msra.mxu1 %v16987_v4  ;;  %v22672_v4 = vld [vmem:[#allocation53_spill] sm:$0xff]  ;;  %v22684_v51 = vld [vmem:[#allocation32_spill] sm:$0xff] }
  0x95   :  { %14362 = vmatmul.mubr.f32.gmra.mxu0 %v17252_v49  ;;  %14412 = vmatmul.mubr.f32.gmra.mxu1 %v22669_v38 }
  0x96   :  { %14444 = vmatprep.subr.mxu0 %v22670_v26  ;;  %14492 = vmatprep.subr.mxu1 %v16989_v5 }
  0x97   :  { %14445 = vmatpush3.msra.mxu0 %v22670_v26  ;;  %14493 = vmatpush3.msra.mxu1 %v16989_v5  ;;  %v22674_v5 = vld [vmem:[#allocation25_spill] sm:$0xff]  ;;  %v22680_v26 = vld [vmem:[#allocation50_spill] sm:$0xff] }
  0x98   :  { %14446 = vmatprep.subr.mxu0 %v22671_v3  ;;  %14494 = vmatprep.subr.mxu1 %v16991_v9 }
  0x99   :  { %14364 = vmatprep.mubr.f32.mxu0 %v17275_v30  ;;  %14414 = vmatprep.mubr.f32.mxu1 %v17228_v6 }
  0x9a   :  { %14447 = vmatpush3.msra.mxu0 %v22671_v3  ;;  %14495 = vmatpush3.msra.mxu1 %v16991_v9  ;;  %v22675_v9 = vld [vmem:[#allocation27_spill] sm:$0xff] }
  0x9b   :  { %14365 = vmatmul.mubr.f32.gmra.mxu0 %v17285_v39  ;;  %14415 = vmatmul.mubr.f32.gmra.mxu1 %v22672_v4 }
  0x9c   :  { %14448 = vmatprep.subr.mxu0 %v22673_v2  ;;  %14496 = vmatprep.subr.mxu1 %v16993_v10 }
  0x9d   :  { %14449 = vmatpush3.msra.mxu0 %v22673_v2  ;;  %14497 = vmatpush3.msra.mxu1 %v16993_v10  ;;  %v22676_v10 = vld [vmem:[#allocation31_spill] sm:$0xff] }
  0x9e   :  { %14450 = vmatprep.subr.mxu0 %v22674_v5  ;;  %14498 = vmatprep.subr.mxu1 %v16995_v11 }
  0x9f   :  { %14367 = vmatprep.mubr.f32.mxu0 %v17308_v14  ;;  %14417 = vmatprep.mubr.f32.mxu1 %v17263_v1 }
  0xa0   :  { %14451 = vmatpush3.msra.mxu0 %v22674_v5  ;;  %14499 = vmatpush3.msra.mxu1 %v16995_v11  ;;  %v22677_v11 = vld [vmem:[#allocation37_spill] sm:$0xff] }
  0xa1   :  { %14368 = vmatmul.mubr.f32.gmra.mxu0 %v17319_v31  ;;  %14418 = vmatmul.mubr.f32.gmra.mxu1 %v17272_v43  ;;  %v89_v5 = vld [vmem:[#allocation5] sm:$0xff] }
  0xa2   :  { %14452 = vmatprep.subr.mxu0 %v22675_v9  ;;  %14500 = vmatprep.subr.mxu1 %v17004_v16 }
  0xa3   :  { %14453 = vmatpush3.msra.mxu0 %v22675_v9  ;;  %14501 = vmatpush3.msra.mxu1 %v17004_v16  ;;  %v22678_v16 = vld [vmem:[#allocation40_spill] sm:$0xff]  ;;  %v17609_v9 = vand.u32 4294901760, %v89_v5 }
  0xa4   :  { %14454 = vmatprep.subr.mxu0 %v22676_v10  ;;  %14502 = vmatprep.subr.mxu1 %v17026_v24 }
  0xa5   :  { %14370 = vmatprep.mubr.f32.mxu0 %v17344_v61  ;;  %14420 = vmatprep.mubr.f32.mxu1 %v17294_v17  ;;  %22690 = vst [vmem:[#allocation17_spill] sm:$0xff] %v17609_v9 }
  0xa6   :  { %14455 = vmatpush3.msra.mxu0 %v22676_v10  ;;  %14503 = vmatpush3.msra.mxu1 %v17026_v24  ;;  %v22679_v24 = vld [vmem:[#allocation43_spill] sm:$0xff]  ;;  %v17613_v10 = vsub.f32 %v89_v5, %v17609_v9 }
  0xa7   :  { %14371 = vmatmul.mubr.f32.gmra.mxu0 %v17355_v44  ;;  %14421 = vmatmul.mubr.f32.gmra.mxu1 %v17305_v50 }
  0xa8   :  { %14456 = vmatprep.subr.mxu0 %v22677_v11  ;;  %14504 = vmatprep.subr.mxu1 %v17032_v27  ;;  %22691 = vst [vmem:[#allocation18_spill] sm:$0xff] %v17613_v10 }
  0xa9   :  { %14457 = vmatpush3.msra.mxu0 %v22677_v11  ;;  %14505 = vmatpush3.msra.mxu1 %v17032_v27  ;;  %v22681_v27 = vld [vmem:[#allocation22_spill] sm:$0xff]  ;;  %v17617_v11 = vand.u32 4294901760, %v17613_v10 }
  0xaa   :  { %14458 = vmatprep.subr.mxu0 %v22678_v16  ;;  %14506 = vmatprep.subr.mxu1 %v17051_v34 }
  0xab   :  { %14373 = vmatprep.mubr.f32.mxu0 %v17380_v25  ;;  %14423 = vmatprep.mubr.f32.mxu1 %v17330_v8  ;;  %22692 = vst [vmem:[#allocation19_spill] sm:$0xff] %v17617_v11 }
  0xac   :  { %14459 = vmatpush3.msra.mxu0 %v22678_v16  ;;  %14507 = vmatpush3.msra.mxu1 %v17051_v34  ;;  %v22682_v34 = vld [vmem:[#allocation24_spill] sm:$0xff]  ;;  %v1724_v16 = vsub.f32 %v17613_v10, %v17617_v11 }
  0xad   :  { %14374 = vmatmul.mubr.f32.gmra.mxu0 %v17391_v19  ;;  %14424 = vmatmul.mubr.f32.gmra.mxu1 %v17341_v35 }
  0xae   :  { %14460 = vmatprep.subr.mxu0 %v22679_v24  ;;  %14508 = vmatprep.subr.mxu1 %v17069_v45 }
  0xaf   :  { %14461 = vmatpush3.msra.mxu0 %v22679_v24  ;;  %14509 = vmatpush3.msra.mxu1 %v17069_v45  ;;  %v22683_v45 = vld [vmem:[#allocation29_spill] sm:$0xff]  ;;  %v17622_v24 = vand.u32 4294901760, %v1724_v16 }
  0xb0   :  { %14462 = vmatprep.subr.mxu0 %v22680_v26  ;;  %14510 = vmatprep.subr.mxu1 %v17075_v48 }
  0xb1   :  { %14426 = vmatprep.mubr.f32.mxu1 %v17366_v58  ;;  %14463 = vmatpush3.msra.mxu0 %v22680_v26  ;;  %22693 = vst [vmem:[#allocation20_spill] sm:$0xff] %v17622_v24 }
  0xb2   :  { %14464 = vmatprep.mubr.f32.mxu0 %v22681_v27  ;;  %14511 = vmatpush3.msra.mxu1 %v17075_v48  ;;  %v22685_v48 = vld [vmem:[#allocation38_spill] sm:$0xff] }
  0xb3   :  { %14427 = vmatmul.mubr.f32.gmra.mxu1 %v17377_v57  ;;  %14465 = vmatmul.mubr.f32.vlgmr.msra.gmra.mxu0 %v22682_v34 }
  0xb4   :  { %14512 = vmatprep.subr.mxu1 %v17101_v62  ;;  %14429 = vmatprep.mubr.f32.mxu1 %v17400_v40 }
  0xb5   :  { %14513 = vmatpush3.msra.mxu1 %v17101_v62  ;;  %14467 = vmatprep.mubr.f32.mxu0 %v22683_v45  ;;  %v90_v62 = vld [vmem:[#allocation5 + $0x8] sm:$0xff] }
  0xb6   :  { %14514 = vmatprep.subr.mxu1 %v17113_v12 }
  0xb7   :  { %14515 = vmatpush3.msra.mxu1 %v17113_v12  ;;  %14468 = vmatmul.mubr.f32.gmra.mxu0 %v22684_v51  ;;  %v17593_v12 = vand.u32 4294901760, %v90_v62 }
  0xb8   :  { %14430 = vmatmul.mubr.f32.gmra.mxu1 %v17409_v33  ;;  %14516 = vmatprep.subr.mxu1 %v22660_v37 }
  0xb9   :  { %14517 = vmatpush3.msra.mxu1 %v22660_v37  ;;  %14470 = vmatprep.mubr.f32.mxu0 %v22685_v48  ;;  %22686 = vst [vmem:[#allocation15_spill] sm:$0xff] %v17593_v12  ;;  %v17597_v37 = vsub.f32 %v90_v62, %v17593_v12 }
  0xba   :  { %14518 = vmatprep.subr.mxu1 %v22662_v21  ;;  %14520 = vmatprep.mubr.f32.mxu1 %v22681_v27 }
  0xbb   :  { %14519 = vmatpush3.msra.mxu1 %v22662_v21  ;;  %14471 = vmatmul.mubr.f32.gmra.mxu0 %v17182_v52  ;;  %22687 = vst [vmem:[#allocation30_spill] sm:$0xff] %v17597_v37  ;;  %v17601_v21 = vand.u32 4294901760, %v17597_v37 }
  0xbc   :  { %14521 = vmatmul.mubr.f32.vlgmr.msra.gmra.mxu1 %v22682_v34  ;;  %14473 = vmatprep.mubr.f32.mxu0 %v17214_v47 }
  0xbd   :  { %14523 = vmatprep.mubr.f32.mxu1 %v22683_v45  ;;  %14544 = vmatprep.subr.mxu0 %v17593_v12  ;;  %22688 = vst [vmem:[#allocation16_spill] sm:$0xff] %v17601_v21  ;;  %v1717_v3 = vsub.f32 %v17597_v37, %v17601_v21 }
  0xbe   :  { %14545 = vmatpush3.msra.mxu0 %v17593_v12 }
  0xbf   :  { %14474 = vmatmul.mubr.f32.gmra.mxu0 %v17230_v22  ;;  %v17605_v2 = vand.u32 4294901760, %v1717_v3  ;;  %14546 = vmatprep.subr.mxu0 %v17609_v9 }
  0xc0   :  { %14524 = vmatmul.mubr.f32.gmra.mxu1 %v22684_v51  ;;  %14476 = vmatprep.mubr.f32.mxu0 %v17254_v41 }
  0xc1   :  { %14526 = vmatprep.mubr.f32.mxu1 %v22685_v48  ;;  %22689 = vst [vmem:[#allocation33_spill] sm:$0xff] %v17605_v2  ;;  %14572 = vmatprep.subr.mxu1 %v17605_v2 }
  0xc2   :  { %14573 = vmatpush3.msra.mxu1 %v17605_v2  ;;  %14547 = vmatpush3.msra.mxu0 %v17609_v9 }
  0xc3   :  { %14477 = vmatmul.mubr.f32.gmra.mxu0 %v17265_v63  ;;  %14600 = vmatprep.subr.mxu0 %v17597_v37 }
  0xc4   :  { %14527 = vmatmul.mubr.f32.gmra.mxu1 %v17182_v52  ;;  %14479 = vmatprep.mubr.f32.mxu0 %v17287_v59 }
  0xc5   :  { %14529 = vmatprep.mubr.f32.mxu1 %v17214_v47  ;;  %14574 = vmatprep.subr.mxu1 %v17622_v24 }
  0xc6   :  { %14575 = vmatpush3.msra.mxu1 %v17622_v24 }
  0xc7   :  { %14480 = vmatmul.mubr.f32.gmra.mxu0 %v17296_v53  ;;  %14628 = vmatprep.subr.mxu1 %v17593_v12 }
  0xc8   :  { %14530 = vmatmul.mubr.f32.gmra.mxu1 %v17230_v22  ;;  %14482 = vmatprep.mubr.f32.mxu0 %v17321_v36 }
  0xc9   :  { %14532 = vmatprep.mubr.f32.mxu1 %v17254_v41 }
  0xcb   :  { %14483 = vmatmul.mubr.f32.gmra.mxu0 %v17332_v18 }
  0xcc   :  { %14533 = vmatmul.mubr.f32.gmra.mxu1 %v17265_v63  ;;  %14485 = vmatprep.mubr.f32.mxu0 %v17357_v56 }
  0xcd   :  { %14535 = vmatprep.mubr.f32.mxu1 %v17287_v59 }
  0xcf   :  { %14486 = vmatmul.mubr.f32.gmra.mxu0 %v17368_v20 }
  0xd0   :  { %14536 = vmatmul.mubr.f32.gmra.mxu1 %v17296_v53 }
  0xd1   :  { %14538 = vmatprep.mubr.f32.mxu1 %v17321_v36 }
  0xd4   :  { %14539 = vmatmul.mubr.f32.gmra.mxu1 %v17332_v18 }
  0xd5   :  { %14541 = vmatprep.mubr.f32.mxu1 %v17357_v56 }
  0xd8   :  { %14542 = vmatmul.mubr.f32.gmra.mxu1 %v17368_v20 }
 0x114   :  { %v14242_v26 = vpop.f32.mrf.mxu0 }
 0x116   :  { %v17627_v62 = vpop.f32.mrf.mxu0 }
 0x11a   :  { %v17629_v3 = vpop.f32.mrf.mxu0 }
 0x11c   :  { %v17631_v5 = vpop.f32.mrf.mxu0 }
 0x11f   :  { %v17633_v2 = vpop.f32.mrf.mxu0  ;;  %v14298_v33 = vpop.f32.mrf.mxu1 }
 0x120   :  { %v518_v9 = vadd.f32 %v14298_v33, %v14242_v26 }
 0x121   :  { %v17635_v40 = vpop.f32.mrf.mxu0  ;;  %v511_v16 = vpop.f32.mrf.mxu1 }
 0x122   :  { %v512_v12 = vadd.f32 %v511_v16, %v17627_v62 }
 0x125   :  { %v17637_v19 = vpop.f32.mrf.mxu0  ;;  %v14301_v25 = vpop.f32.mrf.mxu1 }
 0x126   :  { %22694 = vst [vmem:[#allocation21_spill] sm:$0xff] %v17637_v19  ;;  %v17661_v19 = vld [vmem:[#allocation8 + $0x78] sm:$0xff] }
 0x127   :  { %v17639_v57 = vpop.f32.mrf.mxu0  ;;  %v523_v24 = vpop.f32.mrf.mxu1  ;;  %22704 = vst [vmem:[#allocation97_spill] sm:$0xff] %v17661_v19 }
 0x128   :  { %22695 = vst [vmem:[#allocation23_spill] sm:$0xff] %v17639_v57  ;;  %v530_v57 = vadd.f32 %v14301_v25, %v17629_v3 }
 0x12b   :  { %v14254_v58 = vpop.f32.mrf.mxu0  ;;  %v14304_v44 = vpop.f32.mrf.mxu1 }
 0x12d   :  { %v290_v61 = vpop.f32.mrf.mxu0  ;;  %v535_v35 = vpop.f32.mrf.mxu1 }
 0x12f   :  { %v22706_v26 = vld [vmem:[#allocation23_spill] sm:$0xff] }
 0x131   :  { %v14257_v8 = vpop.f32.mrf.mxu0  ;;  %v14307_v31 = vpop.f32.mrf.mxu1 }
 0x133   :  { %v310_v14 = vpop.f32.mrf.mxu0  ;;  %v547_v50 = vpop.f32.mrf.mxu1 }
 0x134   :  { %v548_v33 = vadd.f32 %v547_v50, %v22706_v26 }
 0x137   :  { %v14260_v17 = vpop.f32.mrf.mxu0  ;;  %v14310_v39 = vpop.f32.mrf.mxu1 }
 0x138   :  { %v566_v16 = vadd.f32 %v14310_v39, %v14254_v58 }
 0x139   :  { %v330_v30 = vpop.f32.mrf.mxu0  ;;  %v559_v43 = vpop.f32.mrf.mxu1 }
 0x13a   :  { %v560_v62 = vadd.f32 %v559_v43, %v290_v61 }
 0x13d   :  { %v14263_v1 = vpop.f32.mrf.mxu0  ;;  %v14313_v49 = vpop.f32.mrf.mxu1 }
 0x13e   :  { %v578_v3 = vadd.f32 %v14313_v49, %v14257_v8 }
 0x13f   :  { %v350_v28 = vpop.f32.mrf.mxu0  ;;  %v571_v4 = vpop.f32.mrf.mxu1 }
 0x140   :  { %v572_v25 = vadd.f32 %v571_v4, %v310_v14 }
 0x143   :  { %v14316_v6 = vpop.f32.mrf.mxu1  ;;  %v14354_v38 = vpop.f32.mrf.mxu0 }
 0x145   :  { %v583_v55 = vpop.f32.mrf.mxu1  ;;  %v705_v7 = vpop.f32.mrf.mxu0 }
 0x149   :  { %v14319_v0 = vpop.f32.mrf.mxu1  ;;  %v14357_v15 = vpop.f32.mrf.mxu0 }
 0x14b   :  { %v595_v42 = vpop.f32.mrf.mxu1  ;;  %v719_v32 = vpop.f32.mrf.mxu0 }
 0x14c   :  { %v596_v26 = vadd.f32 %v595_v42, %v350_v28 }
 0x14f   :  { %v14360_v13 = vpop.f32.mrf.mxu0  ;;  %v14410_v20 = vpop.f32.mrf.mxu1 }
 0x151   :  { %v733_v46 = vpop.f32.mrf.mxu0  ;;  %v899_v56 = vpop.f32.mrf.mxu1 }
 0x155   :  { %v14363_v60 = vpop.f32.mrf.mxu0  ;;  %v14413_v18 = vpop.f32.mrf.mxu1 }
 0x157   :  { %v747_v54 = vpop.f32.mrf.mxu0  ;;  %v915_v36 = vpop.f32.mrf.mxu1 }
 0x15b   :  { %v14366_v29 = vpop.f32.mrf.mxu0  ;;  %v14416_v53 = vpop.f32.mrf.mxu1 }
 0x15d   :  { %v761_v59 = vpop.f32.mrf.mxu0  ;;  %v931_v23 = vpop.f32.mrf.mxu1 }
 0x161   :  { %v14369_v63 = vpop.f32.mrf.mxu0  ;;  %v14419_v41 = vpop.f32.mrf.mxu1 }
 0x163   :  { %v775_v22 = vpop.f32.mrf.mxu0  ;;  %v947_v47 = vpop.f32.mrf.mxu1 }
 0x167   :  { %v14372_v52 = vpop.f32.mrf.mxu0  ;;  %v14422_v48 = vpop.f32.mrf.mxu1 }
 0x169   :  { %v17641_v51 = vpop.f32.mrf.mxu0  ;;  %v17643_v45 = vpop.f32.mrf.mxu1 }
 0x16a   :  { %22696 = vst [vmem:[#allocation25_spill] sm:$0xff] %v17641_v51  ;;  %22697 = vst [vmem:[#allocation27_spill] sm:$0xff] %v17643_v45  ;;  %v524_v51 = vadd.f32 %v523_v24, %v17631_v5  ;;  %v542_v45 = vadd.f32 %v14304_v44, %v17633_v2  ;;  %v713_v5 = vadd.f32 %v14354_v38, %v518_v9 }
 0x16b   :  { %v590_v2 = vadd.f32 %v14316_v6, %v14260_v17  ;;  %v584_v44 = vadd.f32 %v583_v55, %v330_v30  ;;  %v748_v6 = vadd.f32 %v747_v54, %v548_v33 }
 0x16c   :  { %v908_v50 = vadd.f32 %v14410_v20, %v713_v5  ;;  %v720_v58 = vadd.f32 %v719_v32, %v524_v51  ;;  %v741_v43 = vadd.f32 %v14360_v13, %v542_v45  ;;  %v776_v13 = vadd.f32 %v775_v22, %v572_v25 }
 0x16d   :  { %v17645_v34 = vpop.f32.mrf.mxu0  ;;  %v17647_v27 = vpop.f32.mrf.mxu1 }
 0x16e   :  { %22698 = vst [vmem:[#allocation31_spill] sm:$0xff] %v17645_v34  ;;  %22699 = vst [vmem:[#allocation37_spill] sm:$0xff] %v17647_v27  ;;  %v916_v17 = vadd.f32 %v915_v36, %v720_v58  ;;  %v940_v4 = vadd.f32 %v14416_v53, %v741_v43 }
 0x16f   :  { %v17649_v11 = vpop.f32.mrf.mxu0  ;;  %v17651_v21 = vpop.f32.mrf.mxu1 }
 0x170   :  { %22700 = vst [vmem:[#allocation40_spill] sm:$0xff] %v17649_v11  ;;  %22701 = vst [vmem:[#allocation43_spill] sm:$0xff] %v17651_v21  ;;  %v536_v21 = vadd.f32 %v535_v35, %v17635_v40  ;;  %v22705_v11 = vld [vmem:[#allocation21_spill] sm:$0xff] }
 0x171   :  { %v22707_v35 = vld [vmem:[#allocation97_spill] sm:$0xff] }
 0x172   :  { %v17669_v40 = vand.u32 4294901760, %v22707_v35  ;;  %v734_v61 = vadd.f32 %v733_v46, %v536_v21  ;;  %v948_v46 = vadd.f32 %v947_v47, %v748_v6 }
 0x173   :  { %v17653_v10 = vpop.f32.mrf.mxu1  ;;  %v14466_v37 = vpop.f32.mrf.mxu0 }
 0x174   :  { %22702 = vst [vmem:[#allocation50_spill] sm:$0xff] %v17653_v10  ;;  %v554_v10 = vadd.f32 %v14307_v31, %v22705_v11  ;;  %v602_v11 = vadd.f32 %v14319_v0, %v14263_v1  ;;  %v727_v31 = vadd.f32 %v14357_v15, %v530_v57  ;;  %v1145_v55 = vadd.f32 %v14466_v37, %v908_v50 }
 0x175   :  { %v17659_v34 = vpop.f32.mrf.mxu1  ;;  %v1138_v27 = vpop.f32.mrf.mxu0  ;;  %v932_v0 = vadd.f32 %v931_v23, %v734_v61  ;;  %v783_v1 = vadd.f32 %v14369_v63, %v578_v3  ;;  %v22710_v23 = vld [vmem:[#allocation31_spill] sm:$0xff] }
 0x176   :  { %22703 = vst [vmem:[#allocation96_spill] sm:$0xff] %v17659_v34  ;;  %v706_v34 = vadd.f32 %v705_v7, %v512_v12  ;;  %v755_v8 = vadd.f32 %v14363_v60, %v554_v10  ;;  %v924_v38 = vadd.f32 %v14413_v18, %v727_v31  ;;  %v769_v7 = vadd.f32 %v14366_v29, %v566_v16  ;;  %v22708_v29 = vld [vmem:[#allocation25_spill] sm:$0xff] }
 0x177   :  { %v14469_v24 = vpop.f32.mrf.mxu0  ;;  %v762_v12 = vadd.f32 %v761_v59, %v560_v62  ;;  %v790_v53 = vadd.f32 %v22708_v29, %v584_v44  ;;  %v22709_v59 = vld [vmem:[#allocation27_spill] sm:$0xff]  ;;  %v811_v63 = vadd.f32 %v22710_v23, %v602_v11  ;;  %v22712_v37 = vld [vmem:[#allocation40_spill] sm:$0xff] }
 0x178   :  { %v17666_v19 = vpop.f32.mrf.mxu1  ;;  %v900_v49 = vadd.f32 %v899_v56, %v706_v34  ;;  %v956_v32 = vadd.f32 %v14419_v41, %v755_v8  ;;  %v797_v56 = vadd.f32 %v14372_v52, %v590_v2  ;;  %v972_v60 = vadd.f32 %v14422_v48, %v769_v7  ;;  %v22711_v41 = vld [vmem:[#allocation37_spill] sm:$0xff]  ;;  %v22713_v10 = vld [vmem:[#allocation43_spill] sm:$0xff] }
 0x179   :  { %v1150_v39 = vpop.f32.mrf.mxu0  ;;  %v1157_v18 = vadd.f32 %v14469_v24, %v924_v38  ;;  %v964_v34 = vadd.f32 %v22709_v59, %v762_v12  ;;  %v17678_v22 = vadd.f32 %v22711_v41, %v783_v1  ;;  %v804_v21 = vadd.f32 %v22712_v37, %v596_v26  ;;  %v22716_v12 = vld [vmem:[#allocation15_spill] sm:$0xff] }
 0x17a   :  { %v1011_v14 = vpop.f32.mrf.mxu1  ;;  %v1139_v28 = vadd.f32 %v1138_v27, %v900_v49  ;;  %v1151_v52 = vadd.f32 %v1150_v39, %v916_v17  ;;  %v17683_v33 = vadd.f32 %v22713_v10, %v776_v13  ;;  %v17705_v61 = vadd.f32 %v17666_v19, %v811_v63 }
 0x17b   :  { %v14472_v30 = vpop.f32.mrf.mxu0  ;;  %v22714_v25 = vld [vmem:[#allocation50_spill] sm:$0xff] }
 0x17c   :  { %v14522_v9 = vpop.f32.mrf.mxu1  ;;  %v17691_v5 = vadd.f32 %v22714_v25, %v797_v56  ;;  %v1169_v24 = vadd.f32 %v14472_v30, %v940_v4 }
 0x17d   :  { %v1322_v57 = vadd.f32 %v14522_v9, %v1145_v55  ;;  %v1162_v20 = vpop.f32.mrf.mxu0  ;;  %v22715_v31 = vld [vmem:[#allocation96_spill] sm:$0xff]  ;;  %v17709_v55 = vadd.f32 %v1011_v14, %v804_v21 }
 0x17e   :  { %v1315_v42 = vpop.f32.mrf.mxu1  ;;  %v17695_v50 = vadd.f32 %v22715_v31, %v790_v53  ;;  %v1163_v49 = vadd.f32 %v1162_v20, %v932_v0 }
 0x17f   :  { %v1414_v54 = vsel %vm1409_vm0, %v1322_v57, 0  ;;  %v1316_v15 = vadd.f32 %v1315_v42, %v1139_v28  ;;  %v14475_v36 = vpop.f32.mrf.mxu0  ;;  %v22717_v28 = vld [vmem:[#allocation17_spill] sm:$0xff] }
 0x180   :  { %v17675_v27 = vand.u32 4294901760, %v1414_v54  ;;  %v14525_v45 = vpop.f32.mrf.mxu1  ;;  %v1181_v30 = vadd.f32 %v14475_v36, %v956_v32 }
 0x181   :  { %v1411_v47 = vsel %vm1409_vm0, %v1316_v15, 0  ;;  %v1334_v51 = vadd.f32 %v14525_v45, %v1157_v18  ;;  %v1174_v48 = vpop.f32.mrf.mxu0 }
 0x182   :  { %v17686_v16 = vsub.f32 %v1414_v54, %v17675_v27  ;;  %v17688_v62 = vand.u32 4294901760, %v1411_v47  ;;  %v1327_v3 = vpop.f32.mrf.mxu1  ;;  %v1175_v57 = vadd.f32 %v1174_v48, %v948_v46 }
 0x183   :  { %v1420_v2 = vsel %vm1409_vm0, %v1334_v51, 0  ;;  %v1328_v44 = vadd.f32 %v1327_v3, %v1151_v52  ;;  %v14478_v11 = vpop.f32.mrf.mxu0 }
 0x184   :  { %v1537_v26 = vand.u32 4294901760, %v17686_v16  ;;  %v17699_v39 = vsub.f32 %v1411_v47, %v17688_v62  ;;  %v17701_v58 = vand.u32 4294901760, %v1420_v2  ;;  %v14528_v43 = vpop.f32.mrf.mxu1  ;;  %14576 = vmatprep.mubr.f32.mxu1 %v17688_v62  ;;  %v1193_v32 = vadd.f32 %v14478_v11, %v972_v60 }
 0x185   :  { %v1417_v8 = vsel %vm1409_vm0, %v1328_v44, 0  ;;  %v1346_v38 = vadd.f32 %v14528_v43, %v1169_v24  ;;  %14577 = vmatmul.mubr.f32.vlgmr.msra.gmra.mxu1 %v17675_v27  ;;  %v1186_v6 = vpop.f32.mrf.mxu0 }
 0x186   :  { %v17712_v17 = vsub.f32 %v1420_v2, %v17701_v58  ;;  %v17714_v7 = vand.u32 4294901760, %v1417_v8  ;;  %v1339_v4 = vpop.f32.mrf.mxu1  ;;  %14629 = vmatpush3.msra.mxu1 %v22716_v12  ;;  %v1538_v19 = vsub.f32 %v17686_v16, %v1537_v26  ;;  %v1527_v14 = vand.u32 4294901760, %v17699_v39 }
 0x187   :  { %v1426_v9 = vsel %vm1409_vm0, %v1346_v38, 0  ;;  %v1340_v0 = vadd.f32 %v1339_v4, %v1163_v49  ;;  %v14481_v1 = vpop.f32.mrf.mxu0  ;;  %14630 = vmatprep.subr.mxu1 %v22717_v28  ;;  %v1187_v36 = vadd.f32 %v1186_v6, %v964_v34 }
 0x188   :  { %v17724_v20 = vsub.f32 %v1417_v8, %v17714_v7  ;;  %v17726_v13 = vand.u32 4294901760, %v1426_v9  ;;  %v14531_v56 = vpop.f32.mrf.mxu1  ;;  %14579 = vmatprep.mubr.f32.mxu1 %v17714_v7  ;;  %14631 = vmatpush3.msra.mxu1 %v22717_v28  ;;  %v1528_v46 = vsub.f32 %v17699_v39, %v1527_v14  ;;  %v1557_v15 = vand.u32 4294901760, %v17712_v17  ;;  %v22718_v8 = vld [vmem:[#allocation30_spill] sm:$0xff] }
 0x189   :  { %v1423_v42 = vsel %vm1409_vm0, %v1340_v0, 0  ;;  %v1358_v18 = vadd.f32 %v14531_v56, %v1181_v30  ;;  %14580 = vmatmul.mubr.f32.gmra.mxu1 %v17701_v58  ;;  %v1198_v54 = vpop.f32.mrf.mxu0  ;;  %14684 = vmatprep.subr.mxu1 %v22716_v12  ;;  %v1539_v23 = vand.u32 4294901760, %v1538_v19  ;;  %v1205_v21 = vadd.f32 %v14481_v1, %v17678_v22  ;;  %v22719_v56 = vld [vmem:[#allocation18_spill] sm:$0xff] }
 0x18a   :  { %v17738_v60 = vsub.f32 %v1426_v9, %v17726_v13  ;;  %v17740_v29 = vand.u32 4294901760, %v1423_v42  ;;  %v1351_v53 = vpop.f32.mrf.mxu1  ;;  %v1547_v59 = vand.u32 4294901760, %v17724_v20  ;;  %v1529_v52 = vand.u32 4294901760, %v1528_v46 }
 0x18b   :  { %v1432_v63 = vsel %vm1409_vm0, %v1358_v18, 0  ;;  %v1352_v45 = vadd.f32 %v1351_v53, %v1175_v57  ;;  %v14484_v41 = vpop.f32.mrf.mxu0  ;;  %v1558_v37 = vsub.f32 %v17712_v17, %v1557_v15  ;;  %v1199_v2 = vadd.f32 %v1198_v54, %v17683_v33 }
 0x18c   :  { %v17745_v47 = vsub.f32 %v1423_v42, %v17740_v29  ;;  %v17747_v51 = vand.u32 4294901760, %v1432_v63  ;;  %v14534_v48 = vpop.f32.mrf.mxu1  ;;  %14582 = vmatprep.mubr.f32.mxu1 %v17740_v29  ;;  %v1548_v34 = vsub.f32 %v17724_v20, %v1547_v59  ;;  %14548 = vmatprep.mubr.f32.mxu0 %v1529_v52  ;;  %v1577_v25 = vand.u32 4294901760, %v17738_v60 }
 0x18d   :  { %v1429_v10 = vsel %vm1409_vm0, %v1352_v45, 0  ;;  %v1370_v3 = vadd.f32 %v14534_v48, %v1193_v32  ;;  %14583 = vmatmul.mubr.f32.gmra.mxu1 %v17726_v13  ;;  %14549 = vmatmul.mubr.f32.vlgmr.msra.gmra.mxu0 %v1539_v23  ;;  %v1210_v11 = vpop.f32.mrf.mxu0  ;;  %v1559_v19 = vand.u32 4294901760, %v1558_v37  ;;  %v1217_v0 = vadd.f32 %v14484_v41, %v17691_v5 }
 0x18e   :  { %v17761_v24 = vsub.f32 %v1432_v63, %v17747_v51  ;;  %v17764_v44 = vand.u32 4294901760, %v1429_v10  ;;  %v1363_v31 = vpop.f32.mrf.mxu1  ;;  %v1549_v43 = vand.u32 4294901760, %v1548_v34  ;;  %14601 = vmatpush3.msra.mxu0 %v22718_v8  ;;  %v1567_v38 = vand.u32 4294901760, %v17745_v47 }
 0x18f   :  { %v1438_v22 = vsel %vm1409_vm0, %v1370_v3, 0  ;;  %v1364_v49 = vadd.f32 %v1363_v31, %v1187_v36  ;;  %v1578_v6 = vsub.f32 %v17738_v60, %v1577_v25  ;;  %14602 = vmatprep.subr.mxu0 %v22719_v56  ;;  %v14487_v54 = vpop.f32.mrf.mxu0 }
 0x190   :  { %v17773_v30 = vsub.f32 %v1429_v10, %v17764_v44  ;;  %v17775_v33 = vand.u32 4294901760, %v1438_v22  ;;  %v14537_v4 = vpop.f32.mrf.mxu1  ;;  %14551 = vmatprep.mubr.f32.mxu0 %v1549_v43  ;;  %14585 = vmatprep.mubr.f32.mxu1 %v17764_v44  ;;  %v1597_v9 = vand.u32 4294901760, %v17761_v24  ;;  %v1568_v32 = vsub.f32 %v17745_v47, %v1567_v38 }
 0x191   :  { %v1435_v1 = vsel %vm1409_vm0, %v1364_v49, 0  ;;  %v1382_v57 = vadd.f32 %v14537_v4, %v1205_v21  ;;  %14586 = vmatmul.mubr.f32.gmra.mxu1 %v17747_v51  ;;  %14552 = vmatmul.mubr.f32.gmra.mxu0 %v1559_v19  ;;  %v1579_v5 = vand.u32 4294901760, %v1578_v6  ;;  %v22720_v21 = vld [vmem:[#allocation16_spill] sm:$0xff]  ;;  %v1211_v10 = vadd.f32 %v1210_v11, %v17695_v50 }
 0x192   :  { %v17787_v42 = vsub.f32 %v1438_v22, %v17775_v33  ;;  %v17789_v18 = vand.u32 4294901760, %v1435_v1  ;;  %v1375_v46 = vpop.f32.mrf.mxu1  ;;  %v1587_v36 = vand.u32 4294901760, %v17773_v30  ;;  %v1569_v63 = vand.u32 4294901760, %v1568_v32  ;;  %14603 = vmatpush3.msra.mxu0 %v22719_v56  ;;  %v1222_v22 = vpop.f32.mrf.mxu0 }
 0x193   :  { %v1444_v53 = vsel %vm1409_vm0, %v1382_v57, 0  ;;  %v1376_v23 = vadd.f32 %v1375_v46, %v1199_v2  ;;  %v1598_v45 = vsub.f32 %v17761_v24, %v1597_v9  ;;  %14656 = vmatprep.subr.mxu0 %v22720_v21  ;;  %v1229_v3 = vadd.f32 %v14487_v54, %v17705_v61 }
 0x194   :  { %v17798_v41 = vsub.f32 %v1435_v1, %v17789_v18  ;;  %v17800_v52 = vand.u32 4294901760, %v1444_v53  ;;  %v14540_v48 = vpop.f32.mrf.mxu1  ;;  %14588 = vmatprep.mubr.f32.mxu1 %v17789_v18  ;;  %v1588_v34 = vsub.f32 %v17773_v30, %v1587_v36  ;;  %v1617_v37 = vand.u32 4294901760, %v17787_v42  ;;  %14554 = vmatprep.mubr.f32.mxu0 %v1569_v63 }
 0x195   :  { %v1441_v2 = vsel %vm1409_vm0, %v1376_v23, 0  ;;  %v1394_v31 = vadd.f32 %v14540_v48, %v1217_v0  ;;  %14589 = vmatmul.mubr.f32.gmra.mxu1 %v17775_v33  ;;  %14555 = vmatmul.mubr.f32.gmra.mxu0 %v1579_v5  ;;  %v1599_v11 = vand.u32 4294901760, %v1598_v45  ;;  %v1223_v5 = vadd.f32 %v1222_v22, %v17709_v55 }
 0x196   :  { %v17813_v43 = vsub.f32 %v1444_v53, %v17800_v52  ;;  %v17815_v49 = vand.u32 4294901760, %v1441_v2  ;;  %v1387_v6 = vpop.f32.mrf.mxu1  ;;  %v1589_v4 = vand.u32 4294901760, %v1588_v34  ;;  %v1607_v19 = vand.u32 4294901760, %v17798_v41 }
 0x197   :  { %v1450_v50 = vsel %vm1409_vm0, %v1394_v31, 0  ;;  %v1388_v61 = vadd.f32 %v1387_v6, %v1211_v10  ;;  %v1618_v0 = vsub.f32 %v17787_v42, %v1617_v37  ;;  %v17837_v63 = vsub.f32 %v22707_v35, %v17669_v40 }
 0x198   :  { %v17823_v1 = vsub.f32 %v1441_v2, %v17815_v49  ;;  %v17825_v57 = vand.u32 4294901760, %v1450_v50  ;;  %v14543_v32 = vpop.f32.mrf.mxu1  ;;  %14557 = vmatprep.mubr.f32.mxu0 %v1589_v4  ;;  %14591 = vmatprep.mubr.f32.mxu1 %v17815_v49  ;;  %v1608_v54 = vsub.f32 %v17798_v41, %v1607_v19  ;;  %v1637_v46 = vand.u32 4294901760, %v17813_v43 }
 0x199   :  { %v1447_v53 = vsel %vm1409_vm0, %v1388_v61, 0  ;;  %v1406_v23 = vadd.f32 %v14543_v32, %v1229_v3  ;;  %14592 = vmatmul.mubr.f32.gmra.mxu1 %v17800_v52  ;;  %14558 = vmatmul.mubr.f32.gmra.mxu0 %v1599_v11  ;;  %v1619_v3 = vand.u32 4294901760, %v1618_v0 }
 0x19a   :  { %v17840_v45 = vsub.f32 %v1450_v50, %v17825_v57  ;;  %v17842_v48 = vand.u32 4294901760, %v1447_v53  ;;  %v1399_v34 = vpop.f32.mrf.mxu1  ;;  %v1609_v10 = vand.u32 4294901760, %v1608_v54  ;;  %v1627_v2 = vand.u32 4294901760, %v17823_v1 }
 0x19b   :  { %v1456_v55 = vsel %vm1409_vm0, %v1406_v23, 0  ;;  %v1400_v31 = vadd.f32 %v1399_v34, %v1223_v5  ;;  %v1638_v22 = vsub.f32 %v17813_v43, %v1637_v46 }
 0x19c   :  { %v17850_v35 = vsub.f32 %v1447_v53, %v17842_v48  ;;  %v17852_v6 = vand.u32 4294901760, %v1456_v55  ;;  %14560 = vmatprep.mubr.f32.mxu0 %v1609_v10  ;;  %14594 = vmatprep.mubr.f32.mxu1 %v17842_v48  ;;  %v1628_v4 = vsub.f32 %v17823_v1, %v1627_v2  ;;  %v1657_v50 = vand.u32 4294901760, %v17840_v45 }
 0x19d   :  { %v1453_v61 = vsel %vm1409_vm0, %v1400_v31, 0  ;;  %14595 = vmatmul.mubr.f32.gmra.mxu1 %v17825_v57  ;;  %14561 = vmatmul.mubr.f32.gmra.mxu0 %v1619_v3  ;;  %v1639_v5 = vand.u32 4294901760, %v1638_v22  ;;  %v17868_v53 = vand.u32 4294901760, %v17837_v63 }
 0x19e   :  { %v17862_v11 = vsub.f32 %v1456_v55, %v17852_v6  ;;  %v17864_v0 = vand.u32 4294901760, %v1453_v61  ;;  %v1629_v32 = vand.u32 4294901760, %v1628_v4  ;;  %v1647_v54 = vand.u32 4294901760, %v17850_v35 }
 0x19f   :  { %v1658_v10 = vsub.f32 %v17840_v45, %v1657_v50 }
 0x1a0   :  { %v17871_v23 = vsub.f32 %v1453_v61, %v17864_v0  ;;  %14563 = vmatprep.mubr.f32.mxu0 %v1629_v32  ;;  %14597 = vmatprep.mubr.f32.mxu1 %v17864_v0  ;;  %v1648_v34 = vsub.f32 %v17850_v35, %v1647_v54  ;;  %v1677_v55 = vand.u32 4294901760, %v17862_v11  ;;  %v2807_v32 = vsub.f32 %v17837_v63, %v17868_v53 }
 0x1a1   :  { %14598 = vmatmul.mubr.f32.gmra.mxu1 %v17852_v6  ;;  %14564 = vmatmul.mubr.f32.gmra.mxu0 %v1639_v5  ;;  %v1659_v22 = vand.u32 4294901760, %v1658_v10  ;;  %v114_v10 = vld [vmem:[#allocation8 + $0x38] sm:$0xff] }
 0x1a2   :  { %14632 = vmatprep.mubr.f32.mxu1 %v1527_v14  ;;  %v1649_v31 = vand.u32 4294901760, %v1648_v34  ;;  %v1667_v3 = vand.u32 4294901760, %v17871_v23  ;;  %v1678_v61 = vsub.f32 %v17862_v11, %v1677_v55  ;;  %v2808_v34 = vand.u32 4294901760, %v2807_v32 }
 0x1a4   :  { %14566 = vmatprep.mubr.f32.mxu0 %v1649_v31  ;;  %v1668_v4 = vsub.f32 %v17871_v23, %v1667_v3  ;;  %v1679_v5 = vand.u32 4294901760, %v1678_v61 }
 0x1a5   :  { %14633 = vmatmul.mubr.f32.vlgmr.msra.gmra.mxu1 %v1537_v26  ;;  %14567 = vmatmul.mubr.f32.gmra.mxu0 %v1659_v22  ;;  %v22721_v26 = vld [vmem:[#allocation19_spill] sm:$0xff]  ;;  %v113_v22 = vld [vmem:[#allocation8 + $0x30] sm:$0xff] }
 0x1a6   :  { %14635 = vmatprep.mubr.f32.mxu1 %v1547_v59  ;;  %v1669_v14 = vand.u32 4294901760, %v1668_v4  ;;  %14685 = vmatpush3.msra.mxu1 %v22716_v12  ;;  %v18017_v32 = vand.u32 4294901760, %v113_v22 }
 0x1a7   :  { %14686 = vmatprep.subr.mxu1 %v22717_v28 }
 0x1a8   :  { %14569 = vmatprep.mubr.f32.mxu0 %v1669_v14  ;;  %14687 = vmatpush3.msra.mxu1 %v22717_v28  ;;  %v112_v14 = vld [vmem:[#allocation8 + $0x28] sm:$0xff] }
 0x1a9   :  { %14636 = vmatmul.mubr.f32.gmra.mxu1 %v1557_v15  ;;  %14570 = vmatmul.mubr.f32.gmra.mxu0 %v1679_v5 }
 0x1aa   :  { %14638 = vmatprep.mubr.f32.mxu1 %v1567_v38  ;;  %14604 = vmatprep.mubr.f32.mxu0 %v17699_v39  ;;  %v121_v39 = vld [vmem:[#allocation8 + $0x70] sm:$0xff] }
 0x1ab   :  { %14768 = vmatprep.subr.mxu1 %v2808_v34 }
 0x1ad   :  { %14639 = vmatmul.mubr.f32.gmra.mxu1 %v1577_v25  ;;  %14605 = vmatmul.mubr.f32.vlgmr.msra.gmra.mxu0 %v17686_v16  ;;  %v17915_v16 = vand.u32 4294901760, %v121_v39 }
 0x1ae   :  { %14641 = vmatprep.mubr.f32.mxu1 %v1587_v36  ;;  %14607 = vmatprep.mubr.f32.mxu0 %v17724_v20  ;;  %v120_v20 = vld [vmem:[#allocation8 + $0x68] sm:$0xff] }
 0x1af   :  { %14657 = vmatpush3.msra.mxu0 %v22720_v21  ;;  %v17926_v15 = vand.u32 4294901760, %v120_v20 }
 0x1b0   :  { %14658 = vmatprep.subr.mxu0 %v22721_v26 }
 0x1b1   :  { %14642 = vmatmul.mubr.f32.gmra.mxu1 %v1597_v9  ;;  %14659 = vmatpush3.msra.mxu0 %v22721_v26  ;;  %v17936_v59 = vsub.f32 %v120_v20, %v17926_v15  ;;  %v18031_v20 = vand.u32 4294901760, %v112_v14 }
 0x1b2   :  { %14608 = vmatmul.mubr.f32.gmra.mxu0 %v17712_v17  ;;  %14644 = vmatprep.mubr.f32.mxu1 %v1607_v19  ;;  %v17924_v17 = vsub.f32 %v121_v39, %v17915_v16  ;;  %v116_v19 = vld [vmem:[#allocation8 + $0x48] sm:$0xff] }
 0x1b3   :  { %14610 = vmatprep.mubr.f32.mxu0 %v17745_v47  ;;  %14712 = vmatprep.subr.mxu0 %v17669_v40  ;;  %v119_v47 = vld [vmem:[#allocation8 + $0x60] sm:$0xff] }
 0x1b4   :  { %v17947_v38 = vand.u32 4294901760, %v119_v47 }
 0x1b5   :  { %14645 = vmatmul.mubr.f32.gmra.mxu1 %v1617_v37  ;;  %v117_v37 = vld [vmem:[#allocation8 + $0x50] sm:$0xff] }
 0x1b6   :  { %14611 = vmatmul.mubr.f32.gmra.mxu0 %v17738_v60  ;;  %14647 = vmatprep.mubr.f32.mxu1 %v1627_v2  ;;  %v17933_v60 = vand.u32 4294901760, %v17924_v17  ;;  %v17955_v36 = vsub.f32 %v119_v47, %v17947_v38 }
 0x1b7   :  { %14613 = vmatprep.mubr.f32.mxu0 %v17773_v30  ;;  %v118_v30 = vld [vmem:[#allocation8 + $0x58] sm:$0xff] }
 0x1b8   :  { %v2814_v25 = vsub.f32 %v17924_v17, %v17933_v60 }
 0x1b9   :  { %14648 = vmatmul.mubr.f32.gmra.mxu1 %v1637_v46  ;;  %v17966_v46 = vand.u32 4294901760, %v17955_v36 }
 0x1ba   :  { %14614 = vmatmul.mubr.f32.gmra.mxu0 %v17761_v24  ;;  %14650 = vmatprep.mubr.f32.mxu1 %v1647_v54  ;;  %v17945_v24 = vand.u32 4294901760, %v17936_v59  ;;  %v2815_v9 = vand.u32 4294901760, %v2814_v25  ;;  %v18036_v25 = vsub.f32 %v113_v22, %v18017_v32  ;;  %v108_v22 = vld [vmem:[#allocation8 + $0x8] sm:$0xff] }
 0x1bb   :  { %14616 = vmatprep.mubr.f32.mxu0 %v17798_v41  ;;  %v17957_v41 = vand.u32 4294901760, %v118_v30  ;;  %v2828_v54 = vsub.f32 %v17955_v36, %v17966_v46 }
 0x1bd   :  { %14651 = vmatmul.mubr.f32.gmra.mxu1 %v1657_v50  ;;  %v17969_v2 = vsub.f32 %v118_v30, %v17957_v41  ;;  %v2829_v31 = vand.u32 4294901760, %v2828_v54 }
 0x1be   :  { %14617 = vmatmul.mubr.f32.gmra.mxu0 %v17787_v42  ;;  %14653 = vmatprep.mubr.f32.mxu1 %v1667_v3  ;;  %v2821_v42 = vsub.f32 %v17936_v59, %v17945_v24 }
 0x1bf   :  { %14619 = vmatprep.mubr.f32.mxu0 %v17823_v1 }
 0x1c0   :  { %v2822_v1 = vand.u32 4294901760, %v2821_v42  ;;  %v110_v42 = vld [vmem:[#allocation8 + $0x18] sm:$0xff] }
 0x1c1   :  { %14654 = vmatmul.mubr.f32.gmra.mxu1 %v1677_v55 }
 0x1c2   :  { %14620 = vmatmul.mubr.f32.gmra.mxu0 %v17813_v43  ;;  %14688 = vmatprep.mubr.f32.mxu1 %v17688_v62  ;;  %v17963_v43 = vand.u32 4294901760, %v117_v37 }
 0x1c3   :  { %14622 = vmatprep.mubr.f32.mxu0 %v17850_v35  ;;  %v115_v35 = vld [vmem:[#allocation8 + $0x40] sm:$0xff] }
 0x1c4   :  { %v17978_v50 = vsub.f32 %v117_v37, %v17963_v43 }
 0x1c5   :  { %14689 = vmatmul.mubr.f32.vlgmr.msra.gmra.mxu1 %v17675_v27 }
 0x1c6   :  { %14623 = vmatmul.mubr.f32.gmra.mxu0 %v17840_v45  ;;  %14691 = vmatprep.mubr.f32.mxu1 %v17714_v7  ;;  %v17974_v45 = vand.u32 4294901760, %v116_v19  ;;  %v17996_v55 = vand.u32 4294901760, %v17978_v50 }
 0x1c7   :  { %14625 = vmatprep.mubr.f32.mxu0 %v17871_v23  ;;  %14769 = vmatpush3.msra.mxu1 %v2808_v34  ;;  %v17983_v23 = vand.u32 4294901760, %v17969_v2  ;;  %v111_v34 = vld [vmem:[#allocation8 + $0x20] sm:$0xff] }
 0x1c8   :  { %14770 = vmatprep.subr.mxu1 %v2815_v9  ;;  %v2842_v61 = vsub.f32 %v17978_v50, %v17996_v55 }
 0x1c9   :  { %14692 = vmatmul.mubr.f32.gmra.mxu1 %v17701_v58  ;;  %v2835_v3 = vsub.f32 %v17969_v2, %v17983_v23 }
 0x1ca   :  { %14626 = vmatmul.mubr.f32.gmra.mxu0 %v17862_v11  ;;  %14694 = vmatprep.mubr.f32.mxu1 %v17740_v29  ;;  %v17986_v11 = vand.u32 4294901760, %v115_v35  ;;  %v2843_v47 = vand.u32 4294901760, %v2842_v61 }
 0x1cb   :  { %14660 = vmatprep.mubr.f32.mxu0 %v17688_v62  ;;  %14771 = vmatpush3.msra.mxu1 %v2815_v9  ;;  %v17991_v62 = vsub.f32 %v116_v19, %v17974_v45  ;;  %v2836_v5 = vand.u32 4294901760, %v2835_v3  ;;  %v18042_v9 = vand.u32 4294901760, %v111_v34  ;;  %v18050_v19 = vsub.f32 %v112_v14, %v18031_v20 }
 0x1cc   :  { %14772 = vmatprep.subr.mxu1 %v2822_v1 }
 0x1cd   :  { %14695 = vmatmul.mubr.f32.gmra.mxu1 %v17726_v13  ;;  %v18011_v4 = vand.u32 4294901760, %v17991_v62  ;;  %v18070_v61 = vand.u32 4294901760, %v18050_v19 }
 0x1ce   :  { %14661 = vmatmul.mubr.f32.vlgmr.msra.gmra.mxu0 %v17675_v27  ;;  %14697 = vmatprep.mubr.f32.mxu1 %v17764_v44  ;;  %v18001_v27 = vand.u32 4294901760, %v114_v10 }
 0x1cf   :  { %14663 = vmatprep.mubr.f32.mxu0 %v17714_v7  ;;  %14713 = vmatpush3.msra.mxu0 %v17669_v40  ;;  %v18006_v7 = vsub.f32 %v115_v35, %v17986_v11  ;;  %v2849_v39 = vsub.f32 %v17991_v62, %v18011_v4  ;;  %v18056_v35 = vand.u32 4294901760, %v110_v42 }
 0x1d0   :  { %14714 = vmatprep.subr.mxu0 %v17915_v16  ;;  %14773 = vmatpush3.msra.mxu1 %v2822_v1  ;;  %v18054_v1 = vand.u32 4294901760, %v18036_v25 }
 0x1d1   :  { %14715 = vmatpush3.msra.mxu0 %v17915_v16  ;;  %14698 = vmatmul.mubr.f32.gmra.mxu1 %v17747_v51  ;;  %v2850_v37 = vand.u32 4294901760, %v2849_v39  ;;  %v18077_v14 = vsub.f32 %v110_v42, %v18056_v35  ;;  %v18083_v39 = vand.u32 4294901760, %v108_v22  ;;  %v2877_v42 = vsub.f32 %v18050_v19, %v18070_v61 }
 0x1d2   :  { %14664 = vmatmul.mubr.f32.gmra.mxu0 %v17701_v58  ;;  %14716 = vmatprep.subr.mxu0 %v17926_v15  ;;  %v18021_v58 = vsub.f32 %v114_v10, %v18001_v27  ;;  %v18062_v10 = vsub.f32 %v111_v34, %v18042_v9 }
 0x1d3   :  { %14666 = vmatprep.mubr.f32.mxu0 %v17740_v29  ;;  %14700 = vmatprep.mubr.f32.mxu1 %v17789_v18  ;;  %v18025_v29 = vand.u32 4294901760, %v18006_v7 }
 0x1d4   :  { %14717 = vmatpush3.msra.mxu0 %v17926_v15  ;;  %14774 = vmatprep.subr.mxu1 %v2829_v31  ;;  %v18040_v30 = vand.u32 4294901760, %v18021_v58 }
 0x1d5   :  { %14718 = vmatprep.subr.mxu0 %v17947_v38  ;;  %14775 = vmatpush3.msra.mxu1 %v2829_v31 }
 0x1d6   :  { %14719 = vmatpush3.msra.mxu0 %v17947_v38  ;;  %14701 = vmatmul.mubr.f32.gmra.mxu1 %v17775_v33  ;;  %v2863_v54 = vsub.f32 %v18021_v58, %v18040_v30 }
 0x1d7   :  { %14667 = vmatmul.mubr.f32.gmra.mxu0 %v17726_v13  ;;  %14720 = vmatprep.subr.mxu0 %v17957_v41  ;;  %v2856_v13 = vsub.f32 %v18006_v7, %v18025_v29 }
 0x1d8   :  { %14776 = vmatprep.subr.mxu1 %v2836_v5  ;;  %14669 = vmatprep.mubr.f32.mxu0 %v17764_v44  ;;  %v109_v44 = vld [vmem:[#allocation8 + $0x10] sm:$0xff]  ;;  %v2864_v34 = vand.u32 4294901760, %v2863_v54  ;;  %v18097_v54 = vand.u32 4294901760, %v18077_v14 }
 0x1d9   :  { %14703 = vmatprep.mubr.f32.mxu1 %v17815_v49  ;;  %14721 = vmatpush3.msra.mxu0 %v17957_v41  ;;  %v2857_v31 = vand.u32 4294901760, %v2856_v13  ;;  %v18066_v3 = vand.u32 4294901760, %v109_v44 }
 0x1da   :  { %14777 = vmatpush3.msra.mxu1 %v2836_v5  ;;  %14722 = vmatprep.subr.mxu0 %v17963_v43  ;;  %v107_v5 = vld [vmem:[#allocation8] sm:$0xff] }
 0x1db   :  { %14778 = vmatprep.subr.mxu1 %v2843_v47  ;;  %14723 = vmatpush3.msra.mxu0 %v17963_v43  ;;  %v18092_v13 = vand.u32 4294901760, %v107_v5 }
 0x1dc   :  { %14779 = vmatpush3.msra.mxu1 %v2843_v47  ;;  %14670 = vmatmul.mubr.f32.gmra.mxu0 %v17747_v51  ;;  %v2870_v51 = vsub.f32 %v18036_v25, %v18054_v1  ;;  %v18087_v47 = vsub.f32 %v109_v44, %v18066_v3 }
 0x1dd   :  { %14704 = vmatmul.mubr.f32.gmra.mxu1 %v17800_v52  ;;  %14724 = vmatprep.subr.mxu0 %v17974_v45  ;;  %v18112_v26 = vsub.f32 %v107_v5, %v18092_v13 }
 0x1de   :  { %14780 = vmatprep.subr.mxu1 %v2850_v37  ;;  %14672 = vmatprep.mubr.f32.mxu0 %v17789_v18  ;;  %v18081_v18 = vand.u32 4294901760, %v18062_v10 }
 0x1df   :  { %14706 = vmatprep.mubr.f32.mxu1 %v17842_v48  ;;  %14725 = vmatpush3.msra.mxu0 %v17974_v45 }
 0x1e0   :  { %14781 = vmatpush3.msra.mxu1 %v2850_v37  ;;  %14726 = vmatprep.subr.mxu0 %v17986_v11  ;;  %v2871_v37 = vand.u32 4294901760, %v2870_v51  ;;  %v2884_v44 = vsub.f32 %v18062_v10, %v18081_v18  ;;  %v2878_v51 = vand.u32 4294901760, %v2877_v42 }
 0x1e1   :  { %14782 = vmatprep.subr.mxu1 %v2857_v31  ;;  %14727 = vmatpush3.msra.mxu0 %v17986_v11 }
 0x1e2   :  { %14783 = vmatpush3.msra.mxu1 %v2857_v31  ;;  %14673 = vmatmul.mubr.f32.gmra.mxu0 %v17775_v33  ;;  %v18103_v33 = vsub.f32 %v108_v22, %v18083_v39  ;;  %v18108_v31 = vand.u32 4294901760, %v18087_v47  ;;  %v2885_v22 = vand.u32 4294901760, %v2884_v44 }
 0x1e3   :  { %14707 = vmatmul.mubr.f32.gmra.mxu1 %v17825_v57  ;;  %14728 = vmatprep.subr.mxu0 %v18001_v27 }
 0x1e4   :  { %14784 = vmatprep.subr.mxu1 %v2864_v34  ;;  %14675 = vmatprep.mubr.f32.mxu0 %v17815_v49  ;;  %v2891_v49 = vsub.f32 %v18077_v14, %v18097_v54  ;;  %v18119_v21 = vand.u32 4294901760, %v18103_v33  ;;  %v2898_v5 = vsub.f32 %v18087_v47, %v18108_v31 }
 0x1e5   :  { %14709 = vmatprep.mubr.f32.mxu1 %v17864_v0  ;;  %14729 = vmatpush3.msra.mxu0 %v18001_v27 }
 0x1e6   :  { %14785 = vmatpush3.msra.mxu1 %v2864_v34  ;;  %14730 = vmatprep.subr.mxu0 %v18017_v32  ;;  %v18127_v34 = vand.u32 4294901760, %v18112_v26  ;;  %v2905_v42 = vsub.f32 %v18103_v33, %v18119_v21 }
 0x1e7   :  { %14786 = vmatprep.subr.mxu1 %v2871_v37  ;;  %14731 = vmatpush3.msra.mxu0 %v18017_v32 }
 0x1e8   :  { %14787 = vmatpush3.msra.mxu1 %v2871_v37  ;;  %14676 = vmatmul.mubr.f32.gmra.mxu0 %v17800_v52  ;;  %v2892_v52 = vand.u32 4294901760, %v2891_v49  ;;  %v2899_v37 = vand.u32 4294901760, %v2898_v5  ;;  %v2906_v44 = vand.u32 4294901760, %v2905_v42  ;;  %v22724_v49 = vld [vmem:[#allocation49_spill] sm:$0xff]  ;;  %v22729_v42 = vld [vmem:[#allocation32_spill] sm:$0xff] }
 0x1e9   :  { %14710 = vmatmul.mubr.f32.gmra.mxu1 %v17852_v6  ;;  %14732 = vmatprep.subr.mxu0 %v18031_v20  ;;  %v22727_v5 = vld [vmem:[#allocation29_spill] sm:$0xff] }
 0x1ea   :  { %14788 = vmatprep.subr.mxu1 %v2878_v51  ;;  %14678 = vmatprep.mubr.f32.mxu0 %v17842_v48  ;;  %v2912_v48 = vsub.f32 %v18112_v26, %v18127_v34 }
 0x1eb   :  { %14733 = vmatpush3.msra.mxu0 %v18031_v20  ;;  %14789 = vmatpush3.msra.mxu1 %v2878_v51 }
 0x1ec   :  { %14734 = vmatprep.subr.mxu0 %v18042_v9  ;;  %14790 = vmatprep.subr.mxu1 %v2885_v22  ;;  %v2913_v51 = vand.u32 4294901760, %v2912_v48  ;;  %v22733_v48 = vld [vmem:[#allocation41_spill] sm:$0xff] }
 0x1ed   :  { %14735 = vmatpush3.msra.mxu0 %v18042_v9  ;;  %14791 = vmatpush3.msra.mxu1 %v2885_v22  ;;  %v22725_v22 = vld [vmem:[#allocation24_spill] sm:$0xff] }
 0x1ee   :  { %14679 = vmatmul.mubr.f32.gmra.mxu0 %v17825_v57  ;;  %14736 = vmatprep.subr.mxu0 %v18056_v35  ;;  %v22722_v57 = vld [vmem:[#allocation46_spill] sm:$0xff] }
 0x1ef   :  { %14792 = vmatprep.subr.mxu1 %v2892_v52  ;;  %14681 = vmatprep.mubr.f32.mxu0 %v17864_v0  ;;  %v22723_v0 = vld [vmem:[#allocation22_spill] sm:$0xff] }
 0x1f0   :  { %14737 = vmatpush3.msra.mxu0 %v18056_v35  ;;  %14793 = vmatpush3.msra.mxu1 %v2892_v52  ;;  %v22728_v52 = vld [vmem:[#allocation58_spill] sm:$0xff] }
 0x1f1   :  { %14738 = vmatprep.subr.mxu0 %v18066_v3  ;;  %14794 = vmatprep.subr.mxu1 %v2899_v37 }
 0x1f2   :  { %14739 = vmatpush3.msra.mxu0 %v18066_v3  ;;  %14795 = vmatpush3.msra.mxu1 %v2899_v37  ;;  %v22732_v37 = vld [vmem:[#allocation64_spill] sm:$0xff] }
 0x1f3   :  { %14682 = vmatmul.mubr.f32.gmra.mxu0 %v17852_v6  ;;  %14740 = vmatprep.subr.mxu0 %v18083_v39  ;;  %v22726_v6 = vld [vmem:[#allocation55_spill] sm:$0xff] }
 0x1f4   :  { %14796 = vmatprep.subr.mxu1 %v2906_v44  ;;  %14741 = vmatpush3.msra.mxu0 %v18083_v39 }
 0x1f5   :  { %14797 = vmatpush3.msra.mxu1 %v2906_v44  ;;  %14742 = vmatprep.subr.mxu0 %v18092_v13  ;;  %v22736_v44 = vld [vmem:[#allocation72_spill] sm:$0xff] }
 0x1f6   :  { %14798 = vmatprep.subr.mxu1 %v2913_v51  ;;  %14743 = vmatpush3.msra.mxu0 %v18092_v13 }
 0x1f7   :  { %14744 = vmatprep.mubr.f32.mxu0 %v22722_v57  ;;  %14799 = vmatpush3.msra.mxu1 %v2913_v51  ;;  %v22737_v51 = vld [vmem:[#allocation52_spill] sm:$0xff] }
 0x1f8   :  { %14800 = vmatprep.mubr.f32.mxu1 %v22723_v0  ;;  %14745 = vmatmul.mubr.f32.vlgmr.msra.gmra.mxu0 %v22724_v49 }
 0x1f9   :  { %14801 = vmatmul.mubr.f32.vlgmr.msra.gmra.mxu1 %v22725_v22  ;;  %14824 = vmatprep.subr.mxu0 %v17837_v63 }
 0x1fa   :  { %14825 = vmatpush3.msra.mxu0 %v17837_v63  ;;  %14880 = vmatprep.subr.mxu1 %v17669_v40  ;;  %v22730_v63 = vld [vmem:[#allocation61_spill] sm:$0xff] }
 0x1fb   :  { %14826 = vmatprep.subr.mxu0 %v17924_v17  ;;  %14881 = vmatpush3.msra.mxu1 %v17669_v40 }
 0x1fc   :  { %14747 = vmatprep.mubr.f32.mxu0 %v22726_v6  ;;  %14803 = vmatprep.mubr.f32.mxu1 %v22727_v5 }
 0x1fd   :  { %14827 = vmatpush3.msra.mxu0 %v17924_v17  ;;  %14882 = vmatprep.subr.mxu1 %v17915_v16  ;;  %v22731_v17 = vld [vmem:[#allocation38_spill] sm:$0xff] }
 0x1fe   :  { %14748 = vmatmul.mubr.f32.gmra.mxu0 %v22728_v52  ;;  %14804 = vmatmul.mubr.f32.gmra.mxu1 %v22729_v42 }
 0x1ff   :  { %14828 = vmatprep.subr.mxu0 %v17936_v59  ;;  %14883 = vmatpush3.msra.mxu1 %v17915_v16 }
 0x200   :  { %14829 = vmatpush3.msra.mxu0 %v17936_v59  ;;  %14884 = vmatprep.subr.mxu1 %v17926_v15  ;;  %v22734_v59 = vld [vmem:[#allocation69_spill] sm:$0xff] }
 0x201   :  { %14830 = vmatprep.subr.mxu0 %v17955_v36  ;;  %14885 = vmatpush3.msra.mxu1 %v17926_v15 }
 0x202   :  { %14750 = vmatprep.mubr.f32.mxu0 %v22730_v63  ;;  %14806 = vmatprep.mubr.f32.mxu1 %v22731_v17 }
 0x203   :  { %14831 = vmatpush3.msra.mxu0 %v17955_v36  ;;  %14886 = vmatprep.subr.mxu1 %v17947_v38  ;;  %v22735_v36 = vld [vmem:[#allocation48_spill] sm:$0xff] }
 0x204   :  { %14751 = vmatmul.mubr.f32.gmra.mxu0 %v22732_v37  ;;  %14807 = vmatmul.mubr.f32.gmra.mxu1 %v22733_v48 }
 0x205   :  { %14832 = vmatprep.subr.mxu0 %v17969_v2  ;;  %14887 = vmatpush3.msra.mxu1 %v17947_v38 }
 0x206   :  { %14833 = vmatpush3.msra.mxu0 %v17969_v2  ;;  %14888 = vmatprep.subr.mxu1 %v17957_v41  ;;  %v22738_v2 = vld [vmem:[#allocation77_spill] sm:$0xff] }
 0x207   :  { %14834 = vmatprep.subr.mxu0 %v17978_v50  ;;  %14889 = vmatpush3.msra.mxu1 %v17957_v41 }
 0x208   :  { %14753 = vmatprep.mubr.f32.mxu0 %v22734_v59  ;;  %14809 = vmatprep.mubr.f32.mxu1 %v22735_v36  ;;  %v22741_v59 = vld [vmem:[#allocation60_spill] sm:$0xff] }
 0x209   :  { %14835 = vmatpush3.msra.mxu0 %v17978_v50  ;;  %14890 = vmatprep.subr.mxu1 %v17963_v43  ;;  %v22739_v50 = vld [vmem:[#allocation57_spill] sm:$0xff] }
 0x20a   :  { %14754 = vmatmul.mubr.f32.gmra.mxu0 %v22736_v44  ;;  %14810 = vmatmul.mubr.f32.gmra.mxu1 %v22737_v51  ;;  %v22740_v44 = vld [vmem:[#allocation80_spill] sm:$0xff] }
 0x20b   :  { %14836 = vmatprep.subr.mxu0 %v17991_v62  ;;  %14891 = vmatpush3.msra.mxu1 %v17963_v43 }
 0x20c   :  { %14837 = vmatpush3.msra.mxu0 %v17991_v62  ;;  %14892 = vmatprep.subr.mxu1 %v17974_v45  ;;  %v22742_v62 = vld [vmem:[#allocation85_spill] sm:$0xff] }
 0x20d   :  { %14838 = vmatprep.subr.mxu0 %v18006_v7  ;;  %14893 = vmatpush3.msra.mxu1 %v17974_v45 }
 0x20e   :  { %14756 = vmatprep.mubr.f32.mxu0 %v22738_v2  ;;  %14812 = vmatprep.mubr.f32.mxu1 %v22739_v50  ;;  %v22745_v2 = vld [vmem:[#allocation68_spill] sm:$0xff] }
 0x20f   :  { %14839 = vmatpush3.msra.mxu0 %v18006_v7  ;;  %14894 = vmatprep.subr.mxu1 %v17986_v11  ;;  %v22743_v7 = vld [vmem:[#allocation66_spill] sm:$0xff] }
 0x210   :  { %14757 = vmatmul.mubr.f32.gmra.mxu0 %v22740_v44  ;;  %14813 = vmatmul.mubr.f32.gmra.mxu1 %v22741_v59  ;;  %v22744_v44 = vld [vmem:[#allocation88_spill] sm:$0xff] }
 0x211   :  { %14840 = vmatprep.subr.mxu0 %v18021_v58  ;;  %14895 = vmatpush3.msra.mxu1 %v17986_v11 }
 0x212   :  { %14841 = vmatpush3.msra.mxu0 %v18021_v58  ;;  %14896 = vmatprep.subr.mxu1 %v18001_v27  ;;  %v22746_v58 = vld [vmem:[#allocation91_spill] sm:$0xff] }
 0x213   :  { %14842 = vmatprep.subr.mxu0 %v18036_v25  ;;  %14897 = vmatpush3.msra.mxu1 %v18001_v27 }
 0x214   :  { %14759 = vmatprep.mubr.f32.mxu0 %v22742_v62  ;;  %14815 = vmatprep.mubr.f32.mxu1 %v22743_v7  ;;  %v22749_v62 = vld [vmem:[#allocation76_spill] sm:$0xff] }
 0x215   :  { %14843 = vmatpush3.msra.mxu0 %v18036_v25  ;;  %14898 = vmatprep.subr.mxu1 %v18017_v32  ;;  %v22747_v25 = vld [vmem:[#allocation74_spill] sm:$0xff] }
 0x216   :  { %14760 = vmatmul.mubr.f32.gmra.mxu0 %v22744_v44  ;;  %14816 = vmatmul.mubr.f32.gmra.mxu1 %v22745_v2  ;;  %v22748_v44 = vld [vmem:[#allocation93_spill] sm:$0xff] }
 0x217   :  { %14844 = vmatprep.subr.mxu0 %v18050_v19  ;;  %14899 = vmatpush3.msra.mxu1 %v18017_v32 }
 0x218   :  { %14845 = vmatpush3.msra.mxu0 %v18050_v19  ;;  %14900 = vmatprep.subr.mxu1 %v18031_v20  ;;  %v22750_v19 = vld [vmem:[#allocation94_spill] sm:$0xff] }
 0x219   :  { %14846 = vmatprep.subr.mxu0 %v18062_v10  ;;  %14901 = vmatpush3.msra.mxu1 %v18031_v20 }
 0x21a   :  { %14762 = vmatprep.mubr.f32.mxu0 %v22746_v58  ;;  %14818 = vmatprep.mubr.f32.mxu1 %v22747_v25  ;;  %v22753_v58 = vld [vmem:[#allocation84_spill] sm:$0xff] }
 0x21b   :  { %14847 = vmatpush3.msra.mxu0 %v18062_v10  ;;  %14902 = vmatprep.subr.mxu1 %v18042_v9  ;;  %v22751_v10 = vld [vmem:[#allocation82_spill] sm:$0xff] }
 0x21c   :  { %14763 = vmatmul.mubr.f32.gmra.mxu0 %v22748_v44  ;;  %14819 = vmatmul.mubr.f32.gmra.mxu1 %v22749_v62  ;;  %v22752_v44 = vld [vmem:[#allocation95_spill] sm:$0xff] }
 0x21d   :  { %14848 = vmatprep.subr.mxu0 %v18077_v14  ;;  %14903 = vmatpush3.msra.mxu1 %v18042_v9 }
 0x21e   :  { %14849 = vmatpush3.msra.mxu0 %v18077_v14  ;;  %14904 = vmatprep.subr.mxu1 %v18056_v35  ;;  %v22754_v14 = vld [vmem:[#allocation26_spill] sm:$0xff] }
 0x21f   :  { %14850 = vmatprep.subr.mxu0 %v18087_v47  ;;  %14905 = vmatpush3.msra.mxu1 %v18056_v35 }
 0x220   :  { %14765 = vmatprep.mubr.f32.mxu0 %v22750_v19  ;;  %14821 = vmatprep.mubr.f32.mxu1 %v22751_v10 }
 0x221   :  { %14851 = vmatpush3.msra.mxu0 %v18087_v47  ;;  %14906 = vmatprep.subr.mxu1 %v18066_v3  ;;  %v22755_v47 = vld [vmem:[#allocation28_spill] sm:$0xff] }
 0x222   :  { %14766 = vmatmul.mubr.f32.gmra.mxu0 %v22752_v44  ;;  %14822 = vmatmul.mubr.f32.gmra.mxu1 %v22753_v58  ;;  %v22756_v44 = vld [vmem:[#allocation34_spill] sm:$0xff] }
 0x223   :  { %14852 = vmatprep.subr.mxu0 %v18103_v33  ;;  %14907 = vmatpush3.msra.mxu1 %v18066_v3 }
 0x224   :  { %14853 = vmatpush3.msra.mxu0 %v18103_v33  ;;  %14908 = vmatprep.subr.mxu1 %v18083_v39  ;;  %v22757_v33 = vld [vmem:[#allocation35_spill] sm:$0xff] }
 0x225   :  { %14854 = vmatprep.subr.mxu0 %v18112_v26  ;;  %14909 = vmatpush3.msra.mxu1 %v18083_v39 }
 0x226   :  { %14855 = vmatpush3.msra.mxu0 %v18112_v26  ;;  %14856 = vmatprep.mubr.f32.mxu0 %v22754_v14  ;;  %v22758_v26 = vld [vmem:[#allocation36_spill] sm:$0xff] }
 0x227   :  { %14910 = vmatprep.subr.mxu1 %v18092_v13  ;;  %14857 = vmatmul.mubr.f32.vlgmr.msra.gmra.mxu0 %v22755_v47  ;;  %v22759_v47 = vld [vmem:[#allocation39_spill] sm:$0xff] }
 0x228   :  { %14911 = vmatpush3.msra.mxu1 %v18092_v13  ;;  %14912 = vmatprep.mubr.f32.mxu1 %v22756_v44  ;;  %v22760_v44 = vld [vmem:[#allocation42_spill] sm:$0xff] }
 0x229   :  { %14936 = vmatprep.subr.mxu0 %v17868_v53  ;;  %14913 = vmatmul.mubr.f32.vlgmr.msra.gmra.mxu1 %v22757_v33 }
 0x22a   :  { %14937 = vmatpush3.msra.mxu0 %v17868_v53  ;;  %14992 = vmatprep.subr.mxu1 %v17669_v40  ;;  %v22761_v53 = vld [vmem:[#allocation45_spill] sm:$0xff] }
 0x22b   :  { %14938 = vmatprep.subr.mxu0 %v17933_v60  ;;  %14993 = vmatpush3.msra.mxu1 %v17669_v40  ;;  %v22762_v40 = vld [vmem:[#allocation44_spill] sm:$0xff] }
 0x22c   :  { %14859 = vmatprep.mubr.f32.mxu0 %v22758_v26  ;;  %14939 = vmatpush3.msra.mxu0 %v17933_v60  ;;  %v22763_v60 = vld [vmem:[#allocation47_spill] sm:$0xff] }
 0x22d   :  { %14994 = vmatprep.subr.mxu1 %v17915_v16  ;;  %14860 = vmatmul.mubr.f32.gmra.mxu0 %v22759_v47 }
 0x22e   :  { %14915 = vmatprep.mubr.f32.mxu1 %v22760_v44  ;;  %14940 = vmatprep.subr.mxu0 %v17945_v24  ;;  %v22764_v44 = vld [vmem:[#allocation51_spill] sm:$0xff] }
 0x22f   :  { %14995 = vmatpush3.msra.mxu1 %v17915_v16  ;;  %14941 = vmatpush3.msra.mxu0 %v17945_v24  ;;  %v22765_v16 = vld [vmem:[#allocation53_spill] sm:$0xff]  ;;  %v22767_v24 = vld [vmem:[#allocation56_spill] sm:$0xff] }
 0x230   :  { %14916 = vmatmul.mubr.f32.gmra.mxu1 %v22761_v53  ;;  %14996 = vmatprep.subr.mxu1 %v17926_v15 }
 0x231   :  { %14942 = vmatprep.subr.mxu0 %v17966_v46  ;;  %14997 = vmatpush3.msra.mxu1 %v17926_v15  ;;  %v22766_v15 = vld [vmem:[#allocation54_spill] sm:$0xff] }
 0x232   :  { %14862 = vmatprep.mubr.f32.mxu0 %v22762_v40  ;;  %14943 = vmatpush3.msra.mxu0 %v17966_v46  ;;  %v22768_v46 = vld [vmem:[#allocation59_spill] sm:$0xff] }
 0x233   :  { %14998 = vmatprep.subr.mxu1 %v17947_v38  ;;  %14863 = vmatmul.mubr.f32.gmra.mxu0 %v22763_v60 }
 0x234   :  { %14918 = vmatprep.mubr.f32.mxu1 %v22764_v44  ;;  %14944 = vmatprep.subr.mxu0 %v17983_v23 }
 0x235   :  { %14999 = vmatpush3.msra.mxu1 %v17947_v38  ;;  %14945 = vmatpush3.msra.mxu0 %v17983_v23  ;;  %v22769_v38 = vld [vmem:[#allocation62_spill] sm:$0xff]  ;;  %v22771_v23 = vld [vmem:[#allocation65_spill] sm:$0xff] }
 0x236   :  { %14919 = vmatmul.mubr.f32.gmra.mxu1 %v22765_v16  ;;  %15000 = vmatprep.subr.mxu1 %v17957_v41 }
 0x237   :  { %14946 = vmatprep.subr.mxu0 %v17996_v55  ;;  %15001 = vmatpush3.msra.mxu1 %v17957_v41  ;;  %v22770_v41 = vld [vmem:[#allocation63_spill] sm:$0xff] }
 0x238   :  { %14865 = vmatprep.mubr.f32.mxu0 %v22766_v15  ;;  %14947 = vmatpush3.msra.mxu0 %v17996_v55  ;;  %v22772_v55 = vld [vmem:[#allocation67_spill] sm:$0xff] }
 0x239   :  { %15002 = vmatprep.subr.mxu1 %v17963_v43  ;;  %14866 = vmatmul.mubr.f32.gmra.mxu0 %v22767_v24 }
 0x23a   :  { %14921 = vmatprep.mubr.f32.mxu1 %v22768_v46  ;;  %14948 = vmatprep.subr.mxu0 %v18011_v4 }
 0x23b   :  { %15003 = vmatpush3.msra.mxu1 %v17963_v43  ;;  %14949 = vmatpush3.msra.mxu0 %v18011_v4  ;;  %v22773_v43 = vld [vmem:[#allocation70_spill] sm:$0xff]  ;;  %v22775_v4 = vld [vmem:[#allocation73_spill] sm:$0xff] }
 0x23c   :  { %14922 = vmatmul.mubr.f32.gmra.mxu1 %v22769_v38  ;;  %15004 = vmatprep.subr.mxu1 %v17974_v45 }
 0x23d   :  { %14950 = vmatprep.subr.mxu0 %v18025_v29  ;;  %15005 = vmatpush3.msra.mxu1 %v17974_v45  ;;  %v22774_v45 = vld [vmem:[#allocation71_spill] sm:$0xff] }
 0x23e   :  { %14868 = vmatprep.mubr.f32.mxu0 %v22770_v41  ;;  %14951 = vmatpush3.msra.mxu0 %v18025_v29 }
 0x23f   :  { %15006 = vmatprep.subr.mxu1 %v17986_v11  ;;  %14869 = vmatmul.mubr.f32.gmra.mxu0 %v22771_v23 }
 0x240   :  { %14924 = vmatprep.mubr.f32.mxu1 %v22772_v55  ;;  %14952 = vmatprep.subr.mxu0 %v18040_v30 }
 0x241   :  { %15007 = vmatpush3.msra.mxu1 %v17986_v11  ;;  %14953 = vmatpush3.msra.mxu0 %v18040_v30  ;;  %v22776_v11 = vld [vmem:[#allocation75_spill] sm:$0xff] }
 0x242   :  { %14925 = vmatmul.mubr.f32.gmra.mxu1 %v22773_v43  ;;  %15008 = vmatprep.subr.mxu1 %v18001_v27 }
 0x243   :  { %14954 = vmatprep.subr.mxu0 %v18054_v1  ;;  %15009 = vmatpush3.msra.mxu1 %v18001_v27  ;;  %v22778_v27 = vld [vmem:[#allocation78_spill] sm:$0xff] }
 0x244   :  { %14871 = vmatprep.mubr.f32.mxu0 %v22774_v45  ;;  %14955 = vmatpush3.msra.mxu0 %v18054_v1 }
 0x245   :  { %15010 = vmatprep.subr.mxu1 %v18017_v32  ;;  %14872 = vmatmul.mubr.f32.gmra.mxu0 %v22775_v4  ;;  %v14578_v29 = vpop.f32.mrf.mxu1  ;;  %v22779_v4 = vld [vmem:[#allocation79_spill] sm:$0xff] }
 0x246   :  { %14927 = vmatprep.mubr.f32.mxu1 %v22776_v11  ;;  %14956 = vmatprep.subr.mxu0 %v18070_v61 }
 0x247   :  { %15011 = vmatpush3.msra.mxu1 %v18017_v32  ;;  %14957 = vmatpush3.msra.mxu0 %v18070_v61  ;;  %v18308_v30 = vpop.f32.mrf.mxu1  ;;  %v22780_v32 = vld [vmem:[#allocation81_spill] sm:$0xff] }
 0x248   :  { %22777 = vst [vmem:[#allocation21_spill] sm:$0xff] %v18308_v30  ;;  %14928 = vmatmul.mubr.f32.gmra.mxu1 %v22778_v27  ;;  %15012 = vmatprep.subr.mxu1 %v18031_v20  ;;  %v22782_v30 = vld [vmem:[#allocation83_spill] sm:$0xff]  ;;  %v22783_v27 = vld [vmem:[#allocation86_spill] sm:$0xff] }
 0x249   :  { %14958 = vmatprep.subr.mxu0 %v18081_v18  ;;  %15013 = vmatpush3.msra.mxu1 %v18031_v20  ;;  %v14581_v1 = vpop.f32.mrf.mxu1 }
 0x24a   :  { %14874 = vmatprep.mubr.f32.mxu0 %v22779_v4  ;;  %14959 = vmatpush3.msra.mxu0 %v18081_v18  ;;  %v22788_v4 = vld [vmem:[#allocation90_spill] sm:$0xff] }
 0x24b   :  { %15014 = vmatprep.subr.mxu1 %v18042_v9  ;;  %14875 = vmatmul.mubr.f32.gmra.mxu0 %v22780_v32  ;;  %v18318_v61 = vpop.f32.mrf.mxu1 }
 0x24c   :  { %22781 = vst [vmem:[#allocation23_spill] sm:$0xff] %v18318_v61  ;;  %14930 = vmatprep.mubr.f32.mxu1 %v22782_v30  ;;  %14960 = vmatprep.subr.mxu0 %v18097_v54  ;;  %v22785_v30 = vld [vmem:[#allocation87_spill] sm:$0xff] }
 0x24d   :  { %15015 = vmatpush3.msra.mxu1 %v18042_v9  ;;  %14961 = vmatpush3.msra.mxu0 %v18097_v54  ;;  %v14584_v20 = vpop.f32.mrf.mxu1  ;;  %v14550_v18 = vpop.f32.mrf.mxu0  ;;  %v22787_v54 = vld [vmem:[#allocation89_spill] sm:$0xff] }
 0x24e   :  { %14931 = vmatmul.mubr.f32.gmra.mxu1 %v22783_v27  ;;  %15016 = vmatprep.subr.mxu1 %v18056_v35  ;;  %v18328_v32 = vadd.f32 %v14578_v29, %v14550_v18 }
 0x24f   :  { %14962 = vmatprep.subr.mxu0 %v18108_v31  ;;  %15017 = vmatpush3.msra.mxu1 %v18056_v35  ;;  %v18330_v61 = vpop.f32.mrf.mxu1  ;;  %v18334_v9 = vpop.f32.mrf.mxu0 }
 0x250   :  { %22784 = vst [vmem:[#allocation97_spill] sm:$0xff] %v18330_v61  ;;  %14877 = vmatprep.mubr.f32.mxu0 %v22785_v30  ;;  %14963 = vmatpush3.msra.mxu0 %v18108_v31  ;;  %22786 = vst [vmem:[#allocation25_spill] sm:$0xff] %v18334_v9  ;;  %v22790_v31 = vld [vmem:[#allocation92_spill] sm:$0xff] }
 0x251   :  { %15018 = vmatprep.subr.mxu1 %v18066_v3  ;;  %14878 = vmatmul.mubr.f32.gmra.mxu0 %v22787_v54  ;;  %v14587_v27 = vpop.f32.mrf.mxu1  ;;  %v14553_v35 = vpop.f32.mrf.mxu0 }
 0x252   :  { %14933 = vmatprep.mubr.f32.mxu1 %v22788_v4  ;;  %14964 = vmatprep.subr.mxu0 %v18119_v21  ;;  %v18342_v29 = vadd.f32 %v14581_v1, %v14553_v35 }
 0x253   :  { %15019 = vmatpush3.msra.mxu1 %v18066_v3  ;;  %14965 = vmatpush3.msra.mxu0 %v18119_v21  ;;  %v18344_v18 = vpop.f32.mrf.mxu1  ;;  %v18348_v61 = vpop.f32.mrf.mxu0 }
 0x254   :  { %22789 = vst [vmem:[#allocation27_spill] sm:$0xff] %v18344_v18  ;;  %14934 = vmatmul.mubr.f32.gmra.mxu1 %v22790_v31  ;;  %15020 = vmatprep.subr.mxu1 %v18083_v39  ;;  %22791 = vst [vmem:[#allocation31_spill] sm:$0xff] %v18348_v61 }
 0x255   :  { %14966 = vmatprep.subr.mxu0 %v18127_v34  ;;  %15021 = vmatpush3.msra.mxu1 %v18083_v39  ;;  %v14590_v9 = vpop.f32.mrf.mxu1  ;;  %v14556_v21 = vpop.f32.mrf.mxu0 }
 0x256   :  { %14967 = vmatpush3.msra.mxu0 %v18127_v34  ;;  %14968 = vmatprep.mubr.f32.mxu0 %v22723_v0  ;;  %v18356_v3 = vadd.f32 %v14584_v20, %v14556_v21 }
 0x257   :  { %15022 = vmatprep.subr.mxu1 %v18092_v13  ;;  %14969 = vmatmul.mubr.f32.vlgmr.msra.gmra.mxu0 %v22725_v22  ;;  %v18358_v1 = vpop.f32.mrf.mxu1  ;;  %v18362_v35 = vpop.f32.mrf.mxu0 }
 0x258   :  { %22792 = vst [vmem:[#allocation37_spill] sm:$0xff] %v18358_v1  ;;  %15023 = vmatpush3.msra.mxu1 %v18092_v13  ;;  %15024 = vmatprep.mubr.f32.mxu1 %v22723_v0  ;;  %22793 = vst [vmem:[#allocation40_spill] sm:$0xff] %v18362_v35  ;;  %v22795_v13 = vld [vmem:[#allocation33_spill] sm:$0xff] }
 0x259   :  { %15025 = vmatmul.mubr.f32.vlgmr.msra.gmra.mxu1 %v22725_v22  ;;  %14971 = vmatprep.mubr.f32.mxu0 %v22727_v5  ;;  %v14593_v39 = vpop.f32.mrf.mxu1  ;;  %v14559_v34 = vpop.f32.mrf.mxu0 }
 0x25a   :  { %15027 = vmatprep.mubr.f32.mxu1 %v22727_v5  ;;  %15048 = vmatprep.subr.mxu0 %v22716_v12  ;;  %v18369_v20 = vadd.f32 %v14587_v27, %v14559_v34 }
 0x25b   :  { %14972 = vmatmul.mubr.f32.gmra.mxu0 %v22729_v42  ;;  %v18371_v21 = vpop.f32.mrf.mxu1  ;;  %15076 = vmatprep.subr.mxu1 %v22795_v13  ;;  %v18375_v1 = vpop.f32.mrf.mxu0 }
 0x25c   :  { %22794 = vst [vmem:[#allocation43_spill] sm:$0xff] %v18371_v21  ;;  %14974 = vmatprep.mubr.f32.mxu0 %v22731_v17  ;;  %22796 = vst [vmem:[#allocation50_spill] sm:$0xff] %v18375_v1  ;;  %15049 = vmatpush3.msra.mxu0 %v22716_v12  ;;  %v22798_v21 = vld [vmem:[#allocation20_spill] sm:$0xff] }
 0x25d   :  { %15028 = vmatmul.mubr.f32.gmra.mxu1 %v22729_v42  ;;  %v14596_v18 = vpop.f32.mrf.mxu1  ;;  %15050 = vmatprep.subr.mxu0 %v22717_v28  ;;  %v14562_v35 = vpop.f32.mrf.mxu0 }
 0x25e   :  { %15030 = vmatprep.mubr.f32.mxu1 %v22731_v17  ;;  %15077 = vmatpush3.msra.mxu1 %v22795_v13  ;;  %v18383_v27 = vadd.f32 %v14590_v9, %v14562_v35 }
 0x25f   :  { %14975 = vmatmul.mubr.f32.gmra.mxu0 %v22733_v48  ;;  %v18385_v34 = vpop.f32.mrf.mxu1  ;;  %15078 = vmatprep.subr.mxu1 %v22798_v21  ;;  %v18389_v1 = vpop.f32.mrf.mxu0 }
 0x260   :  { %22797 = vst [vmem:[#allocation96_spill] sm:$0xff] %v18385_v34  ;;  %14977 = vmatprep.mubr.f32.mxu0 %v22735_v36  ;;  %22799 = vst [vmem:[#allocation98_spill] sm:$0xff] %v18389_v1  ;;  %15051 = vmatpush3.msra.mxu0 %v22717_v28 }
 0x261   :  { %15031 = vmatmul.mubr.f32.gmra.mxu1 %v22733_v48  ;;  %v14599_v61 = vpop.f32.mrf.mxu1  ;;  %15104 = vmatprep.subr.mxu0 %v22718_v8  ;;  %v14565_v13 = vpop.f32.mrf.mxu0 }
 0x262   :  { %15033 = vmatprep.mubr.f32.mxu1 %v22735_v36  ;;  %15079 = vmatpush3.msra.mxu1 %v22798_v21  ;;  %v18397_v9 = vadd.f32 %v14593_v39, %v14565_v13 }
 0x263   :  { %14978 = vmatmul.mubr.f32.gmra.mxu0 %v22737_v51  ;;  %v18399_v35 = vpop.f32.mrf.mxu1  ;;  %15132 = vmatprep.subr.mxu1 %v22716_v12  ;;  %v18403_v34 = vpop.f32.mrf.mxu0 }
 0x264   :  { %22800 = vst [vmem:[#allocation99_spill] sm:$0xff] %v18399_v35  ;;  %14980 = vmatprep.mubr.f32.mxu0 %v22739_v50  ;;  %22801 = vst [vmem:[#allocation100_spill] sm:$0xff] %v18403_v34 }
 0x265   :  { %15034 = vmatmul.mubr.f32.gmra.mxu1 %v22737_v51  ;;  %v14634_v1 = vpop.f32.mrf.mxu1  ;;  %v14568_v31 = vpop.f32.mrf.mxu0 }
 0x266   :  { %15036 = vmatprep.mubr.f32.mxu1 %v22739_v50  ;;  %v1841_v21 = vadd.f32 %v14596_v18, %v14568_v31 }
 0x267   :  { %14981 = vmatmul.mubr.f32.gmra.mxu0 %v22741_v59  ;;  %v18408_v4 = vpop.f32.mrf.mxu1  ;;  %v18411_v39 = vpop.f32.mrf.mxu0 }
 0x268   :  { %22802 = vst [vmem:[#allocation101_spill] sm:$0xff] %v18408_v4  ;;  %14983 = vmatprep.mubr.f32.mxu0 %v22743_v7  ;;  %22803 = vst [vmem:[#allocation102_spill] sm:$0xff] %v18411_v39 }
 0x269   :  { %15037 = vmatmul.mubr.f32.gmra.mxu1 %v22741_v59  ;;  %v14637_v13 = vpop.f32.mrf.mxu1  ;;  %v14571_v35 = vpop.f32.mrf.mxu0 }
 0x26a   :  { %15039 = vmatprep.mubr.f32.mxu1 %v22743_v7  ;;  %v1853_v34 = vadd.f32 %v14599_v61, %v14571_v35 }
 0x26b   :  { %14984 = vmatmul.mubr.f32.gmra.mxu0 %v22745_v2  ;;  %v18416_v54 = vpop.f32.mrf.mxu1  ;;  %v18419_v18 = vpop.f32.mrf.mxu0 }
 0x26c   :  { %22804 = vst [vmem:[#allocation103_spill] sm:$0xff] %v18416_v54  ;;  %14986 = vmatprep.mubr.f32.mxu0 %v22747_v25  ;;  %22805 = vst [vmem:[#allocation104_spill] sm:$0xff] %v18419_v18 }
 0x26d   :  { %15040 = vmatmul.mubr.f32.gmra.mxu1 %v22745_v2  ;;  %v14640_v31 = vpop.f32.mrf.mxu1  ;;  %v14606_v4 = vpop.f32.mrf.mxu0 }
 0x26e   :  { %15042 = vmatprep.mubr.f32.mxu1 %v22747_v25  ;;  %v1936_v39 = vadd.f32 %v14606_v4, %v18328_v32 }
 0x26f   :  { %14987 = vmatmul.mubr.f32.gmra.mxu0 %v22749_v62  ;;  %v18425_v30 = vpop.f32.mrf.mxu1  ;;  %v18428_v61 = vpop.f32.mrf.mxu0 }
 0x270   :  { %22806 = vst [vmem:[#allocation105_spill] sm:$0xff] %v18425_v30  ;;  %14989 = vmatprep.mubr.f32.mxu0 %v22751_v10  ;;  %22807 = vst [vmem:[#allocation106_spill] sm:$0xff] %v18428_v61  ;;  %v2117_v54 = vadd.f32 %v14634_v1, %v1936_v39 }
 0x271   :  { %15043 = vmatmul.mubr.f32.gmra.mxu1 %v22749_v62  ;;  %v14643_v35 = vpop.f32.mrf.mxu1 }
 0x272   :  { %15045 = vmatprep.mubr.f32.mxu1 %v22751_v10  ;;  %v14609_v18 = vpop.f32.mrf.mxu0 }
 0x273   :  { %14990 = vmatmul.mubr.f32.gmra.mxu0 %v22753_v58  ;;  %v1950_v11 = vadd.f32 %v14609_v18, %v18342_v29  ;;  %v18434_v45 = vpop.f32.mrf.mxu1 }
 0x274   :  { %22808 = vst [vmem:[#allocation107_spill] sm:$0xff] %v18434_v45  ;;  %v18436_v4 = vpop.f32.mrf.mxu0 }
 0x275   :  { %22809 = vst [vmem:[#allocation108_spill] sm:$0xff] %v18436_v4  ;;  %15046 = vmatmul.mubr.f32.gmra.mxu1 %v22753_v58  ;;  %v14646_v32 = vpop.f32.mrf.mxu1  ;;  %v2133_v30 = vadd.f32 %v14637_v13, %v1950_v11 }
 0x276   :  { %v14612_v61 = vpop.f32.mrf.mxu0 }
 0x277   :  { %v1964_v43 = vadd.f32 %v14612_v61, %v18356_v3  ;;  %v18440_v55 = vpop.f32.mrf.mxu1 }
 0x278   :  { %22810 = vst [vmem:[#allocation109_spill] sm:$0xff] %v18440_v55  ;;  %v18442_v1 = vpop.f32.mrf.mxu0 }
 0x279   :  { %22811 = vst [vmem:[#allocation110_spill] sm:$0xff] %v18442_v1  ;;  %v14649_v39 = vpop.f32.mrf.mxu1  ;;  %v2149_v23 = vadd.f32 %v14640_v31, %v1964_v43 }
 0x27a   :  { %v14615_v41 = vpop.f32.mrf.mxu0 }
 0x27b   :  { %v1978_v29 = vadd.f32 %v14615_v41, %v18369_v20  ;;  %v18445_v18 = vpop.f32.mrf.mxu1 }
 0x27c   :  { %22812 = vst [vmem:[#allocation111_spill] sm:$0xff] %v18445_v18  ;;  %v18447_v45 = vpop.f32.mrf.mxu0 }
 0x27d   :  { %22813 = vst [vmem:[#allocation112_spill] sm:$0xff] %v18447_v45  ;;  %v14652_v4 = vpop.f32.mrf.mxu1  ;;  %v2165_v38 = vadd.f32 %v14643_v35, %v1978_v29 }
 0x27e   :  { %v14618_v46 = vpop.f32.mrf.mxu0 }
 0x27f   :  { %v1992_v11 = vadd.f32 %v14618_v46, %v18383_v27  ;;  %v18450_v13 = vpop.f32.mrf.mxu1 }
 0x280   :  { %22814 = vst [vmem:[#allocation113_spill] sm:$0xff] %v18450_v13  ;;  %v18452_v3 = vpop.f32.mrf.mxu0 }
 0x281   :  { %22815 = vst [vmem:[#allocation114_spill] sm:$0xff] %v18452_v3  ;;  %v14655_v61 = vpop.f32.mrf.mxu1  ;;  %v2181_v55 = vadd.f32 %v14646_v32, %v1992_v11 }
 0x282   :  { %v14621_v1 = vpop.f32.mrf.mxu0 }
 0x283   :  { %v2006_v43 = vadd.f32 %v14621_v1, %v18397_v9  ;;  %v18455_v31 = vpop.f32.mrf.mxu1 }
 0x284   :  { %22816 = vst [vmem:[#allocation115_spill] sm:$0xff] %v18455_v31  ;;  %v18457_v41 = vpop.f32.mrf.mxu0 }
 0x285   :  { %22817 = vst [vmem:[#allocation116_spill] sm:$0xff] %v18457_v41  ;;  %v14690_v20 = vpop.f32.mrf.mxu1  ;;  %v2197_v18 = vadd.f32 %v14649_v39, %v2006_v43 }
 0x286   :  { %v14624_v45 = vpop.f32.mrf.mxu0 }
 0x287   :  { %v2020_v35 = vadd.f32 %v14624_v45, %v1841_v21  ;;  %v18459_v29 = vpop.f32.mrf.mxu1 }
 0x288   :  { %22818 = vst [vmem:[#allocation117_spill] sm:$0xff] %v18459_v29  ;;  %v18461_v46 = vpop.f32.mrf.mxu0 }
 0x289   :  { %22819 = vst [vmem:[#allocation118_spill] sm:$0xff] %v18461_v46  ;;  %v14693_v27 = vpop.f32.mrf.mxu1  ;;  %v2213_v13 = vadd.f32 %v14652_v4, %v2020_v35 }
 0x28a   :  { %v14627_v3 = vpop.f32.mrf.mxu0 }
 0x28b   :  { %v2034_v24 = vadd.f32 %v14627_v3, %v1853_v34  ;;  %v18463_v32 = vpop.f32.mrf.mxu1 }
 0x28c   :  { %22820 = vst [vmem:[#allocation119_spill] sm:$0xff] %v18463_v32  ;;  %v18465_v11 = vpop.f32.mrf.mxu0 }
 0x28d   :  { %22821 = vst [vmem:[#allocation120_spill] sm:$0xff] %v18465_v11  ;;  %v14696_v9 = vpop.f32.mrf.mxu1  ;;  %v2229_v1 = vadd.f32 %v14655_v61, %v2034_v24 }
 0x28e   :  { %v14662_v31 = vpop.f32.mrf.mxu0 }
 0x28f   :  { %v2312_v41 = vadd.f32 %v14662_v31, %v2117_v54  ;;  %v18467_v15 = vpop.f32.mrf.mxu1 }
 0x290   :  { %22822 = vst [vmem:[#allocation121_spill] sm:$0xff] %v18467_v15  ;;  %v18469_v39 = vpop.f32.mrf.mxu0 }
 0x291   :  { %22823 = vst [vmem:[#allocation122_spill] sm:$0xff] %v18469_v39  ;;  %v18471_v45 = vadd.f32 %v14690_v20, %v2312_v41  ;;  %v14699_v29 = vpop.f32.mrf.mxu1 }
 0x292   :  { %v14665_v21 = vpop.f32.mrf.mxu0 }
 0x293   :  { %22824 = vst [vmem:[#allocation123_spill] sm:$0xff] %v18471_v45  ;;  %v2324_v43 = vadd.f32 %v14665_v21, %v2133_v30  ;;  %v18477_v3 = vpop.f32.mrf.mxu1 }
 0x294   :  { %v18473_v4 = vpop.f32.mrf.mxu0  ;;  %22827 = vst [vmem:[#allocation126_spill] sm:$0xff] %v18477_v3 }
 0x295   :  { %22825 = vst [vmem:[#allocation124_spill] sm:$0xff] %v18473_v4  ;;  %v18475_v34 = vadd.f32 %v14693_v27, %v2324_v43 }
 0x296   :  { %v14702_v61 = vpop.f32.mrf.mxu1 }
 0x297   :  { %22826 = vst [vmem:[#allocation125_spill] sm:$0xff] %v18475_v34  ;;  %v14668_v35 = vpop.f32.mrf.mxu0 }
 0x298   :  { %v2336_v32 = vadd.f32 %v14668_v35, %v2149_v23  ;;  %v18485_v20 = vpop.f32.mrf.mxu1 }
 0x299   :  { %v18479_v24 = vpop.f32.mrf.mxu0  ;;  %22831 = vst [vmem:[#allocation130_spill] sm:$0xff] %v18485_v20 }
 0x29a   :  { %22828 = vst [vmem:[#allocation127_spill] sm:$0xff] %v18479_v24  ;;  %v18481_v54 = vadd.f32 %v14696_v9, %v2336_v32 }
 0x29c   :  { %22829 = vst [vmem:[#allocation128_spill] sm:$0xff] %v18481_v54  ;;  %v14671_v31 = vpop.f32.mrf.mxu0 }
 0x29d   :  { %v2348_v15 = vadd.f32 %v14671_v31, %v2165_v38  ;;  %v14705_v27 = vpop.f32.mrf.mxu1 }
 0x29e   :  { %v18483_v41 = vpop.f32.mrf.mxu0 }
 0x29f   :  { %22830 = vst [vmem:[#allocation129_spill] sm:$0xff] %v18483_v41  ;;  %v18487_v30 = vadd.f32 %v14699_v29, %v2348_v15  ;;  %v18493_v23 = vpop.f32.mrf.mxu1 }
 0x2a0   :  { %22835 = vst [vmem:[#allocation134_spill] sm:$0xff] %v18493_v23 }
 0x2a1   :  { %22832 = vst [vmem:[#allocation131_spill] sm:$0xff] %v18487_v30 }
 0x2a2   :  { %v14674_v21 = vpop.f32.mrf.mxu0 }
 0x2a3   :  { %v2360_v43 = vadd.f32 %v14674_v21, %v2181_v55  ;;  %v14708_v38 = vpop.f32.mrf.mxu1 }
 0x2a4   :  { %v18489_v4 = vpop.f32.mrf.mxu0 }
 0x2a5   :  { %22833 = vst [vmem:[#allocation132_spill] sm:$0xff] %v18489_v4  ;;  %v18491_v3 = vadd.f32 %v14702_v61, %v2360_v43  ;;  %v18499_v20 = vpop.f32.mrf.mxu1 }
 0x2a6   :  { %22838 = vst [vmem:[#allocation137_spill] sm:$0xff] %v18499_v20 }
 0x2a7   :  { %22834 = vst [vmem:[#allocation133_spill] sm:$0xff] %v18491_v3 }
 0x2a8   :  { %v14677_v32 = vpop.f32.mrf.mxu0 }
 0x2a9   :  { %v2372_v9 = vadd.f32 %v14677_v32, %v2197_v18  ;;  %v14711_v21 = vpop.f32.mrf.mxu1 }
 0x2aa   :  { %v18495_v35 = vpop.f32.mrf.mxu0 }
 0x2ab   :  { %22836 = vst [vmem:[#allocation135_spill] sm:$0xff] %v18495_v35  ;;  %v18497_v31 = vadd.f32 %v14705_v27, %v2372_v9  ;;  %v18509_v18 = vpop.f32.mrf.mxu1 }
 0x2ac   :  { %22843 = vst [vmem:[#allocation142_spill] sm:$0xff] %v18509_v18 }
 0x2ad   :  { %22837 = vst [vmem:[#allocation136_spill] sm:$0xff] %v18497_v31 }
 0x2ae   :  { %v14680_v41 = vpop.f32.mrf.mxu0 }
 0x2af   :  { %v2384_v15 = vadd.f32 %v14680_v41, %v2213_v13 }
 0x2b0   :  { %v18501_v29 = vpop.f32.mrf.mxu0 }
 0x2b1   :  { %22839 = vst [vmem:[#allocation138_spill] sm:$0xff] %v18501_v29  ;;  %v18503_v55 = vadd.f32 %v14708_v38, %v2384_v15 }
 0x2b3   :  { %22840 = vst [vmem:[#allocation139_spill] sm:$0xff] %v18503_v55  ;;  %v14683_v61 = vpop.f32.mrf.mxu0 }
 0x2b4   :  { %v2396_v43 = vadd.f32 %v14683_v61, %v2229_v1 }
 0x2b5   :  { %v18505_v4 = vpop.f32.mrf.mxu0 }
 0x2b6   :  { %22841 = vst [vmem:[#allocation140_spill] sm:$0xff] %v18505_v4  ;;  %v18507_v23 = vadd.f32 %v14711_v21, %v2396_v43 }
 0x2b8   :  { %22842 = vst [vmem:[#allocation141_spill] sm:$0xff] %v18507_v23  ;;  %v14746_v32 = vpop.f32.mrf.mxu0 }
 0x2b9   :  { %v14802_v27 = vpop.f32.mrf.mxu1 }
 0x2ba   :  { %v2649_v9 = vpop.f32.mrf.mxu0  ;;  %v2957_v57 = vadd.f32 %v14802_v27, %v14746_v32 }
 0x2bb   :  { %v2950_v35 = vpop.f32.mrf.mxu1 }
 0x2bc   :  { %v2951_v8 = vadd.f32 %v2950_v35, %v2649_v9  ;;  %v16769_v9 = vld [vmem:[#allocation7 + $0x78] sm:$0xff] }
 0x2bd   :  { %v18521_v35 = vmul.f32 %v16769_v9, %v16769_v9 }
 0x2be   :  { %v14749_v24 = vpop.f32.mrf.mxu0  ;;  %v14805_v20 = vpop.f32.mrf.mxu1 }
 0x2bf   :  { %v2969_v12 = vadd.f32 %v14805_v20, %v14749_v24  ;;  %22849 = vst [vmem:[#allocation148_spill] sm:$0xff] %v18521_v35 }
 0x2c0   :  { %v2669_v13 = vpop.f32.mrf.mxu0  ;;  %v2962_v41 = vpop.f32.mrf.mxu1 }
 0x2c4   :  { %v14752_v29 = vpop.f32.mrf.mxu0  ;;  %v14808_v38 = vpop.f32.mrf.mxu1 }
 0x2c6   :  { %v2689_v15 = vpop.f32.mrf.mxu0  ;;  %v2974_v39 = vpop.f32.mrf.mxu1 }
 0x2ca   :  { %v14755_v11 = vpop.f32.mrf.mxu0  ;;  %v14811_v1 = vpop.f32.mrf.mxu1 }
 0x2cb   :  { %v2993_v27 = vadd.f32 %v14811_v1, %v14755_v11 }
 0x2cc   :  { %v2709_v61 = vpop.f32.mrf.mxu0  ;;  %v2986_v4 = vpop.f32.mrf.mxu1 }
 0x2cd   :  { %v2987_v32 = vadd.f32 %v2986_v4, %v2709_v61 }
 0x2d0   :  { %v14758_v21 = vpop.f32.mrf.mxu0  ;;  %v14814_v43 = vpop.f32.mrf.mxu1 }
 0x2d1   :  { %v3005_v20 = vadd.f32 %v14814_v43, %v14758_v21 }
 0x2d2   :  { %v2729_v46 = vpop.f32.mrf.mxu0  ;;  %v2998_v18 = vpop.f32.mrf.mxu1 }
 0x2d3   :  { %v2999_v24 = vadd.f32 %v2998_v18, %v2729_v46  ;;  %v22850_v18 = vld [vmem:[#allocation148_spill] sm:$0xff] }
 0x2d4   :  { %v18528_v46 = vand.u32 4294901760, %v22850_v18 }
 0x2d6   :  { %v14761_v23 = vpop.f32.mrf.mxu0  ;;  %v14817_v55 = vpop.f32.mrf.mxu1 }
 0x2d8   :  { %v2749_v31 = vpop.f32.mrf.mxu0  ;;  %v3010_v3 = vpop.f32.mrf.mxu1 }
 0x2dc   :  { %v14764_v30 = vpop.f32.mrf.mxu0  ;;  %v14820_v54 = vpop.f32.mrf.mxu1 }
 0x2de   :  { %v2769_v34 = vpop.f32.mrf.mxu0  ;;  %v3022_v45 = vpop.f32.mrf.mxu1 }
 0x2e2   :  { %v14767_v16 = vpop.f32.mrf.mxu0  ;;  %v14823_v44 = vpop.f32.mrf.mxu1 }
 0x2e3   :  { %v3041_v9 = vadd.f32 %v14823_v44, %v14767_v16 }
 0x2e4   :  { %v2789_v60 = vpop.f32.mrf.mxu0  ;;  %v3034_v40 = vpop.f32.mrf.mxu1 }
 0x2e7   :  { %v14858_v53 = vpop.f32.mrf.mxu0 }
 0x2e9   :  { %v14914_v47 = vpop.f32.mrf.mxu1  ;;  %v3144_v26 = vpop.f32.mrf.mxu0 }
 0x2eb   :  { %v3338_v33 = vpop.f32.mrf.mxu1 }
 0x2ed   :  { %v14861_v14 = vpop.f32.mrf.mxu0 }
 0x2ef   :  { %v3158_v58 = vpop.f32.mrf.mxu0 }
 0x2f0   :  { %v14917_v10 = vpop.f32.mrf.mxu1 }
 0x2f2   :  { %v3354_v19 = vpop.f32.mrf.mxu1 }
 0x2f3   :  { %v14864_v62 = vpop.f32.mrf.mxu0 }
 0x2f5   :  { %v3172_v25 = vpop.f32.mrf.mxu0 }
 0x2f6   :  { %v14920_v2 = vpop.f32.mrf.mxu1 }
 0x2f8   :  { %v3370_v7 = vpop.f32.mrf.mxu1 }
 0x2f9   :  { %v14867_v59 = vpop.f32.mrf.mxu0 }
 0x2fa   :  { %v3194_v35 = vadd.f32 %v14867_v59, %v2993_v27 }
 0x2fb   :  { %v3186_v50 = vpop.f32.mrf.mxu0 }
 0x2fc   :  { %v14923_v51 = vpop.f32.mrf.mxu1  ;;  %v3187_v21 = vadd.f32 %v3186_v50, %v2987_v32 }
 0x2fd   :  { %v3395_v59 = vadd.f32 %v14923_v51, %v3194_v35 }
 0x2fe   :  { %v3386_v36 = vpop.f32.mrf.mxu1 }
 0x2ff   :  { %v14870_v48 = vpop.f32.mrf.mxu0  ;;  %v18530_v50 = vadd.f32 %v3386_v36, %v3187_v21 }
 0x301   :  { %v3200_v37 = vpop.f32.mrf.mxu0 }
 0x302   :  { %v14926_v17 = vpop.f32.mrf.mxu1 }
 0x304   :  { %v18511_v63 = vpop.f32.mrf.mxu1 }
 0x305   :  { %22844 = vst [vmem:[#allocation143_spill] sm:$0xff] %v18511_v63  ;;  %v14873_v42 = vpop.f32.mrf.mxu0  ;;  %v2963_v63 = vadd.f32 %v2962_v41, %v2669_v13  ;;  %v3017_v13 = vadd.f32 %v14817_v55, %v14761_v23  ;;  %v3145_v41 = vadd.f32 %v3144_v26, %v2951_v8  ;;  %v3035_v8 = vadd.f32 %v3034_v40, %v2789_v60 }
 0x306   :  { %v3208_v23 = vadd.f32 %v14870_v48, %v3005_v20 }
 0x307   :  { %v3214_v52 = vpop.f32.mrf.mxu0  ;;  %v3339_v26 = vadd.f32 %v3338_v33, %v3145_v41 }
 0x308   :  { %v18513_v5 = vpop.f32.mrf.mxu1  ;;  %v18532_v33 = vadd.f32 %v14926_v17, %v3208_v23 }
 0x309   :  { %22845 = vst [vmem:[#allocation144_spill] sm:$0xff] %v18513_v5  ;;  %v2981_v5 = vadd.f32 %v14808_v38, %v14752_v29  ;;  %v3011_v38 = vadd.f32 %v3010_v3, %v2749_v31 }
 0x30a   :  { %v18515_v6 = vpop.f32.mrf.mxu1 }
 0x30b   :  { %22846 = vst [vmem:[#allocation145_spill] sm:$0xff] %v18515_v6  ;;  %v14876_v22 = vpop.f32.mrf.mxu0  ;;  %v3152_v6 = vadd.f32 %v14858_v53, %v2957_v57  ;;  %v3029_v53 = vadd.f32 %v14820_v54, %v14764_v30  ;;  %v3166_v57 = vadd.f32 %v14861_v14, %v2969_v12  ;;  %v3180_v11 = vadd.f32 %v14864_v62, %v2981_v5 }
 0x30c   :  { %v3215_v14 = vadd.f32 %v3214_v52, %v3011_v38 }
 0x30d   :  { %v3228_v49 = vpop.f32.mrf.mxu0  ;;  %v3347_v1 = vadd.f32 %v14914_v47, %v3152_v6  ;;  %v3363_v54 = vadd.f32 %v14917_v10, %v3166_v57  ;;  %v3236_v47 = vadd.f32 %v14876_v22, %v3029_v53 }
 0x30e   :  { %v18517_v0 = vpop.f32.mrf.mxu1 }
 0x30f   :  { %22847 = vst [vmem:[#allocation146_spill] sm:$0xff] %v18517_v0  ;;  %v2975_v0 = vadd.f32 %v2974_v39, %v2689_v15  ;;  %v3159_v15 = vadd.f32 %v3158_v58, %v2963_v63  ;;  %v3023_v39 = vadd.f32 %v3022_v45, %v2769_v34  ;;  %v3201_v63 = vadd.f32 %v3200_v37, %v2999_v24 }
 0x310   :  { %v18519_v56 = vpop.f32.mrf.mxu1  ;;  %v3222_v58 = vadd.f32 %v14873_v42, %v3017_v13  ;;  %v22851_v42 = vld [vmem:[#allocation143_spill] sm:$0xff] }
 0x311   :  { %22848 = vst [vmem:[#allocation147_spill] sm:$0xff] %v18519_v56  ;;  %v14879_v28 = vpop.f32.mrf.mxu0  ;;  %v3173_v4 = vadd.f32 %v3172_v25, %v2975_v0  ;;  %v3355_v12 = vadd.f32 %v3354_v19, %v3159_v15  ;;  %v3379_v0 = vadd.f32 %v14920_v2, %v3180_v11  ;;  %v18536_v10 = vadd.f32 %v22851_v42, %v3201_v63  ;;  %v22852_v2 = vld [vmem:[#allocation144_spill] sm:$0xff] }
 0x312   :  { %v3229_v60 = vadd.f32 %v3228_v49, %v3023_v39  ;;  %v3250_v22 = vadd.f32 %v14879_v28, %v3041_v9  ;;  %v22853_v30 = vld [vmem:[#allocation145_spill] sm:$0xff] }
 0x313   :  { %v3242_v56 = vpop.f32.mrf.mxu0  ;;  %v3371_v62 = vadd.f32 %v3370_v7, %v3173_v4  ;;  %v18539_v7 = vadd.f32 %v22852_v2, %v3222_v58  ;;  %v18545_v31 = vadd.f32 %v22853_v30, %v3215_v14 }
 0x314   :  { %v18523_v29 = vpop.f32.mrf.mxu1  ;;  %v3243_v24 = vadd.f32 %v3242_v56, %v3035_v8 }
 0x315   :  { %v18567_v56 = vadd.f32 %v18523_v29, %v3250_v22 }
 0x316   :  { %v18525_v61 = vpop.f32.mrf.mxu1  ;;  %v22854_v55 = vld [vmem:[#allocation146_spill] sm:$0xff] }
 0x317   :  { %v14970_v43 = vpop.f32.mrf.mxu0  ;;  %v18548_v27 = vadd.f32 %v22854_v55, %v3236_v47 }
 0x318   :  { %v3584_v3 = vadd.f32 %v14970_v43, %v3347_v1  ;;  %v22855_v38 = vld [vmem:[#allocation147_spill] sm:$0xff] }
 0x319   :  { %v15026_v6 = vpop.f32.mrf.mxu1  ;;  %v3577_v5 = vpop.f32.mrf.mxu0  ;;  %v18557_v53 = vadd.f32 %v22855_v38, %v3229_v60 }
 0x31a   :  { %v3761_v25 = vadd.f32 %v15026_v6, %v3584_v3  ;;  %v3578_v44 = vadd.f32 %v3577_v5, %v3339_v26  ;;  %v22857_v5 = vld [vmem:[#allocation17_spill] sm:$0xff] }
 0x31b   :  { %v3754_v16 = vpop.f32.mrf.mxu1  ;;  %v14973_v40 = vpop.f32.mrf.mxu0 }
 0x31c   :  { %v3852_v48 = vsel %vm1409_vm0, %v3761_v25, 0  ;;  %v3755_v19 = vadd.f32 %v3754_v16, %v3578_v44  ;;  %v3596_v37 = vadd.f32 %v14973_v40, %v3363_v54  ;;  %v22856_v54 = vld [vmem:[#allocation15_spill] sm:$0xff] }
 0x31d   :  { %v18541_v51 = vand.u32 4294901760, %v3852_v48  ;;  %v15029_v36 = vpop.f32.mrf.mxu1  ;;  %v3589_v52 = vpop.f32.mrf.mxu0 }
 0x31e   :  { %v3849_v45 = vsel %vm1409_vm0, %v3755_v19, 0  ;;  %v3773_v17 = vadd.f32 %v15029_v36, %v3596_v37  ;;  %v3590_v34 = vadd.f32 %v3589_v52, %v3355_v12  ;;  %v18582_v12 = vadd.f32 %v18525_v61, %v3243_v24 }
 0x31f   :  { %v18551_v32 = vsub.f32 %v3852_v48, %v18541_v51  ;;  %v18553_v35 = vand.u32 4294901760, %v3849_v45  ;;  %v3766_v49 = vpop.f32.mrf.mxu1  ;;  %v14976_v20 = vpop.f32.mrf.mxu0 }
 0x320   :  { %v3858_v28 = vsel %vm1409_vm0, %v3773_v17, 0  ;;  %v3767_v13 = vadd.f32 %v3766_v49, %v3590_v34  ;;  %v3608_v41 = vadd.f32 %v14976_v20, %v3379_v0 }
 0x321   :  { %v3975_v57 = vand.u32 4294901760, %v18551_v32  ;;  %v18561_v15 = vsub.f32 %v3849_v45, %v18553_v35  ;;  %v18563_v39 = vand.u32 4294901760, %v3858_v28  ;;  %v15032_v1 = vpop.f32.mrf.mxu1  ;;  %v3601_v11 = vpop.f32.mrf.mxu0  ;;  %15080 = vmatprep.mubr.f32.mxu1 %v18553_v35 }
 0x322   :  { %v3855_v4 = vsel %vm1409_vm0, %v3767_v13, 0  ;;  %v3785_v9 = vadd.f32 %v15032_v1, %v3608_v41  ;;  %v3602_v21 = vadd.f32 %v3601_v11, %v3371_v62  ;;  %15081 = vmatmul.mubr.f32.vlgmr.msra.gmra.mxu1 %v18541_v51 }
 0x323   :  { %v3976_v43 = vsub.f32 %v18551_v32, %v3975_v57  ;;  %v18575_v8 = vsub.f32 %v3858_v28, %v18563_v39  ;;  %v18577_v26 = vand.u32 4294901760, %v3855_v4  ;;  %v3778_v23 = vpop.f32.mrf.mxu1  ;;  %v14979_v3 = vpop.f32.mrf.mxu0  ;;  %v3965_v29 = vand.u32 4294901760, %v18561_v15  ;;  %15133 = vmatpush3.msra.mxu1 %v22856_v54 }
 0x324   :  { %v3864_v63 = vsel %vm1409_vm0, %v3785_v9, 0  ;;  %v3779_v58 = vadd.f32 %v3778_v23, %v3602_v21  ;;  %v3620_v6 = vadd.f32 %v14979_v3, %v3395_v59  ;;  %15134 = vmatprep.subr.mxu1 %v22857_v5 }
 0x325   :  { %v3977_v0 = vand.u32 4294901760, %v3976_v43  ;;  %v3995_v62 = vand.u32 4294901760, %v18575_v8  ;;  %v18588_v25 = vsub.f32 %v3855_v4, %v18577_v26  ;;  %v18590_v44 = vand.u32 4294901760, %v3864_v63  ;;  %v15035_v14 = vpop.f32.mrf.mxu1  ;;  %v3613_v47 = vpop.f32.mrf.mxu0  ;;  %15083 = vmatprep.mubr.f32.mxu1 %v18577_v26  ;;  %15135 = vmatpush3.msra.mxu1 %v22857_v5  ;;  %v22858_v43 = vld [vmem:[#allocation30_spill] sm:$0xff] }
 0x326   :  { %v3861_v61 = vsel %vm1409_vm0, %v3779_v58, 0  ;;  %v3797_v16 = vadd.f32 %v15035_v14, %v3620_v6  ;;  %v3614_v59 = vadd.f32 %v3613_v47, %v18530_v50  ;;  %15084 = vmatmul.mubr.f32.gmra.mxu1 %v18563_v39  ;;  %v3966_v40 = vsub.f32 %v18561_v15, %v3965_v29  ;;  %15188 = vmatprep.subr.mxu1 %v22856_v54 }
 0x327   :  { %v18602_v48 = vsub.f32 %v3864_v63, %v18590_v44  ;;  %v18604_v19 = vand.u32 4294901760, %v3861_v61  ;;  %v3790_v37 = vpop.f32.mrf.mxu1  ;;  %v14982_v42 = vpop.f32.mrf.mxu0  ;;  %v3985_v2 = vand.u32 4294901760, %v18588_v25  ;;  %v3996_v50 = vsub.f32 %v18575_v8, %v3995_v62 }
 0x328   :  { %v3870_v60 = vsel %vm1409_vm0, %v3797_v16, 0  ;;  %v3791_v36 = vadd.f32 %v3790_v37, %v3614_v59  ;;  %v3632_v52 = vadd.f32 %v14982_v42, %v18532_v33  ;;  %v3967_v22 = vand.u32 4294901760, %v3966_v40  ;;  %v22859_v59 = vld [vmem:[#allocation18_spill] sm:$0xff] }
 0x329   :  { %v4015_v45 = vand.u32 4294901760, %v18602_v48  ;;  %v18614_v17 = vsub.f32 %v3861_v61, %v18604_v19  ;;  %v18616_v34 = vand.u32 4294901760, %v3870_v60  ;;  %v15038_v30 = vpop.f32.mrf.mxu1  ;;  %v3625_v55 = vpop.f32.mrf.mxu0  ;;  %15086 = vmatprep.mubr.f32.mxu1 %v18604_v19  ;;  %v3986_v49 = vsub.f32 %v18588_v25, %v3985_v2 }
 0x32a   :  { %v3867_v20 = vsel %vm1409_vm0, %v3791_v36, 0  ;;  %v3809_v24 = vadd.f32 %v15038_v30, %v3632_v52  ;;  %v3626_v33 = vadd.f32 %v3625_v55, %v18536_v10  ;;  %15052 = vmatprep.mubr.f32.mxu0 %v3967_v22  ;;  %15087 = vmatmul.mubr.f32.gmra.mxu1 %v18590_v44  ;;  %v3997_v28 = vand.u32 4294901760, %v3996_v50 }
 0x32b   :  { %v18626_v13 = vsub.f32 %v3870_v60, %v18616_v34  ;;  %v18628_v41 = vand.u32 4294901760, %v3867_v20  ;;  %v3802_v38 = vpop.f32.mrf.mxu1  ;;  %15053 = vmatmul.mubr.f32.vlgmr.msra.gmra.mxu0 %v3977_v0  ;;  %v14985_v1 = vpop.f32.mrf.mxu0  ;;  %v3987_v11 = vand.u32 4294901760, %v3986_v49  ;;  %v4005_v4 = vand.u32 4294901760, %v18614_v17 }
 0x32c   :  { %v3876_v9 = vsel %vm1409_vm0, %v3809_v24, 0  ;;  %v3803_v21 = vadd.f32 %v3802_v38, %v3626_v33  ;;  %v3644_v10 = vadd.f32 %v14985_v1, %v18539_v7  ;;  %15105 = vmatpush3.msra.mxu0 %v22858_v43  ;;  %v4016_v23 = vsub.f32 %v18602_v48, %v4015_v45 }
 0x32d   :  { %v4035_v3 = vand.u32 4294901760, %v18626_v13  ;;  %v18639_v63 = vsub.f32 %v3867_v20, %v18628_v41  ;;  %v18641_v58 = vand.u32 4294901760, %v3876_v9  ;;  %v15041_v6 = vpop.f32.mrf.mxu1  ;;  %v3637_v0 = vpop.f32.mrf.mxu0  ;;  %15055 = vmatprep.mubr.f32.mxu0 %v3987_v11  ;;  %15089 = vmatprep.mubr.f32.mxu1 %v18628_v41  ;;  %v4006_v7 = vsub.f32 %v18614_v17, %v4005_v4 }
 0x32e   :  { %v3873_v14 = vsel %vm1409_vm0, %v3803_v21, 0  ;;  %v3821_v47 = vadd.f32 %v15041_v6, %v3644_v10  ;;  %v3638_v61 = vadd.f32 %v3637_v0, %v18545_v31  ;;  %15090 = vmatmul.mubr.f32.gmra.mxu1 %v18616_v34  ;;  %v4017_v16 = vand.u32 4294901760, %v4016_v23  ;;  %15106 = vmatprep.subr.mxu0 %v22859_v59 }
 0x32f   :  { %v18652_v40 = vsub.f32 %v3876_v9, %v18641_v58  ;;  %v18654_v37 = vand.u32 4294901760, %v3873_v14  ;;  %v3814_v42 = vpop.f32.mrf.mxu1  ;;  %15056 = vmatmul.mubr.f32.gmra.mxu0 %v3997_v28  ;;  %v14988_v50 = vpop.f32.mrf.mxu0  ;;  %v4007_v60 = vand.u32 4294901760, %v4006_v7  ;;  %v4025_v36 = vand.u32 4294901760, %v18639_v63  ;;  %v22860_v9 = vld [vmem:[#allocation16_spill] sm:$0xff] }
 0x330   :  { %v3882_v52 = vsel %vm1409_vm0, %v3821_v47, 0  ;;  %v3815_v22 = vadd.f32 %v3814_v42, %v3638_v61  ;;  %v3656_v31 = vadd.f32 %v14988_v50, %v18548_v27  ;;  %v4036_v30 = vsub.f32 %v18626_v13, %v4035_v3  ;;  %15107 = vmatpush3.msra.mxu0 %v22859_v59 }
 0x331   :  { %v4055_v55 = vand.u32 4294901760, %v18652_v40  ;;  %v18665_v49 = vsub.f32 %v3873_v14, %v18654_v37  ;;  %v18667_v20 = vand.u32 4294901760, %v3882_v52  ;;  %v15044_v24 = vpop.f32.mrf.mxu1  ;;  %v3649_v33 = vpop.f32.mrf.mxu0  ;;  %15058 = vmatprep.mubr.f32.mxu0 %v4007_v60  ;;  %15092 = vmatprep.mubr.f32.mxu1 %v18654_v37  ;;  %v4026_v27 = vsub.f32 %v18639_v63, %v4025_v36 }
 0x332   :  { %v3879_v28 = vsel %vm1409_vm0, %v3815_v22, 0  ;;  %v3833_v38 = vadd.f32 %v15044_v24, %v3656_v31  ;;  %v3650_v1 = vadd.f32 %v3649_v33, %v18557_v53  ;;  %15093 = vmatmul.mubr.f32.gmra.mxu1 %v18641_v58  ;;  %v4037_v11 = vand.u32 4294901760, %v4036_v30  ;;  %15160 = vmatprep.subr.mxu0 %v22860_v9 }
 0x333   :  { %v18678_v21 = vsub.f32 %v3882_v52, %v18667_v20  ;;  %v18680_v10 = vand.u32 4294901760, %v3879_v28  ;;  %v3826_v23 = vpop.f32.mrf.mxu1  ;;  %15059 = vmatmul.mubr.f32.gmra.mxu0 %v4017_v16  ;;  %v14991_v6 = vpop.f32.mrf.mxu0  ;;  %v4027_v0 = vand.u32 4294901760, %v4026_v27  ;;  %v4045_v7 = vand.u32 4294901760, %v18665_v49 }
 0x334   :  { %v3888_v14 = vsel %vm1409_vm0, %v3833_v38, 0  ;;  %v3827_v47 = vadd.f32 %v3826_v23, %v3650_v1  ;;  %v3668_v53 = vadd.f32 %v14991_v6, %v18567_v56  ;;  %v4056_v61 = vsub.f32 %v18652_v40, %v4055_v55 }
 0x335   :  { %v4075_v42 = vand.u32 4294901760, %v18678_v21  ;;  %v18690_v50 = vsub.f32 %v3879_v28, %v18680_v10  ;;  %v18692_v60 = vand.u32 4294901760, %v3888_v14  ;;  %v15047_v16 = vpop.f32.mrf.mxu1  ;;  %v3661_v52 = vpop.f32.mrf.mxu0  ;;  %15061 = vmatprep.mubr.f32.mxu0 %v4027_v0  ;;  %15095 = vmatprep.mubr.f32.mxu1 %v18680_v10  ;;  %v4046_v56 = vsub.f32 %v18665_v49, %v4045_v7 }
 0x336   :  { %v3885_v22 = vsel %vm1409_vm0, %v3827_v47, 0  ;;  %v3845_v31 = vadd.f32 %v15047_v16, %v3668_v53  ;;  %v3662_v30 = vadd.f32 %v3661_v52, %v18582_v12  ;;  %15096 = vmatmul.mubr.f32.gmra.mxu1 %v18667_v20  ;;  %v18703_v24 = vsub.f32 %v22850_v18, %v18528_v46 }
 0x337   :  { %v18706_v33 = vsub.f32 %v3888_v14, %v18692_v60  ;;  %v18708_v27 = vand.u32 4294901760, %v3885_v22  ;;  %v3838_v28 = vpop.f32.mrf.mxu1  ;;  %15062 = vmatmul.mubr.f32.gmra.mxu0 %v4037_v11  ;;  %v4047_v38 = vand.u32 4294901760, %v4046_v56  ;;  %v4065_v1 = vand.u32 4294901760, %v18690_v50 }
 0x338   :  { %v3894_v23 = vsel %vm1409_vm0, %v3845_v31, 0  ;;  %v3839_v6 = vadd.f32 %v3838_v28, %v3662_v30  ;;  %v4057_v12 = vand.u32 4294901760, %v4056_v61  ;;  %v4076_v0 = vsub.f32 %v18678_v21, %v4075_v42 }
 0x339   :  { %v4095_v18 = vand.u32 4294901760, %v18706_v33  ;;  %v18717_v14 = vsub.f32 %v3885_v22, %v18708_v27  ;;  %v18719_v47 = vand.u32 4294901760, %v3894_v23  ;;  %15064 = vmatprep.mubr.f32.mxu0 %v4047_v38  ;;  %15098 = vmatprep.mubr.f32.mxu1 %v18708_v27  ;;  %v4066_v11 = vsub.f32 %v18690_v50, %v4065_v1 }
 0x33a   :  { %v3891_v53 = vsel %vm1409_vm0, %v3839_v6, 0  ;;  %15099 = vmatmul.mubr.f32.gmra.mxu1 %v18692_v60  ;;  %v4077_v22 = vand.u32 4294901760, %v4076_v0  ;;  %v18734_v31 = vand.u32 4294901760, %v18703_v24 }
 0x33b   :  { %v18728_v61 = vsub.f32 %v3894_v23, %v18719_v47  ;;  %v18730_v16 = vand.u32 4294901760, %v3891_v53  ;;  %15065 = vmatmul.mubr.f32.gmra.mxu0 %v4057_v12  ;;  %v4067_v52 = vand.u32 4294901760, %v4066_v11  ;;  %v4085_v56 = vand.u32 4294901760, %v18717_v14 }
 0x33c   :  { %v4096_v23 = vsub.f32 %v18706_v33, %v4095_v18 }
 0x33d   :  { %v4115_v30 = vand.u32 4294901760, %v18728_v61  ;;  %v18738_v28 = vsub.f32 %v3891_v53, %v18730_v16  ;;  %15067 = vmatprep.mubr.f32.mxu0 %v4067_v52  ;;  %15101 = vmatprep.mubr.f32.mxu1 %v18730_v16  ;;  %v4086_v38 = vsub.f32 %v18717_v14, %v4085_v56  ;;  %v5309_v52 = vsub.f32 %v18703_v24, %v18734_v31 }
 0x33e   :  { %15102 = vmatmul.mubr.f32.gmra.mxu1 %v18719_v47  ;;  %v4097_v0 = vand.u32 4294901760, %v4096_v23 }
 0x33f   :  { %15068 = vmatmul.mubr.f32.gmra.mxu0 %v4077_v22  ;;  %15136 = vmatprep.mubr.f32.mxu1 %v3965_v29  ;;  %v4087_v6 = vand.u32 4294901760, %v4086_v38  ;;  %v4105_v12 = vand.u32 4294901760, %v18738_v28  ;;  %v4116_v53 = vsub.f32 %v18728_v61, %v4115_v30  ;;  %v5310_v38 = vand.u32 4294901760, %v5309_v52  ;;  %v16777_v52 = vld [vmem:[#allocation7 + $0x38] sm:$0xff] }
 0x341   :  { %15070 = vmatprep.mubr.f32.mxu0 %v4087_v6  ;;  %v4106_v11 = vsub.f32 %v18738_v28, %v4105_v12  ;;  %v4117_v22 = vand.u32 4294901760, %v4116_v53 }
 0x342   :  { %15137 = vmatmul.mubr.f32.vlgmr.msra.gmra.mxu1 %v3975_v57  ;;  %v22861_v57 = vld [vmem:[#allocation19_spill] sm:$0xff] }
 0x343   :  { %15071 = vmatmul.mubr.f32.gmra.mxu0 %v4097_v0  ;;  %15139 = vmatprep.mubr.f32.mxu1 %v3985_v2  ;;  %v4107_v29 = vand.u32 4294901760, %v4106_v11 }
 0x344   :  { %15189 = vmatpush3.msra.mxu1 %v22856_v54 }
 0x345   :  { %15073 = vmatprep.mubr.f32.mxu0 %v4107_v29  ;;  %15190 = vmatprep.subr.mxu1 %v22857_v5  ;;  %v5055_v29 = vmul.f32 %v16777_v52, %v16777_v52  ;;  %v16782_v52 = vld [vmem:[#allocation7 + $0x10] sm:$0xff] }
 0x346   :  { %15140 = vmatmul.mubr.f32.gmra.mxu1 %v3995_v62  ;;  %v16770_v62 = vld [vmem:[#allocation7 + $0x70] sm:$0xff] }
 0x347   :  { %15074 = vmatmul.mubr.f32.gmra.mxu0 %v4117_v22  ;;  %15142 = vmatprep.mubr.f32.mxu1 %v4005_v4  ;;  %v5062_v2 = vmul.f32 %v16770_v62, %v16770_v62  ;;  %v16772_v4 = vld [vmem:[#allocation7 + $0x60] sm:$0xff] }
 0x348   :  { %15108 = vmatprep.mubr.f32.mxu0 %v18561_v15  ;;  %15191 = vmatpush3.msra.mxu1 %v22857_v5  ;;  %v16771_v15 = vld [vmem:[#allocation7 + $0x68] sm:$0xff] }
 0x349   :  { %15272 = vmatprep.subr.mxu1 %v5310_v38 }
 0x34a   :  { %15143 = vmatmul.mubr.f32.gmra.mxu1 %v4015_v45 }
 0x34b   :  { %15109 = vmatmul.mubr.f32.vlgmr.msra.gmra.mxu0 %v18551_v32  ;;  %15145 = vmatprep.mubr.f32.mxu1 %v4025_v36  ;;  %v18783_v32 = vand.u32 4294901760, %v5062_v2 }
 0x34c   :  { %15111 = vmatprep.mubr.f32.mxu0 %v18588_v25  ;;  %15161 = vmatpush3.msra.mxu0 %v22860_v9  ;;  %v5061_v25 = vmul.f32 %v16771_v15, %v16771_v15  ;;  %v18871_v15 = vand.u32 4294901760, %v5055_v29 }
 0x34d   :  { %15162 = vmatprep.subr.mxu0 %v22861_v57 }
 0x34e   :  { %15146 = vmatmul.mubr.f32.gmra.mxu1 %v4035_v3  ;;  %15163 = vmatpush3.msra.mxu0 %v22861_v57  ;;  %v18794_v45 = vand.u32 4294901760, %v5061_v25  ;;  %v5060_v3 = vmul.f32 %v16772_v4, %v16772_v4  ;;  %v16779_v4 = vld [vmem:[#allocation7 + $0x28] sm:$0xff] }
 0x34f   :  { %15112 = vmatmul.mubr.f32.gmra.mxu0 %v18575_v8  ;;  %15148 = vmatprep.mubr.f32.mxu1 %v4045_v7  ;;  %v18792_v8 = vsub.f32 %v5062_v2, %v18783_v32 }
 0x350   :  { %15114 = vmatprep.mubr.f32.mxu0 %v18614_v17  ;;  %15216 = vmatprep.subr.mxu0 %v18528_v46  ;;  %v18804_v17 = vsub.f32 %v5061_v25, %v18794_v45  ;;  %v18815_v36 = vand.u32 4294901760, %v5060_v3 }
 0x352   :  { %15149 = vmatmul.mubr.f32.gmra.mxu1 %v4055_v55  ;;  %v16773_v55 = vld [vmem:[#allocation7 + $0x58] sm:$0xff] }
 0x353   :  { %15115 = vmatmul.mubr.f32.gmra.mxu0 %v18602_v48  ;;  %15151 = vmatprep.mubr.f32.mxu1 %v4065_v1  ;;  %v18801_v48 = vand.u32 4294901760, %v18792_v8  ;;  %v18825_v1 = vsub.f32 %v5060_v3, %v18815_v36  ;;  %v5053_v3 = vmul.f32 %v16779_v4, %v16779_v4 }
 0x354   :  { %15117 = vmatprep.mubr.f32.mxu0 %v18639_v63  ;;  %v18813_v63 = vand.u32 4294901760, %v18804_v17 }
 0x355   :  { %v18836_v23 = vand.u32 4294901760, %v18825_v1 }
 0x356   :  { %15152 = vmatmul.mubr.f32.gmra.mxu1 %v4075_v42 }
 0x357   :  { %15118 = vmatmul.mubr.f32.gmra.mxu0 %v18626_v13  ;;  %15154 = vmatprep.mubr.f32.mxu1 %v4085_v56  ;;  %v5316_v13 = vsub.f32 %v18792_v8, %v18801_v48  ;;  %v5330_v11 = vsub.f32 %v18825_v1, %v18836_v23 }
 0x358   :  { %15120 = vmatprep.mubr.f32.mxu0 %v18665_v49  ;;  %v5059_v49 = vmul.f32 %v16773_v55, %v16773_v55 }
 0x359   :  { %v5317_v42 = vand.u32 4294901760, %v5316_v13  ;;  %v5331_v2 = vand.u32 4294901760, %v5330_v11 }
 0x35a   :  { %15155 = vmatmul.mubr.f32.gmra.mxu1 %v4095_v18  ;;  %v18827_v18 = vand.u32 4294901760, %v5059_v49 }
 0x35b   :  { %15121 = vmatmul.mubr.f32.gmra.mxu0 %v18652_v40  ;;  %15157 = vmatprep.mubr.f32.mxu1 %v4105_v12  ;;  %v16774_v40 = vld [vmem:[#allocation7 + $0x50] sm:$0xff] }
 0x35c   :  { %15123 = vmatprep.mubr.f32.mxu0 %v18690_v50  ;;  %v5058_v7 = vmul.f32 %v16774_v40, %v16774_v40  ;;  %v5323_v50 = vsub.f32 %v18804_v17, %v18813_v63  ;;  %v18839_v6 = vsub.f32 %v5059_v49, %v18827_v18  ;;  %v18891_v49 = vsub.f32 %v5055_v29, %v18871_v15  ;;  %v16780_v40 = vld [vmem:[#allocation7 + $0x20] sm:$0xff] }
 0x35d   :  { %v5050_v29 = vmul.f32 %v16782_v52, %v16782_v52 }
 0x35e   :  { %15158 = vmatmul.mubr.f32.gmra.mxu1 %v4115_v30  ;;  %v5324_v30 = vand.u32 4294901760, %v5323_v50  ;;  %v18853_v53 = vand.u32 4294901760, %v18839_v6  ;;  %v18901_v50 = vand.u32 4294901760, %v5053_v3 }
 0x35f   :  { %15124 = vmatmul.mubr.f32.gmra.mxu0 %v18678_v21  ;;  %15192 = vmatprep.mubr.f32.mxu1 %v18553_v35  ;;  %v16775_v21 = vld [vmem:[#allocation7 + $0x48] sm:$0xff] }
 0x360   :  { %15126 = vmatprep.mubr.f32.mxu0 %v18717_v14  ;;  %v5057_v56 = vmul.f32 %v16775_v21, %v16775_v21  ;;  %v18833_v14 = vand.u32 4294901760, %v5058_v7 }
 0x362   :  { %15193 = vmatmul.mubr.f32.vlgmr.msra.gmra.mxu1 %v18541_v51  ;;  %v18848_v0 = vsub.f32 %v5058_v7, %v18833_v14  ;;  %v5052_v7 = vmul.f32 %v16780_v40, %v16780_v40  ;;  %v18936_v40 = vand.u32 4294901760, %v5050_v29 }
 0x363   :  { %15127 = vmatmul.mubr.f32.gmra.mxu0 %v18706_v33  ;;  %15195 = vmatprep.mubr.f32.mxu1 %v18577_v26  ;;  %v16776_v33 = vld [vmem:[#allocation7 + $0x40] sm:$0xff] }
 0x364   :  { %15129 = vmatprep.mubr.f32.mxu0 %v18738_v28  ;;  %15273 = vmatpush3.msra.mxu1 %v5310_v38  ;;  %v5056_v12 = vmul.f32 %v16776_v33, %v16776_v33  ;;  %v18844_v28 = vand.u32 4294901760, %v5057_v56  ;;  %v18866_v22 = vand.u32 4294901760, %v18848_v0  ;;  %v16778_v38 = vld [vmem:[#allocation7 + $0x30] sm:$0xff]  ;;  %v18912_v11 = vand.u32 4294901760, %v5052_v7 }
 0x365   :  { %15274 = vmatprep.subr.mxu1 %v5317_v42  ;;  %v5054_v62 = vmul.f32 %v16778_v38, %v16778_v38 }
 0x366   :  { %15196 = vmatmul.mubr.f32.gmra.mxu1 %v18563_v39  ;;  %v5344_v13 = vsub.f32 %v18848_v0, %v18866_v22  ;;  %v18932_v4 = vsub.f32 %v5052_v7, %v18912_v11 }
 0x367   :  { %15130 = vmatmul.mubr.f32.gmra.mxu0 %v18728_v61  ;;  %15198 = vmatprep.mubr.f32.mxu1 %v18604_v19  ;;  %v18856_v61 = vand.u32 4294901760, %v5056_v12  ;;  %v18887_v55 = vand.u32 4294901760, %v5054_v62 }
 0x368   :  { %15164 = vmatprep.mubr.f32.mxu0 %v18553_v35  ;;  %15275 = vmatpush3.msra.mxu1 %v5317_v42  ;;  %v18861_v35 = vsub.f32 %v5057_v56, %v18844_v28  ;;  %v5345_v21 = vand.u32 4294901760, %v5344_v13  ;;  %v16783_v13 = vld [vmem:[#allocation7 + $0x8] sm:$0xff] }
 0x369   :  { %15276 = vmatprep.subr.mxu1 %v5324_v30  ;;  %v18906_v56 = vsub.f32 %v5054_v62, %v18887_v55 }
 0x36a   :  { %15199 = vmatmul.mubr.f32.gmra.mxu1 %v18590_v44  ;;  %v18881_v25 = vand.u32 4294901760, %v18861_v35 }
 0x36b   :  { %15165 = vmatmul.mubr.f32.vlgmr.msra.gmra.mxu0 %v18541_v51  ;;  %15201 = vmatprep.mubr.f32.mxu1 %v18628_v41  ;;  %v5337_v51 = vsub.f32 %v18839_v6, %v18853_v53  ;;  %v18924_v62 = vand.u32 4294901760, %v18906_v56 }
 0x36c   :  { %15167 = vmatprep.mubr.f32.mxu0 %v18577_v26  ;;  %15217 = vmatpush3.msra.mxu0 %v18528_v46  ;;  %v18876_v26 = vsub.f32 %v5056_v12, %v18856_v61  ;;  %v5351_v42 = vsub.f32 %v18861_v35, %v18881_v25  ;;  %v18910_v12 = vand.u32 4294901760, %v18891_v49 }
 0x36d   :  { %15218 = vmatprep.subr.mxu0 %v18783_v32  ;;  %15277 = vmatpush3.msra.mxu1 %v5324_v30  ;;  %v16781_v30 = vld [vmem:[#allocation7 + $0x18] sm:$0xff]  ;;  %v5372_v7 = vsub.f32 %v18906_v56, %v18924_v62 }
 0x36e   :  { %15219 = vmatpush3.msra.mxu0 %v18783_v32  ;;  %15202 = vmatmul.mubr.f32.gmra.mxu1 %v18616_v34  ;;  %v5051_v33 = vmul.f32 %v16781_v30, %v16781_v30  ;;  %v5352_v38 = vand.u32 4294901760, %v5351_v42  ;;  %v16784_v42 = vld [vmem:[#allocation7] sm:$0xff] }
 0x36f   :  { %15168 = vmatmul.mubr.f32.gmra.mxu0 %v18563_v39  ;;  %15220 = vmatprep.subr.mxu0 %v18794_v45  ;;  %v5338_v39 = vand.u32 4294901760, %v5337_v51  ;;  %v5365_v51 = vsub.f32 %v18891_v49, %v18910_v12 }
 0x370   :  { %15170 = vmatprep.mubr.f32.mxu0 %v18604_v19  ;;  %15204 = vmatprep.mubr.f32.mxu1 %v18654_v37  ;;  %v18895_v19 = vand.u32 4294901760, %v18876_v26 }
 0x371   :  { %15221 = vmatpush3.msra.mxu0 %v18794_v45  ;;  %15278 = vmatprep.subr.mxu1 %v5331_v2 }
 0x372   :  { %15222 = vmatprep.subr.mxu0 %v18815_v36  ;;  %15279 = vmatpush3.msra.mxu1 %v5331_v2  ;;  %v18926_v2 = vand.u32 4294901760, %v5051_v33 }
 0x373   :  { %15223 = vmatpush3.msra.mxu0 %v18815_v36  ;;  %15205 = vmatmul.mubr.f32.gmra.mxu1 %v18641_v58 }
 0x374   :  { %15171 = vmatmul.mubr.f32.gmra.mxu0 %v18590_v44  ;;  %15224 = vmatprep.subr.mxu0 %v18827_v18  ;;  %v5358_v44 = vsub.f32 %v18876_v26, %v18895_v19  ;;  %v18947_v30 = vsub.f32 %v5051_v33, %v18926_v2 }
 0x375   :  { %15280 = vmatprep.subr.mxu1 %v5338_v39  ;;  %15173 = vmatprep.mubr.f32.mxu0 %v18628_v41  ;;  %v18920_v41 = vsub.f32 %v5053_v3, %v18901_v50  ;;  %v5049_v3 = vmul.f32 %v16783_v13, %v16783_v13  ;;  %v18957_v13 = vsub.f32 %v5050_v29, %v18936_v40 }
 0x376   :  { %15207 = vmatprep.mubr.f32.mxu1 %v18680_v10  ;;  %15225 = vmatpush3.msra.mxu0 %v18827_v18 }
 0x377   :  { %15281 = vmatpush3.msra.mxu1 %v5338_v39  ;;  %15226 = vmatprep.subr.mxu0 %v18833_v14  ;;  %v5359_v39 = vand.u32 4294901760, %v5358_v44  ;;  %v5366_v44 = vand.u32 4294901760, %v5365_v51  ;;  %v18953_v52 = vand.u32 4294901760, %v5049_v3  ;;  %v5373_v51 = vand.u32 4294901760, %v5372_v7 }
 0x378   :  { %15282 = vmatprep.subr.mxu1 %v5345_v21  ;;  %15227 = vmatpush3.msra.mxu0 %v18833_v14 }
 0x379   :  { %15283 = vmatpush3.msra.mxu1 %v5345_v21  ;;  %15174 = vmatmul.mubr.f32.gmra.mxu0 %v18616_v34  ;;  %v18940_v34 = vand.u32 4294901760, %v18920_v41  ;;  %v5048_v21 = vmul.f32 %v16784_v42, %v16784_v42  ;;  %v18967_v42 = vand.u32 4294901760, %v18947_v30 }
 0x37a   :  { %15208 = vmatmul.mubr.f32.gmra.mxu1 %v18667_v20  ;;  %15228 = vmatprep.subr.mxu0 %v18844_v28 }
 0x37b   :  { %15284 = vmatprep.subr.mxu1 %v5352_v38  ;;  %15176 = vmatprep.mubr.f32.mxu0 %v18654_v37  ;;  %v18951_v37 = vand.u32 4294901760, %v18932_v4  ;;  %v5379_v33 = vsub.f32 %v18920_v41, %v18940_v34 }
 0x37c   :  { %15210 = vmatprep.mubr.f32.mxu1 %v18708_v27  ;;  %15229 = vmatpush3.msra.mxu0 %v18844_v28 }
 0x37d   :  { %15285 = vmatpush3.msra.mxu1 %v5352_v38  ;;  %15230 = vmatprep.subr.mxu0 %v18856_v61  ;;  %v18962_v38 = vand.u32 4294901760, %v5048_v21  ;;  %v5386_v29 = vsub.f32 %v18932_v4, %v18951_v37  ;;  %v5380_v7 = vand.u32 4294901760, %v5379_v33 }
 0x37e   :  { %15286 = vmatprep.subr.mxu1 %v5359_v39  ;;  %15231 = vmatpush3.msra.mxu0 %v18856_v61 }
 0x37f   :  { %15287 = vmatpush3.msra.mxu1 %v5359_v39  ;;  %15177 = vmatmul.mubr.f32.gmra.mxu0 %v18641_v58  ;;  %v18973_v58 = vsub.f32 %v5049_v3, %v18953_v52  ;;  %v18978_v39 = vand.u32 4294901760, %v18957_v13  ;;  %v18982_v57 = vsub.f32 %v5048_v21, %v18962_v38  ;;  %v5387_v3 = vand.u32 4294901760, %v5386_v29 }
 0x380   :  { %15211 = vmatmul.mubr.f32.gmra.mxu1 %v18692_v60  ;;  %15232 = vmatprep.subr.mxu0 %v18871_v15 }
 0x381   :  { %15288 = vmatprep.subr.mxu1 %v5366_v44  ;;  %15179 = vmatprep.mubr.f32.mxu0 %v18680_v10  ;;  %v5393_v10 = vsub.f32 %v18947_v30, %v18967_v42  ;;  %v18989_v9 = vand.u32 4294901760, %v18973_v58  ;;  %v5400_v21 = vsub.f32 %v18957_v13, %v18978_v39 }
 0x382   :  { %15213 = vmatprep.mubr.f32.mxu1 %v18730_v16  ;;  %15233 = vmatpush3.msra.mxu0 %v18871_v15 }
 0x383   :  { %15289 = vmatpush3.msra.mxu1 %v5366_v44  ;;  %15234 = vmatprep.subr.mxu0 %v18887_v55  ;;  %v18997_v44 = vand.u32 4294901760, %v18982_v57  ;;  %v5407_v33 = vsub.f32 %v18973_v58, %v18989_v9 }
 0x384   :  { %15290 = vmatprep.subr.mxu1 %v5373_v51  ;;  %15235 = vmatpush3.msra.mxu0 %v18887_v55 }
 0x385   :  { %15291 = vmatpush3.msra.mxu1 %v5373_v51  ;;  %15180 = vmatmul.mubr.f32.gmra.mxu0 %v18667_v20  ;;  %v5394_v20 = vand.u32 4294901760, %v5393_v10  ;;  %v5401_v51 = vand.u32 4294901760, %v5400_v21  ;;  %v5408_v29 = vand.u32 4294901760, %v5407_v33  ;;  %v22864_v10 = vld [vmem:[#allocation49_spill] sm:$0xff]  ;;  %v22869_v33 = vld [vmem:[#allocation32_spill] sm:$0xff] }
 0x386   :  { %15214 = vmatmul.mubr.f32.gmra.mxu1 %v18719_v47  ;;  %15236 = vmatprep.subr.mxu0 %v18901_v50  ;;  %v22867_v21 = vld [vmem:[#allocation29_spill] sm:$0xff] }
 0x387   :  { %15292 = vmatprep.subr.mxu1 %v5380_v7  ;;  %15182 = vmatprep.mubr.f32.mxu0 %v18708_v27  ;;  %v5414_v27 = vsub.f32 %v18982_v57, %v18997_v44 }
 0x388   :  { %15237 = vmatpush3.msra.mxu0 %v18901_v50  ;;  %15293 = vmatpush3.msra.mxu1 %v5380_v7 }
 0x389   :  { %15238 = vmatprep.subr.mxu0 %v18912_v11  ;;  %15294 = vmatprep.subr.mxu1 %v5387_v3  ;;  %v5415_v7 = vand.u32 4294901760, %v5414_v27  ;;  %v22873_v27 = vld [vmem:[#allocation41_spill] sm:$0xff] }
 0x38a   :  { %15239 = vmatpush3.msra.mxu0 %v18912_v11  ;;  %15295 = vmatpush3.msra.mxu1 %v5387_v3  ;;  %v22865_v3 = vld [vmem:[#allocation24_spill] sm:$0xff] }
 0x38b   :  { %15183 = vmatmul.mubr.f32.gmra.mxu0 %v18692_v60  ;;  %15240 = vmatprep.subr.mxu0 %v18926_v2  ;;  %v22862_v60 = vld [vmem:[#allocation46_spill] sm:$0xff] }
 0x38c   :  { %15296 = vmatprep.subr.mxu1 %v5394_v20  ;;  %15185 = vmatprep.mubr.f32.mxu0 %v18730_v16  ;;  %v22863_v16 = vld [vmem:[#allocation22_spill] sm:$0xff] }
 0x38d   :  { %15241 = vmatpush3.msra.mxu0 %v18926_v2  ;;  %15297 = vmatpush3.msra.mxu1 %v5394_v20  ;;  %v22868_v20 = vld [vmem:[#allocation58_spill] sm:$0xff] }
 0x38e   :  { %15242 = vmatprep.subr.mxu0 %v18936_v40  ;;  %15298 = vmatprep.subr.mxu1 %v5401_v51 }
 0x38f   :  { %15243 = vmatpush3.msra.mxu0 %v18936_v40  ;;  %15299 = vmatpush3.msra.mxu1 %v5401_v51  ;;  %v22872_v51 = vld [vmem:[#allocation64_spill] sm:$0xff] }
 0x390   :  { %15186 = vmatmul.mubr.f32.gmra.mxu0 %v18719_v47  ;;  %15244 = vmatprep.subr.mxu0 %v18953_v52  ;;  %v22866_v47 = vld [vmem:[#allocation55_spill] sm:$0xff] }
 0x391   :  { %15300 = vmatprep.subr.mxu1 %v5408_v29  ;;  %15245 = vmatpush3.msra.mxu0 %v18953_v52 }
 0x392   :  { %15301 = vmatpush3.msra.mxu1 %v5408_v29  ;;  %15246 = vmatprep.subr.mxu0 %v18962_v38  ;;  %v22876_v29 = vld [vmem:[#allocation72_spill] sm:$0xff] }
 0x393   :  { %15302 = vmatprep.subr.mxu1 %v5415_v7  ;;  %15247 = vmatpush3.msra.mxu0 %v18962_v38 }
 0x394   :  { %15248 = vmatprep.mubr.f32.mxu0 %v22862_v60  ;;  %15303 = vmatpush3.msra.mxu1 %v5415_v7  ;;  %v22877_v7 = vld [vmem:[#allocation52_spill] sm:$0xff] }
 0x395   :  { %15304 = vmatprep.mubr.f32.mxu1 %v22863_v16  ;;  %15249 = vmatmul.mubr.f32.vlgmr.msra.gmra.mxu0 %v22864_v10 }
 0x396   :  { %15305 = vmatmul.mubr.f32.vlgmr.msra.gmra.mxu1 %v22865_v3  ;;  %15328 = vmatprep.subr.mxu0 %v18703_v24 }
 0x397   :  { %15329 = vmatpush3.msra.mxu0 %v18703_v24  ;;  %15384 = vmatprep.subr.mxu1 %v18528_v46  ;;  %v22870_v24 = vld [vmem:[#allocation61_spill] sm:$0xff] }
 0x398   :  { %15330 = vmatprep.subr.mxu0 %v18792_v8  ;;  %15385 = vmatpush3.msra.mxu1 %v18528_v46 }
 0x399   :  { %15251 = vmatprep.mubr.f32.mxu0 %v22866_v47  ;;  %15307 = vmatprep.mubr.f32.mxu1 %v22867_v21 }
 0x39a   :  { %15331 = vmatpush3.msra.mxu0 %v18792_v8  ;;  %15386 = vmatprep.subr.mxu1 %v18783_v32  ;;  %v22871_v8 = vld [vmem:[#allocation38_spill] sm:$0xff] }
 0x39b   :  { %15252 = vmatmul.mubr.f32.gmra.mxu0 %v22868_v20  ;;  %15308 = vmatmul.mubr.f32.gmra.mxu1 %v22869_v33 }
 0x39c   :  { %15332 = vmatprep.subr.mxu0 %v18804_v17  ;;  %15387 = vmatpush3.msra.mxu1 %v18783_v32 }
 0x39d   :  { %15333 = vmatpush3.msra.mxu0 %v18804_v17  ;;  %15388 = vmatprep.subr.mxu1 %v18794_v45  ;;  %v22874_v17 = vld [vmem:[#allocation69_spill] sm:$0xff] }
 0x39e   :  { %15334 = vmatprep.subr.mxu0 %v18825_v1  ;;  %15389 = vmatpush3.msra.mxu1 %v18794_v45 }
 0x39f   :  { %15254 = vmatprep.mubr.f32.mxu0 %v22870_v24  ;;  %15310 = vmatprep.mubr.f32.mxu1 %v22871_v8 }
 0x3a0   :  { %15335 = vmatpush3.msra.mxu0 %v18825_v1  ;;  %15390 = vmatprep.subr.mxu1 %v18815_v36  ;;  %v22875_v1 = vld [vmem:[#allocation48_spill] sm:$0xff] }
 0x3a1   :  { %15255 = vmatmul.mubr.f32.gmra.mxu0 %v22872_v51  ;;  %15311 = vmatmul.mubr.f32.gmra.mxu1 %v22873_v27 }
 0x3a2   :  { %15336 = vmatprep.subr.mxu0 %v18839_v6  ;;  %15391 = vmatpush3.msra.mxu1 %v18815_v36 }
 0x3a3   :  { %15337 = vmatpush3.msra.mxu0 %v18839_v6  ;;  %15392 = vmatprep.subr.mxu1 %v18827_v18  ;;  %v22878_v6 = vld [vmem:[#allocation77_spill] sm:$0xff] }
 0x3a4   :  { %15338 = vmatprep.subr.mxu0 %v18848_v0  ;;  %15393 = vmatpush3.msra.mxu1 %v18827_v18 }
 0x3a5   :  { %15257 = vmatprep.mubr.f32.mxu0 %v22874_v17  ;;  %15313 = vmatprep.mubr.f32.mxu1 %v22875_v1  ;;  %v22881_v17 = vld [vmem:[#allocation60_spill] sm:$0xff] }
 0x3a6   :  { %15339 = vmatpush3.msra.mxu0 %v18848_v0  ;;  %15394 = vmatprep.subr.mxu1 %v18833_v14  ;;  %v22879_v0 = vld [vmem:[#allocation57_spill] sm:$0xff] }
 0x3a7   :  { %15258 = vmatmul.mubr.f32.gmra.mxu0 %v22876_v29  ;;  %15314 = vmatmul.mubr.f32.gmra.mxu1 %v22877_v7  ;;  %v22880_v29 = vld [vmem:[#allocation80_spill] sm:$0xff] }
 0x3a8   :  { %15340 = vmatprep.subr.mxu0 %v18861_v35  ;;  %15395 = vmatpush3.msra.mxu1 %v18833_v14 }
 0x3a9   :  { %15341 = vmatpush3.msra.mxu0 %v18861_v35  ;;  %15396 = vmatprep.subr.mxu1 %v18844_v28  ;;  %v22882_v35 = vld [vmem:[#allocation85_spill] sm:$0xff] }
 0x3aa   :  { %15342 = vmatprep.subr.mxu0 %v18876_v26  ;;  %15397 = vmatpush3.msra.mxu1 %v18844_v28 }
 0x3ab   :  { %15260 = vmatprep.mubr.f32.mxu0 %v22878_v6  ;;  %15316 = vmatprep.mubr.f32.mxu1 %v22879_v0  ;;  %v22885_v6 = vld [vmem:[#allocation68_spill] sm:$0xff] }
 0x3ac   :  { %15343 = vmatpush3.msra.mxu0 %v18876_v26  ;;  %15398 = vmatprep.subr.mxu1 %v18856_v61  ;;  %v22883_v26 = vld [vmem:[#allocation66_spill] sm:$0xff] }
 0x3ad   :  { %15261 = vmatmul.mubr.f32.gmra.mxu0 %v22880_v29  ;;  %15317 = vmatmul.mubr.f32.gmra.mxu1 %v22881_v17  ;;  %v22884_v29 = vld [vmem:[#allocation88_spill] sm:$0xff] }
 0x3ae   :  { %15344 = vmatprep.subr.mxu0 %v18891_v49  ;;  %15399 = vmatpush3.msra.mxu1 %v18856_v61 }
 0x3af   :  { %15345 = vmatpush3.msra.mxu0 %v18891_v49  ;;  %15400 = vmatprep.subr.mxu1 %v18871_v15  ;;  %v22886_v49 = vld [vmem:[#allocation91_spill] sm:$0xff] }
 0x3b0   :  { %15346 = vmatprep.subr.mxu0 %v18906_v56  ;;  %15401 = vmatpush3.msra.mxu1 %v18871_v15 }
 0x3b1   :  { %15263 = vmatprep.mubr.f32.mxu0 %v22882_v35  ;;  %15319 = vmatprep.mubr.f32.mxu1 %v22883_v26  ;;  %v22889_v35 = vld [vmem:[#allocation76_spill] sm:$0xff] }
 0x3b2   :  { %15347 = vmatpush3.msra.mxu0 %v18906_v56  ;;  %15402 = vmatprep.subr.mxu1 %v18887_v55  ;;  %v22887_v56 = vld [vmem:[#allocation74_spill] sm:$0xff] }
 0x3b3   :  { %15264 = vmatmul.mubr.f32.gmra.mxu0 %v22884_v29  ;;  %15320 = vmatmul.mubr.f32.gmra.mxu1 %v22885_v6  ;;  %v22888_v29 = vld [vmem:[#allocation93_spill] sm:$0xff] }
 0x3b4   :  { %15348 = vmatprep.subr.mxu0 %v18920_v41  ;;  %15403 = vmatpush3.msra.mxu1 %v18887_v55 }
 0x3b5   :  { %15349 = vmatpush3.msra.mxu0 %v18920_v41  ;;  %15404 = vmatprep.subr.mxu1 %v18901_v50  ;;  %v22890_v41 = vld [vmem:[#allocation94_spill] sm:$0xff] }
 0x3b6   :  { %15350 = vmatprep.subr.mxu0 %v18932_v4  ;;  %15405 = vmatpush3.msra.mxu1 %v18901_v50 }
 0x3b7   :  { %15266 = vmatprep.mubr.f32.mxu0 %v22886_v49  ;;  %15322 = vmatprep.mubr.f32.mxu1 %v22887_v56  ;;  %v22893_v49 = vld [vmem:[#allocation84_spill] sm:$0xff] }
 0x3b8   :  { %15351 = vmatpush3.msra.mxu0 %v18932_v4  ;;  %15406 = vmatprep.subr.mxu1 %v18912_v11  ;;  %v22891_v4 = vld [vmem:[#allocation82_spill] sm:$0xff] }
 0x3b9   :  { %15267 = vmatmul.mubr.f32.gmra.mxu0 %v22888_v29  ;;  %15323 = vmatmul.mubr.f32.gmra.mxu1 %v22889_v35  ;;  %v22892_v29 = vld [vmem:[#allocation95_spill] sm:$0xff] }
 0x3ba   :  { %15352 = vmatprep.subr.mxu0 %v18947_v30  ;;  %15407 = vmatpush3.msra.mxu1 %v18912_v11 }
 0x3bb   :  { %15353 = vmatpush3.msra.mxu0 %v18947_v30  ;;  %15408 = vmatprep.subr.mxu1 %v18926_v2  ;;  %v22894_v30 = vld [vmem:[#allocation26_spill] sm:$0xff] }
 0x3bc   :  { %15354 = vmatprep.subr.mxu0 %v18957_v13  ;;  %15409 = vmatpush3.msra.mxu1 %v18926_v2 }
 0x3bd   :  { %15269 = vmatprep.mubr.f32.mxu0 %v22890_v41  ;;  %15325 = vmatprep.mubr.f32.mxu1 %v22891_v4 }
 0x3be   :  { %15355 = vmatpush3.msra.mxu0 %v18957_v13  ;;  %15410 = vmatprep.subr.mxu1 %v18936_v40  ;;  %v22895_v13 = vld [vmem:[#allocation28_spill] sm:$0xff] }
 0x3bf   :  { %15270 = vmatmul.mubr.f32.gmra.mxu0 %v22892_v29  ;;  %15326 = vmatmul.mubr.f32.gmra.mxu1 %v22893_v49  ;;  %v22896_v29 = vld [vmem:[#allocation34_spill] sm:$0xff] }
 0x3c0   :  { %15356 = vmatprep.subr.mxu0 %v18973_v58  ;;  %15411 = vmatpush3.msra.mxu1 %v18936_v40 }
 0x3c1   :  { %15357 = vmatpush3.msra.mxu0 %v18973_v58  ;;  %15412 = vmatprep.subr.mxu1 %v18953_v52  ;;  %v22897_v58 = vld [vmem:[#allocation35_spill] sm:$0xff] }
 0x3c2   :  { %15358 = vmatprep.subr.mxu0 %v18982_v57  ;;  %15413 = vmatpush3.msra.mxu1 %v18953_v52 }
 0x3c3   :  { %15359 = vmatpush3.msra.mxu0 %v18982_v57  ;;  %15360 = vmatprep.mubr.f32.mxu0 %v22894_v30  ;;  %v22898_v57 = vld [vmem:[#allocation36_spill] sm:$0xff] }
 0x3c4   :  { %15414 = vmatprep.subr.mxu1 %v18962_v38  ;;  %15361 = vmatmul.mubr.f32.vlgmr.msra.gmra.mxu0 %v22895_v13  ;;  %v22899_v13 = vld [vmem:[#allocation39_spill] sm:$0xff] }
 0x3c5   :  { %15415 = vmatpush3.msra.mxu1 %v18962_v38  ;;  %15416 = vmatprep.mubr.f32.mxu1 %v22896_v29  ;;  %v22900_v29 = vld [vmem:[#allocation42_spill] sm:$0xff] }
 0x3c6   :  { %15440 = vmatprep.subr.mxu0 %v18734_v31  ;;  %15417 = vmatmul.mubr.f32.vlgmr.msra.gmra.mxu1 %v22897_v58 }
 0x3c7   :  { %15441 = vmatpush3.msra.mxu0 %v18734_v31  ;;  %15496 = vmatprep.subr.mxu1 %v18528_v46  ;;  %v22901_v31 = vld [vmem:[#allocation45_spill] sm:$0xff] }
 0x3c8   :  { %15442 = vmatprep.subr.mxu0 %v18801_v48  ;;  %15497 = vmatpush3.msra.mxu1 %v18528_v46  ;;  %v22902_v46 = vld [vmem:[#allocation44_spill] sm:$0xff] }
 0x3c9   :  { %15363 = vmatprep.mubr.f32.mxu0 %v22898_v57  ;;  %15443 = vmatpush3.msra.mxu0 %v18801_v48  ;;  %v22903_v48 = vld [vmem:[#allocation47_spill] sm:$0xff] }
 0x3ca   :  { %15498 = vmatprep.subr.mxu1 %v18783_v32  ;;  %15364 = vmatmul.mubr.f32.gmra.mxu0 %v22899_v13 }
 0x3cb   :  { %15419 = vmatprep.mubr.f32.mxu1 %v22900_v29  ;;  %15444 = vmatprep.subr.mxu0 %v18813_v63  ;;  %v22904_v29 = vld [vmem:[#allocation51_spill] sm:$0xff] }
 0x3cc   :  { %15499 = vmatpush3.msra.mxu1 %v18783_v32  ;;  %15445 = vmatpush3.msra.mxu0 %v18813_v63  ;;  %v22905_v32 = vld [vmem:[#allocation53_spill] sm:$0xff]  ;;  %v22907_v63 = vld [vmem:[#allocation56_spill] sm:$0xff] }
 0x3cd   :  { %15420 = vmatmul.mubr.f32.gmra.mxu1 %v22901_v31  ;;  %15500 = vmatprep.subr.mxu1 %v18794_v45 }
 0x3ce   :  { %15446 = vmatprep.subr.mxu0 %v18836_v23  ;;  %15501 = vmatpush3.msra.mxu1 %v18794_v45  ;;  %v22906_v45 = vld [vmem:[#allocation54_spill] sm:$0xff] }
 0x3cf   :  { %15366 = vmatprep.mubr.f32.mxu0 %v22902_v46  ;;  %15447 = vmatpush3.msra.mxu0 %v18836_v23  ;;  %v22908_v23 = vld [vmem:[#allocation59_spill] sm:$0xff] }
 0x3d0   :  { %15502 = vmatprep.subr.mxu1 %v18815_v36  ;;  %15367 = vmatmul.mubr.f32.gmra.mxu0 %v22903_v48 }
 0x3d1   :  { %15422 = vmatprep.mubr.f32.mxu1 %v22904_v29  ;;  %15448 = vmatprep.subr.mxu0 %v18853_v53 }
 0x3d2   :  { %15503 = vmatpush3.msra.mxu1 %v18815_v36  ;;  %15449 = vmatpush3.msra.mxu0 %v18853_v53  ;;  %v22909_v36 = vld [vmem:[#allocation62_spill] sm:$0xff]  ;;  %v22911_v53 = vld [vmem:[#allocation65_spill] sm:$0xff] }
 0x3d3   :  { %15423 = vmatmul.mubr.f32.gmra.mxu1 %v22905_v32  ;;  %15504 = vmatprep.subr.mxu1 %v18827_v18 }
 0x3d4   :  { %15450 = vmatprep.subr.mxu0 %v18866_v22  ;;  %15505 = vmatpush3.msra.mxu1 %v18827_v18  ;;  %v22910_v18 = vld [vmem:[#allocation63_spill] sm:$0xff] }
 0x3d5   :  { %15369 = vmatprep.mubr.f32.mxu0 %v22906_v45  ;;  %15451 = vmatpush3.msra.mxu0 %v18866_v22  ;;  %v22912_v22 = vld [vmem:[#allocation67_spill] sm:$0xff] }
 0x3d6   :  { %15506 = vmatprep.subr.mxu1 %v18833_v14  ;;  %15370 = vmatmul.mubr.f32.gmra.mxu0 %v22907_v63 }
 0x3d7   :  { %15425 = vmatprep.mubr.f32.mxu1 %v22908_v23  ;;  %15452 = vmatprep.subr.mxu0 %v18881_v25 }
 0x3d8   :  { %15507 = vmatpush3.msra.mxu1 %v18833_v14  ;;  %15453 = vmatpush3.msra.mxu0 %v18881_v25  ;;  %v22913_v14 = vld [vmem:[#allocation70_spill] sm:$0xff]  ;;  %v22915_v25 = vld [vmem:[#allocation73_spill] sm:$0xff] }
 0x3d9   :  { %15426 = vmatmul.mubr.f32.gmra.mxu1 %v22909_v36  ;;  %15508 = vmatprep.subr.mxu1 %v18844_v28 }
 0x3da   :  { %15454 = vmatprep.subr.mxu0 %v18895_v19  ;;  %15509 = vmatpush3.msra.mxu1 %v18844_v28  ;;  %v22914_v28 = vld [vmem:[#allocation71_spill] sm:$0xff] }
 0x3db   :  { %15372 = vmatprep.mubr.f32.mxu0 %v22910_v18  ;;  %15455 = vmatpush3.msra.mxu0 %v18895_v19 }
 0x3dc   :  { %15510 = vmatprep.subr.mxu1 %v18856_v61  ;;  %15373 = vmatmul.mubr.f32.gmra.mxu0 %v22911_v53 }
 0x3dd   :  { %15428 = vmatprep.mubr.f32.mxu1 %v22912_v22  ;;  %15456 = vmatprep.subr.mxu0 %v18910_v12 }
 0x3de   :  { %15511 = vmatpush3.msra.mxu1 %v18856_v61  ;;  %15457 = vmatpush3.msra.mxu0 %v18910_v12  ;;  %v22916_v61 = vld [vmem:[#allocation75_spill] sm:$0xff] }
 0x3df   :  { %15429 = vmatmul.mubr.f32.gmra.mxu1 %v22913_v14  ;;  %15512 = vmatprep.subr.mxu1 %v18871_v15 }
 0x3e0   :  { %15458 = vmatprep.subr.mxu0 %v18924_v62  ;;  %15513 = vmatpush3.msra.mxu1 %v18871_v15  ;;  %v22918_v15 = vld [vmem:[#allocation78_spill] sm:$0xff] }
 0x3e1   :  { %15375 = vmatprep.mubr.f32.mxu0 %v22914_v28  ;;  %15459 = vmatpush3.msra.mxu0 %v18924_v62 }
 0x3e2   :  { %15514 = vmatprep.subr.mxu1 %v18887_v55  ;;  %15376 = vmatmul.mubr.f32.gmra.mxu0 %v22915_v25  ;;  %v15082_v19 = vpop.f32.mrf.mxu1  ;;  %v22919_v25 = vld [vmem:[#allocation79_spill] sm:$0xff] }
 0x3e3   :  { %15431 = vmatprep.mubr.f32.mxu1 %v22916_v61  ;;  %15460 = vmatprep.subr.mxu0 %v18940_v34 }
 0x3e4   :  { %15515 = vmatpush3.msra.mxu1 %v18887_v55  ;;  %15461 = vmatpush3.msra.mxu0 %v18940_v34  ;;  %v19178_v12 = vpop.f32.mrf.mxu1  ;;  %v22920_v55 = vld [vmem:[#allocation81_spill] sm:$0xff] }
 0x3e5   :  { %22917 = vst [vmem:[#allocation148_spill] sm:$0xff] %v19178_v12  ;;  %15432 = vmatmul.mubr.f32.gmra.mxu1 %v22918_v15  ;;  %15516 = vmatprep.subr.mxu1 %v18901_v50  ;;  %v22922_v12 = vld [vmem:[#allocation83_spill] sm:$0xff]  ;;  %v22923_v15 = vld [vmem:[#allocation86_spill] sm:$0xff] }
 0x3e6   :  { %15462 = vmatprep.subr.mxu0 %v18951_v37  ;;  %15517 = vmatpush3.msra.mxu1 %v18901_v50  ;;  %v15085_v62 = vpop.f32.mrf.mxu1 }
 0x3e7   :  { %15378 = vmatprep.mubr.f32.mxu0 %v22919_v25  ;;  %15463 = vmatpush3.msra.mxu0 %v18951_v37  ;;  %v22928_v25 = vld [vmem:[#allocation90_spill] sm:$0xff] }
 0x3e8   :  { %15518 = vmatprep.subr.mxu1 %v18912_v11  ;;  %15379 = vmatmul.mubr.f32.gmra.mxu0 %v22920_v55  ;;  %v19188_v34 = vpop.f32.mrf.mxu1 }
 0x3e9   :  { %22921 = vst [vmem:[#allocation143_spill] sm:$0xff] %v19188_v34  ;;  %15434 = vmatprep.mubr.f32.mxu1 %v22922_v12  ;;  %15464 = vmatprep.subr.mxu0 %v18967_v42  ;;  %v22925_v12 = vld [vmem:[#allocation87_spill] sm:$0xff] }
 0x3ea   :  { %15519 = vmatpush3.msra.mxu1 %v18912_v11  ;;  %15465 = vmatpush3.msra.mxu0 %v18967_v42  ;;  %v15088_v50 = vpop.f32.mrf.mxu1  ;;  %v22927_v42 = vld [vmem:[#allocation89_spill] sm:$0xff] }
 0x3eb   :  { %15435 = vmatmul.mubr.f32.gmra.mxu1 %v22923_v15  ;;  %15520 = vmatprep.subr.mxu1 %v18926_v2  ;;  %v15054_v37 = vpop.f32.mrf.mxu0 }
 0x3ec   :  { %15466 = vmatprep.subr.mxu0 %v18978_v39  ;;  %15521 = vmatpush3.msra.mxu1 %v18926_v2  ;;  %v19198_v55 = vadd.f32 %v15082_v19, %v15054_v37  ;;  %v19200_v34 = vpop.f32.mrf.mxu1 }
 0x3ed   :  { %22924 = vst [vmem:[#allocation144_spill] sm:$0xff] %v19200_v34  ;;  %15381 = vmatprep.mubr.f32.mxu0 %v22925_v12  ;;  %15467 = vmatpush3.msra.mxu0 %v18978_v39  ;;  %v19204_v11 = vpop.f32.mrf.mxu0  ;;  %v22930_v39 = vld [vmem:[#allocation92_spill] sm:$0xff] }
 0x3ee   :  { %22926 = vst [vmem:[#allocation145_spill] sm:$0xff] %v19204_v11  ;;  %15522 = vmatprep.subr.mxu1 %v18936_v40  ;;  %15382 = vmatmul.mubr.f32.gmra.mxu0 %v22927_v42  ;;  %v15091_v15 = vpop.f32.mrf.mxu1 }
 0x3ef   :  { %15437 = vmatprep.mubr.f32.mxu1 %v22928_v25  ;;  %15468 = vmatprep.subr.mxu0 %v18989_v9  ;;  %v15057_v2 = vpop.f32.mrf.mxu0 }
 0x3f0   :  { %15523 = vmatpush3.msra.mxu1 %v18936_v40  ;;  %15469 = vmatpush3.msra.mxu0 %v18989_v9  ;;  %v19212_v19 = vadd.f32 %v15085_v62, %v15057_v2  ;;  %v19214_v37 = vpop.f32.mrf.mxu1 }
 0x3f1   :  { %22929 = vst [vmem:[#allocation146_spill] sm:$0xff] %v19214_v37  ;;  %15438 = vmatmul.mubr.f32.gmra.mxu1 %v22930_v39  ;;  %15524 = vmatprep.subr.mxu1 %v18953_v52  ;;  %v19218_v34 = vpop.f32.mrf.mxu0 }
 0x3f2   :  { %22931 = vst [vmem:[#allocation147_spill] sm:$0xff] %v19218_v34  ;;  %15470 = vmatprep.subr.mxu0 %v18997_v44  ;;  %15525 = vmatpush3.msra.mxu1 %v18953_v52  ;;  %v15094_v11 = vpop.f32.mrf.mxu1 }
 0x3f3   :  { %15471 = vmatpush3.msra.mxu0 %v18997_v44  ;;  %15472 = vmatprep.mubr.f32.mxu0 %v22863_v16  ;;  %v15060_v9 = vpop.f32.mrf.mxu0 }
 0x3f4   :  { %15526 = vmatprep.subr.mxu1 %v18962_v38  ;;  %15473 = vmatmul.mubr.f32.vlgmr.msra.gmra.mxu0 %v22865_v3  ;;  %v19226_v40 = vadd.f32 %v15088_v50, %v15060_v9  ;;  %v19228_v62 = vpop.f32.mrf.mxu1 }
 0x3f5   :  { %22932 = vst [vmem:[#allocation149_spill] sm:$0xff] %v19228_v62  ;;  %15527 = vmatpush3.msra.mxu1 %v18962_v38  ;;  %15528 = vmatprep.mubr.f32.mxu1 %v22863_v16  ;;  %v19232_v2 = vpop.f32.mrf.mxu0  ;;  %v22935_v38 = vld [vmem:[#allocation33_spill] sm:$0xff] }
 0x3f6   :  { %22933 = vst [vmem:[#allocation150_spill] sm:$0xff] %v19232_v2  ;;  %15529 = vmatmul.mubr.f32.vlgmr.msra.gmra.mxu1 %v22865_v3  ;;  %15475 = vmatprep.mubr.f32.mxu0 %v22867_v21  ;;  %v15097_v52 = vpop.f32.mrf.mxu1 }
 0x3f7   :  { %15531 = vmatprep.mubr.f32.mxu1 %v22867_v21  ;;  %v15063_v44 = vpop.f32.mrf.mxu0  ;;  %15552 = vmatprep.subr.mxu0 %v22856_v54 }
 0x3f8   :  { %15476 = vmatmul.mubr.f32.gmra.mxu0 %v22869_v33  ;;  %v19239_v50 = vadd.f32 %v15091_v15, %v15063_v44  ;;  %v19241_v9 = vpop.f32.mrf.mxu1  ;;  %15580 = vmatprep.subr.mxu1 %v22935_v38 }
 0x3f9   :  { %22934 = vst [vmem:[#allocation151_spill] sm:$0xff] %v19241_v9  ;;  %15478 = vmatprep.mubr.f32.mxu0 %v22871_v8  ;;  %v19245_v62 = vpop.f32.mrf.mxu0  ;;  %15553 = vmatpush3.msra.mxu0 %v22856_v54  ;;  %v22938_v9 = vld [vmem:[#allocation20_spill] sm:$0xff] }
 0x3fa   :  { %22936 = vst [vmem:[#allocation152_spill] sm:$0xff] %v19245_v62  ;;  %15532 = vmatmul.mubr.f32.gmra.mxu1 %v22869_v33  ;;  %v15100_v37 = vpop.f32.mrf.mxu1  ;;  %15554 = vmatprep.subr.mxu0 %v22857_v5 }
 0x3fb   :  { %15534 = vmatprep.mubr.f32.mxu1 %v22871_v8  ;;  %v15066_v2 = vpop.f32.mrf.mxu0  ;;  %15581 = vmatpush3.msra.mxu1 %v22935_v38 }
 0x3fc   :  { %15479 = vmatmul.mubr.f32.gmra.mxu0 %v22873_v27  ;;  %v19253_v15 = vadd.f32 %v15094_v11, %v15066_v2  ;;  %v19255_v44 = vpop.f32.mrf.mxu1  ;;  %15582 = vmatprep.subr.mxu1 %v22938_v9 }
 0x3fd   :  { %22937 = vst [vmem:[#allocation153_spill] sm:$0xff] %v19255_v44  ;;  %15481 = vmatprep.mubr.f32.mxu0 %v22875_v1  ;;  %v19259_v62 = vpop.f32.mrf.mxu0  ;;  %15555 = vmatpush3.msra.mxu0 %v22857_v5 }
 0x3fe   :  { %22939 = vst [vmem:[#allocation154_spill] sm:$0xff] %v19259_v62  ;;  %15535 = vmatmul.mubr.f32.gmra.mxu1 %v22873_v27  ;;  %v15103_v34 = vpop.f32.mrf.mxu1  ;;  %15608 = vmatprep.subr.mxu0 %v22858_v43 }
 0x3ff   :  { %15537 = vmatprep.mubr.f32.mxu1 %v22875_v1  ;;  %v15069_v38 = vpop.f32.mrf.mxu0  ;;  %15583 = vmatpush3.msra.mxu1 %v22938_v9 }
 0x400   :  { %15482 = vmatmul.mubr.f32.gmra.mxu0 %v22877_v7  ;;  %v19267_v11 = vadd.f32 %v15097_v52, %v15069_v38  ;;  %v19269_v2 = vpop.f32.mrf.mxu1  ;;  %15636 = vmatprep.subr.mxu1 %v22856_v54 }
 0x401   :  { %22940 = vst [vmem:[#allocation155_spill] sm:$0xff] %v19269_v2  ;;  %15484 = vmatprep.mubr.f32.mxu0 %v22879_v0  ;;  %v19273_v44 = vpop.f32.mrf.mxu0 }
 0x402   :  { %22941 = vst [vmem:[#allocation156_spill] sm:$0xff] %v19273_v44  ;;  %15538 = vmatmul.mubr.f32.gmra.mxu1 %v22877_v7  ;;  %v15138_v62 = vpop.f32.mrf.mxu1 }
 0x403   :  { %15540 = vmatprep.mubr.f32.mxu1 %v22879_v0  ;;  %v15072_v39 = vpop.f32.mrf.mxu0 }
 0x404   :  { %15485 = vmatmul.mubr.f32.gmra.mxu0 %v22881_v17  ;;  %v4279_v9 = vadd.f32 %v15100_v37, %v15072_v39  ;;  %v19278_v25 = vpop.f32.mrf.mxu1 }
 0x405   :  { %22942 = vst [vmem:[#allocation157_spill] sm:$0xff] %v19278_v25  ;;  %15487 = vmatprep.mubr.f32.mxu0 %v22883_v26  ;;  %v19281_v52 = vpop.f32.mrf.mxu0 }
 0x406   :  { %22943 = vst [vmem:[#allocation158_spill] sm:$0xff] %v19281_v52  ;;  %15541 = vmatmul.mubr.f32.gmra.mxu1 %v22881_v17  ;;  %v15141_v38 = vpop.f32.mrf.mxu1 }
 0x407   :  { %15543 = vmatprep.mubr.f32.mxu1 %v22883_v26  ;;  %v15075_v2 = vpop.f32.mrf.mxu0 }
 0x408   :  { %15488 = vmatmul.mubr.f32.gmra.mxu0 %v22885_v6  ;;  %v4291_v44 = vadd.f32 %v15103_v34, %v15075_v2  ;;  %v19286_v42 = vpop.f32.mrf.mxu1 }
 0x409   :  { %22944 = vst [vmem:[#allocation159_spill] sm:$0xff] %v19286_v42  ;;  %15490 = vmatprep.mubr.f32.mxu0 %v22887_v56  ;;  %v19289_v37 = vpop.f32.mrf.mxu0 }
 0x40a   :  { %22945 = vst [vmem:[#allocation160_spill] sm:$0xff] %v19289_v37  ;;  %15544 = vmatmul.mubr.f32.gmra.mxu1 %v22885_v6  ;;  %v15144_v39 = vpop.f32.mrf.mxu1 }
 0x40b   :  { %15546 = vmatprep.mubr.f32.mxu1 %v22887_v56  ;;  %v15110_v52 = vpop.f32.mrf.mxu0 }
 0x40c   :  { %15491 = vmatmul.mubr.f32.gmra.mxu0 %v22889_v35  ;;  %v4374_v25 = vadd.f32 %v15110_v52, %v19198_v55  ;;  %v19295_v12 = vpop.f32.mrf.mxu1 }
 0x40d   :  { %22946 = vst [vmem:[#allocation161_spill] sm:$0xff] %v19295_v12  ;;  %15493 = vmatprep.mubr.f32.mxu0 %v22891_v4  ;;  %v19298_v34 = vpop.f32.mrf.mxu0 }
 0x40e   :  { %22947 = vst [vmem:[#allocation162_spill] sm:$0xff] %v19298_v34  ;;  %15547 = vmatmul.mubr.f32.gmra.mxu1 %v22889_v35  ;;  %v15147_v2 = vpop.f32.mrf.mxu1  ;;  %v4555_v37 = vadd.f32 %v15138_v62, %v4374_v25 }
 0x40f   :  { %15549 = vmatprep.mubr.f32.mxu1 %v22891_v4  ;;  %v15113_v42 = vpop.f32.mrf.mxu0 }
 0x410   :  { %15494 = vmatmul.mubr.f32.gmra.mxu0 %v22893_v49  ;;  %v4388_v61 = vadd.f32 %v15113_v42, %v19212_v19  ;;  %v19304_v28 = vpop.f32.mrf.mxu1 }
 0x411   :  { %22948 = vst [vmem:[#allocation163_spill] sm:$0xff] %v19304_v28  ;;  %v19306_v55 = vpop.f32.mrf.mxu0 }
 0x412   :  { %22949 = vst [vmem:[#allocation164_spill] sm:$0xff] %v19306_v55  ;;  %15550 = vmatmul.mubr.f32.gmra.mxu1 %v22893_v49  ;;  %v15150_v52 = vpop.f32.mrf.mxu1  ;;  %v4571_v12 = vadd.f32 %v15141_v38, %v4388_v61 }
 0x413   :  { %v15116_v34 = vpop.f32.mrf.mxu0 }
 0x414   :  { %v4402_v14 = vadd.f32 %v15116_v34, %v19226_v40  ;;  %v19310_v22 = vpop.f32.mrf.mxu1 }
 0x415   :  { %22950 = vst [vmem:[#allocation165_spill] sm:$0xff] %v19310_v22  ;;  %v19312_v25 = vpop.f32.mrf.mxu0 }
 0x416   :  { %22951 = vst [vmem:[#allocation166_spill] sm:$0xff] %v19312_v25  ;;  %v15153_v62 = vpop.f32.mrf.mxu1  ;;  %v4587_v53 = vadd.f32 %v15144_v39, %v4402_v14 }
 0x417   :  { %v15119_v18 = vpop.f32.mrf.mxu0 }
 0x418   :  { %v4416_v42 = vadd.f32 %v15119_v18, %v19239_v50  ;;  %v19315_v19 = vpop.f32.mrf.mxu1 }
 0x419   :  { %22952 = vst [vmem:[#allocation167_spill] sm:$0xff] %v19315_v19  ;;  %v19317_v28 = vpop.f32.mrf.mxu0 }
 0x41a   :  { %22953 = vst [vmem:[#allocation168_spill] sm:$0xff] %v19317_v28  ;;  %v15156_v55 = vpop.f32.mrf.mxu1  ;;  %v4603_v36 = vadd.f32 %v15147_v2, %v4416_v42 }
 0x41b   :  { %v15122_v23 = vpop.f32.mrf.mxu0 }
 0x41c   :  { %v4430_v61 = vadd.f32 %v15122_v23, %v19253_v15  ;;  %v19320_v38 = vpop.f32.mrf.mxu1 }
 0x41d   :  { %22954 = vst [vmem:[#allocation169_spill] sm:$0xff] %v19320_v38  ;;  %v19322_v40 = vpop.f32.mrf.mxu0 }
 0x41e   :  { %22955 = vst [vmem:[#allocation170_spill] sm:$0xff] %v19322_v40  ;;  %v15159_v34 = vpop.f32.mrf.mxu1  ;;  %v4619_v22 = vadd.f32 %v15150_v52, %v4430_v61 }
 0x41f   :  { %v15125_v25 = vpop.f32.mrf.mxu0 }
 0x420   :  { %v4444_v14 = vadd.f32 %v15125_v25, %v19267_v11  ;;  %v19325_v39 = vpop.f32.mrf.mxu1 }
 0x421   :  { %22956 = vst [vmem:[#allocation171_spill] sm:$0xff] %v19325_v39  ;;  %v19327_v18 = vpop.f32.mrf.mxu0 }
 0x422   :  { %22957 = vst [vmem:[#allocation172_spill] sm:$0xff] %v19327_v18  ;;  %v15194_v50 = vpop.f32.mrf.mxu1  ;;  %v4635_v19 = vadd.f32 %v15153_v62, %v4444_v14 }
 0x423   :  { %v15128_v28 = vpop.f32.mrf.mxu0 }
 0x424   :  { %v4458_v2 = vadd.f32 %v15128_v28, %v4279_v9  ;;  %v19329_v42 = vpop.f32.mrf.mxu1 }
 0x425   :  { %22958 = vst [vmem:[#allocation173_spill] sm:$0xff] %v19329_v42  ;;  %v19331_v23 = vpop.f32.mrf.mxu0  ;;  %v22964_v42 = vld [vmem:[#allocation123_spill] sm:$0xff] }
 0x426   :  { %22959 = vst [vmem:[#allocation174_spill] sm:$0xff] %v19331_v23  ;;  %v15197_v15 = vpop.f32.mrf.mxu1  ;;  %v19333_v38 = vadd.f32 %v15156_v55, %v4458_v2  ;;  %v19347_v55 = vmul.f32 %v22964_v42, %v22964_v42 }
 0x427   :  { %v15131_v40 = vpop.f32.mrf.mxu0 }
 0x428   :  { %v4472_v52 = vadd.f32 %v15131_v40, %v4291_v44  ;;  %v19335_v61 = vpop.f32.mrf.mxu1  ;;  %22965 = vst [vmem:[#allocation123_spill] sm:$0xff] %v19347_v55 }
 0x429   :  { %22960 = vst [vmem:[#allocation175_spill] sm:$0xff] %v19335_v61  ;;  %v19337_v11 = vpop.f32.mrf.mxu0 }
 0x42a   :  { %22961 = vst [vmem:[#allocation176_spill] sm:$0xff] %v19337_v11  ;;  %v15200_v25 = vpop.f32.mrf.mxu1  ;;  %v19339_v39 = vadd.f32 %v15159_v34, %v4472_v52 }
 0x42b   :  { %v15166_v18 = vpop.f32.mrf.mxu0 }
 0x42c   :  { %v4750_v62 = vadd.f32 %v15166_v18, %v4555_v37  ;;  %v19341_v14 = vpop.f32.mrf.mxu1 }
 0x42d   :  { %22962 = vst [vmem:[#allocation177_spill] sm:$0xff] %v19341_v14  ;;  %v19343_v28 = vpop.f32.mrf.mxu0  ;;  %v22971_v14 = vld [vmem:[#allocation125_spill] sm:$0xff] }
 0x42e   :  { %22963 = vst [vmem:[#allocation178_spill] sm:$0xff] %v19343_v28  ;;  %v4913_v9 = vadd.f32 %v15194_v50, %v4750_v62  ;;  %v15203_v34 = vpop.f32.mrf.mxu1  ;;  %v19364_v11 = vmul.f32 %v22971_v14, %v22971_v14 }
 0x42f   :  { %v15169_v23 = vpop.f32.mrf.mxu0 }
 0x430   :  { %v19349_v44 = vmul.f32 %v4913_v9, %v4913_v9  ;;  %v19352_v40 = vmul.f32 %v4913_v9, %v22964_v42  ;;  %v4762_v2 = vadd.f32 %v15169_v23, %v4571_v12  ;;  %v19360_v50 = vpop.f32.mrf.mxu1  ;;  %22972 = vst [vmem:[#allocation125_spill] sm:$0xff] %v19364_v11 }
 0x431   :  { %v19354_v52 = vpop.f32.mrf.mxu0  ;;  %22970 = vst [vmem:[#allocation183_spill] sm:$0xff] %v19360_v50 }
 0x432   :  { %22966 = vst [vmem:[#allocation179_spill] sm:$0xff] %v19349_v44  ;;  %22967 = vst [vmem:[#allocation180_spill] sm:$0xff] %v19352_v40  ;;  %v19358_v37 = vadd.f32 %v19349_v44, %v19347_v55  ;;  %v4925_v18 = vadd.f32 %v15197_v15, %v4762_v2  ;;  %v22977_v40 = vld [vmem:[#allocation128_spill] sm:$0xff] }
 0x433   :  { %22968 = vst [vmem:[#allocation181_spill] sm:$0xff] %v19354_v52  ;;  %v15206_v2 = vpop.f32.mrf.mxu1  ;;  %v19379_v52 = vmul.f32 %v22977_v40, %v22977_v40 }
 0x434   :  { %22969 = vst [vmem:[#allocation182_spill] sm:$0xff] %v19358_v37  ;;  %v15172_v62 = vpop.f32.mrf.mxu0  ;;  %v19366_v61 = vmul.f32 %v4925_v18, %v4925_v18  ;;  %v19369_v42 = vmul.f32 %v4925_v18, %v22971_v14 }
 0x435   :  { %v4774_v12 = vadd.f32 %v15172_v62, %v4587_v53  ;;  %22978 = vst [vmem:[#allocation128_spill] sm:$0xff] %v19379_v52  ;;  %v19392_v62 = vpop.f32.mrf.mxu1 }
 0x436   :  { %22973 = vst [vmem:[#allocation184_spill] sm:$0xff] %v19366_v61  ;;  %22974 = vst [vmem:[#allocation185_spill] sm:$0xff] %v19369_v42  ;;  %v19371_v23 = vpop.f32.mrf.mxu0  ;;  %v19375_v9 = vadd.f32 %v19366_v61, %v19364_v11 }
 0x437   :  { %22975 = vst [vmem:[#allocation186_spill] sm:$0xff] %v19371_v23  ;;  %v4937_v15 = vadd.f32 %v15200_v25, %v4774_v12  ;;  %22983 = vst [vmem:[#allocation192_spill] sm:$0xff] %v19392_v62  ;;  %v22984_v12 = vld [vmem:[#allocation131_spill] sm:$0xff] }
 0x438   :  { %22976 = vst [vmem:[#allocation187_spill] sm:$0xff] %v19375_v9  ;;  %v19396_v42 = vmul.f32 %v22984_v12, %v22984_v12 }
 0x439   :  { %v15175_v50 = vpop.f32.mrf.mxu0  ;;  %v19381_v28 = vmul.f32 %v4937_v15, %v4937_v15  ;;  %v19384_v37 = vmul.f32 %v4937_v15, %v22977_v40 }
 0x43a   :  { %v4786_v14 = vadd.f32 %v15175_v50, %v4603_v36  ;;  %22985 = vst [vmem:[#allocation131_spill] sm:$0xff] %v19396_v42  ;;  %v15209_v36 = vpop.f32.mrf.mxu1 }
 0x43b   :  { %22979 = vst [vmem:[#allocation188_spill] sm:$0xff] %v19381_v28  ;;  %22980 = vst [vmem:[#allocation189_spill] sm:$0xff] %v19384_v37  ;;  %v19386_v53 = vpop.f32.mrf.mxu0  ;;  %v19390_v18 = vadd.f32 %v19381_v28, %v19379_v52 }
 0x43c   :  { %22981 = vst [vmem:[#allocation190_spill] sm:$0xff] %v19386_v53  ;;  %v4949_v25 = vadd.f32 %v15203_v34, %v4786_v14  ;;  %v22990_v34 = vld [vmem:[#allocation133_spill] sm:$0xff]  ;;  %v19413_v53 = vpop.f32.mrf.mxu1 }
 0x43d   :  { %22982 = vst [vmem:[#allocation191_spill] sm:$0xff] %v19390_v18  ;;  %v19411_v14 = vmul.f32 %v22990_v34, %v22990_v34  ;;  %22992 = vst [vmem:[#allocation197_spill] sm:$0xff] %v19413_v53 }
 0x43e   :  { %v19398_v23 = vmul.f32 %v4949_v25, %v4949_v25  ;;  %v19401_v9 = vmul.f32 %v4949_v25, %v22984_v12 }
 0x43f   :  { %v15178_v40 = vpop.f32.mrf.mxu0  ;;  %22991 = vst [vmem:[#allocation133_spill] sm:$0xff] %v19411_v14 }
 0x440   :  { %22986 = vst [vmem:[#allocation193_spill] sm:$0xff] %v19398_v23  ;;  %22987 = vst [vmem:[#allocation194_spill] sm:$0xff] %v19401_v9  ;;  %v4798_v50 = vadd.f32 %v15178_v40, %v4619_v22  ;;  %v19405_v15 = vadd.f32 %v19398_v23, %v19396_v42 }
 0x441   :  { %v19407_v37 = vpop.f32.mrf.mxu0 }
 0x442   :  { %22988 = vst [vmem:[#allocation195_spill] sm:$0xff] %v19405_v15  ;;  %22989 = vst [vmem:[#allocation196_spill] sm:$0xff] %v19407_v37  ;;  %v4961_v62 = vadd.f32 %v15206_v2, %v4798_v50  ;;  %v15212_v2 = vpop.f32.mrf.mxu1  ;;  %v22997_v37 = vld [vmem:[#allocation136_spill] sm:$0xff] }
 0x443   :  { %v19428_v15 = vmul.f32 %v22997_v37, %v22997_v37 }
 0x444   :  { %v19415_v18 = vmul.f32 %v4961_v62, %v4961_v62  ;;  %v19418_v25 = vmul.f32 %v4961_v62, %v22990_v34  ;;  %v19435_v34 = vpop.f32.mrf.mxu1 }
 0x445   :  { %v15181_v12 = vpop.f32.mrf.mxu0  ;;  %22998 = vst [vmem:[#allocation136_spill] sm:$0xff] %v19428_v15  ;;  %23001 = vst [vmem:[#allocation204_spill] sm:$0xff] %v19435_v34  ;;  %v23011_v34 = vld [vmem:[#allocation141_spill] sm:$0xff] }
 0x446   :  { %22993 = vst [vmem:[#allocation198_spill] sm:$0xff] %v19415_v18  ;;  %22994 = vst [vmem:[#allocation199_spill] sm:$0xff] %v19418_v25  ;;  %v19422_v22 = vadd.f32 %v19415_v18, %v19411_v14  ;;  %v4810_v40 = vadd.f32 %v15181_v12, %v4635_v19 }
 0x447   :  { %v19424_v9 = vpop.f32.mrf.mxu0 }
 0x448   :  { %22995 = vst [vmem:[#allocation200_spill] sm:$0xff] %v19422_v22  ;;  %22996 = vst [vmem:[#allocation201_spill] sm:$0xff] %v19424_v9  ;;  %v4973_v50 = vadd.f32 %v15209_v36, %v4810_v40  ;;  %v23004_v40 = vld [vmem:[#allocation139_spill] sm:$0xff]  ;;  %v15215_v22 = vpop.f32.mrf.mxu1 }
 0x449   :  { %v19446_v9 = vmul.f32 %v23004_v40, %v23004_v40 }
 0x44a   :  { %v19430_v53 = vmul.f32 %v4973_v50, %v4973_v50  ;;  %v19433_v23 = vmul.f32 %v4973_v50, %v22997_v37 }
 0x44b   :  { %v15184_v62 = vpop.f32.mrf.mxu0  ;;  %23005 = vst [vmem:[#allocation139_spill] sm:$0xff] %v19446_v9 }
 0x44c   :  { %22999 = vst [vmem:[#allocation202_spill] sm:$0xff] %v19430_v53  ;;  %23000 = vst [vmem:[#allocation203_spill] sm:$0xff] %v19433_v23  ;;  %v4822_v25 = vadd.f32 %v15184_v62, %v19333_v38  ;;  %v19440_v19 = vadd.f32 %v19430_v53, %v19428_v15 }
 0x44d   :  { %v19442_v12 = vpop.f32.mrf.mxu0 }
 0x44e   :  { %23002 = vst [vmem:[#allocation205_spill] sm:$0xff] %v19440_v19  ;;  %23003 = vst [vmem:[#allocation206_spill] sm:$0xff] %v19442_v12  ;;  %v4985_v36 = vadd.f32 %v15212_v2, %v4822_v25  ;;  %v19460_v2 = vpop.f32.mrf.mxu1  ;;  %v19464_v12 = vmul.f32 %v23011_v34, %v23011_v34 }
 0x44f   :  { %23010 = vst [vmem:[#allocation211_spill] sm:$0xff] %v19460_v2 }
 0x450   :  { %v19448_v18 = vmul.f32 %v4985_v36, %v4985_v36  ;;  %v19451_v37 = vmul.f32 %v4985_v36, %v23004_v40  ;;  %v15187_v50 = vpop.f32.mrf.mxu0  ;;  %23012 = vst [vmem:[#allocation141_spill] sm:$0xff] %v19464_v12 }
 0x451   :  { %v4834_v38 = vadd.f32 %v15187_v50, %v19339_v39 }
 0x452   :  { %23006 = vst [vmem:[#allocation207_spill] sm:$0xff] %v19448_v18  ;;  %23007 = vst [vmem:[#allocation208_spill] sm:$0xff] %v19451_v37  ;;  %v19456_v62 = vadd.f32 %v19448_v18, %v19446_v9  ;;  %v19458_v23 = vpop.f32.mrf.mxu0 }
 0x453   :  { %23009 = vst [vmem:[#allocation210_spill] sm:$0xff] %v19458_v23  ;;  %v4997_v25 = vadd.f32 %v15215_v22, %v4834_v38 }
 0x454   :  { %23008 = vst [vmem:[#allocation209_spill] sm:$0xff] %v19456_v62 }
 0x455   :  { %v19466_v19 = vmul.f32 %v4997_v25, %v4997_v25  ;;  %v19469_v36 = vmul.f32 %v4997_v25, %v23011_v34  ;;  %v15250_v40 = vpop.f32.mrf.mxu0 }
 0x456   :  { %v15306_v39 = vpop.f32.mrf.mxu1 }
 0x457   :  { %23013 = vst [vmem:[#allocation212_spill] sm:$0xff] %v19466_v19  ;;  %23014 = vst [vmem:[#allocation213_spill] sm:$0xff] %v19469_v36  ;;  %v19473_v50 = vadd.f32 %v19466_v19, %v19464_v12  ;;  %v5151_v37 = vpop.f32.mrf.mxu0  ;;  %v5459_v60 = vadd.f32 %v15306_v39, %v15250_v40 }
 0x458   :  { %v5452_v23 = vpop.f32.mrf.mxu1 }
 0x459   :  { %23015 = vst [vmem:[#allocation214_spill] sm:$0xff] %v19473_v50  ;;  %v5453_v43 = vadd.f32 %v5452_v23, %v5151_v37  ;;  %v16785_v23 = vld [vmem:[#allocation8 + $0x78] sm:$0xff] }
 0x45a   :  { %v19485_v37 = vmul.f32 %v16785_v23, %v16785_v23 }
 0x45b   :  { %v15253_v22 = vpop.f32.mrf.mxu0  ;;  %v15309_v38 = vpop.f32.mrf.mxu1 }
 0x45c   :  { %v5471_v54 = vadd.f32 %v15309_v38, %v15253_v22  ;;  %23021 = vst [vmem:[#allocation220_spill] sm:$0xff] %v19485_v37 }
 0x45d   :  { %v5171_v2 = vpop.f32.mrf.mxu0  ;;  %v5464_v62 = vpop.f32.mrf.mxu1 }
 0x461   :  { %v15256_v18 = vpop.f32.mrf.mxu0  ;;  %v15312_v53 = vpop.f32.mrf.mxu1 }
 0x463   :  { %v5191_v28 = vpop.f32.mrf.mxu0  ;;  %v5476_v61 = vpop.f32.mrf.mxu1 }
 0x467   :  { %v15259_v44 = vpop.f32.mrf.mxu0  ;;  %v15315_v9 = vpop.f32.mrf.mxu1 }
 0x468   :  { %v5495_v39 = vadd.f32 %v15315_v9, %v15259_v44 }
 0x469   :  { %v5211_v34 = vpop.f32.mrf.mxu0  ;;  %v5488_v25 = vpop.f32.mrf.mxu1 }
 0x46a   :  { %v5489_v40 = vadd.f32 %v5488_v25, %v5211_v34 }
 0x46d   :  { %v15262_v36 = vpop.f32.mrf.mxu0  ;;  %v15318_v15 = vpop.f32.mrf.mxu1 }
 0x46e   :  { %v5507_v22 = vadd.f32 %v15318_v15, %v15262_v36 }
 0x46f   :  { %v5231_v14 = vpop.f32.mrf.mxu0  ;;  %v5500_v42 = vpop.f32.mrf.mxu1 }
 0x470   :  { %v5501_v38 = vadd.f32 %v5500_v42, %v5231_v14  ;;  %v23022_v14 = vld [vmem:[#allocation220_spill] sm:$0xff] }
 0x471   :  { %v19492_v42 = vand.u32 4294901760, %v23022_v14 }
 0x473   :  { %v15265_v19 = vpop.f32.mrf.mxu0  ;;  %v15321_v50 = vpop.f32.mrf.mxu1 }
 0x475   :  { %v5251_v12 = vpop.f32.mrf.mxu0  ;;  %v5512_v52 = vpop.f32.mrf.mxu1 }
 0x479   :  { %v15268_v11 = vpop.f32.mrf.mxu0  ;;  %v15324_v55 = vpop.f32.mrf.mxu1 }
 0x47b   :  { %v5271_v63 = vpop.f32.mrf.mxu0  ;;  %v5524_v45 = vpop.f32.mrf.mxu1 }
 0x47f   :  { %v15271_v32 = vpop.f32.mrf.mxu0  ;;  %v15327_v29 = vpop.f32.mrf.mxu1 }
 0x480   :  { %v5543_v23 = vadd.f32 %v15327_v29, %v15271_v32 }
 0x481   :  { %v5291_v48 = vpop.f32.mrf.mxu0  ;;  %v5536_v46 = vpop.f32.mrf.mxu1 }
 0x484   :  { %v15362_v31 = vpop.f32.mrf.mxu0 }
 0x486   :  { %v15418_v13 = vpop.f32.mrf.mxu1  ;;  %v5646_v57 = vpop.f32.mrf.mxu0 }
 0x488   :  { %v5840_v58 = vpop.f32.mrf.mxu1 }
 0x48a   :  { %v15365_v30 = vpop.f32.mrf.mxu0 }
 0x48c   :  { %v5660_v49 = vpop.f32.mrf.mxu0 }
 0x48d   :  { %v15421_v4 = vpop.f32.mrf.mxu1 }
 0x48f   :  { %v5856_v41 = vpop.f32.mrf.mxu1 }
 0x490   :  { %v15368_v35 = vpop.f32.mrf.mxu0 }
 0x492   :  { %v5674_v56 = vpop.f32.mrf.mxu0 }
 0x493   :  { %v15424_v6 = vpop.f32.mrf.mxu1 }
 0x495   :  { %v5872_v26 = vpop.f32.mrf.mxu1 }
 0x496   :  { %v15371_v17 = vpop.f32.mrf.mxu0 }
 0x497   :  { %v5696_v37 = vadd.f32 %v15371_v17, %v5495_v39 }
 0x498   :  { %v5688_v0 = vpop.f32.mrf.mxu0 }
 0x499   :  { %v15427_v7 = vpop.f32.mrf.mxu1  ;;  %v5689_v15 = vadd.f32 %v5688_v0, %v5489_v40 }
 0x49a   :  { %v5897_v17 = vadd.f32 %v15427_v7, %v5696_v37 }
 0x49b   :  { %v5888_v1 = vpop.f32.mrf.mxu1 }
 0x49c   :  { %v15374_v27 = vpop.f32.mrf.mxu0  ;;  %v19494_v0 = vadd.f32 %v5888_v1, %v5689_v15 }
 0x49e   :  { %v5702_v51 = vpop.f32.mrf.mxu0 }
 0x49f   :  { %v15430_v8 = vpop.f32.mrf.mxu1 }
 0x4a1   :  { %v19475_v24 = vpop.f32.mrf.mxu1 }
 0x4a2   :  { %23016 = vst [vmem:[#allocation215_spill] sm:$0xff] %v19475_v24  ;;  %v15377_v33 = vpop.f32.mrf.mxu0  ;;  %v5465_v24 = vadd.f32 %v5464_v62, %v5171_v2  ;;  %v5519_v2 = vadd.f32 %v15321_v50, %v15265_v19  ;;  %v5647_v62 = vadd.f32 %v5646_v57, %v5453_v43  ;;  %v5537_v43 = vadd.f32 %v5536_v46, %v5291_v48 }
 0x4a3   :  { %v5710_v19 = vadd.f32 %v15374_v27, %v5507_v22 }
 0x4a4   :  { %v5716_v20 = vpop.f32.mrf.mxu0  ;;  %v5841_v57 = vadd.f32 %v5840_v58, %v5647_v62 }
 0x4a5   :  { %v19477_v21 = vpop.f32.mrf.mxu1  ;;  %v19496_v58 = vadd.f32 %v15430_v8, %v5710_v19 }
 0x4a6   :  { %23017 = vst [vmem:[#allocation216_spill] sm:$0xff] %v19477_v21  ;;  %v5483_v21 = vadd.f32 %v15312_v53, %v15256_v18  ;;  %v5513_v53 = vadd.f32 %v5512_v52, %v5251_v12 }
 0x4a7   :  { %v19479_v47 = vpop.f32.mrf.mxu1 }
 0x4a8   :  { %23018 = vst [vmem:[#allocation217_spill] sm:$0xff] %v19479_v47  ;;  %v15380_v3 = vpop.f32.mrf.mxu0  ;;  %v5654_v47 = vadd.f32 %v15362_v31, %v5459_v60  ;;  %v5531_v31 = vadd.f32 %v15324_v55, %v15268_v11  ;;  %v5668_v60 = vadd.f32 %v15365_v30, %v5471_v54  ;;  %v5682_v44 = vadd.f32 %v15368_v35, %v5483_v21 }
 0x4a9   :  { %v5717_v30 = vadd.f32 %v5716_v20, %v5513_v53 }
 0x4aa   :  { %v5730_v10 = vpop.f32.mrf.mxu0  ;;  %v5849_v9 = vadd.f32 %v15418_v13, %v5654_v47  ;;  %v5865_v11 = vadd.f32 %v15421_v4, %v5668_v60  ;;  %v5738_v13 = vadd.f32 %v15380_v3, %v5531_v31 }
 0x4ab   :  { %v19481_v16 = vpop.f32.mrf.mxu1 }
 0x4ac   :  { %23019 = vst [vmem:[#allocation218_spill] sm:$0xff] %v19481_v16  ;;  %v5477_v16 = vadd.f32 %v5476_v61, %v5191_v28  ;;  %v5661_v28 = vadd.f32 %v5660_v49, %v5465_v24  ;;  %v5525_v61 = vadd.f32 %v5524_v45, %v5271_v63  ;;  %v5703_v24 = vadd.f32 %v5702_v51, %v5501_v38 }
 0x4ad   :  { %v19483_v59 = vpop.f32.mrf.mxu1  ;;  %v5724_v49 = vadd.f32 %v15377_v33, %v5519_v2  ;;  %v23023_v33 = vld [vmem:[#allocation215_spill] sm:$0xff] }
 0x4ae   :  { %23020 = vst [vmem:[#allocation219_spill] sm:$0xff] %v19483_v59  ;;  %v15383_v5 = vpop.f32.mrf.mxu0  ;;  %v5675_v25 = vadd.f32 %v5674_v56, %v5477_v16  ;;  %v5857_v54 = vadd.f32 %v5856_v41, %v5661_v28  ;;  %v5881_v16 = vadd.f32 %v15424_v6, %v5682_v44  ;;  %v19500_v4 = vadd.f32 %v23023_v33, %v5703_v24  ;;  %v23024_v6 = vld [vmem:[#allocation216_spill] sm:$0xff] }
 0x4af   :  { %v5731_v48 = vadd.f32 %v5730_v10, %v5525_v61  ;;  %v5752_v3 = vadd.f32 %v15383_v5, %v5543_v23  ;;  %v23025_v55 = vld [vmem:[#allocation217_spill] sm:$0xff] }
 0x4b0   :  { %v5744_v59 = vpop.f32.mrf.mxu0  ;;  %v5873_v35 = vadd.f32 %v5872_v26, %v5675_v25  ;;  %v19503_v26 = vadd.f32 %v23024_v6, %v5724_v49  ;;  %v19509_v12 = vadd.f32 %v23025_v55, %v5717_v30 }
 0x4b1   :  { %v19487_v18 = vpop.f32.mrf.mxu1  ;;  %v5745_v38 = vadd.f32 %v5744_v59, %v5537_v43 }
 0x4b2   :  { %v19531_v59 = vadd.f32 %v19487_v18, %v5752_v3 }
 0x4b3   :  { %v19489_v34 = vpop.f32.mrf.mxu1  ;;  %v23026_v50 = vld [vmem:[#allocation218_spill] sm:$0xff] }
 0x4b4   :  { %v15474_v36 = vpop.f32.mrf.mxu0  ;;  %v19512_v39 = vadd.f32 %v23026_v50, %v5738_v13 }
 0x4b5   :  { %v6086_v52 = vadd.f32 %v15474_v36, %v5849_v9  ;;  %v23027_v53 = vld [vmem:[#allocation219_spill] sm:$0xff] }
 0x4b6   :  { %v15530_v47 = vpop.f32.mrf.mxu1  ;;  %v6079_v21 = vpop.f32.mrf.mxu0  ;;  %v19521_v31 = vadd.f32 %v23027_v53, %v5731_v48 }
 0x4b7   :  { %v6263_v56 = vadd.f32 %v15530_v47, %v6086_v52  ;;  %v6080_v29 = vadd.f32 %v6079_v21, %v5841_v57  ;;  %v23029_v21 = vld [vmem:[#allocation17_spill] sm:$0xff] }
 0x4b8   :  { %v6256_v32 = vpop.f32.mrf.mxu1  ;;  %v15477_v46 = vpop.f32.mrf.mxu0 }
 0x4b9   :  { %v6354_v27 = vsel %vm1409_vm0, %v6263_v56, 0  ;;  %v6257_v41 = vadd.f32 %v6256_v32, %v6080_v29  ;;  %v6098_v51 = vadd.f32 %v15477_v46, %v5865_v11  ;;  %v23028_v11 = vld [vmem:[#allocation15_spill] sm:$0xff] }
 0x4ba   :  { %v19505_v7 = vand.u32 4294901760, %v6354_v27  ;;  %v15533_v1 = vpop.f32.mrf.mxu1  ;;  %v6091_v20 = vpop.f32.mrf.mxu0 }
 0x4bb   :  { %v6351_v45 = vsel %vm1409_vm0, %v6257_v41, 0  ;;  %v6275_v8 = vadd.f32 %v15533_v1, %v6098_v51  ;;  %v6092_v63 = vadd.f32 %v6091_v20, %v5857_v54  ;;  %v19546_v54 = vadd.f32 %v19489_v34, %v5745_v38 }
 0x4bc   :  { %v19515_v40 = vsub.f32 %v6354_v27, %v19505_v7  ;;  %v19517_v37 = vand.u32 4294901760, %v6351_v45  ;;  %v6268_v10 = vpop.f32.mrf.mxu1  ;;  %v15480_v22 = vpop.f32.mrf.mxu0 }
 0x4bd   :  { %v6360_v5 = vsel %vm1409_vm0, %v6275_v8, 0  ;;  %v6269_v2 = vadd.f32 %v6268_v10, %v6092_v63  ;;  %v6110_v62 = vadd.f32 %v15480_v22, %v5881_v16 }
 0x4be   :  { %v6477_v60 = vand.u32 4294901760, %v19515_v40  ;;  %v19525_v28 = vsub.f32 %v6351_v45, %v19517_v37  ;;  %v19527_v61 = vand.u32 4294901760, %v6360_v5  ;;  %v15536_v9 = vpop.f32.mrf.mxu1  ;;  %v6103_v44 = vpop.f32.mrf.mxu0  ;;  %15584 = vmatprep.mubr.f32.mxu1 %v19517_v37 }
 0x4bf   :  { %v6357_v25 = vsel %vm1409_vm0, %v6269_v2, 0  ;;  %v6287_v23 = vadd.f32 %v15536_v9, %v6110_v62  ;;  %v6104_v15 = vadd.f32 %v6103_v44, %v5873_v35  ;;  %15585 = vmatmul.mubr.f32.vlgmr.msra.gmra.mxu1 %v19505_v7 }
 0x4c0   :  { %v6478_v36 = vsub.f32 %v19515_v40, %v6477_v60  ;;  %v19539_v43 = vsub.f32 %v6360_v5, %v19527_v61  ;;  %v19541_v57 = vand.u32 4294901760, %v6357_v25  ;;  %v6280_v19 = vpop.f32.mrf.mxu1  ;;  %v15483_v52 = vpop.f32.mrf.mxu0  ;;  %v6467_v18 = vand.u32 4294901760, %v19525_v28  ;;  %15637 = vmatpush3.msra.mxu1 %v23028_v11 }
 0x4c1   :  { %v6366_v24 = vsel %vm1409_vm0, %v6287_v23, 0  ;;  %v6281_v49 = vadd.f32 %v6280_v19, %v6104_v15  ;;  %v6122_v47 = vadd.f32 %v15483_v52, %v5897_v17  ;;  %15638 = vmatprep.subr.mxu1 %v23029_v21 }
 0x4c2   :  { %v6479_v16 = vand.u32 4294901760, %v6478_v36  ;;  %v6497_v35 = vand.u32 4294901760, %v19539_v43  ;;  %v19552_v56 = vsub.f32 %v6357_v25, %v19541_v57  ;;  %v19554_v29 = vand.u32 4294901760, %v6366_v24  ;;  %v15539_v30 = vpop.f32.mrf.mxu1  ;;  %v6115_v13 = vpop.f32.mrf.mxu0  ;;  %15587 = vmatprep.mubr.f32.mxu1 %v19541_v57  ;;  %15639 = vmatpush3.msra.mxu1 %v23029_v21  ;;  %v23030_v36 = vld [vmem:[#allocation30_spill] sm:$0xff] }
 0x4c3   :  { %v6363_v34 = vsel %vm1409_vm0, %v6281_v49, 0  ;;  %v6299_v32 = vadd.f32 %v15539_v30, %v6122_v47  ;;  %v6116_v17 = vadd.f32 %v6115_v13, %v19494_v0  ;;  %15588 = vmatmul.mubr.f32.gmra.mxu1 %v19527_v61  ;;  %v6468_v46 = vsub.f32 %v19525_v28, %v6467_v18  ;;  %15692 = vmatprep.subr.mxu1 %v23028_v11 }
 0x4c4   :  { %v19566_v27 = vsub.f32 %v6366_v24, %v19554_v29  ;;  %v19568_v41 = vand.u32 4294901760, %v6363_v34  ;;  %v6292_v51 = vpop.f32.mrf.mxu1  ;;  %v15486_v33 = vpop.f32.mrf.mxu0  ;;  %v6487_v6 = vand.u32 4294901760, %v19552_v56  ;;  %v6498_v0 = vsub.f32 %v19539_v43, %v6497_v35 }
 0x4c5   :  { %v6372_v48 = vsel %vm1409_vm0, %v6299_v32, 0  ;;  %v6293_v1 = vadd.f32 %v6292_v51, %v6116_v17  ;;  %v6134_v20 = vadd.f32 %v15486_v33, %v19496_v58  ;;  %v6469_v3 = vand.u32 4294901760, %v6468_v46  ;;  %v23031_v17 = vld [vmem:[#allocation18_spill] sm:$0xff] }
 0x4c6   :  { %v6517_v45 = vand.u32 4294901760, %v19566_v27  ;;  %v19578_v8 = vsub.f32 %v6363_v34, %v19568_v41  ;;  %v19580_v63 = vand.u32 4294901760, %v6372_v48  ;;  %v15542_v55 = vpop.f32.mrf.mxu1  ;;  %v6127_v50 = vpop.f32.mrf.mxu0  ;;  %15590 = vmatprep.mubr.f32.mxu1 %v19568_v41  ;;  %v6488_v10 = vsub.f32 %v19552_v56, %v6487_v6 }
 0x4c7   :  { %v6369_v22 = vsel %vm1409_vm0, %v6293_v1, 0  ;;  %v6311_v38 = vadd.f32 %v15542_v55, %v6134_v20  ;;  %v6128_v58 = vadd.f32 %v6127_v50, %v19500_v4  ;;  %15556 = vmatprep.mubr.f32.mxu0 %v6469_v3  ;;  %15591 = vmatmul.mubr.f32.gmra.mxu1 %v19554_v29  ;;  %v6499_v5 = vand.u32 4294901760, %v6498_v0 }
 0x4c8   :  { %v19590_v2 = vsub.f32 %v6372_v48, %v19580_v63  ;;  %v19592_v62 = vand.u32 4294901760, %v6369_v22  ;;  %v6304_v53 = vpop.f32.mrf.mxu1  ;;  %15557 = vmatmul.mubr.f32.vlgmr.msra.gmra.mxu0 %v6479_v16  ;;  %v15489_v9 = vpop.f32.mrf.mxu0  ;;  %v6489_v44 = vand.u32 4294901760, %v6488_v10  ;;  %v6507_v25 = vand.u32 4294901760, %v19578_v8 }
 0x4c9   :  { %v6378_v23 = vsel %vm1409_vm0, %v6311_v38, 0  ;;  %v6305_v15 = vadd.f32 %v6304_v53, %v6128_v58  ;;  %v6146_v4 = vadd.f32 %v15489_v9, %v19503_v26  ;;  %15609 = vmatpush3.msra.mxu0 %v23030_v36  ;;  %v6518_v19 = vsub.f32 %v19566_v27, %v6517_v45 }
 0x4ca   :  { %v6537_v52 = vand.u32 4294901760, %v19590_v2  ;;  %v19603_v24 = vsub.f32 %v6369_v22, %v19592_v62  ;;  %v19605_v49 = vand.u32 4294901760, %v6378_v23  ;;  %v15545_v47 = vpop.f32.mrf.mxu1  ;;  %v6139_v16 = vpop.f32.mrf.mxu0  ;;  %15559 = vmatprep.mubr.f32.mxu0 %v6489_v44  ;;  %15593 = vmatprep.mubr.f32.mxu1 %v19592_v62  ;;  %v6508_v26 = vsub.f32 %v19578_v8, %v6507_v25 }
 0x4cb   :  { %v6375_v30 = vsel %vm1409_vm0, %v6305_v15, 0  ;;  %v6323_v13 = vadd.f32 %v15545_v47, %v6146_v4  ;;  %v6140_v34 = vadd.f32 %v6139_v16, %v19509_v12  ;;  %15594 = vmatmul.mubr.f32.gmra.mxu1 %v19580_v63  ;;  %v6519_v32 = vand.u32 4294901760, %v6518_v19  ;;  %15610 = vmatprep.subr.mxu0 %v23031_v17 }
 0x4cc   :  { %v19616_v46 = vsub.f32 %v6378_v23, %v19605_v49  ;;  %v19618_v51 = vand.u32 4294901760, %v6375_v30  ;;  %v6316_v33 = vpop.f32.mrf.mxu1  ;;  %15560 = vmatmul.mubr.f32.gmra.mxu0 %v6499_v5  ;;  %v15492_v0 = vpop.f32.mrf.mxu0  ;;  %v6509_v48 = vand.u32 4294901760, %v6508_v26  ;;  %v6527_v1 = vand.u32 4294901760, %v19603_v24  ;;  %v23032_v23 = vld [vmem:[#allocation16_spill] sm:$0xff] }
 0x4cd   :  { %v6384_v20 = vsel %vm1409_vm0, %v6323_v13, 0  ;;  %v6317_v3 = vadd.f32 %v6316_v33, %v6140_v34  ;;  %v6158_v12 = vadd.f32 %v15492_v0, %v19512_v39  ;;  %v6538_v55 = vsub.f32 %v19590_v2, %v6537_v52  ;;  %15611 = vmatpush3.msra.mxu0 %v23031_v17 }
 0x4ce   :  { %v6557_v50 = vand.u32 4294901760, %v19616_v46  ;;  %v19629_v10 = vsub.f32 %v6375_v30, %v19618_v51  ;;  %v19631_v22 = vand.u32 4294901760, %v6384_v20  ;;  %v15548_v38 = vpop.f32.mrf.mxu1  ;;  %v6151_v58 = vpop.f32.mrf.mxu0  ;;  %15562 = vmatprep.mubr.f32.mxu0 %v6509_v48  ;;  %15596 = vmatprep.mubr.f32.mxu1 %v19618_v51  ;;  %v6528_v39 = vsub.f32 %v19603_v24, %v6527_v1 }
 0x4cf   :  { %v6381_v5 = vsel %vm1409_vm0, %v6317_v3, 0  ;;  %v6335_v53 = vadd.f32 %v15548_v38, %v6158_v12  ;;  %v6152_v9 = vadd.f32 %v6151_v58, %v19521_v31  ;;  %15597 = vmatmul.mubr.f32.gmra.mxu1 %v19605_v49  ;;  %v6539_v44 = vand.u32 4294901760, %v6538_v55  ;;  %15664 = vmatprep.subr.mxu0 %v23032_v23 }
 0x4d0   :  { %v19642_v15 = vsub.f32 %v6384_v20, %v19631_v22  ;;  %v19644_v4 = vand.u32 4294901760, %v6381_v5  ;;  %v6328_v19 = vpop.f32.mrf.mxu1  ;;  %15563 = vmatmul.mubr.f32.gmra.mxu0 %v6519_v32  ;;  %v15495_v47 = vpop.f32.mrf.mxu0  ;;  %v6529_v16 = vand.u32 4294901760, %v6528_v39  ;;  %v6547_v26 = vand.u32 4294901760, %v19629_v10 }
 0x4d1   :  { %v6390_v30 = vsel %vm1409_vm0, %v6335_v53, 0  ;;  %v6329_v13 = vadd.f32 %v6328_v19, %v6152_v9  ;;  %v6170_v31 = vadd.f32 %v15495_v47, %v19531_v59  ;;  %v6558_v34 = vsub.f32 %v19616_v46, %v6557_v50 }
 0x4d2   :  { %v6577_v33 = vand.u32 4294901760, %v19642_v15  ;;  %v19654_v0 = vsub.f32 %v6381_v5, %v19644_v4  ;;  %v19656_v48 = vand.u32 4294901760, %v6390_v30  ;;  %v15551_v32 = vpop.f32.mrf.mxu1  ;;  %v6163_v20 = vpop.f32.mrf.mxu0  ;;  %15565 = vmatprep.mubr.f32.mxu0 %v6529_v16  ;;  %15599 = vmatprep.mubr.f32.mxu1 %v19644_v4  ;;  %v6548_v59 = vsub.f32 %v19629_v10, %v6547_v26 }
 0x4d3   :  { %v6387_v3 = vsel %vm1409_vm0, %v6329_v13, 0  ;;  %v6347_v12 = vadd.f32 %v15551_v32, %v6170_v31  ;;  %v6164_v55 = vadd.f32 %v6163_v20, %v19546_v54  ;;  %15600 = vmatmul.mubr.f32.gmra.mxu1 %v19631_v22  ;;  %v19667_v38 = vsub.f32 %v23022_v14, %v19492_v42 }
 0x4d4   :  { %v19670_v58 = vsub.f32 %v6390_v30, %v19656_v48  ;;  %v19672_v39 = vand.u32 4294901760, %v6387_v3  ;;  %v6340_v5 = vpop.f32.mrf.mxu1  ;;  %15566 = vmatmul.mubr.f32.gmra.mxu0 %v6539_v44  ;;  %v6549_v53 = vand.u32 4294901760, %v6548_v59  ;;  %v6567_v9 = vand.u32 4294901760, %v19654_v0 }
 0x4d5   :  { %v6396_v19 = vsel %vm1409_vm0, %v6347_v12, 0  ;;  %v6341_v47 = vadd.f32 %v6340_v5, %v6164_v55  ;;  %v6559_v54 = vand.u32 4294901760, %v6558_v34  ;;  %v6578_v16 = vsub.f32 %v19642_v15, %v6577_v33 }
 0x4d6   :  { %v6597_v14 = vand.u32 4294901760, %v19670_v58  ;;  %v19681_v30 = vsub.f32 %v6387_v3, %v19672_v39  ;;  %v19683_v13 = vand.u32 4294901760, %v6396_v19  ;;  %15568 = vmatprep.mubr.f32.mxu0 %v6549_v53  ;;  %15602 = vmatprep.mubr.f32.mxu1 %v19672_v39  ;;  %v6568_v44 = vsub.f32 %v19654_v0, %v6567_v9 }
 0x4d7   :  { %v6393_v31 = vsel %vm1409_vm0, %v6341_v47, 0  ;;  %15603 = vmatmul.mubr.f32.gmra.mxu1 %v19656_v48  ;;  %v6579_v3 = vand.u32 4294901760, %v6578_v16  ;;  %v19698_v12 = vand.u32 4294901760, %v19667_v38 }
 0x4d8   :  { %v19692_v34 = vsub.f32 %v6396_v19, %v19683_v13  ;;  %v19694_v32 = vand.u32 4294901760, %v6393_v31  ;;  %15569 = vmatmul.mubr.f32.gmra.mxu0 %v6559_v54  ;;  %v6569_v20 = vand.u32 4294901760, %v6568_v44  ;;  %v6587_v59 = vand.u32 4294901760, %v19681_v30 }
 0x4d9   :  { %v6598_v19 = vsub.f32 %v19670_v58, %v6597_v14 }
 0x4da   :  { %v6617_v55 = vand.u32 4294901760, %v19692_v34  ;;  %v19702_v5 = vsub.f32 %v6393_v31, %v19694_v32  ;;  %15571 = vmatprep.mubr.f32.mxu0 %v6569_v20  ;;  %15605 = vmatprep.mubr.f32.mxu1 %v19694_v32  ;;  %v6588_v53 = vsub.f32 %v19681_v30, %v6587_v59  ;;  %v7779_v20 = vsub.f32 %v19667_v38, %v19698_v12 }
 0x4db   :  { %15606 = vmatmul.mubr.f32.gmra.mxu1 %v19683_v13  ;;  %v6599_v16 = vand.u32 4294901760, %v6598_v19 }
 0x4dc   :  { %15572 = vmatmul.mubr.f32.gmra.mxu0 %v6579_v3  ;;  %15640 = vmatprep.mubr.f32.mxu1 %v6467_v18  ;;  %v6589_v47 = vand.u32 4294901760, %v6588_v53  ;;  %v6607_v54 = vand.u32 4294901760, %v19702_v5  ;;  %v6618_v31 = vsub.f32 %v19692_v34, %v6617_v55  ;;  %v7780_v53 = vand.u32 4294901760, %v7779_v20  ;;  %v16793_v20 = vld [vmem:[#allocation8 + $0x38] sm:$0xff] }
 0x4de   :  { %15574 = vmatprep.mubr.f32.mxu0 %v6589_v47  ;;  %v6608_v44 = vsub.f32 %v19702_v5, %v6607_v54  ;;  %v6619_v3 = vand.u32 4294901760, %v6618_v31 }
 0x4df   :  { %15641 = vmatmul.mubr.f32.vlgmr.msra.gmra.mxu1 %v6477_v60  ;;  %v23033_v60 = vld [vmem:[#allocation19_spill] sm:$0xff] }
 0x4e0   :  { %15575 = vmatmul.mubr.f32.gmra.mxu0 %v6599_v16  ;;  %15643 = vmatprep.mubr.f32.mxu1 %v6487_v6  ;;  %v6609_v18 = vand.u32 4294901760, %v6608_v44 }
 0x4e1   :  { %15693 = vmatpush3.msra.mxu1 %v23028_v11 }
 0x4e2   :  { %15577 = vmatprep.mubr.f32.mxu0 %v6609_v18  ;;  %15694 = vmatprep.subr.mxu1 %v23029_v21  ;;  %v7525_v18 = vmul.f32 %v16793_v20, %v16793_v20  ;;  %v16798_v20 = vld [vmem:[#allocation8 + $0x10] sm:$0xff] }
 0x4e3   :  { %15644 = vmatmul.mubr.f32.gmra.mxu1 %v6497_v35  ;;  %v16786_v35 = vld [vmem:[#allocation8 + $0x70] sm:$0xff] }
 0x4e4   :  { %15578 = vmatmul.mubr.f32.gmra.mxu0 %v6619_v3  ;;  %15646 = vmatprep.mubr.f32.mxu1 %v6507_v25  ;;  %v7532_v6 = vmul.f32 %v16786_v35, %v16786_v35  ;;  %v16788_v25 = vld [vmem:[#allocation8 + $0x60] sm:$0xff] }
 0x4e5   :  { %15612 = vmatprep.mubr.f32.mxu0 %v19525_v28  ;;  %15695 = vmatpush3.msra.mxu1 %v23029_v21  ;;  %v16787_v28 = vld [vmem:[#allocation8 + $0x68] sm:$0xff] }
 0x4e6   :  { %15776 = vmatprep.subr.mxu1 %v7780_v53 }
 0x4e7   :  { %15647 = vmatmul.mubr.f32.gmra.mxu1 %v6517_v45 }
 0x4e8   :  { %15613 = vmatmul.mubr.f32.vlgmr.msra.gmra.mxu0 %v19515_v40  ;;  %15649 = vmatprep.mubr.f32.mxu1 %v6527_v1  ;;  %v19747_v40 = vand.u32 4294901760, %v7532_v6 }
 0x4e9   :  { %15615 = vmatprep.mubr.f32.mxu0 %v19552_v56  ;;  %15665 = vmatpush3.msra.mxu0 %v23032_v23  ;;  %v7531_v56 = vmul.f32 %v16787_v28, %v16787_v28  ;;  %v19835_v28 = vand.u32 4294901760, %v7525_v18 }
 0x4ea   :  { %15666 = vmatprep.subr.mxu0 %v23033_v60 }
 0x4eb   :  { %15650 = vmatmul.mubr.f32.gmra.mxu1 %v6537_v52  ;;  %15667 = vmatpush3.msra.mxu0 %v23033_v60  ;;  %v19758_v45 = vand.u32 4294901760, %v7531_v56  ;;  %v7530_v52 = vmul.f32 %v16788_v25, %v16788_v25  ;;  %v16795_v25 = vld [vmem:[#allocation8 + $0x28] sm:$0xff] }
 0x4ec   :  { %15616 = vmatmul.mubr.f32.gmra.mxu0 %v19539_v43  ;;  %15652 = vmatprep.mubr.f32.mxu1 %v6547_v26  ;;  %v19756_v43 = vsub.f32 %v7532_v6, %v19747_v40 }
 0x4ed   :  { %15618 = vmatprep.mubr.f32.mxu0 %v19578_v8  ;;  %15720 = vmatprep.subr.mxu0 %v19492_v42  ;;  %v19768_v8 = vsub.f32 %v7531_v56, %v19758_v45  ;;  %v19779_v1 = vand.u32 4294901760, %v7530_v52 }
 0x4ef   :  { %15653 = vmatmul.mubr.f32.gmra.mxu1 %v6557_v50  ;;  %v16789_v50 = vld [vmem:[#allocation8 + $0x58] sm:$0xff] }
 0x4f0   :  { %15619 = vmatmul.mubr.f32.gmra.mxu0 %v19566_v27  ;;  %15655 = vmatprep.mubr.f32.mxu1 %v6567_v9  ;;  %v19765_v27 = vand.u32 4294901760, %v19756_v43  ;;  %v19789_v9 = vsub.f32 %v7530_v52, %v19779_v1  ;;  %v7523_v52 = vmul.f32 %v16795_v25, %v16795_v25 }
 0x4f1   :  { %15621 = vmatprep.mubr.f32.mxu0 %v19603_v24  ;;  %v19777_v24 = vand.u32 4294901760, %v19768_v8 }
 0x4f2   :  { %v19800_v19 = vand.u32 4294901760, %v19789_v9 }
 0x4f3   :  { %15656 = vmatmul.mubr.f32.gmra.mxu1 %v6577_v33 }
 0x4f4   :  { %15622 = vmatmul.mubr.f32.gmra.mxu0 %v19590_v2  ;;  %15658 = vmatprep.mubr.f32.mxu1 %v6587_v59  ;;  %v7786_v2 = vsub.f32 %v19756_v43, %v19765_v27  ;;  %v7800_v44 = vsub.f32 %v19789_v9, %v19800_v19 }
 0x4f5   :  { %15624 = vmatprep.mubr.f32.mxu0 %v19629_v10  ;;  %v7529_v10 = vmul.f32 %v16789_v50, %v16789_v50 }
 0x4f6   :  { %v7787_v33 = vand.u32 4294901760, %v7786_v2  ;;  %v7801_v6 = vand.u32 4294901760, %v7800_v44 }
 0x4f7   :  { %15659 = vmatmul.mubr.f32.gmra.mxu1 %v6597_v14  ;;  %v19791_v14 = vand.u32 4294901760, %v7529_v10 }
 0x4f8   :  { %15625 = vmatmul.mubr.f32.gmra.mxu0 %v19616_v46  ;;  %15661 = vmatprep.mubr.f32.mxu1 %v6607_v54  ;;  %v16790_v46 = vld [vmem:[#allocation8 + $0x50] sm:$0xff] }
 0x4f9   :  { %15627 = vmatprep.mubr.f32.mxu0 %v19654_v0  ;;  %v7528_v26 = vmul.f32 %v16790_v46, %v16790_v46  ;;  %v7793_v0 = vsub.f32 %v19768_v8, %v19777_v24  ;;  %v19803_v47 = vsub.f32 %v7529_v10, %v19791_v14  ;;  %v19855_v10 = vsub.f32 %v7525_v18, %v19835_v28  ;;  %v16796_v46 = vld [vmem:[#allocation8 + $0x20] sm:$0xff] }
 0x4fa   :  { %v7520_v18 = vmul.f32 %v16798_v20, %v16798_v20 }
 0x4fb   :  { %15662 = vmatmul.mubr.f32.gmra.mxu1 %v6617_v55  ;;  %v7794_v55 = vand.u32 4294901760, %v7793_v0  ;;  %v19817_v31 = vand.u32 4294901760, %v19803_v47  ;;  %v19865_v0 = vand.u32 4294901760, %v7523_v52 }
 0x4fc   :  { %15628 = vmatmul.mubr.f32.gmra.mxu0 %v19642_v15  ;;  %15696 = vmatprep.mubr.f32.mxu1 %v19517_v37  ;;  %v16791_v15 = vld [vmem:[#allocation8 + $0x48] sm:$0xff] }
 0x4fd   :  { %15630 = vmatprep.mubr.f32.mxu0 %v19681_v30  ;;  %v7527_v59 = vmul.f32 %v16791_v15, %v16791_v15  ;;  %v19797_v30 = vand.u32 4294901760, %v7528_v26 }
 0x4ff   :  { %15697 = vmatmul.mubr.f32.vlgmr.msra.gmra.mxu1 %v19505_v7  ;;  %v19812_v16 = vsub.f32 %v7528_v26, %v19797_v30  ;;  %v7522_v26 = vmul.f32 %v16796_v46, %v16796_v46  ;;  %v19900_v46 = vand.u32 4294901760, %v7520_v18 }
 0x500   :  { %15631 = vmatmul.mubr.f32.gmra.mxu0 %v19670_v58  ;;  %15699 = vmatprep.mubr.f32.mxu1 %v19541_v57  ;;  %v16792_v58 = vld [vmem:[#allocation8 + $0x40] sm:$0xff] }
 0x501   :  { %15633 = vmatprep.mubr.f32.mxu0 %v19702_v5  ;;  %15777 = vmatpush3.msra.mxu1 %v7780_v53  ;;  %v7526_v54 = vmul.f32 %v16792_v58, %v16792_v58  ;;  %v19808_v5 = vand.u32 4294901760, %v7527_v59  ;;  %v19830_v3 = vand.u32 4294901760, %v19812_v16  ;;  %v16794_v53 = vld [vmem:[#allocation8 + $0x30] sm:$0xff]  ;;  %v19876_v44 = vand.u32 4294901760, %v7522_v26 }
 0x502   :  { %15778 = vmatprep.subr.mxu1 %v7787_v33  ;;  %v7524_v35 = vmul.f32 %v16794_v53, %v16794_v53 }
 0x503   :  { %15700 = vmatmul.mubr.f32.gmra.mxu1 %v19527_v61  ;;  %v7814_v2 = vsub.f32 %v19812_v16, %v19830_v3  ;;  %v19896_v25 = vsub.f32 %v7522_v26, %v19876_v44 }
 0x504   :  { %15634 = vmatmul.mubr.f32.gmra.mxu0 %v19692_v34  ;;  %15702 = vmatprep.mubr.f32.mxu1 %v19568_v41  ;;  %v19820_v34 = vand.u32 4294901760, %v7526_v54  ;;  %v19851_v50 = vand.u32 4294901760, %v7524_v35 }
 0x505   :  { %15668 = vmatprep.mubr.f32.mxu0 %v19517_v37  ;;  %15779 = vmatpush3.msra.mxu1 %v7787_v33  ;;  %v19825_v37 = vsub.f32 %v7527_v59, %v19808_v5  ;;  %v7815_v15 = vand.u32 4294901760, %v7814_v2  ;;  %v16799_v2 = vld [vmem:[#allocation8 + $0x8] sm:$0xff] }
 0x506   :  { %15780 = vmatprep.subr.mxu1 %v7794_v55  ;;  %v19870_v59 = vsub.f32 %v7524_v35, %v19851_v50 }
 0x507   :  { %15703 = vmatmul.mubr.f32.gmra.mxu1 %v19554_v29  ;;  %v19845_v56 = vand.u32 4294901760, %v19825_v37 }
 0x508   :  { %15669 = vmatmul.mubr.f32.vlgmr.msra.gmra.mxu0 %v19505_v7  ;;  %15705 = vmatprep.mubr.f32.mxu1 %v19592_v62  ;;  %v7807_v7 = vsub.f32 %v19803_v47, %v19817_v31  ;;  %v19888_v35 = vand.u32 4294901760, %v19870_v59 }
 0x509   :  { %15671 = vmatprep.mubr.f32.mxu0 %v19541_v57  ;;  %15721 = vmatpush3.msra.mxu0 %v19492_v42  ;;  %v19840_v57 = vsub.f32 %v7526_v54, %v19820_v34  ;;  %v7821_v33 = vsub.f32 %v19825_v37, %v19845_v56  ;;  %v19874_v54 = vand.u32 4294901760, %v19855_v10 }
 0x50a   :  { %15722 = vmatprep.subr.mxu0 %v19747_v40  ;;  %15781 = vmatpush3.msra.mxu1 %v7794_v55  ;;  %v16797_v55 = vld [vmem:[#allocation8 + $0x18] sm:$0xff]  ;;  %v7842_v26 = vsub.f32 %v19870_v59, %v19888_v35 }
 0x50b   :  { %15723 = vmatpush3.msra.mxu0 %v19747_v40  ;;  %15706 = vmatmul.mubr.f32.gmra.mxu1 %v19580_v63  ;;  %v7521_v58 = vmul.f32 %v16797_v55, %v16797_v55  ;;  %v7822_v53 = vand.u32 4294901760, %v7821_v33  ;;  %v16800_v33 = vld [vmem:[#allocation8] sm:$0xff] }
 0x50c   :  { %15672 = vmatmul.mubr.f32.gmra.mxu0 %v19527_v61  ;;  %15724 = vmatprep.subr.mxu0 %v19758_v45  ;;  %v7808_v61 = vand.u32 4294901760, %v7807_v7  ;;  %v7835_v7 = vsub.f32 %v19855_v10, %v19874_v54 }
 0x50d   :  { %15674 = vmatprep.mubr.f32.mxu0 %v19568_v41  ;;  %15708 = vmatprep.mubr.f32.mxu1 %v19618_v51  ;;  %v19859_v41 = vand.u32 4294901760, %v19840_v57 }
 0x50e   :  { %15725 = vmatpush3.msra.mxu0 %v19758_v45  ;;  %15782 = vmatprep.subr.mxu1 %v7801_v6 }
 0x50f   :  { %15726 = vmatprep.subr.mxu0 %v19779_v1  ;;  %15783 = vmatpush3.msra.mxu1 %v7801_v6  ;;  %v19890_v6 = vand.u32 4294901760, %v7521_v58 }
 0x510   :  { %15727 = vmatpush3.msra.mxu0 %v19779_v1  ;;  %15709 = vmatmul.mubr.f32.gmra.mxu1 %v19605_v49 }
 0x511   :  { %15675 = vmatmul.mubr.f32.gmra.mxu0 %v19554_v29  ;;  %15728 = vmatprep.subr.mxu0 %v19791_v14  ;;  %v7828_v29 = vsub.f32 %v19840_v57, %v19859_v41  ;;  %v19911_v55 = vsub.f32 %v7521_v58, %v19890_v6 }
 0x512   :  { %15784 = vmatprep.subr.mxu1 %v7808_v61  ;;  %15677 = vmatprep.mubr.f32.mxu0 %v19592_v62  ;;  %v19884_v62 = vsub.f32 %v7523_v52, %v19865_v0  ;;  %v7519_v52 = vmul.f32 %v16799_v2, %v16799_v2  ;;  %v19921_v2 = vsub.f32 %v7520_v18, %v19900_v46 }
 0x513   :  { %15711 = vmatprep.mubr.f32.mxu1 %v19644_v4  ;;  %15729 = vmatpush3.msra.mxu0 %v19791_v14 }
 0x514   :  { %15785 = vmatpush3.msra.mxu1 %v7808_v61  ;;  %15730 = vmatprep.subr.mxu0 %v19797_v30  ;;  %v7829_v61 = vand.u32 4294901760, %v7828_v29  ;;  %v7836_v29 = vand.u32 4294901760, %v7835_v7  ;;  %v19917_v20 = vand.u32 4294901760, %v7519_v52  ;;  %v7843_v7 = vand.u32 4294901760, %v7842_v26 }
 0x515   :  { %15786 = vmatprep.subr.mxu1 %v7815_v15  ;;  %15731 = vmatpush3.msra.mxu0 %v19797_v30 }
 0x516   :  { %15787 = vmatpush3.msra.mxu1 %v7815_v15  ;;  %15678 = vmatmul.mubr.f32.gmra.mxu0 %v19580_v63  ;;  %v19904_v63 = vand.u32 4294901760, %v19884_v62  ;;  %v7518_v15 = vmul.f32 %v16800_v33, %v16800_v33  ;;  %v19931_v33 = vand.u32 4294901760, %v19911_v55 }
 0x517   :  { %15712 = vmatmul.mubr.f32.gmra.mxu1 %v19631_v22  ;;  %15732 = vmatprep.subr.mxu0 %v19808_v5 }
 0x518   :  { %15788 = vmatprep.subr.mxu1 %v7822_v53  ;;  %15680 = vmatprep.mubr.f32.mxu0 %v19618_v51  ;;  %v19915_v51 = vand.u32 4294901760, %v19896_v25  ;;  %v7849_v58 = vsub.f32 %v19884_v62, %v19904_v63 }
 0x519   :  { %15714 = vmatprep.mubr.f32.mxu1 %v19672_v39  ;;  %15733 = vmatpush3.msra.mxu0 %v19808_v5 }
 0x51a   :  { %15789 = vmatpush3.msra.mxu1 %v7822_v53  ;;  %15734 = vmatprep.subr.mxu0 %v19820_v34  ;;  %v19926_v53 = vand.u32 4294901760, %v7518_v15  ;;  %v7856_v18 = vsub.f32 %v19896_v25, %v19915_v51  ;;  %v7850_v26 = vand.u32 4294901760, %v7849_v58 }
 0x51b   :  { %15790 = vmatprep.subr.mxu1 %v7829_v61  ;;  %15735 = vmatpush3.msra.mxu0 %v19820_v34 }
 0x51c   :  { %15791 = vmatpush3.msra.mxu1 %v7829_v61  ;;  %15681 = vmatmul.mubr.f32.gmra.mxu0 %v19605_v49  ;;  %v19937_v49 = vsub.f32 %v7519_v52, %v19917_v20  ;;  %v19942_v61 = vand.u32 4294901760, %v19921_v2  ;;  %v19946_v60 = vsub.f32 %v7518_v15, %v19926_v53  ;;  %v7857_v52 = vand.u32 4294901760, %v7856_v18 }
 0x51d   :  { %15715 = vmatmul.mubr.f32.gmra.mxu1 %v19656_v48  ;;  %15736 = vmatprep.subr.mxu0 %v19835_v28 }
 0x51e   :  { %15792 = vmatprep.subr.mxu1 %v7836_v29  ;;  %15683 = vmatprep.mubr.f32.mxu0 %v19644_v4  ;;  %v7863_v4 = vsub.f32 %v19911_v55, %v19931_v33  ;;  %v19953_v23 = vand.u32 4294901760, %v19937_v49  ;;  %v7870_v15 = vsub.f32 %v19921_v2, %v19942_v61 }
 0x51f   :  { %15717 = vmatprep.mubr.f32.mxu1 %v19694_v32  ;;  %15737 = vmatpush3.msra.mxu0 %v19835_v28 }
 0x520   :  { %15793 = vmatpush3.msra.mxu1 %v7836_v29  ;;  %15738 = vmatprep.subr.mxu0 %v19851_v50  ;;  %v19961_v29 = vand.u32 4294901760, %v19946_v60  ;;  %v7877_v58 = vsub.f32 %v19937_v49, %v19953_v23 }
 0x521   :  { %15794 = vmatprep.subr.mxu1 %v7843_v7  ;;  %15739 = vmatpush3.msra.mxu0 %v19851_v50 }
 0x522   :  { %15795 = vmatpush3.msra.mxu1 %v7843_v7  ;;  %15684 = vmatmul.mubr.f32.gmra.mxu0 %v19631_v22  ;;  %v7864_v22 = vand.u32 4294901760, %v7863_v4  ;;  %v7871_v7 = vand.u32 4294901760, %v7870_v15  ;;  %v7878_v18 = vand.u32 4294901760, %v7877_v58  ;;  %v23036_v4 = vld [vmem:[#allocation49_spill] sm:$0xff]  ;;  %v23041_v58 = vld [vmem:[#allocation32_spill] sm:$0xff] }
 0x523   :  { %15718 = vmatmul.mubr.f32.gmra.mxu1 %v19683_v13  ;;  %15740 = vmatprep.subr.mxu0 %v19865_v0  ;;  %v23039_v15 = vld [vmem:[#allocation29_spill] sm:$0xff] }
 0x524   :  { %15796 = vmatprep.subr.mxu1 %v7850_v26  ;;  %15686 = vmatprep.mubr.f32.mxu0 %v19672_v39  ;;  %v7884_v39 = vsub.f32 %v19946_v60, %v19961_v29 }
 0x525   :  { %15741 = vmatpush3.msra.mxu0 %v19865_v0  ;;  %15797 = vmatpush3.msra.mxu1 %v7850_v26 }
 0x526   :  { %15742 = vmatprep.subr.mxu0 %v19876_v44  ;;  %15798 = vmatprep.subr.mxu1 %v7857_v52  ;;  %v7885_v26 = vand.u32 4294901760, %v7884_v39  ;;  %v23045_v39 = vld [vmem:[#allocation41_spill] sm:$0xff] }
 0x527   :  { %15743 = vmatpush3.msra.mxu0 %v19876_v44  ;;  %15799 = vmatpush3.msra.mxu1 %v7857_v52  ;;  %v23037_v52 = vld [vmem:[#allocation24_spill] sm:$0xff] }
 0x528   :  { %15687 = vmatmul.mubr.f32.gmra.mxu0 %v19656_v48  ;;  %15744 = vmatprep.subr.mxu0 %v19890_v6  ;;  %v23034_v48 = vld [vmem:[#allocation46_spill] sm:$0xff] }
 0x529   :  { %15800 = vmatprep.subr.mxu1 %v7864_v22  ;;  %15689 = vmatprep.mubr.f32.mxu0 %v19694_v32  ;;  %v23035_v32 = vld [vmem:[#allocation22_spill] sm:$0xff] }
 0x52a   :  { %15745 = vmatpush3.msra.mxu0 %v19890_v6  ;;  %15801 = vmatpush3.msra.mxu1 %v7864_v22  ;;  %v23040_v22 = vld [vmem:[#allocation58_spill] sm:$0xff] }
 0x52b   :  { %15746 = vmatprep.subr.mxu0 %v19900_v46  ;;  %15802 = vmatprep.subr.mxu1 %v7871_v7 }
 0x52c   :  { %15747 = vmatpush3.msra.mxu0 %v19900_v46  ;;  %15803 = vmatpush3.msra.mxu1 %v7871_v7  ;;  %v23044_v7 = vld [vmem:[#allocation64_spill] sm:$0xff] }
 0x52d   :  { %15690 = vmatmul.mubr.f32.gmra.mxu0 %v19683_v13  ;;  %15748 = vmatprep.subr.mxu0 %v19917_v20  ;;  %v23038_v13 = vld [vmem:[#allocation55_spill] sm:$0xff] }
 0x52e   :  { %15804 = vmatprep.subr.mxu1 %v7878_v18  ;;  %15749 = vmatpush3.msra.mxu0 %v19917_v20 }
 0x52f   :  { %15805 = vmatpush3.msra.mxu1 %v7878_v18  ;;  %15750 = vmatprep.subr.mxu0 %v19926_v53  ;;  %v23048_v18 = vld [vmem:[#allocation72_spill] sm:$0xff] }
 0x530   :  { %15806 = vmatprep.subr.mxu1 %v7885_v26  ;;  %15751 = vmatpush3.msra.mxu0 %v19926_v53 }
 0x531   :  { %15752 = vmatprep.mubr.f32.mxu0 %v23034_v48  ;;  %15807 = vmatpush3.msra.mxu1 %v7885_v26  ;;  %v23049_v26 = vld [vmem:[#allocation52_spill] sm:$0xff] }
 0x532   :  { %15808 = vmatprep.mubr.f32.mxu1 %v23035_v32  ;;  %15753 = vmatmul.mubr.f32.vlgmr.msra.gmra.mxu0 %v23036_v4 }
 0x533   :  { %15809 = vmatmul.mubr.f32.vlgmr.msra.gmra.mxu1 %v23037_v52  ;;  %15832 = vmatprep.subr.mxu0 %v19667_v38 }
 0x534   :  { %15833 = vmatpush3.msra.mxu0 %v19667_v38  ;;  %15888 = vmatprep.subr.mxu1 %v19492_v42  ;;  %v23042_v38 = vld [vmem:[#allocation61_spill] sm:$0xff] }
 0x535   :  { %15834 = vmatprep.subr.mxu0 %v19756_v43  ;;  %15889 = vmatpush3.msra.mxu1 %v19492_v42 }
 0x536   :  { %15755 = vmatprep.mubr.f32.mxu0 %v23038_v13  ;;  %15811 = vmatprep.mubr.f32.mxu1 %v23039_v15 }
 0x537   :  { %15835 = vmatpush3.msra.mxu0 %v19756_v43  ;;  %15890 = vmatprep.subr.mxu1 %v19747_v40  ;;  %v23043_v43 = vld [vmem:[#allocation38_spill] sm:$0xff] }
 0x538   :  { %15756 = vmatmul.mubr.f32.gmra.mxu0 %v23040_v22  ;;  %15812 = vmatmul.mubr.f32.gmra.mxu1 %v23041_v58 }
 0x539   :  { %15836 = vmatprep.subr.mxu0 %v19768_v8  ;;  %15891 = vmatpush3.msra.mxu1 %v19747_v40 }
 0x53a   :  { %15837 = vmatpush3.msra.mxu0 %v19768_v8  ;;  %15892 = vmatprep.subr.mxu1 %v19758_v45  ;;  %v23046_v8 = vld [vmem:[#allocation69_spill] sm:$0xff] }
 0x53b   :  { %15838 = vmatprep.subr.mxu0 %v19789_v9  ;;  %15893 = vmatpush3.msra.mxu1 %v19758_v45 }
 0x53c   :  { %15758 = vmatprep.mubr.f32.mxu0 %v23042_v38  ;;  %15814 = vmatprep.mubr.f32.mxu1 %v23043_v43 }
 0x53d   :  { %15839 = vmatpush3.msra.mxu0 %v19789_v9  ;;  %15894 = vmatprep.subr.mxu1 %v19779_v1  ;;  %v23047_v9 = vld [vmem:[#allocation48_spill] sm:$0xff] }
 0x53e   :  { %15759 = vmatmul.mubr.f32.gmra.mxu0 %v23044_v7  ;;  %15815 = vmatmul.mubr.f32.gmra.mxu1 %v23045_v39 }
 0x53f   :  { %15840 = vmatprep.subr.mxu0 %v19803_v47  ;;  %15895 = vmatpush3.msra.mxu1 %v19779_v1 }
 0x540   :  { %15841 = vmatpush3.msra.mxu0 %v19803_v47  ;;  %15896 = vmatprep.subr.mxu1 %v19791_v14  ;;  %v23050_v47 = vld [vmem:[#allocation77_spill] sm:$0xff] }
 0x541   :  { %15842 = vmatprep.subr.mxu0 %v19812_v16  ;;  %15897 = vmatpush3.msra.mxu1 %v19791_v14 }
 0x542   :  { %15761 = vmatprep.mubr.f32.mxu0 %v23046_v8  ;;  %15817 = vmatprep.mubr.f32.mxu1 %v23047_v9  ;;  %v23053_v8 = vld [vmem:[#allocation60_spill] sm:$0xff] }
 0x543   :  { %15843 = vmatpush3.msra.mxu0 %v19812_v16  ;;  %15898 = vmatprep.subr.mxu1 %v19797_v30  ;;  %v23051_v16 = vld [vmem:[#allocation57_spill] sm:$0xff] }
 0x544   :  { %15762 = vmatmul.mubr.f32.gmra.mxu0 %v23048_v18  ;;  %15818 = vmatmul.mubr.f32.gmra.mxu1 %v23049_v26  ;;  %v23052_v18 = vld [vmem:[#allocation80_spill] sm:$0xff] }
 0x545   :  { %15844 = vmatprep.subr.mxu0 %v19825_v37  ;;  %15899 = vmatpush3.msra.mxu1 %v19797_v30 }
 0x546   :  { %15845 = vmatpush3.msra.mxu0 %v19825_v37  ;;  %15900 = vmatprep.subr.mxu1 %v19808_v5  ;;  %v23054_v37 = vld [vmem:[#allocation85_spill] sm:$0xff] }
 0x547   :  { %15846 = vmatprep.subr.mxu0 %v19840_v57  ;;  %15901 = vmatpush3.msra.mxu1 %v19808_v5 }
 0x548   :  { %15764 = vmatprep.mubr.f32.mxu0 %v23050_v47  ;;  %15820 = vmatprep.mubr.f32.mxu1 %v23051_v16  ;;  %v23057_v47 = vld [vmem:[#allocation68_spill] sm:$0xff] }
 0x549   :  { %15847 = vmatpush3.msra.mxu0 %v19840_v57  ;;  %15902 = vmatprep.subr.mxu1 %v19820_v34  ;;  %v23055_v57 = vld [vmem:[#allocation66_spill] sm:$0xff] }
 0x54a   :  { %15765 = vmatmul.mubr.f32.gmra.mxu0 %v23052_v18  ;;  %15821 = vmatmul.mubr.f32.gmra.mxu1 %v23053_v8  ;;  %v23056_v18 = vld [vmem:[#allocation88_spill] sm:$0xff] }
 0x54b   :  { %15848 = vmatprep.subr.mxu0 %v19855_v10  ;;  %15903 = vmatpush3.msra.mxu1 %v19820_v34 }
 0x54c   :  { %15849 = vmatpush3.msra.mxu0 %v19855_v10  ;;  %15904 = vmatprep.subr.mxu1 %v19835_v28  ;;  %v23058_v10 = vld [vmem:[#allocation91_spill] sm:$0xff] }
 0x54d   :  { %15850 = vmatprep.subr.mxu0 %v19870_v59  ;;  %15905 = vmatpush3.msra.mxu1 %v19835_v28 }
 0x54e   :  { %15767 = vmatprep.mubr.f32.mxu0 %v23054_v37  ;;  %15823 = vmatprep.mubr.f32.mxu1 %v23055_v57  ;;  %v23061_v37 = vld [vmem:[#allocation76_spill] sm:$0xff] }
 0x54f   :  { %15851 = vmatpush3.msra.mxu0 %v19870_v59  ;;  %15906 = vmatprep.subr.mxu1 %v19851_v50  ;;  %v23059_v59 = vld [vmem:[#allocation74_spill] sm:$0xff] }
 0x550   :  { %15768 = vmatmul.mubr.f32.gmra.mxu0 %v23056_v18  ;;  %15824 = vmatmul.mubr.f32.gmra.mxu1 %v23057_v47  ;;  %v23060_v18 = vld [vmem:[#allocation93_spill] sm:$0xff] }
 0x551   :  { %15852 = vmatprep.subr.mxu0 %v19884_v62  ;;  %15907 = vmatpush3.msra.mxu1 %v19851_v50 }
 0x552   :  { %15853 = vmatpush3.msra.mxu0 %v19884_v62  ;;  %15908 = vmatprep.subr.mxu1 %v19865_v0  ;;  %v23062_v62 = vld [vmem:[#allocation94_spill] sm:$0xff] }
 0x553   :  { %15854 = vmatprep.subr.mxu0 %v19896_v25  ;;  %15909 = vmatpush3.msra.mxu1 %v19865_v0 }
 0x554   :  { %15770 = vmatprep.mubr.f32.mxu0 %v23058_v10  ;;  %15826 = vmatprep.mubr.f32.mxu1 %v23059_v59  ;;  %v23065_v10 = vld [vmem:[#allocation84_spill] sm:$0xff] }
 0x555   :  { %15855 = vmatpush3.msra.mxu0 %v19896_v25  ;;  %15910 = vmatprep.subr.mxu1 %v19876_v44  ;;  %v23063_v25 = vld [vmem:[#allocation82_spill] sm:$0xff] }
 0x556   :  { %15771 = vmatmul.mubr.f32.gmra.mxu0 %v23060_v18  ;;  %15827 = vmatmul.mubr.f32.gmra.mxu1 %v23061_v37  ;;  %v23064_v18 = vld [vmem:[#allocation95_spill] sm:$0xff] }
 0x557   :  { %15856 = vmatprep.subr.mxu0 %v19911_v55  ;;  %15911 = vmatpush3.msra.mxu1 %v19876_v44 }
 0x558   :  { %15857 = vmatpush3.msra.mxu0 %v19911_v55  ;;  %15912 = vmatprep.subr.mxu1 %v19890_v6  ;;  %v23066_v55 = vld [vmem:[#allocation26_spill] sm:$0xff] }
 0x559   :  { %15858 = vmatprep.subr.mxu0 %v19921_v2  ;;  %15913 = vmatpush3.msra.mxu1 %v19890_v6 }
 0x55a   :  { %15773 = vmatprep.mubr.f32.mxu0 %v23062_v62  ;;  %15829 = vmatprep.mubr.f32.mxu1 %v23063_v25 }
 0x55b   :  { %15859 = vmatpush3.msra.mxu0 %v19921_v2  ;;  %15914 = vmatprep.subr.mxu1 %v19900_v46  ;;  %v23067_v2 = vld [vmem:[#allocation28_spill] sm:$0xff] }
 0x55c   :  { %15774 = vmatmul.mubr.f32.gmra.mxu0 %v23064_v18  ;;  %15830 = vmatmul.mubr.f32.gmra.mxu1 %v23065_v10  ;;  %v23068_v18 = vld [vmem:[#allocation34_spill] sm:$0xff] }
 0x55d   :  { %15860 = vmatprep.subr.mxu0 %v19937_v49  ;;  %15915 = vmatpush3.msra.mxu1 %v19900_v46 }
 0x55e   :  { %15861 = vmatpush3.msra.mxu0 %v19937_v49  ;;  %15916 = vmatprep.subr.mxu1 %v19917_v20  ;;  %v23069_v49 = vld [vmem:[#allocation35_spill] sm:$0xff] }
 0x55f   :  { %15862 = vmatprep.subr.mxu0 %v19946_v60  ;;  %15917 = vmatpush3.msra.mxu1 %v19917_v20 }
 0x560   :  { %15863 = vmatpush3.msra.mxu0 %v19946_v60  ;;  %15864 = vmatprep.mubr.f32.mxu0 %v23066_v55  ;;  %v23070_v60 = vld [vmem:[#allocation36_spill] sm:$0xff] }
 0x561   :  { %15918 = vmatprep.subr.mxu1 %v19926_v53  ;;  %15865 = vmatmul.mubr.f32.vlgmr.msra.gmra.mxu0 %v23067_v2  ;;  %v23071_v2 = vld [vmem:[#allocation39_spill] sm:$0xff] }
 0x562   :  { %15919 = vmatpush3.msra.mxu1 %v19926_v53  ;;  %15920 = vmatprep.mubr.f32.mxu1 %v23068_v18  ;;  %v23072_v18 = vld [vmem:[#allocation42_spill] sm:$0xff] }
 0x563   :  { %15944 = vmatprep.subr.mxu0 %v19698_v12  ;;  %15921 = vmatmul.mubr.f32.vlgmr.msra.gmra.mxu1 %v23069_v49 }
 0x564   :  { %15945 = vmatpush3.msra.mxu0 %v19698_v12  ;;  %16000 = vmatprep.subr.mxu1 %v19492_v42  ;;  %v23073_v12 = vld [vmem:[#allocation45_spill] sm:$0xff] }
 0x565   :  { %15946 = vmatprep.subr.mxu0 %v19765_v27  ;;  %16001 = vmatpush3.msra.mxu1 %v19492_v42  ;;  %v23074_v42 = vld [vmem:[#allocation44_spill] sm:$0xff] }
 0x566   :  { %15867 = vmatprep.mubr.f32.mxu0 %v23070_v60  ;;  %15947 = vmatpush3.msra.mxu0 %v19765_v27  ;;  %v23075_v27 = vld [vmem:[#allocation47_spill] sm:$0xff] }
 0x567   :  { %16002 = vmatprep.subr.mxu1 %v19747_v40  ;;  %15868 = vmatmul.mubr.f32.gmra.mxu0 %v23071_v2 }
 0x568   :  { %15923 = vmatprep.mubr.f32.mxu1 %v23072_v18  ;;  %15948 = vmatprep.subr.mxu0 %v19777_v24  ;;  %v23076_v18 = vld [vmem:[#allocation51_spill] sm:$0xff] }
 0x569   :  { %16003 = vmatpush3.msra.mxu1 %v19747_v40  ;;  %15949 = vmatpush3.msra.mxu0 %v19777_v24  ;;  %v23077_v40 = vld [vmem:[#allocation53_spill] sm:$0xff]  ;;  %v23079_v24 = vld [vmem:[#allocation56_spill] sm:$0xff] }
 0x56a   :  { %15924 = vmatmul.mubr.f32.gmra.mxu1 %v23073_v12  ;;  %16004 = vmatprep.subr.mxu1 %v19758_v45 }
 0x56b   :  { %15950 = vmatprep.subr.mxu0 %v19800_v19  ;;  %16005 = vmatpush3.msra.mxu1 %v19758_v45  ;;  %v23078_v45 = vld [vmem:[#allocation54_spill] sm:$0xff] }
 0x56c   :  { %15870 = vmatprep.mubr.f32.mxu0 %v23074_v42  ;;  %15951 = vmatpush3.msra.mxu0 %v19800_v19  ;;  %v23080_v19 = vld [vmem:[#allocation59_spill] sm:$0xff] }
 0x56d   :  { %16006 = vmatprep.subr.mxu1 %v19779_v1  ;;  %15871 = vmatmul.mubr.f32.gmra.mxu0 %v23075_v27 }
 0x56e   :  { %15926 = vmatprep.mubr.f32.mxu1 %v23076_v18  ;;  %15952 = vmatprep.subr.mxu0 %v19817_v31 }
 0x56f   :  { %16007 = vmatpush3.msra.mxu1 %v19779_v1  ;;  %15953 = vmatpush3.msra.mxu0 %v19817_v31  ;;  %v23081_v1 = vld [vmem:[#allocation62_spill] sm:$0xff]  ;;  %v23083_v31 = vld [vmem:[#allocation65_spill] sm:$0xff] }
 0x570   :  { %15927 = vmatmul.mubr.f32.gmra.mxu1 %v23077_v40  ;;  %16008 = vmatprep.subr.mxu1 %v19791_v14 }
 0x571   :  { %15954 = vmatprep.subr.mxu0 %v19830_v3  ;;  %16009 = vmatpush3.msra.mxu1 %v19791_v14  ;;  %v23082_v14 = vld [vmem:[#allocation63_spill] sm:$0xff] }
 0x572   :  { %15873 = vmatprep.mubr.f32.mxu0 %v23078_v45  ;;  %15955 = vmatpush3.msra.mxu0 %v19830_v3  ;;  %v23084_v3 = vld [vmem:[#allocation67_spill] sm:$0xff] }
 0x573   :  { %16010 = vmatprep.subr.mxu1 %v19797_v30  ;;  %15874 = vmatmul.mubr.f32.gmra.mxu0 %v23079_v24 }
 0x574   :  { %15929 = vmatprep.mubr.f32.mxu1 %v23080_v19  ;;  %15956 = vmatprep.subr.mxu0 %v19845_v56 }
 0x575   :  { %16011 = vmatpush3.msra.mxu1 %v19797_v30  ;;  %15957 = vmatpush3.msra.mxu0 %v19845_v56  ;;  %v23085_v30 = vld [vmem:[#allocation70_spill] sm:$0xff]  ;;  %v23087_v56 = vld [vmem:[#allocation73_spill] sm:$0xff] }
 0x576   :  { %15930 = vmatmul.mubr.f32.gmra.mxu1 %v23081_v1  ;;  %16012 = vmatprep.subr.mxu1 %v19808_v5 }
 0x577   :  { %15958 = vmatprep.subr.mxu0 %v19859_v41  ;;  %16013 = vmatpush3.msra.mxu1 %v19808_v5  ;;  %v23086_v5 = vld [vmem:[#allocation71_spill] sm:$0xff] }
 0x578   :  { %15876 = vmatprep.mubr.f32.mxu0 %v23082_v14  ;;  %15959 = vmatpush3.msra.mxu0 %v19859_v41 }
 0x579   :  { %16014 = vmatprep.subr.mxu1 %v19820_v34  ;;  %15877 = vmatmul.mubr.f32.gmra.mxu0 %v23083_v31 }
 0x57a   :  { %15932 = vmatprep.mubr.f32.mxu1 %v23084_v3  ;;  %15960 = vmatprep.subr.mxu0 %v19874_v54 }
 0x57b   :  { %16015 = vmatpush3.msra.mxu1 %v19820_v34  ;;  %15961 = vmatpush3.msra.mxu0 %v19874_v54  ;;  %v23088_v34 = vld [vmem:[#allocation75_spill] sm:$0xff] }
 0x57c   :  { %15933 = vmatmul.mubr.f32.gmra.mxu1 %v23085_v30  ;;  %16016 = vmatprep.subr.mxu1 %v19835_v28 }
 0x57d   :  { %15962 = vmatprep.subr.mxu0 %v19888_v35  ;;  %16017 = vmatpush3.msra.mxu1 %v19835_v28  ;;  %v23090_v28 = vld [vmem:[#allocation78_spill] sm:$0xff] }
 0x57e   :  { %15879 = vmatprep.mubr.f32.mxu0 %v23086_v5  ;;  %15963 = vmatpush3.msra.mxu0 %v19888_v35 }
 0x57f   :  { %16018 = vmatprep.subr.mxu1 %v19851_v50  ;;  %15880 = vmatmul.mubr.f32.gmra.mxu0 %v23087_v56  ;;  %v15586_v41 = vpop.f32.mrf.mxu1  ;;  %v23091_v56 = vld [vmem:[#allocation79_spill] sm:$0xff] }
 0x580   :  { %15935 = vmatprep.mubr.f32.mxu1 %v23088_v34  ;;  %15964 = vmatprep.subr.mxu0 %v19904_v63 }
 0x581   :  { %16019 = vmatpush3.msra.mxu1 %v19851_v50  ;;  %15965 = vmatpush3.msra.mxu0 %v19904_v63  ;;  %v20142_v54 = vpop.f32.mrf.mxu1  ;;  %v23092_v50 = vld [vmem:[#allocation81_spill] sm:$0xff] }
 0x582   :  { %23089 = vst [vmem:[#allocation220_spill] sm:$0xff] %v20142_v54  ;;  %15936 = vmatmul.mubr.f32.gmra.mxu1 %v23090_v28  ;;  %16020 = vmatprep.subr.mxu1 %v19865_v0  ;;  %v23094_v54 = vld [vmem:[#allocation83_spill] sm:$0xff]  ;;  %v23095_v28 = vld [vmem:[#allocation86_spill] sm:$0xff] }
 0x583   :  { %15966 = vmatprep.subr.mxu0 %v19915_v51  ;;  %16021 = vmatpush3.msra.mxu1 %v19865_v0  ;;  %v15589_v35 = vpop.f32.mrf.mxu1 }
 0x584   :  { %15882 = vmatprep.mubr.f32.mxu0 %v23091_v56  ;;  %15967 = vmatpush3.msra.mxu0 %v19915_v51  ;;  %v23100_v56 = vld [vmem:[#allocation90_spill] sm:$0xff] }
 0x585   :  { %16022 = vmatprep.subr.mxu1 %v19876_v44  ;;  %15883 = vmatmul.mubr.f32.gmra.mxu0 %v23092_v50  ;;  %v20152_v63 = vpop.f32.mrf.mxu1 }
 0x586   :  { %23093 = vst [vmem:[#allocation215_spill] sm:$0xff] %v20152_v63  ;;  %15938 = vmatprep.mubr.f32.mxu1 %v23094_v54  ;;  %15968 = vmatprep.subr.mxu0 %v19931_v33  ;;  %v23097_v54 = vld [vmem:[#allocation87_spill] sm:$0xff] }
 0x587   :  { %16023 = vmatpush3.msra.mxu1 %v19876_v44  ;;  %15969 = vmatpush3.msra.mxu0 %v19931_v33  ;;  %v15592_v0 = vpop.f32.mrf.mxu1  ;;  %v23099_v33 = vld [vmem:[#allocation89_spill] sm:$0xff] }
 0x588   :  { %15939 = vmatmul.mubr.f32.gmra.mxu1 %v23095_v28  ;;  %16024 = vmatprep.subr.mxu1 %v19890_v6  ;;  %v15558_v51 = vpop.f32.mrf.mxu0 }
 0x589   :  { %15970 = vmatprep.subr.mxu0 %v19942_v61  ;;  %16025 = vmatpush3.msra.mxu1 %v19890_v6  ;;  %v20162_v50 = vadd.f32 %v15586_v41, %v15558_v51  ;;  %v20164_v63 = vpop.f32.mrf.mxu1 }
 0x58a   :  { %23096 = vst [vmem:[#allocation216_spill] sm:$0xff] %v20164_v63  ;;  %15885 = vmatprep.mubr.f32.mxu0 %v23097_v54  ;;  %15971 = vmatpush3.msra.mxu0 %v19942_v61  ;;  %v20168_v44 = vpop.f32.mrf.mxu0  ;;  %v23102_v61 = vld [vmem:[#allocation92_spill] sm:$0xff] }
 0x58b   :  { %23098 = vst [vmem:[#allocation217_spill] sm:$0xff] %v20168_v44  ;;  %16026 = vmatprep.subr.mxu1 %v19900_v46  ;;  %15886 = vmatmul.mubr.f32.gmra.mxu0 %v23099_v33  ;;  %v15595_v28 = vpop.f32.mrf.mxu1 }
 0x58c   :  { %15941 = vmatprep.mubr.f32.mxu1 %v23100_v56  ;;  %15972 = vmatprep.subr.mxu0 %v19953_v23  ;;  %v15561_v6 = vpop.f32.mrf.mxu0 }
 0x58d   :  { %16027 = vmatpush3.msra.mxu1 %v19900_v46  ;;  %15973 = vmatpush3.msra.mxu0 %v19953_v23  ;;  %v20176_v41 = vadd.f32 %v15589_v35, %v15561_v6  ;;  %v20178_v51 = vpop.f32.mrf.mxu1 }
 0x58e   :  { %23101 = vst [vmem:[#allocation218_spill] sm:$0xff] %v20178_v51  ;;  %15942 = vmatmul.mubr.f32.gmra.mxu1 %v23102_v61  ;;  %16028 = vmatprep.subr.mxu1 %v19917_v20  ;;  %v20182_v63 = vpop.f32.mrf.mxu0 }
 0x58f   :  { %23103 = vst [vmem:[#allocation219_spill] sm:$0xff] %v20182_v63  ;;  %15974 = vmatprep.subr.mxu0 %v19961_v29  ;;  %16029 = vmatpush3.msra.mxu1 %v19917_v20  ;;  %v15598_v44 = vpop.f32.mrf.mxu1 }
 0x590   :  { %15975 = vmatpush3.msra.mxu0 %v19961_v29  ;;  %15976 = vmatprep.mubr.f32.mxu0 %v23035_v32  ;;  %v15564_v23 = vpop.f32.mrf.mxu0 }
 0x591   :  { %16030 = vmatprep.subr.mxu1 %v19926_v53  ;;  %15977 = vmatmul.mubr.f32.vlgmr.msra.gmra.mxu0 %v23037_v52  ;;  %v20190_v46 = vadd.f32 %v15592_v0, %v15564_v23  ;;  %v20192_v35 = vpop.f32.mrf.mxu1 }
 0x592   :  { %23104 = vst [vmem:[#allocation221_spill] sm:$0xff] %v20192_v35  ;;  %16031 = vmatpush3.msra.mxu1 %v19926_v53  ;;  %16032 = vmatprep.mubr.f32.mxu1 %v23035_v32  ;;  %v20196_v6 = vpop.f32.mrf.mxu0  ;;  %v23107_v53 = vld [vmem:[#allocation33_spill] sm:$0xff] }
 0x593   :  { %23105 = vst [vmem:[#allocation222_spill] sm:$0xff] %v20196_v6  ;;  %16033 = vmatmul.mubr.f32.vlgmr.msra.gmra.mxu1 %v23037_v52  ;;  %15979 = vmatprep.mubr.f32.mxu0 %v23039_v15  ;;  %v15601_v20 = vpop.f32.mrf.mxu1 }
 0x594   :  { %16035 = vmatprep.mubr.f32.mxu1 %v23039_v15  ;;  %v15567_v29 = vpop.f32.mrf.mxu0  ;;  %16056 = vmatprep.subr.mxu0 %v23028_v11 }
 0x595   :  { %15980 = vmatmul.mubr.f32.gmra.mxu0 %v23041_v58  ;;  %v20203_v0 = vadd.f32 %v15595_v28, %v15567_v29  ;;  %v20205_v23 = vpop.f32.mrf.mxu1  ;;  %16084 = vmatprep.subr.mxu1 %v23107_v53 }
 0x596   :  { %23106 = vst [vmem:[#allocation223_spill] sm:$0xff] %v20205_v23  ;;  %15982 = vmatprep.mubr.f32.mxu0 %v23043_v43  ;;  %v20209_v35 = vpop.f32.mrf.mxu0  ;;  %16057 = vmatpush3.msra.mxu0 %v23028_v11  ;;  %v23110_v23 = vld [vmem:[#allocation20_spill] sm:$0xff] }
 0x597   :  { %23108 = vst [vmem:[#allocation224_spill] sm:$0xff] %v20209_v35  ;;  %16036 = vmatmul.mubr.f32.gmra.mxu1 %v23041_v58  ;;  %v15604_v51 = vpop.f32.mrf.mxu1  ;;  %16058 = vmatprep.subr.mxu0 %v23029_v21 }
 0x598   :  { %16038 = vmatprep.mubr.f32.mxu1 %v23043_v43  ;;  %v15570_v6 = vpop.f32.mrf.mxu0  ;;  %16085 = vmatpush3.msra.mxu1 %v23107_v53 }
 0x599   :  { %15983 = vmatmul.mubr.f32.gmra.mxu0 %v23045_v39  ;;  %v20217_v28 = vadd.f32 %v15598_v44, %v15570_v6  ;;  %v20219_v29 = vpop.f32.mrf.mxu1  ;;  %16086 = vmatprep.subr.mxu1 %v23110_v23 }
 0x59a   :  { %23109 = vst [vmem:[#allocation225_spill] sm:$0xff] %v20219_v29  ;;  %15985 = vmatprep.mubr.f32.mxu0 %v23047_v9  ;;  %v20223_v35 = vpop.f32.mrf.mxu0  ;;  %16059 = vmatpush3.msra.mxu0 %v23029_v21 }
 0x59b   :  { %23111 = vst [vmem:[#allocation226_spill] sm:$0xff] %v20223_v35  ;;  %16039 = vmatmul.mubr.f32.gmra.mxu1 %v23045_v39  ;;  %v15607_v63 = vpop.f32.mrf.mxu1  ;;  %16112 = vmatprep.subr.mxu0 %v23030_v36 }
 0x59c   :  { %16041 = vmatprep.mubr.f32.mxu1 %v23047_v9  ;;  %v15573_v53 = vpop.f32.mrf.mxu0  ;;  %16087 = vmatpush3.msra.mxu1 %v23110_v23 }
 0x59d   :  { %15986 = vmatmul.mubr.f32.gmra.mxu0 %v23049_v26  ;;  %v20231_v44 = vadd.f32 %v15601_v20, %v15573_v53  ;;  %v20233_v6 = vpop.f32.mrf.mxu1  ;;  %16140 = vmatprep.subr.mxu1 %v23028_v11 }
 0x59e   :  { %23112 = vst [vmem:[#allocation227_spill] sm:$0xff] %v20233_v6  ;;  %15988 = vmatprep.mubr.f32.mxu0 %v23051_v16  ;;  %v20237_v29 = vpop.f32.mrf.mxu0 }
 0x59f   :  { %23113 = vst [vmem:[#allocation228_spill] sm:$0xff] %v20237_v29  ;;  %16042 = vmatmul.mubr.f32.gmra.mxu1 %v23049_v26  ;;  %v15642_v35 = vpop.f32.mrf.mxu1 }
 0x5a0   :  { %16044 = vmatprep.mubr.f32.mxu1 %v23051_v16  ;;  %v15576_v61 = vpop.f32.mrf.mxu0 }
 0x5a1   :  { %15989 = vmatmul.mubr.f32.gmra.mxu0 %v23053_v8  ;;  %v6781_v23 = vadd.f32 %v15604_v51, %v15576_v61  ;;  %v20242_v56 = vpop.f32.mrf.mxu1 }
 0x5a2   :  { %23114 = vst [vmem:[#allocation229_spill] sm:$0xff] %v20242_v56  ;;  %15991 = vmatprep.mubr.f32.mxu0 %v23055_v57  ;;  %v20245_v20 = vpop.f32.mrf.mxu0 }
 0x5a3   :  { %23115 = vst [vmem:[#allocation230_spill] sm:$0xff] %v20245_v20  ;;  %16045 = vmatmul.mubr.f32.gmra.mxu1 %v23053_v8  ;;  %v15645_v53 = vpop.f32.mrf.mxu1 }
 0x5a4   :  { %16047 = vmatprep.mubr.f32.mxu1 %v23055_v57  ;;  %v15579_v6 = vpop.f32.mrf.mxu0 }
 0x5a5   :  { %15992 = vmatmul.mubr.f32.gmra.mxu0 %v23057_v47  ;;  %v6793_v29 = vadd.f32 %v15607_v63, %v15579_v6  ;;  %v20250_v33 = vpop.f32.mrf.mxu1 }
 0x5a6   :  { %23116 = vst [vmem:[#allocation231_spill] sm:$0xff] %v20250_v33  ;;  %15994 = vmatprep.mubr.f32.mxu0 %v23059_v59  ;;  %v20253_v51 = vpop.f32.mrf.mxu0 }
 0x5a7   :  { %23117 = vst [vmem:[#allocation232_spill] sm:$0xff] %v20253_v51  ;;  %16048 = vmatmul.mubr.f32.gmra.mxu1 %v23057_v47  ;;  %v15648_v61 = vpop.f32.mrf.mxu1 }
 0x5a8   :  { %16050 = vmatprep.mubr.f32.mxu1 %v23059_v59  ;;  %v15614_v20 = vpop.f32.mrf.mxu0 }
 0x5a9   :  { %15995 = vmatmul.mubr.f32.gmra.mxu0 %v23061_v37  ;;  %v6876_v56 = vadd.f32 %v15614_v20, %v20162_v50  ;;  %v20259_v54 = vpop.f32.mrf.mxu1 }
 0x5aa   :  { %23118 = vst [vmem:[#allocation233_spill] sm:$0xff] %v20259_v54  ;;  %15997 = vmatprep.mubr.f32.mxu0 %v23063_v25  ;;  %v20262_v63 = vpop.f32.mrf.mxu0 }
 0x5ab   :  { %23119 = vst [vmem:[#allocation234_spill] sm:$0xff] %v20262_v63  ;;  %16051 = vmatmul.mubr.f32.gmra.mxu1 %v23061_v37  ;;  %v15651_v6 = vpop.f32.mrf.mxu1  ;;  %v7057_v51 = vadd.f32 %v15642_v35, %v6876_v56 }
 0x5ac   :  { %16053 = vmatprep.mubr.f32.mxu1 %v23063_v25  ;;  %v15617_v33 = vpop.f32.mrf.mxu0 }
 0x5ad   :  { %15998 = vmatmul.mubr.f32.gmra.mxu0 %v23065_v10  ;;  %v6890_v34 = vadd.f32 %v15617_v33, %v20176_v41  ;;  %v20268_v5 = vpop.f32.mrf.mxu1 }
 0x5ae   :  { %23120 = vst [vmem:[#allocation235_spill] sm:$0xff] %v20268_v5  ;;  %v20270_v50 = vpop.f32.mrf.mxu0 }
 0x5af   :  { %23121 = vst [vmem:[#allocation236_spill] sm:$0xff] %v20270_v50  ;;  %16054 = vmatmul.mubr.f32.gmra.mxu1 %v23065_v10  ;;  %v15654_v20 = vpop.f32.mrf.mxu1  ;;  %v7073_v54 = vadd.f32 %v15645_v53, %v6890_v34 }
 0x5b0   :  { %v15620_v63 = vpop.f32.mrf.mxu0 }
 0x5b1   :  { %v6904_v30 = vadd.f32 %v15620_v63, %v20190_v46  ;;  %v20274_v3 = vpop.f32.mrf.mxu1 }
 0x5b2   :  { %23122 = vst [vmem:[#allocation237_spill] sm:$0xff] %v20274_v3  ;;  %v20276_v56 = vpop.f32.mrf.mxu0 }
 0x5b3   :  { %23123 = vst [vmem:[#allocation238_spill] sm:$0xff] %v20276_v56  ;;  %v15657_v35 = vpop.f32.mrf.mxu1  ;;  %v7089_v31 = vadd.f32 %v15648_v61, %v6904_v30 }
 0x5b4   :  { %v15623_v14 = vpop.f32.mrf.mxu0 }
 0x5b5   :  { %v6918_v33 = vadd.f32 %v15623_v14, %v20203_v0  ;;  %v20279_v41 = vpop.f32.mrf.mxu1 }
 0x5b6   :  { %23124 = vst [vmem:[#allocation239_spill] sm:$0xff] %v20279_v41  ;;  %v20281_v5 = vpop.f32.mrf.mxu0 }
 0x5b7   :  { %23125 = vst [vmem:[#allocation240_spill] sm:$0xff] %v20281_v5  ;;  %v15660_v50 = vpop.f32.mrf.mxu1  ;;  %v7105_v1 = vadd.f32 %v15651_v6, %v6918_v33 }
 0x5b8   :  { %v15626_v19 = vpop.f32.mrf.mxu0 }
 0x5b9   :  { %v6932_v34 = vadd.f32 %v15626_v19, %v20217_v28  ;;  %v20284_v53 = vpop.f32.mrf.mxu1 }
 0x5ba   :  { %23126 = vst [vmem:[#allocation241_spill] sm:$0xff] %v20284_v53  ;;  %v20286_v46 = vpop.f32.mrf.mxu0 }
 0x5bb   :  { %23127 = vst [vmem:[#allocation242_spill] sm:$0xff] %v20286_v46  ;;  %v15663_v63 = vpop.f32.mrf.mxu1  ;;  %v7121_v3 = vadd.f32 %v15654_v20, %v6932_v34 }
 0x5bc   :  { %v15629_v56 = vpop.f32.mrf.mxu0 }
 0x5bd   :  { %v6946_v30 = vadd.f32 %v15629_v56, %v20231_v44  ;;  %v20289_v61 = vpop.f32.mrf.mxu1 }
 0x5be   :  { %23128 = vst [vmem:[#allocation243_spill] sm:$0xff] %v20289_v61  ;;  %v20291_v14 = vpop.f32.mrf.mxu0 }
 0x5bf   :  { %23129 = vst [vmem:[#allocation244_spill] sm:$0xff] %v20291_v14  ;;  %v15698_v0 = vpop.f32.mrf.mxu1  ;;  %v7137_v41 = vadd.f32 %v15657_v35, %v6946_v30 }
 0x5c0   :  { %v15632_v5 = vpop.f32.mrf.mxu0 }
 0x5c1   :  { %v6960_v6 = vadd.f32 %v15632_v5, %v6781_v23  ;;  %v20293_v33 = vpop.f32.mrf.mxu1 }
 0x5c2   :  { %23130 = vst [vmem:[#allocation245_spill] sm:$0xff] %v20293_v33  ;;  %v20295_v19 = vpop.f32.mrf.mxu0 }
 0x5c3   :  { %23131 = vst [vmem:[#allocation246_spill] sm:$0xff] %v20295_v19  ;;  %v15701_v28 = vpop.f32.mrf.mxu1  ;;  %v7153_v53 = vadd.f32 %v15660_v50, %v6960_v6 }
 0x5c4   :  { %v15635_v46 = vpop.f32.mrf.mxu0 }
 0x5c5   :  { %v6974_v24 = vadd.f32 %v15635_v46, %v6793_v29  ;;  %v20297_v20 = vpop.f32.mrf.mxu1 }
 0x5c6   :  { %23132 = vst [vmem:[#allocation247_spill] sm:$0xff] %v20297_v20  ;;  %v20299_v34 = vpop.f32.mrf.mxu0 }
 0x5c7   :  { %23133 = vst [vmem:[#allocation248_spill] sm:$0xff] %v20299_v34  ;;  %v15704_v44 = vpop.f32.mrf.mxu1  ;;  %v7169_v56 = vadd.f32 %v15663_v63, %v6974_v24 }
 0x5c8   :  { %v15670_v61 = vpop.f32.mrf.mxu0 }
 0x5c9   :  { %v7252_v14 = vadd.f32 %v15670_v61, %v7057_v51  ;;  %v20301_v45 = vpop.f32.mrf.mxu1 }
 0x5ca   :  { %23134 = vst [vmem:[#allocation249_spill] sm:$0xff] %v20301_v45  ;;  %v20303_v35 = vpop.f32.mrf.mxu0 }
 0x5cb   :  { %23135 = vst [vmem:[#allocation250_spill] sm:$0xff] %v20303_v35  ;;  %v20305_v5 = vadd.f32 %v15698_v0, %v7252_v14  ;;  %v15707_v29 = vpop.f32.mrf.mxu1 }
 0x5cc   :  { %v15673_v23 = vpop.f32.mrf.mxu0 }
 0x5cd   :  { %23136 = vst [vmem:[#allocation251_spill] sm:$0xff] %v20305_v5  ;;  %v7264_v6 = vadd.f32 %v15673_v23, %v7073_v54  ;;  %v20315_v51 = vpop.f32.mrf.mxu1 }
 0x5ce   :  { %v20309_v46 = vpop.f32.mrf.mxu0  ;;  %23141 = vst [vmem:[#allocation254_spill] sm:$0xff] %v20315_v51 }
 0x5cf   :  { %23138 = vst [vmem:[#allocation252_spill] sm:$0xff] %v20309_v46  ;;  %v20311_v20 = vadd.f32 %v15701_v28, %v7264_v6 }
 0x5d0   :  { %v15710_v0 = vpop.f32.mrf.mxu1 }
 0x5d1   :  { %23139 = vst [vmem:[#allocation253_spill] sm:$0xff] %v20311_v20  ;;  %v15676_v63 = vpop.f32.mrf.mxu0 }
 0x5d2   :  { %v7276_v61 = vadd.f32 %v15676_v63, %v7089_v31  ;;  %v20325_v28 = vpop.f32.mrf.mxu1 }
 0x5d3   :  { %v20317_v45 = vpop.f32.mrf.mxu0  ;;  %23146 = vst [vmem:[#allocation258_spill] sm:$0xff] %v20325_v28 }
 0x5d4   :  { %23142 = vst [vmem:[#allocation255_spill] sm:$0xff] %v20317_v45  ;;  %v20319_v14 = vadd.f32 %v15704_v44, %v7276_v61 }
 0x5d6   :  { %23143 = vst [vmem:[#allocation256_spill] sm:$0xff] %v20319_v14  ;;  %v15679_v23 = vpop.f32.mrf.mxu0 }
 0x5d7   :  { %v7288_v50 = vadd.f32 %v15679_v23, %v7105_v1  ;;  %v15713_v63 = vpop.f32.mrf.mxu1 }
 0x5d8   :  { %v20323_v33 = vpop.f32.mrf.mxu0 }
 0x5d9   :  { %23145 = vst [vmem:[#allocation257_spill] sm:$0xff] %v20323_v33  ;;  %v20327_v6 = vadd.f32 %v15707_v29, %v7288_v50  ;;  %v20335_v46 = vpop.f32.mrf.mxu1 }
 0x5da   :  { %23151 = vst [vmem:[#allocation262_spill] sm:$0xff] %v20335_v46 }
 0x5db   :  { %23147 = vst [vmem:[#allocation259_spill] sm:$0xff] %v20327_v6 }
 0x5dc   :  { %v15682_v31 = vpop.f32.mrf.mxu0 }
 0x5dd   :  { %v7300_v45 = vadd.f32 %v15682_v31, %v7121_v3  ;;  %v15716_v50 = vpop.f32.mrf.mxu1 }
 0x5de   :  { %v20331_v44 = vpop.f32.mrf.mxu0 }
 0x5df   :  { %23149 = vst [vmem:[#allocation260_spill] sm:$0xff] %v20331_v44  ;;  %v20333_v61 = vadd.f32 %v15710_v0, %v7300_v45  ;;  %v20345_v31 = vpop.f32.mrf.mxu1 }
 0x5e0   :  { %23156 = vst [vmem:[#allocation265_spill] sm:$0xff] %v20345_v31 }
 0x5e1   :  { %23150 = vst [vmem:[#allocation261_spill] sm:$0xff] %v20333_v61 }
 0x5e2   :  { %v15685_v23 = vpop.f32.mrf.mxu0 }
 0x5e3   :  { %v7312_v33 = vadd.f32 %v15685_v23, %v7137_v41  ;;  %v15719_v44 = vpop.f32.mrf.mxu1 }
 0x5e4   :  { %v20339_v28 = vpop.f32.mrf.mxu0 }
 0x5e5   :  { %23153 = vst [vmem:[#allocation263_spill] sm:$0xff] %v20339_v28  ;;  %v20341_v29 = vadd.f32 %v15713_v63, %v7312_v33  ;;  %v20357_v63 = vpop.f32.mrf.mxu1 }
 0x5e6   :  { %23162 = vst [vmem:[#allocation270_spill] sm:$0xff] %v20357_v63 }
 0x5e7   :  { %23154 = vst [vmem:[#allocation264_spill] sm:$0xff] %v20341_v29 }
 0x5e8   :  { %v15688_v3 = vpop.f32.mrf.mxu0 }
 0x5e9   :  { %v7324_v45 = vadd.f32 %v15688_v3, %v7153_v53 }
 0x5ea   :  { %v20347_v0 = vpop.f32.mrf.mxu0 }
 0x5eb   :  { %23157 = vst [vmem:[#allocation266_spill] sm:$0xff] %v20347_v0  ;;  %v20349_v46 = vadd.f32 %v15716_v50, %v7324_v45 }
 0x5ed   :  { %23158 = vst [vmem:[#allocation267_spill] sm:$0xff] %v20349_v46  ;;  %v15691_v23 = vpop.f32.mrf.mxu0 }
 0x5ee   :  { %v7336_v28 = vadd.f32 %v15691_v23, %v7169_v56 }
 0x5ef   :  { %v20353_v54 = vpop.f32.mrf.mxu0 }
 0x5f0   :  { %23160 = vst [vmem:[#allocation268_spill] sm:$0xff] %v20353_v54  ;;  %v20355_v33 = vadd.f32 %v15719_v44, %v7336_v28 }
 0x5f2   :  { %23161 = vst [vmem:[#allocation269_spill] sm:$0xff] %v20355_v33  ;;  %v15754_v53 = vpop.f32.mrf.mxu0 }
 0x5f3   :  { %v15810_v3 = vpop.f32.mrf.mxu1 }
 0x5f4   :  { %v7621_v0 = vpop.f32.mrf.mxu0  ;;  %v7929_v48 = vadd.f32 %v15810_v3, %v15754_v53  ;;  %v16801_v53 = vld [vmem:[#allocation7 + $0x78] sm:$0xff] }
 0x5f5   :  { %v7922_v50 = vpop.f32.mrf.mxu1 }
 0x5f6   :  { %v7923_v36 = vadd.f32 %v7922_v50, %v7621_v0 }
 0x5f8   :  { %v15757_v45 = vpop.f32.mrf.mxu0  ;;  %v15813_v51 = vpop.f32.mrf.mxu1 }
 0x5f9   :  { %v7941_v11 = vadd.f32 %v15813_v51, %v15757_v45 }
 0x5fa   :  { %v7641_v29 = vpop.f32.mrf.mxu0  ;;  %v7934_v61 = vpop.f32.mrf.mxu1 }
 0x5fe   :  { %v15760_v41 = vpop.f32.mrf.mxu0  ;;  %v15816_v1 = vpop.f32.mrf.mxu1 }
 0x600   :  { %v7661_v56 = vpop.f32.mrf.mxu0  ;;  %v7946_v23 = vpop.f32.mrf.mxu1 }
 0x604   :  { %v15763_v54 = vpop.f32.mrf.mxu0  ;;  %v15819_v28 = vpop.f32.mrf.mxu1 }
 0x606   :  { %v7681_v44 = vpop.f32.mrf.mxu0  ;;  %v7958_v46 = vpop.f32.mrf.mxu1 }
 0x60a   :  { %v15766_v63 = vpop.f32.mrf.mxu0  ;;  %v15822_v24 = vpop.f32.mrf.mxu1 }
 0x60b   :  { %v7977_v50 = vadd.f32 %v15822_v24, %v15766_v63 }
 0x60c   :  { %v7701_v6 = vpop.f32.mrf.mxu0  ;;  %v7970_v31 = vpop.f32.mrf.mxu1 }
 0x60d   :  { %v7971_v45 = vadd.f32 %v7970_v31, %v7701_v6 }
 0x610   :  { %v15769_v35 = vpop.f32.mrf.mxu0  ;;  %v15825_v33 = vpop.f32.mrf.mxu1 }
 0x611   :  { %v7989_v51 = vadd.f32 %v15825_v33, %v15769_v35 }
 0x612   :  { %v7721_v19 = vpop.f32.mrf.mxu0  ;;  %v7982_v14 = vpop.f32.mrf.mxu1 }
 0x616   :  { %v15772_v34 = vpop.f32.mrf.mxu0  ;;  %v15828_v20 = vpop.f32.mrf.mxu1 }
 0x618   :  { %v7741_v30 = vpop.f32.mrf.mxu0  ;;  %v7994_v5 = vpop.f32.mrf.mxu1 }
 0x61c   :  { %v15775_v40 = vpop.f32.mrf.mxu0  ;;  %v15831_v18 = vpop.f32.mrf.mxu1 }
 0x61e   :  { %v20361_v27 = vpop.f32.mrf.mxu0  ;;  %v8006_v42 = vpop.f32.mrf.mxu1 }
 0x61f   :  { %23164 = vst [vmem:[#allocation271_spill] sm:$0xff] %v20361_v27  ;;  %v7935_v27 = vadd.f32 %v7934_v61, %v7641_v29 }
 0x621   :  { %v15866_v12 = vpop.f32.mrf.mxu0 }
 0x623   :  { %v15922_v2 = vpop.f32.mrf.mxu1  ;;  %v8116_v60 = vpop.f32.mrf.mxu0 }
 0x624   :  { %v8117_v29 = vadd.f32 %v8116_v60, %v7923_v36 }
 0x625   :  { %v8310_v49 = vpop.f32.mrf.mxu1 }
 0x626   :  { %v23172_v36 = vld [vmem:[#allocation271_spill] sm:$0xff]  ;;  %v8311_v35 = vadd.f32 %v8310_v49, %v8117_v29 }
 0x627   :  { %v15869_v55 = vpop.f32.mrf.mxu0  ;;  %v8007_v60 = vadd.f32 %v8006_v42, %v23172_v36 }
 0x629   :  { %v8130_v10 = vpop.f32.mrf.mxu0 }
 0x62a   :  { %v15925_v25 = vpop.f32.mrf.mxu1 }
 0x62c   :  { %v8326_v62 = vpop.f32.mrf.mxu1 }
 0x62d   :  { %v15872_v37 = vpop.f32.mrf.mxu0 }
 0x62f   :  { %v8144_v59 = vpop.f32.mrf.mxu0 }
 0x630   :  { %v15928_v47 = vpop.f32.mrf.mxu1 }
 0x632   :  { %v8342_v57 = vpop.f32.mrf.mxu1 }
 0x633   :  { %v15875_v8 = vpop.f32.mrf.mxu0 }
 0x635   :  { %v8158_v16 = vpop.f32.mrf.mxu0 }
 0x636   :  { %v15931_v26 = vpop.f32.mrf.mxu1 }
 0x638   :  { %v8358_v9 = vpop.f32.mrf.mxu1 }
 0x639   :  { %v15878_v39 = vpop.f32.mrf.mxu0 }
 0x63b   :  { %v8172_v7 = vpop.f32.mrf.mxu0 }
 0x63c   :  { %v20363_v43 = vpop.f32.mrf.mxu1 }
 0x63d   :  { %23165 = vst [vmem:[#allocation272_spill] sm:$0xff] %v20363_v43  ;;  %v7953_v43 = vadd.f32 %v15816_v1, %v15760_v41  ;;  %v7983_v1 = vadd.f32 %v7982_v14, %v7721_v19  ;;  %v8001_v41 = vadd.f32 %v15828_v20, %v15772_v34  ;;  %v8180_v19 = vadd.f32 %v15878_v39, %v7977_v50 }
 0x63e   :  { %v20365_v38 = vpop.f32.mrf.mxu1 }
 0x63f   :  { %23166 = vst [vmem:[#allocation273_spill] sm:$0xff] %v20365_v38  ;;  %v15881_v58 = vpop.f32.mrf.mxu0  ;;  %v8124_v38 = vadd.f32 %v15866_v12, %v7929_v48  ;;  %v8138_v12 = vadd.f32 %v15869_v55, %v7941_v11  ;;  %v8131_v48 = vadd.f32 %v8130_v10, %v7935_v27  ;;  %v8173_v55 = vadd.f32 %v8172_v7, %v7971_v45 }
 0x641   :  { %v8186_v22 = vpop.f32.mrf.mxu0  ;;  %v8335_v11 = vadd.f32 %v15925_v25, %v8138_v12  ;;  %v8327_v10 = vadd.f32 %v8326_v62, %v8131_v48 }
 0x642   :  { %v20367_v15 = vpop.f32.mrf.mxu1 }
 0x643   :  { %23167 = vst [vmem:[#allocation274_spill] sm:$0xff] %v20367_v15  ;;  %v7947_v15 = vadd.f32 %v7946_v23, %v7661_v56  ;;  %v7995_v23 = vadd.f32 %v7994_v5, %v7741_v30  ;;  %v8319_v56 = vadd.f32 %v15922_v2, %v8124_v38  ;;  %v8194_v38 = vadd.f32 %v15881_v58, %v7989_v51 }
 0x644   :  { %v20369_v13 = vpop.f32.mrf.mxu1  ;;  %v23173_v49 = vld [vmem:[#allocation272_spill] sm:$0xff] }
 0x645   :  { %23168 = vst [vmem:[#allocation275_spill] sm:$0xff] %v20369_v13  ;;  %v15884_v52 = vpop.f32.mrf.mxu0  ;;  %v7965_v13 = vadd.f32 %v15819_v28, %v15763_v54  ;;  %v8152_v54 = vadd.f32 %v15872_v37, %v7953_v43  ;;  %v20390_v39 = vadd.f32 %v23173_v49, %v8180_v19 }
 0x646   :  { %v8208_v2 = vadd.f32 %v15884_v52, %v8001_v41  ;;  %v23174_v25 = vld [vmem:[#allocation273_spill] sm:$0xff] }
 0x647   :  { %v8200_v4 = vpop.f32.mrf.mxu0  ;;  %v8351_v37 = vadd.f32 %v15928_v47, %v8152_v54 }
 0x648   :  { %v20371_v32 = vpop.f32.mrf.mxu1 }
 0x649   :  { %23169 = vst [vmem:[#allocation276_spill] sm:$0xff] %v20371_v32  ;;  %v7959_v32 = vadd.f32 %v7958_v46, %v7681_v44  ;;  %v8145_v46 = vadd.f32 %v8144_v59, %v7947_v15  ;;  %v8013_v44 = vadd.f32 %v15831_v18, %v15775_v40  ;;  %v20394_v40 = vadd.f32 %v23174_v25, %v8173_v55  ;;  %v23180_v55 = vld [vmem:[#allocation15_spill] sm:$0xff] }
 0x64a   :  { %v20373_v17 = vpop.f32.mrf.mxu1  ;;  %v23175_v47 = vld [vmem:[#allocation274_spill] sm:$0xff] }
 0x64b   :  { %23170 = vst [vmem:[#allocation277_spill] sm:$0xff] %v20373_v17  ;;  %v15887_v21 = vpop.f32.mrf.mxu0  ;;  %v16802_v17 = vld [vmem:[#allocation8 + $0x78] sm:$0xff]  ;;  %v8343_v59 = vadd.f32 %v8342_v57, %v8145_v46  ;;  %v20397_v57 = vadd.f32 %v23175_v47, %v8194_v38 }
 0x64c   :  { %v20377_v0 = vmul.f32 %v16802_v17, %v16801_v53  ;;  %v8159_v17 = vadd.f32 %v8158_v16, %v7959_v32  ;;  %v8187_v16 = vadd.f32 %v8186_v22, %v7983_v1  ;;  %v8222_v34 = vadd.f32 %v15887_v21, %v8013_v44  ;;  %v23176_v6 = vld [vmem:[#allocation275_spill] sm:$0xff] }
 0x64d   :  { %v20375_v3 = vpop.f32.mrf.mxu0 }
 0x64e   :  { %23171 = vst [vmem:[#allocation278_spill] sm:$0xff] %v20375_v3  ;;  %v20379_v61 = vpop.f32.mrf.mxu1  ;;  %v8166_v3 = vadd.f32 %v15875_v8, %v7965_v13  ;;  %v20384_v24 = vand.u32 4294901760, %v20377_v0  ;;  %v20387_v8 = vadd.f32 %v8358_v9, %v8159_v17  ;;  %v20403_v31 = vadd.f32 %v23176_v6, %v8187_v16 }
 0x64f   :  { %v20426_v17 = vadd.f32 %v20379_v61, %v8222_v34 }
 0x650   :  { %v20381_v28 = vpop.f32.mrf.mxu1  ;;  %v8367_v32 = vadd.f32 %v15931_v26, %v8166_v3  ;;  %v8201_v26 = vadd.f32 %v8200_v4, %v7995_v23  ;;  %v23177_v33 = vld [vmem:[#allocation276_spill] sm:$0xff] }
 0x651   :  { %v15978_v53 = vpop.f32.mrf.mxu0  ;;  %v20406_v63 = vadd.f32 %v23177_v33, %v8208_v2 }
 0x652   :  { %v8556_v20 = vadd.f32 %v15978_v53, %v8319_v56  ;;  %v23179_v12 = vld [vmem:[#allocation277_spill] sm:$0xff] }
 0x653   :  { %v16034_v43 = vpop.f32.mrf.mxu1  ;;  %v8549_v15 = vpop.f32.mrf.mxu0  ;;  %v20416_v48 = vadd.f32 %v23179_v12, %v8201_v26 }
 0x654   :  { %v8733_v18 = vadd.f32 %v16034_v43, %v8556_v20  ;;  %v8550_v13 = vadd.f32 %v8549_v15, %v8311_v35 }
 0x655   :  { %v8726_v27 = vpop.f32.mrf.mxu1  ;;  %v15981_v42 = vpop.f32.mrf.mxu0  ;;  %v23178_v51 = vld [vmem:[#allocation278_spill] sm:$0xff] }
 0x656   :  { %v8824_v62 = vsel %vm1409_vm0, %v8733_v18, 0  ;;  %v8727_v7 = vadd.f32 %v8726_v27, %v8550_v13  ;;  %v8568_v58 = vadd.f32 %v15981_v42, %v8335_v11  ;;  %v8215_v29 = vadd.f32 %v23178_v51, %v8007_v60 }
 0x657   :  { %v20399_v9 = vand.u32 4294901760, %v8824_v62  ;;  %v16037_v22 = vpop.f32.mrf.mxu1  ;;  %v8561_v52 = vpop.f32.mrf.mxu0 }
 0x658   :  { %v8821_v5 = vsel %vm1409_vm0, %v8727_v7, 0  ;;  %v8745_v30 = vadd.f32 %v16037_v22, %v8568_v58  ;;  %v8562_v14 = vadd.f32 %v8561_v52, %v8327_v10  ;;  %v20441_v38 = vadd.f32 %v20381_v28, %v8215_v29 }
 0x659   :  { %v20409_v3 = vsub.f32 %v8824_v62, %v20399_v9  ;;  %v20411_v50 = vand.u32 4294901760, %v8821_v5  ;;  %v8738_v4 = vpop.f32.mrf.mxu1  ;;  %v15984_v45 = vpop.f32.mrf.mxu0 }
 0x65a   :  { %v8830_v21 = vsel %vm1409_vm0, %v8745_v30, 0  ;;  %v8739_v1 = vadd.f32 %v8738_v4, %v8562_v14  ;;  %v8580_v41 = vadd.f32 %v15984_v45, %v8351_v37 }
 0x65b   :  { %v8947_v23 = vand.u32 4294901760, %v20409_v3  ;;  %v20420_v56 = vsub.f32 %v8821_v5, %v20411_v50  ;;  %v20422_v54 = vand.u32 4294901760, %v8830_v21  ;;  %v16040_v46 = vpop.f32.mrf.mxu1  ;;  %v8573_v44 = vpop.f32.mrf.mxu0  ;;  %16088 = vmatprep.mubr.f32.mxu1 %v20411_v50 }
 0x65c   :  { %v8827_v53 = vsel %vm1409_vm0, %v8739_v1, 0  ;;  %v8757_v36 = vadd.f32 %v16040_v46, %v8580_v41  ;;  %v8574_v60 = vadd.f32 %v8573_v44, %v8343_v59  ;;  %16089 = vmatmul.mubr.f32.vlgmr.msra.gmra.mxu1 %v20399_v9  ;;  %v23181_v59 = vld [vmem:[#allocation17_spill] sm:$0xff] }
 0x65d   :  { %v8948_v35 = vsub.f32 %v20409_v3, %v8947_v23  ;;  %v20434_v19 = vsub.f32 %v8830_v21, %v20422_v54  ;;  %v20436_v20 = vand.u32 4294901760, %v8827_v53  ;;  %v8750_v11 = vpop.f32.mrf.mxu1  ;;  %v15987_v10 = vpop.f32.mrf.mxu0  ;;  %v8937_v61 = vand.u32 4294901760, %v20420_v56  ;;  %16141 = vmatpush3.msra.mxu1 %v23180_v55 }
 0x65e   :  { %v8836_v43 = vsel %vm1409_vm0, %v8757_v36, 0  ;;  %v8751_v15 = vadd.f32 %v8750_v11, %v8574_v60  ;;  %v8592_v37 = vadd.f32 %v15987_v10, %v8367_v32  ;;  %16142 = vmatprep.subr.mxu1 %v23181_v59 }
 0x65f   :  { %v8949_v18 = vand.u32 4294901760, %v8948_v35  ;;  %v8967_v13 = vand.u32 4294901760, %v20434_v19  ;;  %v20447_v16 = vsub.f32 %v8827_v53, %v20436_v20  ;;  %v20449_v2 = vand.u32 4294901760, %v8836_v43  ;;  %v16043_v27 = vpop.f32.mrf.mxu1  ;;  %v8585_v42 = vpop.f32.mrf.mxu0  ;;  %16091 = vmatprep.mubr.f32.mxu1 %v20436_v20  ;;  %16143 = vmatpush3.msra.mxu1 %v23181_v59  ;;  %v23182_v35 = vld [vmem:[#allocation30_spill] sm:$0xff] }
 0x660   :  { %v8833_v28 = vsel %vm1409_vm0, %v8751_v15, 0  ;;  %v8769_v49 = vadd.f32 %v16043_v27, %v8592_v37  ;;  %v8586_v32 = vadd.f32 %v8585_v42, %v20387_v8  ;;  %16092 = vmatmul.mubr.f32.gmra.mxu1 %v20422_v54  ;;  %v8938_v62 = vsub.f32 %v20420_v56, %v8937_v61  ;;  %16196 = vmatprep.subr.mxu1 %v23180_v55 }
 0x661   :  { %v20461_v7 = vsub.f32 %v8836_v43, %v20449_v2  ;;  %v20463_v58 = vand.u32 4294901760, %v8833_v28  ;;  %v8762_v25 = vpop.f32.mrf.mxu1  ;;  %v15990_v47 = vpop.f32.mrf.mxu0  ;;  %v8957_v26 = vand.u32 4294901760, %v20447_v16  ;;  %v8968_v8 = vsub.f32 %v20434_v19, %v8967_v13 }
 0x662   :  { %v8842_v22 = vsel %vm1409_vm0, %v8769_v49, 0  ;;  %v8763_v52 = vadd.f32 %v8762_v25, %v8586_v32  ;;  %v8604_v34 = vadd.f32 %v15990_v47, %v20390_v39  ;;  %v8939_v5 = vand.u32 4294901760, %v8938_v62  ;;  %v23183_v32 = vld [vmem:[#allocation18_spill] sm:$0xff] }
 0x663   :  { %v8987_v30 = vand.u32 4294901760, %v20461_v7  ;;  %v20473_v14 = vsub.f32 %v8833_v28, %v20463_v58  ;;  %v20475_v6 = vand.u32 4294901760, %v8842_v22  ;;  %v16046_v33 = vpop.f32.mrf.mxu1  ;;  %v8597_v4 = vpop.f32.mrf.mxu0  ;;  %16094 = vmatprep.mubr.f32.mxu1 %v20463_v58  ;;  %v8958_v45 = vsub.f32 %v20447_v16, %v8957_v26 }
 0x664   :  { %v8839_v51 = vsel %vm1409_vm0, %v8763_v52, 0  ;;  %v8781_v29 = vadd.f32 %v16046_v33, %v8604_v34  ;;  %v8598_v39 = vadd.f32 %v8597_v4, %v20394_v40  ;;  %16060 = vmatprep.mubr.f32.mxu0 %v8939_v5  ;;  %16095 = vmatmul.mubr.f32.gmra.mxu1 %v20449_v2  ;;  %v8969_v21 = vand.u32 4294901760, %v8968_v8 }
 0x665   :  { %v20485_v1 = vsub.f32 %v8842_v22, %v20475_v6  ;;  %v20487_v41 = vand.u32 4294901760, %v8839_v51  ;;  %v8774_v12 = vpop.f32.mrf.mxu1  ;;  %16061 = vmatmul.mubr.f32.vlgmr.msra.gmra.mxu0 %v8949_v18  ;;  %v15993_v46 = vpop.f32.mrf.mxu0  ;;  %v8959_v44 = vand.u32 4294901760, %v8958_v45  ;;  %v8977_v53 = vand.u32 4294901760, %v20473_v14 }
 0x666   :  { %v8848_v36 = vsel %vm1409_vm0, %v8781_v29, 0  ;;  %v8775_v60 = vadd.f32 %v8774_v12, %v8598_v39  ;;  %v8616_v40 = vadd.f32 %v15993_v46, %v20397_v57  ;;  %16113 = vmatpush3.msra.mxu0 %v23182_v35  ;;  %v8988_v11 = vsub.f32 %v20461_v7, %v8987_v30 }
 0x667   :  { %v9007_v10 = vand.u32 4294901760, %v20485_v1  ;;  %v20498_v43 = vsub.f32 %v8839_v51, %v20487_v41  ;;  %v20500_v15 = vand.u32 4294901760, %v8848_v36  ;;  %v16049_v37 = vpop.f32.mrf.mxu1  ;;  %v8609_v18 = vpop.f32.mrf.mxu0  ;;  %16063 = vmatprep.mubr.f32.mxu0 %v8959_v44  ;;  %16097 = vmatprep.mubr.f32.mxu1 %v20487_v41  ;;  %v8978_v57 = vsub.f32 %v20473_v14, %v8977_v53 }
 0x668   :  { %v8845_v27 = vsel %vm1409_vm0, %v8775_v60, 0  ;;  %v8793_v42 = vadd.f32 %v16049_v37, %v8616_v40  ;;  %v8610_v28 = vadd.f32 %v8609_v18, %v20403_v31  ;;  %16098 = vmatmul.mubr.f32.gmra.mxu1 %v20475_v6  ;;  %v8989_v49 = vand.u32 4294901760, %v8988_v11  ;;  %16114 = vmatprep.subr.mxu0 %v23183_v32 }
 0x669   :  { %v20511_v62 = vsub.f32 %v8848_v36, %v20500_v15  ;;  %v20513_v25 = vand.u32 4294901760, %v8845_v27  ;;  %v8786_v47 = vpop.f32.mrf.mxu1  ;;  %16064 = vmatmul.mubr.f32.gmra.mxu0 %v8969_v21  ;;  %v15996_v8 = vpop.f32.mrf.mxu0  ;;  %v8979_v22 = vand.u32 4294901760, %v8978_v57  ;;  %v8997_v52 = vand.u32 4294901760, %v20498_v43  ;;  %v23184_v36 = vld [vmem:[#allocation16_spill] sm:$0xff] }
 0x66a   :  { %v8854_v34 = vsel %vm1409_vm0, %v8793_v42, 0  ;;  %v8787_v5 = vadd.f32 %v8786_v47, %v8610_v28  ;;  %v8628_v31 = vadd.f32 %v15996_v8, %v20406_v63  ;;  %v9008_v33 = vsub.f32 %v20485_v1, %v9007_v10  ;;  %16115 = vmatpush3.msra.mxu0 %v23183_v32 }
 0x66b   :  { %v9027_v4 = vand.u32 4294901760, %v20511_v62  ;;  %v20524_v45 = vsub.f32 %v8845_v27, %v20513_v25  ;;  %v20526_v51 = vand.u32 4294901760, %v8854_v34  ;;  %v16052_v29 = vpop.f32.mrf.mxu1  ;;  %v8621_v39 = vpop.f32.mrf.mxu0  ;;  %16066 = vmatprep.mubr.f32.mxu0 %v8979_v22  ;;  %16100 = vmatprep.mubr.f32.mxu1 %v20513_v25  ;;  %v8998_v63 = vsub.f32 %v20498_v43, %v8997_v52 }
 0x66c   :  { %v8851_v21 = vsel %vm1409_vm0, %v8787_v5, 0  ;;  %v8805_v12 = vadd.f32 %v16052_v29, %v8628_v31  ;;  %v8622_v46 = vadd.f32 %v8621_v39, %v20416_v48  ;;  %16101 = vmatmul.mubr.f32.gmra.mxu1 %v20500_v15  ;;  %v9009_v44 = vand.u32 4294901760, %v9008_v33  ;;  %16168 = vmatprep.subr.mxu0 %v23184_v36 }
 0x66d   :  { %v20537_v60 = vsub.f32 %v8854_v34, %v20526_v51  ;;  %v20539_v40 = vand.u32 4294901760, %v8851_v21  ;;  %v8798_v11 = vpop.f32.mrf.mxu1  ;;  %16067 = vmatmul.mubr.f32.gmra.mxu0 %v8989_v49  ;;  %v15999_v37 = vpop.f32.mrf.mxu0  ;;  %v8999_v18 = vand.u32 4294901760, %v8998_v63  ;;  %v9017_v57 = vand.u32 4294901760, %v20524_v45 }
 0x66e   :  { %v8860_v27 = vsel %vm1409_vm0, %v8805_v12, 0  ;;  %v8799_v42 = vadd.f32 %v8798_v11, %v8622_v46  ;;  %v8640_v48 = vadd.f32 %v15999_v37, %v20426_v17  ;;  %v9028_v28 = vsub.f32 %v20511_v62, %v9027_v4 }
 0x66f   :  { %v9047_v47 = vand.u32 4294901760, %v20537_v60  ;;  %v20549_v8 = vsub.f32 %v8851_v21, %v20539_v40  ;;  %v20551_v22 = vand.u32 4294901760, %v8860_v27  ;;  %v16055_v49 = vpop.f32.mrf.mxu1  ;;  %v8633_v34 = vpop.f32.mrf.mxu0  ;;  %16069 = vmatprep.mubr.f32.mxu0 %v8999_v18  ;;  %16103 = vmatprep.mubr.f32.mxu1 %v20539_v40  ;;  %v9018_v17 = vsub.f32 %v20524_v45, %v9017_v57 }
 0x670   :  { %v8857_v5 = vsel %vm1409_vm0, %v8799_v42, 0  ;;  %v8817_v31 = vadd.f32 %v16055_v49, %v8640_v48  ;;  %v8634_v33 = vadd.f32 %v8633_v34, %v20441_v38  ;;  %16104 = vmatmul.mubr.f32.gmra.mxu1 %v20526_v51  ;;  %v20562_v29 = vsub.f32 %v20377_v0, %v20384_v24 }
 0x671   :  { %v20565_v39 = vsub.f32 %v8860_v27, %v20551_v22  ;;  %v20567_v63 = vand.u32 4294901760, %v8857_v5  ;;  %v8810_v21 = vpop.f32.mrf.mxu1  ;;  %16070 = vmatmul.mubr.f32.gmra.mxu0 %v9009_v44  ;;  %v9019_v12 = vand.u32 4294901760, %v9018_v17  ;;  %v9037_v46 = vand.u32 4294901760, %v20549_v8 }
 0x672   :  { %v8866_v11 = vsel %vm1409_vm0, %v8817_v31, 0  ;;  %v8811_v37 = vadd.f32 %v8810_v21, %v8634_v33  ;;  %v9029_v38 = vand.u32 4294901760, %v9028_v28  ;;  %v9048_v18 = vsub.f32 %v20537_v60, %v9047_v47 }
 0x673   :  { %v9067_v0 = vand.u32 4294901760, %v20565_v39  ;;  %v20576_v27 = vsub.f32 %v8857_v5, %v20567_v63  ;;  %v20578_v42 = vand.u32 4294901760, %v8866_v11  ;;  %16072 = vmatprep.mubr.f32.mxu0 %v9019_v12  ;;  %16106 = vmatprep.mubr.f32.mxu1 %v20567_v63  ;;  %v9038_v44 = vsub.f32 %v20549_v8, %v9037_v46 }
 0x674   :  { %v8863_v48 = vsel %vm1409_vm0, %v8811_v37, 0  ;;  %16107 = vmatmul.mubr.f32.gmra.mxu1 %v20551_v22  ;;  %v9049_v5 = vand.u32 4294901760, %v9048_v18  ;;  %v20593_v31 = vand.u32 4294901760, %v20562_v29 }
 0x675   :  { %v20587_v28 = vsub.f32 %v8866_v11, %v20578_v42  ;;  %v20589_v49 = vand.u32 4294901760, %v8863_v48  ;;  %16073 = vmatmul.mubr.f32.gmra.mxu0 %v9029_v38  ;;  %v9039_v34 = vand.u32 4294901760, %v9038_v44  ;;  %v9057_v17 = vand.u32 4294901760, %v20576_v27 }
 0x676   :  { %v9068_v11 = vsub.f32 %v20565_v39, %v9067_v0 }
 0x677   :  { %v9087_v33 = vand.u32 4294901760, %v20587_v28  ;;  %v20597_v21 = vsub.f32 %v8863_v48, %v20589_v49  ;;  %16075 = vmatprep.mubr.f32.mxu0 %v9039_v34  ;;  %16109 = vmatprep.mubr.f32.mxu1 %v20589_v49  ;;  %v9058_v12 = vsub.f32 %v20576_v27, %v9057_v17  ;;  %v10249_v34 = vsub.f32 %v20562_v29, %v20593_v31 }
 0x678   :  { %16110 = vmatmul.mubr.f32.gmra.mxu1 %v20578_v42  ;;  %v9069_v18 = vand.u32 4294901760, %v9068_v11 }
 0x679   :  { %16076 = vmatmul.mubr.f32.gmra.mxu0 %v9049_v5  ;;  %16144 = vmatprep.mubr.f32.mxu1 %v8937_v61  ;;  %v9059_v37 = vand.u32 4294901760, %v9058_v12  ;;  %v9077_v38 = vand.u32 4294901760, %v20597_v21  ;;  %v9088_v48 = vsub.f32 %v20587_v28, %v9087_v33  ;;  %v20620_v12 = vand.u32 4294901760, %v10249_v34 }
 0x67b   :  { %16078 = vmatprep.mubr.f32.mxu0 %v9059_v37  ;;  %v9078_v44 = vsub.f32 %v20597_v21, %v9077_v38  ;;  %v9089_v5 = vand.u32 4294901760, %v9088_v48 }
 0x67c   :  { %16145 = vmatmul.mubr.f32.vlgmr.msra.gmra.mxu1 %v8947_v23  ;;  %v23185_v23 = vld [vmem:[#allocation19_spill] sm:$0xff] }
 0x67d   :  { %16079 = vmatmul.mubr.f32.gmra.mxu0 %v9069_v18  ;;  %16147 = vmatprep.mubr.f32.mxu1 %v8957_v26  ;;  %v9079_v61 = vand.u32 4294901760, %v9078_v44 }
 0x67e   :  { %16197 = vmatpush3.msra.mxu1 %v23180_v55 }
 0x67f   :  { %16081 = vmatprep.mubr.f32.mxu0 %v9079_v61  ;;  %16198 = vmatprep.subr.mxu1 %v23181_v59 }
 0x680   :  { %16148 = vmatmul.mubr.f32.gmra.mxu1 %v8967_v13  ;;  %v16803_v13 = vld [vmem:[#allocation7 + $0x70] sm:$0xff] }
 0x681   :  { %16082 = vmatmul.mubr.f32.gmra.mxu0 %v9089_v5  ;;  %16150 = vmatprep.mubr.f32.mxu1 %v8977_v53  ;;  %v16816_v5 = vld [vmem:[#allocation8 + $0x40] sm:$0xff] }
 0x682   :  { %16116 = vmatprep.mubr.f32.mxu0 %v20420_v56  ;;  %16199 = vmatpush3.msra.mxu1 %v23181_v59  ;;  %v16804_v56 = vld [vmem:[#allocation8 + $0x70] sm:$0xff] }
 0x683   :  { %16280 = vmatprep.subr.mxu1 %v20620_v12  ;;  %v10002_v26 = vmul.f32 %v16804_v56, %v16803_v13 }
 0x684   :  { %16151 = vmatmul.mubr.f32.gmra.mxu1 %v8987_v30  ;;  %v16806_v30 = vld [vmem:[#allocation8 + $0x68] sm:$0xff] }
 0x685   :  { %16117 = vmatmul.mubr.f32.vlgmr.msra.gmra.mxu0 %v20409_v3  ;;  %16153 = vmatprep.mubr.f32.mxu1 %v8997_v52  ;;  %v20645_v3 = vand.u32 4294901760, %v10002_v26  ;;  %v16808_v52 = vld [vmem:[#allocation8 + $0x60] sm:$0xff] }
 0x686   :  { %16119 = vmatprep.mubr.f32.mxu0 %v20447_v16  ;;  %16169 = vmatpush3.msra.mxu0 %v23184_v36  ;;  %v16805_v16 = vld [vmem:[#allocation7 + $0x68] sm:$0xff] }
 0x687   :  { %16170 = vmatprep.subr.mxu0 %v23185_v23  ;;  %v10001_v53 = vmul.f32 %v16806_v30, %v16805_v16  ;;  %v16817_v16 = vld [vmem:[#allocation7 + $0x38] sm:$0xff] }
 0x688   :  { %16154 = vmatmul.mubr.f32.gmra.mxu1 %v9007_v10  ;;  %16171 = vmatpush3.msra.mxu0 %v23185_v23  ;;  %v16818_v30 = vld [vmem:[#allocation8 + $0x38] sm:$0xff] }
 0x689   :  { %16120 = vmatmul.mubr.f32.gmra.mxu0 %v20434_v19  ;;  %16156 = vmatprep.mubr.f32.mxu1 %v9017_v57  ;;  %v20654_v19 = vsub.f32 %v10002_v26, %v20645_v3 }
 0x68a   :  { %16122 = vmatprep.mubr.f32.mxu0 %v20473_v14  ;;  %16224 = vmatprep.subr.mxu0 %v20384_v24  ;;  %v20656_v14 = vand.u32 4294901760, %v10001_v53 }
 0x68c   :  { %16157 = vmatmul.mubr.f32.gmra.mxu1 %v9027_v4  ;;  %v20666_v10 = vsub.f32 %v10001_v53, %v20656_v14 }
 0x68d   :  { %16123 = vmatmul.mubr.f32.gmra.mxu0 %v20461_v7  ;;  %16159 = vmatprep.mubr.f32.mxu1 %v9037_v46  ;;  %v20663_v7 = vand.u32 4294901760, %v20654_v19  ;;  %v16810_v46 = vld [vmem:[#allocation8 + $0x58] sm:$0xff] }
 0x68e   :  { %16125 = vmatprep.mubr.f32.mxu0 %v20498_v43  ;;  %v16807_v43 = vld [vmem:[#allocation7 + $0x60] sm:$0xff] }
 0x68f   :  { %v10000_v4 = vmul.f32 %v16808_v52, %v16807_v43  ;;  %v16819_v52 = vld [vmem:[#allocation7 + $0x30] sm:$0xff] }
 0x690   :  { %16160 = vmatmul.mubr.f32.gmra.mxu1 %v9047_v47  ;;  %v16809_v47 = vld [vmem:[#allocation7 + $0x58] sm:$0xff] }
 0x691   :  { %16126 = vmatmul.mubr.f32.gmra.mxu0 %v20485_v1  ;;  %16162 = vmatprep.mubr.f32.mxu1 %v9057_v17  ;;  %v10256_v1 = vsub.f32 %v20654_v19, %v20663_v7  ;;  %v20677_v57 = vand.u32 4294901760, %v10000_v4  ;;  %v9999_v17 = vmul.f32 %v16810_v46, %v16809_v47 }
 0x692   :  { %16128 = vmatprep.mubr.f32.mxu0 %v20524_v45  ;;  %v20675_v45 = vand.u32 4294901760, %v20666_v10 }
 0x693   :  { %v10257_v11 = vand.u32 4294901760, %v10256_v1  ;;  %v20689_v18 = vand.u32 4294901760, %v9999_v17 }
 0x694   :  { %16163 = vmatmul.mubr.f32.gmra.mxu1 %v9067_v0  ;;  %v10263_v37 = vsub.f32 %v20666_v10, %v20675_v45 }
 0x695   :  { %16129 = vmatmul.mubr.f32.gmra.mxu0 %v20511_v62  ;;  %16165 = vmatprep.mubr.f32.mxu1 %v9077_v38  ;;  %v16811_v62 = vld [vmem:[#allocation7 + $0x50] sm:$0xff]  ;;  %v20687_v38 = vsub.f32 %v10000_v4, %v20677_v57  ;;  %v20702_v61 = vsub.f32 %v9999_v17, %v20689_v18 }
 0x696   :  { %16131 = vmatprep.mubr.f32.mxu0 %v20549_v8  ;;  %v16812_v8 = vld [vmem:[#allocation8 + $0x50] sm:$0xff]  ;;  %v10264_v48 = vand.u32 4294901760, %v10263_v37 }
 0x697   :  { %v9998_v0 = vmul.f32 %v16812_v8, %v16811_v62  ;;  %v20699_v34 = vand.u32 4294901760, %v20687_v38  ;;  %v20716_v26 = vand.u32 4294901760, %v20702_v61  ;;  %v16820_v4 = vld [vmem:[#allocation8 + $0x30] sm:$0xff]  ;;  %v16821_v62 = vld [vmem:[#allocation7 + $0x28] sm:$0xff] }
 0x698   :  { %16166 = vmatmul.mubr.f32.gmra.mxu1 %v9087_v33  ;;  %v9994_v1 = vmul.f32 %v16820_v4, %v16819_v52  ;;  %v16822_v8 = vld [vmem:[#allocation8 + $0x28] sm:$0xff] }
 0x699   :  { %16132 = vmatmul.mubr.f32.gmra.mxu0 %v20537_v60  ;;  %16200 = vmatprep.mubr.f32.mxu1 %v20411_v50  ;;  %v16813_v60 = vld [vmem:[#allocation7 + $0x48] sm:$0xff]  ;;  %v20696_v44 = vand.u32 4294901760, %v9998_v0  ;;  %v10270_v56 = vsub.f32 %v20687_v38, %v20699_v34 }
 0x69a   :  { %16134 = vmatprep.mubr.f32.mxu0 %v20576_v27  ;;  %v16814_v27 = vld [vmem:[#allocation8 + $0x48] sm:$0xff]  ;;  %v20750_v37 = vand.u32 4294901760, %v9994_v1 }
 0x69b   :  { %v9997_v33 = vmul.f32 %v16814_v27, %v16813_v60  ;;  %v10271_v47 = vand.u32 4294901760, %v10270_v56  ;;  %v16823_v27 = vld [vmem:[#allocation7 + $0x20] sm:$0xff] }
 0x69c   :  { %16201 = vmatmul.mubr.f32.vlgmr.msra.gmra.mxu1 %v20399_v9  ;;  %v20769_v56 = vsub.f32 %v9994_v1, %v20750_v37  ;;  %v16827_v1 = vld [vmem:[#allocation7 + $0x10] sm:$0xff] }
 0x69d   :  { %16135 = vmatmul.mubr.f32.gmra.mxu0 %v20565_v39  ;;  %16203 = vmatprep.mubr.f32.mxu1 %v20436_v20  ;;  %v16815_v39 = vld [vmem:[#allocation7 + $0x40] sm:$0xff] }
 0x69e   :  { %16137 = vmatprep.mubr.f32.mxu0 %v20597_v21  ;;  %16281 = vmatpush3.msra.mxu1 %v20620_v12  ;;  %v9996_v13 = vmul.f32 %v16816_v5, %v16815_v39  ;;  %v20707_v21 = vand.u32 4294901760, %v9997_v33  ;;  %v20711_v12 = vsub.f32 %v9998_v0, %v20696_v44  ;;  %v9993_v0 = vmul.f32 %v16822_v8, %v16821_v62 }
 0x69f   :  { %16282 = vmatprep.subr.mxu1 %v10257_v11  ;;  %v20787_v8 = vand.u32 4294901760, %v20769_v56 }
 0x6a0   :  { %16204 = vmatmul.mubr.f32.gmra.mxu1 %v20422_v54  ;;  %v20719_v53 = vand.u32 4294901760, %v9996_v13  ;;  %v20729_v43 = vand.u32 4294901760, %v20711_v12  ;;  %v20764_v5 = vand.u32 4294901760, %v9993_v0 }
 0x6a1   :  { %16138 = vmatmul.mubr.f32.gmra.mxu0 %v20587_v28  ;;  %16206 = vmatprep.mubr.f32.mxu1 %v20463_v58  ;;  %v9995_v28 = vmul.f32 %v16818_v30, %v16817_v16  ;;  %v16825_v16 = vld [vmem:[#allocation7 + $0x18] sm:$0xff] }
 0x6a2   :  { %16172 = vmatprep.mubr.f32.mxu0 %v20411_v50  ;;  %16283 = vmatpush3.msra.mxu1 %v10257_v11  ;;  %v20724_v50 = vsub.f32 %v9997_v33, %v20707_v21  ;;  %v10284_v11 = vsub.f32 %v20711_v12, %v20729_v43  ;;  %v16824_v33 = vld [vmem:[#allocation8 + $0x20] sm:$0xff]  ;;  %v16826_v30 = vld [vmem:[#allocation8 + $0x18] sm:$0xff] }
 0x6a3   :  { %16284 = vmatprep.subr.mxu1 %v10264_v48  ;;  %v20734_v46 = vand.u32 4294901760, %v9995_v28 }
 0x6a4   :  { %16207 = vmatmul.mubr.f32.gmra.mxu1 %v20449_v2  ;;  %v20744_v17 = vand.u32 4294901760, %v20724_v50 }
 0x6a5   :  { %16173 = vmatmul.mubr.f32.vlgmr.msra.gmra.mxu0 %v20399_v9  ;;  %16209 = vmatprep.mubr.f32.mxu1 %v20487_v41  ;;  %v10277_v9 = vsub.f32 %v20702_v61, %v20716_v26  ;;  %v20754_v60 = vsub.f32 %v9995_v28, %v20734_v46  ;;  %v9991_v28 = vmul.f32 %v16826_v30, %v16825_v16 }
 0x6a6   :  { %16175 = vmatprep.mubr.f32.mxu0 %v20436_v20  ;;  %16225 = vmatpush3.msra.mxu0 %v20384_v24  ;;  %v20739_v20 = vsub.f32 %v9996_v13, %v20719_v53  ;;  %v10291_v39 = vsub.f32 %v20724_v50, %v20744_v17  ;;  %v10285_v13 = vand.u32 4294901760, %v10284_v11 }
 0x6a7   :  { %16226 = vmatprep.subr.mxu0 %v20645_v3  ;;  %16285 = vmatpush3.msra.mxu1 %v10264_v48  ;;  %v9992_v48 = vmul.f32 %v16824_v33, %v16823_v27  ;;  %v20773_v52 = vand.u32 4294901760, %v20754_v60  ;;  %v20789_v11 = vand.u32 4294901760, %v9991_v28  ;;  %v16829_v33 = vld [vmem:[#allocation7 + $0x8] sm:$0xff] }
 0x6a8   :  { %16227 = vmatpush3.msra.mxu0 %v20645_v3  ;;  %16210 = vmatmul.mubr.f32.gmra.mxu1 %v20475_v6  ;;  %v10292_v62 = vand.u32 4294901760, %v10291_v39 }
 0x6a9   :  { %16176 = vmatmul.mubr.f32.gmra.mxu0 %v20422_v54  ;;  %16228 = vmatprep.subr.mxu0 %v20656_v14  ;;  %v10278_v54 = vand.u32 4294901760, %v10277_v9  ;;  %v20775_v4 = vand.u32 4294901760, %v9992_v48 }
 0x6aa   :  { %16178 = vmatprep.mubr.f32.mxu0 %v20463_v58  ;;  %16212 = vmatprep.mubr.f32.mxu1 %v20513_v25  ;;  %v20758_v58 = vand.u32 4294901760, %v20739_v20 }
 0x6ab   :  { %16229 = vmatpush3.msra.mxu0 %v20656_v14  ;;  %16286 = vmatprep.subr.mxu1 %v10271_v47  ;;  %v20795_v27 = vsub.f32 %v9992_v48, %v20775_v4 }
 0x6ac   :  { %16230 = vmatprep.subr.mxu0 %v20677_v57  ;;  %16287 = vmatpush3.msra.mxu1 %v10271_v47  ;;  %v16828_v47 = vld [vmem:[#allocation8 + $0x10] sm:$0xff] }
 0x6ad   :  { %16231 = vmatpush3.msra.mxu0 %v20677_v57  ;;  %16213 = vmatmul.mubr.f32.gmra.mxu1 %v20500_v15  ;;  %v9990_v9 = vmul.f32 %v16828_v47, %v16827_v1  ;;  %v16832_v1 = vld [vmem:[#allocation8] sm:$0xff]  ;;  %v10312_v47 = vsub.f32 %v20769_v56, %v20787_v8 }
 0x6ae   :  { %16179 = vmatmul.mubr.f32.gmra.mxu0 %v20449_v2  ;;  %16232 = vmatprep.subr.mxu0 %v20689_v18  ;;  %v10298_v2 = vsub.f32 %v20739_v20, %v20758_v58 }
 0x6af   :  { %16288 = vmatprep.subr.mxu1 %v10278_v54  ;;  %16181 = vmatprep.mubr.f32.mxu0 %v20487_v41  ;;  %v20783_v41 = vsub.f32 %v9993_v0, %v20764_v5  ;;  %v16830_v0 = vld [vmem:[#allocation8 + $0x8] sm:$0xff]  ;;  %v20799_v30 = vand.u32 4294901760, %v9990_v9 }
 0x6b0   :  { %16215 = vmatprep.mubr.f32.mxu1 %v20539_v40  ;;  %16233 = vmatpush3.msra.mxu0 %v20689_v18  ;;  %v9989_v39 = vmul.f32 %v16830_v0, %v16829_v33  ;;  %v10299_v16 = vand.u32 4294901760, %v10298_v2  ;;  %v20810_v2 = vsub.f32 %v9991_v28, %v20789_v11  ;;  %v20814_v33 = vand.u32 4294901760, %v20795_v27 }
 0x6b1   :  { %16289 = vmatpush3.msra.mxu1 %v10278_v54  ;;  %16234 = vmatprep.subr.mxu0 %v20696_v44  ;;  %v10305_v54 = vsub.f32 %v20754_v60, %v20773_v52 }
 0x6b2   :  { %16290 = vmatprep.subr.mxu1 %v10285_v13  ;;  %16235 = vmatpush3.msra.mxu0 %v20696_v44  ;;  %v20816_v0 = vand.u32 4294901760, %v9989_v39 }
 0x6b3   :  { %16291 = vmatpush3.msra.mxu1 %v10285_v13  ;;  %16182 = vmatmul.mubr.f32.gmra.mxu0 %v20475_v6  ;;  %v20803_v6 = vand.u32 4294901760, %v20783_v41  ;;  %v16831_v13 = vld [vmem:[#allocation7] sm:$0xff] }
 0x6b4   :  { %16216 = vmatmul.mubr.f32.gmra.mxu1 %v20526_v51  ;;  %16236 = vmatprep.subr.mxu0 %v20707_v21  ;;  %v9988_v48 = vmul.f32 %v16832_v1, %v16831_v13  ;;  %v20820_v13 = vsub.f32 %v9990_v9, %v20799_v30  ;;  %v20830_v1 = vand.u32 4294901760, %v20810_v2  ;;  %v10326_v9 = vsub.f32 %v20795_v27, %v20814_v33 }
 0x6b5   :  { %16292 = vmatprep.subr.mxu1 %v10292_v62  ;;  %16184 = vmatprep.mubr.f32.mxu0 %v20513_v25  ;;  %v10306_v25 = vand.u32 4294901760, %v10305_v54  ;;  %v10319_v28 = vsub.f32 %v20783_v41, %v20803_v6  ;;  %v10313_v54 = vand.u32 4294901760, %v10312_v47 }
 0x6b6   :  { %16218 = vmatprep.mubr.f32.mxu1 %v20567_v63  ;;  %16237 = vmatpush3.msra.mxu0 %v20707_v21 }
 0x6b7   :  { %16293 = vmatpush3.msra.mxu1 %v10292_v62  ;;  %16238 = vmatprep.subr.mxu0 %v20719_v53  ;;  %v20825_v62 = vand.u32 4294901760, %v9988_v48  ;;  %v10320_v47 = vand.u32 4294901760, %v10319_v28 }
 0x6b8   :  { %16294 = vmatprep.subr.mxu1 %v10299_v16  ;;  %16239 = vmatpush3.msra.mxu0 %v20719_v53 }
 0x6b9   :  { %16295 = vmatpush3.msra.mxu1 %v10299_v16  ;;  %16185 = vmatmul.mubr.f32.gmra.mxu0 %v20500_v15  ;;  %v20836_v15 = vsub.f32 %v9989_v39, %v20816_v0  ;;  %v20841_v16 = vand.u32 4294901760, %v20820_v13  ;;  %v20845_v23 = vsub.f32 %v9988_v48, %v20825_v62  ;;  %v10327_v39 = vand.u32 4294901760, %v10326_v9 }
 0x6ba   :  { %16219 = vmatmul.mubr.f32.gmra.mxu1 %v20551_v22  ;;  %16240 = vmatprep.subr.mxu0 %v20734_v46 }
 0x6bb   :  { %16296 = vmatprep.subr.mxu1 %v10306_v25  ;;  %16187 = vmatprep.mubr.f32.mxu0 %v20539_v40  ;;  %v10333_v40 = vsub.f32 %v20810_v2, %v20830_v1  ;;  %v20852_v36 = vand.u32 4294901760, %v20836_v15  ;;  %v10340_v48 = vsub.f32 %v20820_v13, %v20841_v16 }
 0x6bc   :  { %16221 = vmatprep.mubr.f32.mxu1 %v20589_v49  ;;  %16241 = vmatpush3.msra.mxu0 %v20734_v46 }
 0x6bd   :  { %16297 = vmatpush3.msra.mxu1 %v10306_v25  ;;  %16242 = vmatprep.subr.mxu0 %v20750_v37  ;;  %v20860_v25 = vand.u32 4294901760, %v20845_v23  ;;  %v10347_v28 = vsub.f32 %v20836_v15, %v20852_v36 }
 0x6be   :  { %16298 = vmatprep.subr.mxu1 %v10313_v54  ;;  %16243 = vmatpush3.msra.mxu0 %v20750_v37 }
 0x6bf   :  { %16299 = vmatpush3.msra.mxu1 %v10313_v54  ;;  %16188 = vmatmul.mubr.f32.gmra.mxu0 %v20526_v51  ;;  %v10334_v51 = vand.u32 4294901760, %v10333_v40  ;;  %v10341_v54 = vand.u32 4294901760, %v10340_v48  ;;  %v10348_v9 = vand.u32 4294901760, %v10347_v28  ;;  %v23188_v40 = vld [vmem:[#allocation49_spill] sm:$0xff]  ;;  %v23193_v28 = vld [vmem:[#allocation32_spill] sm:$0xff] }
 0x6c0   :  { %16222 = vmatmul.mubr.f32.gmra.mxu1 %v20578_v42  ;;  %16244 = vmatprep.subr.mxu0 %v20764_v5  ;;  %v23191_v48 = vld [vmem:[#allocation29_spill] sm:$0xff] }
 0x6c1   :  { %16300 = vmatprep.subr.mxu1 %v10320_v47  ;;  %16190 = vmatprep.mubr.f32.mxu0 %v20567_v63  ;;  %v10354_v63 = vsub.f32 %v20845_v23, %v20860_v25 }
 0x6c2   :  { %16245 = vmatpush3.msra.mxu0 %v20764_v5  ;;  %16301 = vmatpush3.msra.mxu1 %v10320_v47 }
 0x6c3   :  { %16246 = vmatprep.subr.mxu0 %v20775_v4  ;;  %16302 = vmatprep.subr.mxu1 %v10327_v39  ;;  %v10355_v47 = vand.u32 4294901760, %v10354_v63  ;;  %v23197_v63 = vld [vmem:[#allocation41_spill] sm:$0xff] }
 0x6c4   :  { %16247 = vmatpush3.msra.mxu0 %v20775_v4  ;;  %16303 = vmatpush3.msra.mxu1 %v10327_v39  ;;  %v23189_v39 = vld [vmem:[#allocation24_spill] sm:$0xff] }
 0x6c5   :  { %16191 = vmatmul.mubr.f32.gmra.mxu0 %v20551_v22  ;;  %16248 = vmatprep.subr.mxu0 %v20789_v11  ;;  %v23186_v22 = vld [vmem:[#allocation46_spill] sm:$0xff] }
 0x6c6   :  { %16304 = vmatprep.subr.mxu1 %v10334_v51  ;;  %16193 = vmatprep.mubr.f32.mxu0 %v20589_v49  ;;  %v23187_v49 = vld [vmem:[#allocation22_spill] sm:$0xff] }
 0x6c7   :  { %16249 = vmatpush3.msra.mxu0 %v20789_v11  ;;  %16305 = vmatpush3.msra.mxu1 %v10334_v51  ;;  %v23192_v51 = vld [vmem:[#allocation58_spill] sm:$0xff] }
 0x6c8   :  { %16250 = vmatprep.subr.mxu0 %v20799_v30  ;;  %16306 = vmatprep.subr.mxu1 %v10341_v54 }
 0x6c9   :  { %16251 = vmatpush3.msra.mxu0 %v20799_v30  ;;  %16307 = vmatpush3.msra.mxu1 %v10341_v54  ;;  %v23196_v54 = vld [vmem:[#allocation64_spill] sm:$0xff] }
 0x6ca   :  { %16194 = vmatmul.mubr.f32.gmra.mxu0 %v20578_v42  ;;  %16252 = vmatprep.subr.mxu0 %v20816_v0  ;;  %v23190_v42 = vld [vmem:[#allocation55_spill] sm:$0xff] }
 0x6cb   :  { %16308 = vmatprep.subr.mxu1 %v10348_v9  ;;  %16253 = vmatpush3.msra.mxu0 %v20816_v0 }
 0x6cc   :  { %16309 = vmatpush3.msra.mxu1 %v10348_v9  ;;  %16254 = vmatprep.subr.mxu0 %v20825_v62  ;;  %v23200_v9 = vld [vmem:[#allocation72_spill] sm:$0xff] }
 0x6cd   :  { %16310 = vmatprep.subr.mxu1 %v10355_v47  ;;  %16255 = vmatpush3.msra.mxu0 %v20825_v62 }
 0x6ce   :  { %16256 = vmatprep.mubr.f32.mxu0 %v23186_v22  ;;  %16311 = vmatpush3.msra.mxu1 %v10355_v47  ;;  %v23201_v47 = vld [vmem:[#allocation52_spill] sm:$0xff] }
 0x6cf   :  { %16312 = vmatprep.mubr.f32.mxu1 %v23187_v49  ;;  %16257 = vmatmul.mubr.f32.vlgmr.msra.gmra.mxu0 %v23188_v40  ;;  %v23204_v22 = vld [vmem:[#allocation80_spill] sm:$0xff] }
 0x6d0   :  { %16313 = vmatmul.mubr.f32.vlgmr.msra.gmra.mxu1 %v23189_v39  ;;  %16336 = vmatprep.subr.mxu0 %v20562_v29  ;;  %v23205_v40 = vld [vmem:[#allocation60_spill] sm:$0xff] }
 0x6d1   :  { %16337 = vmatpush3.msra.mxu0 %v20562_v29  ;;  %16392 = vmatprep.subr.mxu1 %v20384_v24  ;;  %v23194_v29 = vld [vmem:[#allocation61_spill] sm:$0xff] }
 0x6d2   :  { %16338 = vmatprep.subr.mxu0 %v20654_v19  ;;  %16393 = vmatpush3.msra.mxu1 %v20384_v24 }
 0x6d3   :  { %16259 = vmatprep.mubr.f32.mxu0 %v23190_v42  ;;  %16315 = vmatprep.mubr.f32.mxu1 %v23191_v48  ;;  %v23208_v42 = vld [vmem:[#allocation88_spill] sm:$0xff] }
 0x6d4   :  { %16339 = vmatpush3.msra.mxu0 %v20654_v19  ;;  %16394 = vmatprep.subr.mxu1 %v20645_v3  ;;  %v23195_v19 = vld [vmem:[#allocation38_spill] sm:$0xff] }
 0x6d5   :  { %16260 = vmatmul.mubr.f32.gmra.mxu0 %v23192_v51  ;;  %16316 = vmatmul.mubr.f32.gmra.mxu1 %v23193_v28  ;;  %v23209_v51 = vld [vmem:[#allocation68_spill] sm:$0xff] }
 0x6d6   :  { %16340 = vmatprep.subr.mxu0 %v20666_v10  ;;  %16395 = vmatpush3.msra.mxu1 %v20645_v3 }
 0x6d7   :  { %16341 = vmatpush3.msra.mxu0 %v20666_v10  ;;  %16396 = vmatprep.subr.mxu1 %v20656_v14  ;;  %v23198_v10 = vld [vmem:[#allocation69_spill] sm:$0xff] }
 0x6d8   :  { %16342 = vmatprep.subr.mxu0 %v20687_v38  ;;  %16397 = vmatpush3.msra.mxu1 %v20656_v14 }
 0x6d9   :  { %16262 = vmatprep.mubr.f32.mxu0 %v23194_v29  ;;  %16318 = vmatprep.mubr.f32.mxu1 %v23195_v19  ;;  %v23212_v29 = vld [vmem:[#allocation93_spill] sm:$0xff] }
 0x6da   :  { %16343 = vmatpush3.msra.mxu0 %v20687_v38  ;;  %16398 = vmatprep.subr.mxu1 %v20677_v57  ;;  %v23199_v38 = vld [vmem:[#allocation48_spill] sm:$0xff] }
 0x6db   :  { %16263 = vmatmul.mubr.f32.gmra.mxu0 %v23196_v54  ;;  %16319 = vmatmul.mubr.f32.gmra.mxu1 %v23197_v63  ;;  %v23213_v54 = vld [vmem:[#allocation76_spill] sm:$0xff] }
 0x6dc   :  { %16344 = vmatprep.subr.mxu0 %v20702_v61  ;;  %16399 = vmatpush3.msra.mxu1 %v20677_v57 }
 0x6dd   :  { %16345 = vmatpush3.msra.mxu0 %v20702_v61  ;;  %16400 = vmatprep.subr.mxu1 %v20689_v18  ;;  %v23202_v61 = vld [vmem:[#allocation77_spill] sm:$0xff] }
 0x6de   :  { %16346 = vmatprep.subr.mxu0 %v20711_v12  ;;  %16401 = vmatpush3.msra.mxu1 %v20689_v18 }
 0x6df   :  { %16265 = vmatprep.mubr.f32.mxu0 %v23198_v10  ;;  %16321 = vmatprep.mubr.f32.mxu1 %v23199_v38  ;;  %v23216_v10 = vld [vmem:[#allocation95_spill] sm:$0xff] }
 0x6e0   :  { %16347 = vmatpush3.msra.mxu0 %v20711_v12  ;;  %16402 = vmatprep.subr.mxu1 %v20696_v44  ;;  %v23203_v12 = vld [vmem:[#allocation57_spill] sm:$0xff] }
 0x6e1   :  { %16266 = vmatmul.mubr.f32.gmra.mxu0 %v23200_v9  ;;  %16322 = vmatmul.mubr.f32.gmra.mxu1 %v23201_v47  ;;  %v23217_v9 = vld [vmem:[#allocation84_spill] sm:$0xff] }
 0x6e2   :  { %16348 = vmatprep.subr.mxu0 %v20724_v50  ;;  %16403 = vmatpush3.msra.mxu1 %v20696_v44 }
 0x6e3   :  { %16349 = vmatpush3.msra.mxu0 %v20724_v50  ;;  %16404 = vmatprep.subr.mxu1 %v20707_v21  ;;  %v23206_v50 = vld [vmem:[#allocation85_spill] sm:$0xff] }
 0x6e4   :  { %16350 = vmatprep.subr.mxu0 %v20739_v20  ;;  %16405 = vmatpush3.msra.mxu1 %v20707_v21 }
 0x6e5   :  { %16268 = vmatprep.mubr.f32.mxu0 %v23202_v61  ;;  %16324 = vmatprep.mubr.f32.mxu1 %v23203_v12  ;;  %v23220_v61 = vld [vmem:[#allocation34_spill] sm:$0xff] }
 0x6e6   :  { %16351 = vmatpush3.msra.mxu0 %v20739_v20  ;;  %16406 = vmatprep.subr.mxu1 %v20719_v53  ;;  %v23207_v20 = vld [vmem:[#allocation66_spill] sm:$0xff] }
 0x6e7   :  { %16269 = vmatmul.mubr.f32.gmra.mxu0 %v23204_v22  ;;  %16325 = vmatmul.mubr.f32.gmra.mxu1 %v23205_v40  ;;  %v23223_v22 = vld [vmem:[#allocation39_spill] sm:$0xff] }
 0x6e8   :  { %16352 = vmatprep.subr.mxu0 %v20754_v60  ;;  %16407 = vmatpush3.msra.mxu1 %v20719_v53 }
 0x6e9   :  { %16353 = vmatpush3.msra.mxu0 %v20754_v60  ;;  %16408 = vmatprep.subr.mxu1 %v20734_v46  ;;  %v23210_v60 = vld [vmem:[#allocation91_spill] sm:$0xff] }
 0x6ea   :  { %16354 = vmatprep.subr.mxu0 %v20769_v56  ;;  %16409 = vmatpush3.msra.mxu1 %v20734_v46 }
 0x6eb   :  { %16271 = vmatprep.mubr.f32.mxu0 %v23206_v50  ;;  %16327 = vmatprep.mubr.f32.mxu1 %v23207_v20  ;;  %v23224_v50 = vld [vmem:[#allocation42_spill] sm:$0xff] }
 0x6ec   :  { %16355 = vmatpush3.msra.mxu0 %v20769_v56  ;;  %16410 = vmatprep.subr.mxu1 %v20750_v37  ;;  %v23211_v56 = vld [vmem:[#allocation74_spill] sm:$0xff] }
 0x6ed   :  { %16272 = vmatmul.mubr.f32.gmra.mxu0 %v23208_v42  ;;  %16328 = vmatmul.mubr.f32.gmra.mxu1 %v23209_v51  ;;  %v23228_v42 = vld [vmem:[#allocation51_spill] sm:$0xff] }
 0x6ee   :  { %16356 = vmatprep.subr.mxu0 %v20783_v41  ;;  %16411 = vmatpush3.msra.mxu1 %v20750_v37 }
 0x6ef   :  { %16357 = vmatpush3.msra.mxu0 %v20783_v41  ;;  %16412 = vmatprep.subr.mxu1 %v20764_v5  ;;  %v23214_v41 = vld [vmem:[#allocation94_spill] sm:$0xff] }
 0x6f0   :  { %16358 = vmatprep.subr.mxu0 %v20795_v27  ;;  %16413 = vmatpush3.msra.mxu1 %v20764_v5 }
 0x6f1   :  { %16274 = vmatprep.mubr.f32.mxu0 %v23210_v60  ;;  %16330 = vmatprep.mubr.f32.mxu1 %v23211_v56  ;;  %v23242_v60 = vld [vmem:[#allocation79_spill] sm:$0xff] }
 0x6f2   :  { %16359 = vmatpush3.msra.mxu0 %v20795_v27  ;;  %16414 = vmatprep.subr.mxu1 %v20775_v4  ;;  %v23215_v27 = vld [vmem:[#allocation82_spill] sm:$0xff] }
 0x6f3   :  { %16275 = vmatmul.mubr.f32.gmra.mxu0 %v23212_v29  ;;  %16331 = vmatmul.mubr.f32.gmra.mxu1 %v23213_v54  ;;  %v23244_v29 = vld [vmem:[#allocation83_spill] sm:$0xff] }
 0x6f4   :  { %16360 = vmatprep.subr.mxu0 %v20810_v2  ;;  %16415 = vmatpush3.msra.mxu1 %v20775_v4 }
 0x6f5   :  { %16361 = vmatpush3.msra.mxu0 %v20810_v2  ;;  %16416 = vmatprep.subr.mxu1 %v20789_v11  ;;  %v23218_v2 = vld [vmem:[#allocation26_spill] sm:$0xff] }
 0x6f6   :  { %16362 = vmatprep.subr.mxu0 %v20820_v13  ;;  %16417 = vmatpush3.msra.mxu1 %v20789_v11 }
 0x6f7   :  { %16277 = vmatprep.mubr.f32.mxu0 %v23214_v41  ;;  %16333 = vmatprep.mubr.f32.mxu1 %v23215_v27  ;;  %v23245_v41 = vld [vmem:[#allocation86_spill] sm:$0xff] }
 0x6f8   :  { %16363 = vmatpush3.msra.mxu0 %v20820_v13  ;;  %16418 = vmatprep.subr.mxu1 %v20799_v30  ;;  %v23219_v13 = vld [vmem:[#allocation28_spill] sm:$0xff] }
 0x6f9   :  { %16278 = vmatmul.mubr.f32.gmra.mxu0 %v23216_v10  ;;  %16334 = vmatmul.mubr.f32.gmra.mxu1 %v23217_v9 }
 0x6fa   :  { %16364 = vmatprep.subr.mxu0 %v20836_v15  ;;  %16419 = vmatpush3.msra.mxu1 %v20799_v30 }
 0x6fb   :  { %16365 = vmatpush3.msra.mxu0 %v20836_v15  ;;  %16420 = vmatprep.subr.mxu1 %v20816_v0  ;;  %v23221_v15 = vld [vmem:[#allocation35_spill] sm:$0xff] }
 0x6fc   :  { %16366 = vmatprep.subr.mxu0 %v20845_v23  ;;  %16421 = vmatpush3.msra.mxu1 %v20816_v0 }
 0x6fd   :  { %16367 = vmatpush3.msra.mxu0 %v20845_v23  ;;  %16368 = vmatprep.mubr.f32.mxu0 %v23218_v2  ;;  %v23222_v23 = vld [vmem:[#allocation36_spill] sm:$0xff] }
 0x6fe   :  { %16422 = vmatprep.subr.mxu1 %v20825_v62  ;;  %16369 = vmatmul.mubr.f32.vlgmr.msra.gmra.mxu0 %v23219_v13  ;;  %v23246_v13 = vld [vmem:[#allocation87_spill] sm:$0xff] }
 0x6ff   :  { %16423 = vmatpush3.msra.mxu1 %v20825_v62  ;;  %16424 = vmatprep.mubr.f32.mxu1 %v23220_v61 }
 0x700   :  { %16448 = vmatprep.subr.mxu0 %v20593_v31  ;;  %16425 = vmatmul.mubr.f32.vlgmr.msra.gmra.mxu1 %v23221_v15  ;;  %v23248_v15 = vld [vmem:[#allocation90_spill] sm:$0xff] }
 0x701   :  { %16449 = vmatpush3.msra.mxu0 %v20593_v31  ;;  %16504 = vmatprep.subr.mxu1 %v20384_v24  ;;  %v23225_v31 = vld [vmem:[#allocation45_spill] sm:$0xff] }
 0x702   :  { %16450 = vmatprep.subr.mxu0 %v20663_v7  ;;  %16505 = vmatpush3.msra.mxu1 %v20384_v24  ;;  %v23226_v24 = vld [vmem:[#allocation44_spill] sm:$0xff] }
 0x703   :  { %16371 = vmatprep.mubr.f32.mxu0 %v23222_v23  ;;  %16451 = vmatpush3.msra.mxu0 %v20663_v7  ;;  %v23227_v7 = vld [vmem:[#allocation47_spill] sm:$0xff] }
 0x704   :  { %16506 = vmatprep.subr.mxu1 %v20645_v3  ;;  %16372 = vmatmul.mubr.f32.gmra.mxu0 %v23223_v22 }
 0x705   :  { %16427 = vmatprep.mubr.f32.mxu1 %v23224_v50  ;;  %16452 = vmatprep.subr.mxu0 %v20675_v45 }
 0x706   :  { %16507 = vmatpush3.msra.mxu1 %v20645_v3  ;;  %16453 = vmatpush3.msra.mxu0 %v20675_v45  ;;  %v23229_v3 = vld [vmem:[#allocation53_spill] sm:$0xff]  ;;  %v23231_v45 = vld [vmem:[#allocation56_spill] sm:$0xff] }
 0x707   :  { %16428 = vmatmul.mubr.f32.gmra.mxu1 %v23225_v31  ;;  %16508 = vmatprep.subr.mxu1 %v20656_v14 }
 0x708   :  { %16454 = vmatprep.subr.mxu0 %v20699_v34  ;;  %16509 = vmatpush3.msra.mxu1 %v20656_v14  ;;  %v23230_v14 = vld [vmem:[#allocation54_spill] sm:$0xff] }
 0x709   :  { %16374 = vmatprep.mubr.f32.mxu0 %v23226_v24  ;;  %16455 = vmatpush3.msra.mxu0 %v20699_v34  ;;  %v23232_v34 = vld [vmem:[#allocation59_spill] sm:$0xff] }
 0x70a   :  { %16510 = vmatprep.subr.mxu1 %v20677_v57  ;;  %16375 = vmatmul.mubr.f32.gmra.mxu0 %v23227_v7 }
 0x70b   :  { %16430 = vmatprep.mubr.f32.mxu1 %v23228_v42  ;;  %16456 = vmatprep.subr.mxu0 %v20716_v26 }
 0x70c   :  { %16511 = vmatpush3.msra.mxu1 %v20677_v57  ;;  %16457 = vmatpush3.msra.mxu0 %v20716_v26  ;;  %v23233_v57 = vld [vmem:[#allocation62_spill] sm:$0xff]  ;;  %v23235_v26 = vld [vmem:[#allocation65_spill] sm:$0xff] }
 0x70d   :  { %16431 = vmatmul.mubr.f32.gmra.mxu1 %v23229_v3  ;;  %16512 = vmatprep.subr.mxu1 %v20689_v18 }
 0x70e   :  { %16458 = vmatprep.subr.mxu0 %v20729_v43  ;;  %16513 = vmatpush3.msra.mxu1 %v20689_v18  ;;  %v23234_v18 = vld [vmem:[#allocation63_spill] sm:$0xff] }
 0x70f   :  { %16377 = vmatprep.mubr.f32.mxu0 %v23230_v14  ;;  %16459 = vmatpush3.msra.mxu0 %v20729_v43  ;;  %v23236_v43 = vld [vmem:[#allocation67_spill] sm:$0xff] }
 0x710   :  { %16514 = vmatprep.subr.mxu1 %v20696_v44  ;;  %16378 = vmatmul.mubr.f32.gmra.mxu0 %v23231_v45 }
 0x711   :  { %16433 = vmatprep.mubr.f32.mxu1 %v23232_v34  ;;  %16460 = vmatprep.subr.mxu0 %v20744_v17  ;;  %v23251_v34 = vld [vmem:[#allocation20_spill] sm:$0xff] }
 0x712   :  { %16515 = vmatpush3.msra.mxu1 %v20696_v44  ;;  %16461 = vmatpush3.msra.mxu0 %v20744_v17  ;;  %v23237_v44 = vld [vmem:[#allocation70_spill] sm:$0xff]  ;;  %v23239_v17 = vld [vmem:[#allocation73_spill] sm:$0xff] }
 0x713   :  { %16434 = vmatmul.mubr.f32.gmra.mxu1 %v23233_v57  ;;  %16516 = vmatprep.subr.mxu1 %v20707_v21 }
 0x714   :  { %16462 = vmatprep.subr.mxu0 %v20758_v58  ;;  %16517 = vmatpush3.msra.mxu1 %v20707_v21  ;;  %v23238_v21 = vld [vmem:[#allocation71_spill] sm:$0xff] }
 0x715   :  { %16380 = vmatprep.mubr.f32.mxu0 %v23234_v18  ;;  %16463 = vmatpush3.msra.mxu0 %v20758_v58 }
 0x716   :  { %16518 = vmatprep.subr.mxu1 %v20719_v53  ;;  %16381 = vmatmul.mubr.f32.gmra.mxu0 %v23235_v26 }
 0x717   :  { %16436 = vmatprep.mubr.f32.mxu1 %v23236_v43  ;;  %16464 = vmatprep.subr.mxu0 %v20773_v52 }
 0x718   :  { %16519 = vmatpush3.msra.mxu1 %v20719_v53  ;;  %16465 = vmatpush3.msra.mxu0 %v20773_v52  ;;  %v23240_v53 = vld [vmem:[#allocation75_spill] sm:$0xff] }
 0x719   :  { %16437 = vmatmul.mubr.f32.gmra.mxu1 %v23237_v44  ;;  %16520 = vmatprep.subr.mxu1 %v20734_v46 }
 0x71a   :  { %16466 = vmatprep.subr.mxu0 %v20787_v8  ;;  %16521 = vmatpush3.msra.mxu1 %v20734_v46  ;;  %v23241_v46 = vld [vmem:[#allocation78_spill] sm:$0xff] }
 0x71b   :  { %16383 = vmatprep.mubr.f32.mxu0 %v23238_v21  ;;  %16467 = vmatpush3.msra.mxu0 %v20787_v8 }
 0x71c   :  { %16522 = vmatprep.subr.mxu1 %v20750_v37  ;;  %16384 = vmatmul.mubr.f32.gmra.mxu0 %v23239_v17  ;;  %v16090_v58 = vpop.f32.mrf.mxu1 }
 0x71d   :  { %16439 = vmatprep.mubr.f32.mxu1 %v23240_v53  ;;  %16468 = vmatprep.subr.mxu0 %v20803_v6 }
 0x71e   :  { %16523 = vmatpush3.msra.mxu1 %v20750_v37  ;;  %16469 = vmatpush3.msra.mxu0 %v20803_v6  ;;  %v21041_v52 = vpop.f32.mrf.mxu1  ;;  %v23243_v37 = vld [vmem:[#allocation81_spill] sm:$0xff] }
 0x71f   :  { %16440 = vmatmul.mubr.f32.gmra.mxu1 %v23241_v46  ;;  %16524 = vmatprep.subr.mxu1 %v20764_v5 }
 0x720   :  { %16470 = vmatprep.subr.mxu0 %v20814_v33  ;;  %16525 = vmatpush3.msra.mxu1 %v20764_v5  ;;  %v16093_v8 = vpop.f32.mrf.mxu1 }
 0x721   :  { %16386 = vmatprep.mubr.f32.mxu0 %v23242_v60  ;;  %16471 = vmatpush3.msra.mxu0 %v20814_v33 }
 0x722   :  { %16526 = vmatprep.subr.mxu1 %v20775_v4  ;;  %16387 = vmatmul.mubr.f32.gmra.mxu0 %v23243_v37  ;;  %v21051_v6 = vpop.f32.mrf.mxu1 }
 0x723   :  { %16442 = vmatprep.mubr.f32.mxu1 %v23244_v29  ;;  %16472 = vmatprep.subr.mxu0 %v20830_v1 }
 0x724   :  { %16527 = vmatpush3.msra.mxu1 %v20775_v4  ;;  %16473 = vmatpush3.msra.mxu0 %v20830_v1  ;;  %v16096_v5 = vpop.f32.mrf.mxu1  ;;  %v23247_v1 = vld [vmem:[#allocation89_spill] sm:$0xff] }
 0x725   :  { %16443 = vmatmul.mubr.f32.gmra.mxu1 %v23245_v41  ;;  %16528 = vmatprep.subr.mxu1 %v20789_v11  ;;  %v16062_v33 = vpop.f32.mrf.mxu0 }
 0x726   :  { %16474 = vmatprep.subr.mxu0 %v20841_v16  ;;  %16529 = vmatpush3.msra.mxu1 %v20789_v11  ;;  %v21061_v10 = vadd.f32 %v16090_v58, %v16062_v33  ;;  %v21063_v2 = vpop.f32.mrf.mxu1 }
 0x727   :  { %16389 = vmatprep.mubr.f32.mxu0 %v23246_v13  ;;  %16475 = vmatpush3.msra.mxu0 %v20841_v16  ;;  %v21067_v4 = vpop.f32.mrf.mxu0  ;;  %v23249_v16 = vld [vmem:[#allocation92_spill] sm:$0xff] }
 0x728   :  { %16530 = vmatprep.subr.mxu1 %v20799_v30  ;;  %16390 = vmatmul.mubr.f32.gmra.mxu0 %v23247_v1  ;;  %v16099_v61 = vpop.f32.mrf.mxu1 }
 0x729   :  { %16445 = vmatprep.mubr.f32.mxu1 %v23248_v15  ;;  %16476 = vmatprep.subr.mxu0 %v20852_v36  ;;  %v16065_v11 = vpop.f32.mrf.mxu0 }
 0x72a   :  { %16531 = vmatpush3.msra.mxu1 %v20799_v30  ;;  %16477 = vmatpush3.msra.mxu0 %v20852_v36  ;;  %v21075_v23 = vadd.f32 %v16093_v8, %v16065_v11  ;;  %v21077_v22 = vpop.f32.mrf.mxu1 }
 0x72b   :  { %16446 = vmatmul.mubr.f32.gmra.mxu1 %v23249_v16  ;;  %16532 = vmatprep.subr.mxu1 %v20816_v0  ;;  %v21081_v50 = vpop.f32.mrf.mxu0 }
 0x72c   :  { %16478 = vmatprep.subr.mxu0 %v20860_v25  ;;  %16533 = vmatpush3.msra.mxu1 %v20816_v0  ;;  %v16102_v31 = vpop.f32.mrf.mxu1 }
 0x72d   :  { %16479 = vmatpush3.msra.mxu0 %v20860_v25  ;;  %16480 = vmatprep.mubr.f32.mxu0 %v23187_v49  ;;  %v16068_v36 = vpop.f32.mrf.mxu0 }
 0x72e   :  { %16534 = vmatprep.subr.mxu1 %v20825_v62  ;;  %16481 = vmatmul.mubr.f32.vlgmr.msra.gmra.mxu0 %v23189_v39  ;;  %v21089_v30 = vadd.f32 %v16096_v5, %v16068_v36  ;;  %v21091_v24 = vpop.f32.mrf.mxu1 }
 0x72f   :  { %16535 = vmatpush3.msra.mxu1 %v20825_v62  ;;  %16536 = vmatprep.mubr.f32.mxu1 %v23187_v49  ;;  %v21095_v7 = vpop.f32.mrf.mxu0  ;;  %v23250_v62 = vld [vmem:[#allocation33_spill] sm:$0xff] }
 0x730   :  { %16537 = vmatmul.mubr.f32.vlgmr.msra.gmra.mxu1 %v23189_v39  ;;  %16483 = vmatprep.mubr.f32.mxu0 %v23191_v48  ;;  %v16105_v0 = vpop.f32.mrf.mxu1 }
 0x731   :  { %16539 = vmatprep.mubr.f32.mxu1 %v23191_v48  ;;  %v16071_v25 = vpop.f32.mrf.mxu0  ;;  %16560 = vmatprep.subr.mxu0 %v23180_v55 }
 0x732   :  { %16484 = vmatmul.mubr.f32.gmra.mxu0 %v23193_v28  ;;  %v21102_v42 = vadd.f32 %v16099_v61, %v16071_v25  ;;  %v21104_v3 = vpop.f32.mrf.mxu1  ;;  %16588 = vmatprep.subr.mxu1 %v23250_v62 }
 0x733   :  { %16486 = vmatprep.mubr.f32.mxu0 %v23195_v19  ;;  %v21108_v49 = vpop.f32.mrf.mxu0  ;;  %16561 = vmatpush3.msra.mxu0 %v23180_v55 }
 0x734   :  { %16540 = vmatmul.mubr.f32.gmra.mxu1 %v23193_v28  ;;  %v16108_v39 = vpop.f32.mrf.mxu1  ;;  %16562 = vmatprep.subr.mxu0 %v23181_v59 }
 0x735   :  { %16542 = vmatprep.mubr.f32.mxu1 %v23195_v19  ;;  %v16074_v48 = vpop.f32.mrf.mxu0  ;;  %16589 = vmatpush3.msra.mxu1 %v23250_v62 }
 0x736   :  { %16487 = vmatmul.mubr.f32.gmra.mxu0 %v23197_v63  ;;  %v21116_v14 = vadd.f32 %v16102_v31, %v16074_v48  ;;  %v21118_v45 = vpop.f32.mrf.mxu1  ;;  %16590 = vmatprep.subr.mxu1 %v23251_v34 }
 0x737   :  { %16489 = vmatprep.mubr.f32.mxu0 %v23199_v38  ;;  %v21122_v57 = vpop.f32.mrf.mxu0  ;;  %16563 = vmatpush3.msra.mxu0 %v23181_v59 }
 0x738   :  { %16543 = vmatmul.mubr.f32.gmra.mxu1 %v23197_v63  ;;  %v16111_v28 = vpop.f32.mrf.mxu1  ;;  %16616 = vmatprep.subr.mxu0 %v23182_v35 }
 0x739   :  { %16545 = vmatprep.mubr.f32.mxu1 %v23199_v38  ;;  %v16077_v19 = vpop.f32.mrf.mxu0  ;;  %16591 = vmatpush3.msra.mxu1 %v23251_v34 }
 0x73a   :  { %16490 = vmatmul.mubr.f32.gmra.mxu0 %v23201_v47  ;;  %v21130_v18 = vadd.f32 %v16105_v0, %v16077_v19  ;;  %v21132_v26 = vpop.f32.mrf.mxu1  ;;  %16644 = vmatprep.subr.mxu1 %v23180_v55 }
 0x73b   :  { %16492 = vmatprep.mubr.f32.mxu0 %v23203_v12  ;;  %v21136_v43 = vpop.f32.mrf.mxu0 }
 0x73c   :  { %16546 = vmatmul.mubr.f32.gmra.mxu1 %v23201_v47  ;;  %v16146_v63 = vpop.f32.mrf.mxu1 }
 0x73d   :  { %16548 = vmatprep.mubr.f32.mxu1 %v23203_v12  ;;  %v16080_v38 = vpop.f32.mrf.mxu0 }
 0x73e   :  { %16493 = vmatmul.mubr.f32.gmra.mxu0 %v23205_v40  ;;  %v9251_v44 = vadd.f32 %v16108_v39, %v16080_v38  ;;  %v21141_v21 = vpop.f32.mrf.mxu1 }
 0x73f   :  { %16495 = vmatprep.mubr.f32.mxu0 %v23207_v20  ;;  %v21144_v17 = vpop.f32.mrf.mxu0 }
 0x740   :  { %16549 = vmatmul.mubr.f32.gmra.mxu1 %v23205_v40  ;;  %v16149_v58 = vpop.f32.mrf.mxu1 }
 0x741   :  { %16551 = vmatprep.mubr.f32.mxu1 %v23207_v20  ;;  %v16083_v53 = vpop.f32.mrf.mxu0 }
 0x742   :  { %16496 = vmatmul.mubr.f32.gmra.mxu0 %v23209_v51  ;;  %v9263_v47 = vadd.f32 %v16111_v28, %v16083_v53  ;;  %v21149_v12 = vpop.f32.mrf.mxu1 }
 0x743   :  { %16498 = vmatprep.mubr.f32.mxu0 %v23211_v56  ;;  %v21152_v46 = vpop.f32.mrf.mxu0 }
 0x744   :  { %16552 = vmatmul.mubr.f32.gmra.mxu1 %v23209_v51  ;;  %v16152_v8 = vpop.f32.mrf.mxu1 }
 0x745   :  { %16554 = vmatprep.mubr.f32.mxu1 %v23211_v56  ;;  %v16118_v60 = vpop.f32.mrf.mxu0 }
 0x746   :  { %16499 = vmatmul.mubr.f32.gmra.mxu0 %v23213_v54  ;;  %v9346_v40 = vadd.f32 %v16118_v60, %v21061_v10  ;;  %v21158_v20 = vpop.f32.mrf.mxu1 }
 0x747   :  { %16501 = vmatprep.mubr.f32.mxu0 %v23215_v27  ;;  %v9338_v37 = vpop.f32.mrf.mxu0 }
 0x748   :  { %16555 = vmatmul.mubr.f32.gmra.mxu1 %v23213_v54  ;;  %v16155_v29 = vpop.f32.mrf.mxu1  ;;  %v9527_v5 = vadd.f32 %v16146_v63, %v9346_v40  ;;  %v9173_v40 = vadd.f32 %v21041_v52, %v21067_v4 }
 0x749   :  { %16557 = vmatprep.mubr.f32.mxu1 %v23215_v27  ;;  %v16121_v51 = vpop.f32.mrf.mxu0 }
 0x74a   :  { %16502 = vmatmul.mubr.f32.gmra.mxu0 %v23217_v9  ;;  %v9360_v56 = vadd.f32 %v16121_v51, %v21075_v23  ;;  %v21165_v41 = vpop.f32.mrf.mxu1 }
 0x74b   :  { %v9352_v33 = vpop.f32.mrf.mxu0 }
 0x74c   :  { %16558 = vmatmul.mubr.f32.gmra.mxu1 %v23217_v9  ;;  %v16158_v10 = vpop.f32.mrf.mxu1  ;;  %v9543_v13 = vadd.f32 %v16149_v58, %v9360_v56 }
 0x74d   :  { %v16124_v1 = vpop.f32.mrf.mxu0 }
 0x74e   :  { %v9374_v61 = vadd.f32 %v16124_v1, %v21089_v30  ;;  %v21169_v54 = vpop.f32.mrf.mxu1 }
 0x74f   :  { %v9366_v15 = vpop.f32.mrf.mxu0 }
 0x750   :  { %v16161_v11 = vpop.f32.mrf.mxu1  ;;  %v9559_v27 = vadd.f32 %v16152_v8, %v9374_v61 }
 0x751   :  { %v16127_v16 = vpop.f32.mrf.mxu0 }
 0x752   :  { %v9388_v31 = vadd.f32 %v16127_v16, %v21102_v42  ;;  %v21172_v36 = vpop.f32.mrf.mxu1 }
 0x753   :  { %v9380_v23 = vpop.f32.mrf.mxu0 }
 0x754   :  { %v16164_v0 = vpop.f32.mrf.mxu1  ;;  %v21174_v25 = vadd.f32 %v16155_v29, %v9388_v31 }
 0x755   :  { %v16130_v9 = vpop.f32.mrf.mxu0 }
 0x756   :  { %v9402_v62 = vadd.f32 %v16130_v9, %v21116_v14  ;;  %v21177_v39 = vpop.f32.mrf.mxu1 }
 0x757   :  { %v21179_v30 = vpop.f32.mrf.mxu0 }
 0x758   :  { %v16167_v48 = vpop.f32.mrf.mxu1  ;;  %v21181_v34 = vadd.f32 %v16158_v10, %v9402_v62 }
 0x759   :  { %v16133_v28 = vpop.f32.mrf.mxu0 }
 0x75a   :  { %v9416_v19 = vadd.f32 %v16133_v28, %v21130_v18  ;;  %v21184_v42 = vpop.f32.mrf.mxu1  ;;  %v9339_v18 = vadd.f32 %v9338_v37, %v9173_v40 }
 0x75b   :  { %v21186_v63 = vpop.f32.mrf.mxu0 }
 0x75c   :  { %v16202_v38 = vpop.f32.mrf.mxu1  ;;  %v21188_v58 = vadd.f32 %v16161_v11, %v9416_v19  ;;  %v9185_v11 = vadd.f32 %v21051_v6, %v21081_v50  ;;  %v9519_v52 = vadd.f32 %v21141_v21, %v9339_v18  ;;  %v23255_v21 = vld [vmem:[#allocation123_spill] sm:$0xff] }
 0x75d   :  { %v16136_v53 = vpop.f32.mrf.mxu0 }
 0x75e   :  { %v9430_v8 = vadd.f32 %v16136_v53, %v9251_v44  ;;  %v9878_v14 = vpop.f32.mrf.mxu1  ;;  %v9353_v9 = vadd.f32 %v9352_v33, %v9185_v11  ;;  %v23252_v53 = vld [vmem:[#allocation179_spill] sm:$0xff] }
 0x75f   :  { %v21190_v60 = vpop.f32.mrf.mxu0 }
 0x760   :  { %v16205_v29 = vpop.f32.mrf.mxu1  ;;  %v21194_v51 = vadd.f32 %v16164_v0, %v9430_v8 }
 0x761   :  { %v16139_v56 = vpop.f32.mrf.mxu0 }
 0x762   :  { %v9444_v10 = vadd.f32 %v16139_v56, %v9263_v47  ;;  %v9890_v1 = vpop.f32.mrf.mxu1  ;;  %v9197_v47 = vadd.f32 %v21063_v2, %v21095_v7  ;;  %v23254_v56 = vld [vmem:[#allocation251_spill] sm:$0xff]  ;;  %v9209_v2 = vadd.f32 %v21077_v22, %v21108_v49 }
 0x763   :  { %v21196_v61 = vpop.f32.mrf.mxu0  ;;  %v23256_v18 = vsub.f32 %v23254_v56, %v23255_v21  ;;  %v23264_v49 = vld [vmem:[#allocation187_spill] sm:$0xff]  ;;  %v23265_v56 = vld [vmem:[#allocation188_spill] sm:$0xff] }
 0x764   :  { %v16208_v16 = vpop.f32.mrf.mxu1  ;;  %v21200_v44 = vadd.f32 %v16167_v48, %v9444_v10  ;;  %v9535_v48 = vadd.f32 %v21149_v12, %v9353_v9  ;;  %v9367_v33 = vadd.f32 %v9366_v15, %v9197_v47  ;;  %v23262_v47 = vld [vmem:[#allocation125_spill] sm:$0xff] }
 0x765   :  { %v16174_v31 = vpop.f32.mrf.mxu0 }
 0x766   :  { %v9722_v62 = vadd.f32 %v16174_v31, %v9527_v5  ;;  %v9902_v4 = vpop.f32.mrf.mxu1  ;;  %v23257_v31 = vld [vmem:[#allocation182_spill] sm:$0xff]  ;;  %v9551_v9 = vadd.f32 %v21158_v20, %v9367_v33  ;;  %v9221_v20 = vadd.f32 %v21091_v24, %v21122_v57  ;;  %v23272_v24 = vld [vmem:[#allocation193_spill] sm:$0xff] }
 0x767   :  { %v9715_v0 = vpop.f32.mrf.mxu0 }
 0x768   :  { %v9885_v28 = vadd.f32 %v16202_v38, %v9722_v62  ;;  %v9716_v19 = vadd.f32 %v9715_v0, %v9519_v52  ;;  %v16211_v50 = vpop.f32.mrf.mxu1  ;;  %v12555_v62 = vadd.f32 0.0001, %v23257_v31 }
 0x769   :  { %v16177_v37 = vpop.f32.mrf.mxu0 }
 0x76a   :  { %v9973_v8 = vsub.f32 %v9885_v28, %v23252_v53  ;;  %v21206_v40 = vadd.f32 %v9878_v14, %v9716_v19  ;;  %v9734_v6 = vadd.f32 %v16177_v37, %v9543_v13  ;;  %v23258_v14 = vld [vmem:[#allocation184_spill] sm:$0xff]  ;;  %v9914_v0 = vpop.f32.mrf.mxu1  ;;  %v9381_v28 = vadd.f32 %v9380_v23, %v9209_v2 }
 0x76b   :  { %v9727_v5 = vpop.f32.mrf.mxu0  ;;  %v9395_v2 = vadd.f32 %v21179_v30, %v9221_v20 }
 0x76c   :  { %23253 = vst [vmem:[#allocation271_spill] sm:$0xff] %v21206_v40  ;;  %v12571_v10 = vadd.f32 %v9973_v8, %v23256_v18  ;;  %v9897_v38 = vadd.f32 %v16205_v29, %v9734_v6  ;;  %v9728_v11 = vadd.f32 %v9727_v5, %v9535_v48  ;;  %v23261_v29 = vld [vmem:[#allocation253_spill] sm:$0xff]  ;;  %v12557_v48 = vadd.f32 0.0001, %v23264_v49 }
 0x76d   :  { %v23263_v37 = vsub.f32 %v23261_v29, %v23262_v47  ;;  %v23275_v29 = vld [vmem:[#allocation259_spill] sm:$0xff] }
 0x76e   :  { %v12587_v7 = vadd.f32 0.0009, %v12571_v10  ;;  %v9975_v52 = vsub.f32 %v9897_v38, %v23258_v14  ;;  %v21216_v13 = vadd.f32 %v9890_v1, %v9728_v11  ;;  %v16180_v12 = vpop.f32.mrf.mxu0  ;;  %v16214_v1 = vpop.f32.mrf.mxu1  ;;  %v9567_v10 = vadd.f32 %v21165_v41, %v9381_v28  ;;  %v23269_v38 = vld [vmem:[#allocation128_spill] sm:$0xff]  ;;  %v23276_v47 = vld [vmem:[#allocation131_spill] sm:$0xff] }
 0x76f   :  { %v9746_v15 = vadd.f32 %v16180_v12, %v9559_v27  ;;  %v9233_v28 = vadd.f32 %v21104_v3, %v21136_v43  ;;  %v23280_v43 = vld [vmem:[#allocation198_spill] sm:$0xff] }
 0x770   :  { %23259 = vst [vmem:[#allocation272_spill] sm:$0xff] %v21216_v13  ;;  %v21219_v19 = vmul.f32 %v12587_v7, %v12555_v62  ;;  %v12573_v53 = vadd.f32 %v9975_v52, %v23263_v37  ;;  %v9739_v8 = vpop.f32.mrf.mxu0  ;;  %v9926_v7 = vpop.f32.mrf.mxu1  ;;  %v23271_v52 = vld [vmem:[#allocation191_spill] sm:$0xff]  ;;  %v23277_v37 = vsub.f32 %v23275_v29, %v23276_v47  ;;  %v23290_v29 = vld [vmem:[#allocation136_spill] sm:$0xff] }
 0x771   :  { %v9909_v6 = vadd.f32 %v16208_v16, %v9746_v15  ;;  %v9740_v22 = vadd.f32 %v9739_v8, %v9551_v9  ;;  %v23268_v16 = vld [vmem:[#allocation256_spill] sm:$0xff]  ;;  %v12559_v12 = vadd.f32 0.0001, %v23271_v52  ;;  %v9583_v8 = vadd.f32 %v21169_v54, %v9395_v2  ;;  %v23282_v54 = vld [vmem:[#allocation261_spill] sm:$0xff] }
 0x772   :  { %23260 = vst [vmem:[#allocation273_spill] sm:$0xff] %v21219_v19  ;;  %v12589_v5 = vadd.f32 0.0009, %v12573_v53  ;;  %v23270_v11 = vsub.f32 %v23268_v16, %v23269_v38 }
 0x773   :  { %v9977_v21 = vsub.f32 %v9909_v6, %v23265_v56  ;;  %v21226_v18 = vadd.f32 %v9902_v4, %v9740_v22  ;;  %v16183_v27 = vpop.f32.mrf.mxu0  ;;  %v23278_v6 = vld [vmem:[#allocation195_spill] sm:$0xff] }
 0x774   :  { %v21230_v23 = vmul.f32 %v12589_v5, %v12557_v48  ;;  %v9758_v33 = vadd.f32 %v16183_v27, %v21174_v25  ;;  %v16217_v53 = vpop.f32.mrf.mxu1  ;;  %v12561_v22 = vadd.f32 0.0001, %v23278_v6 }
 0x775   :  { %23266 = vst [vmem:[#allocation274_spill] sm:$0xff] %v21226_v18  ;;  %v12575_v31 = vadd.f32 %v9977_v21, %v23270_v11  ;;  %v9751_v62 = vpop.f32.mrf.mxu0 }
 0x776   :  { %23267 = vst [vmem:[#allocation275_spill] sm:$0xff] %v21230_v23  ;;  %v9921_v4 = vadd.f32 %v16211_v50, %v9758_v33  ;;  %v9752_v14 = vadd.f32 %v9751_v62, %v9567_v10  ;;  %v9938_v3 = vpop.f32.mrf.mxu1  ;;  %v23283_v10 = vld [vmem:[#allocation133_spill] sm:$0xff] }
 0x777   :  { %v12591_v15 = vadd.f32 0.0009, %v12575_v31  ;;  %v23284_v16 = vsub.f32 %v23282_v54, %v23283_v10  ;;  %v23285_v31 = vld [vmem:[#allocation200_spill] sm:$0xff]  ;;  %v23299_v54 = vld [vmem:[#allocation209_spill] sm:$0xff] }
 0x778   :  { %v9979_v57 = vsub.f32 %v9921_v4, %v23272_v24  ;;  %v21240_v9 = vadd.f32 %v9914_v0, %v9752_v14  ;;  %v9409_v0 = vadd.f32 %v21186_v63, %v9233_v28  ;;  %v12563_v62 = vadd.f32 0.0001, %v23285_v31  ;;  %v23289_v28 = vld [vmem:[#allocation264_spill] sm:$0xff] }
 0x779   :  { %v21242_v25 = vmul.f32 %v12591_v15, %v12559_v12  ;;  %v16186_v41 = vpop.f32.mrf.mxu0  ;;  %v23288_v15 = vld [vmem:[#allocation202_spill] sm:$0xff]  ;;  %v23291_v47 = vsub.f32 %v23289_v28, %v23290_v29  ;;  %v12567_v10 = vadd.f32 0.0001, %v23299_v54 }
 0x77a   :  { %23273 = vst [vmem:[#allocation276_spill] sm:$0xff] %v21240_v9  ;;  %v12577_v30 = vadd.f32 %v9979_v57, %v23277_v37  ;;  %v9770_v50 = vadd.f32 %v16186_v41, %v21181_v34  ;;  %v9245_v34 = vadd.f32 %v21118_v45, %v21144_v17  ;;  %v9599_v63 = vadd.f32 %v21172_v36, %v9409_v0 }
 0x77b   :  { %23274 = vst [vmem:[#allocation278_spill] sm:$0xff] %v21242_v25  ;;  %v9763_v49 = vpop.f32.mrf.mxu0  ;;  %v9257_v17 = vadd.f32 %v21132_v26, %v21152_v46 }
 0x77c   :  { %v12593_v48 = vadd.f32 0.0009, %v12577_v30  ;;  %v9933_v5 = vadd.f32 %v16214_v1, %v9770_v50  ;;  %v9764_v56 = vadd.f32 %v9763_v49, %v9583_v8  ;;  %v9423_v2 = vadd.f32 %v21190_v60, %v9245_v34  ;;  %v23292_v8 = vld [vmem:[#allocation205_spill] sm:$0xff] }
 0x77d   :  { %v9437_v60 = vadd.f32 %v21196_v61, %v9257_v17  ;;  %v12565_v6 = vadd.f32 0.0001, %v23292_v8  ;;  %v23306_v17 = vld [vmem:[#allocation214_spill] sm:$0xff] }
 0x77e   :  { %v21253_v21 = vmul.f32 %v12593_v48, %v12561_v22  ;;  %v9981_v27 = vsub.f32 %v9933_v5, %v23280_v43  ;;  %v21256_v20 = vadd.f32 %v9926_v7, %v9764_v56  ;;  %v16220_v7 = vpop.f32.mrf.mxu1  ;;  %v9615_v41 = vadd.f32 %v21177_v39, %v9423_v2  ;;  %v23293_v22 = vld [vmem:[#allocation207_spill] sm:$0xff]  ;;  %v23304_v2 = vld [vmem:[#allocation141_spill] sm:$0xff] }
 0x77f   :  { %v16189_v33 = vpop.f32.mrf.mxu0  ;;  %v9631_v61 = vadd.f32 %v21184_v42, %v9437_v60  ;;  %v23296_v5 = vld [vmem:[#allocation267_spill] sm:$0xff] }
 0x780   :  { %23279 = vst [vmem:[#allocation277_spill] sm:$0xff] %v21253_v21  ;;  %23281 = vst [vmem:[#allocation46_spill] sm:$0xff] %v21256_v20  ;;  %v12579_v38 = vadd.f32 %v9981_v27, %v23284_v16  ;;  %v9782_v1 = vadd.f32 %v16189_v33, %v21188_v58  ;;  %v9950_v58 = vpop.f32.mrf.mxu1  ;;  %v23297_v56 = vld [vmem:[#allocation139_spill] sm:$0xff] }
 0x781   :  { %v9775_v11 = vpop.f32.mrf.mxu0 }
 0x782   :  { %v12595_v4 = vadd.f32 0.0009, %v12579_v38  ;;  %v9776_v14 = vadd.f32 %v9775_v11, %v9599_v63  ;;  %v9945_v52 = vadd.f32 %v16217_v53, %v9782_v1  ;;  %v16223_v46 = vpop.f32.mrf.mxu1  ;;  %v23300_v63 = vld [vmem:[#allocation212_spill] sm:$0xff] }
 0x784   :  { %v21267_v12 = vmul.f32 %v12595_v4, %v12563_v62  ;;  %v21269_v45 = vadd.f32 %v9938_v3, %v9776_v14  ;;  %v9983_v36 = vsub.f32 %v9945_v52, %v23288_v15  ;;  %v23298_v3 = vsub.f32 %v23296_v5, %v23297_v56  ;;  %v9962_v16 = vpop.f32.mrf.mxu1  ;;  %v23303_v62 = vld [vmem:[#allocation269_spill] sm:$0xff] }
 0x785   :  { %v16192_v24 = vpop.f32.mrf.mxu0  ;;  %v23305_v4 = vsub.f32 %v23303_v62, %v23304_v2  ;;  %v12569_v15 = vadd.f32 0.0001, %v23306_v17 }
 0x786   :  { %23286 = vst [vmem:[#allocation22_spill] sm:$0xff] %v21267_v12  ;;  %23287 = vst [vmem:[#allocation49_spill] sm:$0xff] %v21269_v45  ;;  %v9794_v57 = vadd.f32 %v16192_v24, %v21194_v51  ;;  %v12581_v37 = vadd.f32 %v9983_v36, %v23291_v47 }
 0x787   :  { %v9787_v30 = vpop.f32.mrf.mxu0 }
 0x788   :  { %v9957_v53 = vadd.f32 %v16220_v7, %v9794_v57  ;;  %v9788_v50 = vadd.f32 %v9787_v30, %v9615_v41  ;;  %v12597_v26 = vadd.f32 0.0009, %v12581_v37 }
 0x78a   :  { %v9985_v49 = vsub.f32 %v9957_v53, %v23293_v22  ;;  %v21282_v0 = vadd.f32 %v9950_v58, %v9788_v50  ;;  %v16195_v51 = vpop.f32.mrf.mxu0  ;;  %v21284_v48 = vmul.f32 %v12597_v26, %v12565_v6 }
 0x78b   :  { %v9806_v39 = vadd.f32 %v16195_v51, %v21200_v44 }
 0x78c   :  { %23294 = vst [vmem:[#allocation24_spill] sm:$0xff] %v21282_v0  ;;  %23295 = vst [vmem:[#allocation55_spill] sm:$0xff] %v21284_v48  ;;  %v12583_v43 = vadd.f32 %v9985_v49, %v23298_v3  ;;  %v9799_v27 = vpop.f32.mrf.mxu0 }
 0x78d   :  { %v9969_v33 = vadd.f32 %v16223_v46, %v9806_v39  ;;  %v9800_v34 = vadd.f32 %v9799_v27, %v9631_v61 }
 0x78e   :  { %v12599_v38 = vadd.f32 0.0009, %v12583_v43 }
 0x78f   :  { %v9987_v1 = vsub.f32 %v9969_v33, %v23300_v63  ;;  %v21293_v11 = vadd.f32 %v9962_v16, %v9800_v34  ;;  %v21295_v31 = vpop.f32.mrf.mxu0 }
 0x790   :  { %v21297_v44 = vmul.f32 %v12599_v38, %v12567_v10  ;;  %v16314_v42 = vpop.f32.mrf.mxu1 }
 0x791   :  { %23301 = vst [vmem:[#allocation29_spill] sm:$0xff] %v21293_v11  ;;  %v12585_v7 = vadd.f32 %v9987_v1, %v23305_v4  ;;  %v21302_v14 = vpop.f32.mrf.mxu0  ;;  %v10399_v40 = vadd.f32 %v16314_v42, %v21295_v31 }
 0x792   :  { %23302 = vst [vmem:[#allocation58_spill] sm:$0xff] %v21297_v44  ;;  %v10392_v52 = vpop.f32.mrf.mxu1 }
 0x793   :  { %v12601_v36 = vadd.f32 0.0009, %v12585_v7  ;;  %v10393_v59 = vadd.f32 %v10392_v52, %v21302_v14 }
 0x795   :  { %v21305_v24 = vmul.f32 %v12601_v36, %v12569_v15  ;;  %v16261_v58 = vpop.f32.mrf.mxu0  ;;  %v16317_v57 = vpop.f32.mrf.mxu1 }
 0x796   :  { %v10411_v55 = vadd.f32 %v16317_v57, %v16261_v58 }
 0x797   :  { %23307 = vst [vmem:[#allocation32_spill] sm:$0xff] %v21305_v24  ;;  %v10111_v41 = vpop.f32.mrf.mxu0  ;;  %v10404_v60 = vpop.f32.mrf.mxu1 }
 0x79b   :  { %v16264_v28 = vpop.f32.mrf.mxu0  ;;  %v16320_v29 = vpop.f32.mrf.mxu1 }
 0x79c   :  { %v10423_v31 = vadd.f32 %v16320_v29, %v16264_v28 }
 0x79d   :  { %v10131_v47 = vpop.f32.mrf.mxu0  ;;  %v10416_v37 = vpop.f32.mrf.mxu1 }
 0x79e   :  { %v10417_v42 = vadd.f32 %v10416_v37, %v10131_v47 }
 0x7a1   :  { %v16267_v30 = vpop.f32.mrf.mxu0  ;;  %v16323_v53 = vpop.f32.mrf.mxu1 }
 0x7a3   :  { %v10151_v50 = vpop.f32.mrf.mxu0  ;;  %v10428_v8 = vpop.f32.mrf.mxu1 }
 0x7a4   :  { %v10429_v52 = vadd.f32 %v10428_v8, %v10151_v50 }
 0x7a7   :  { %v16270_v6 = vpop.f32.mrf.mxu0  ;;  %v16326_v26 = vpop.f32.mrf.mxu1 }
 0x7a8   :  { %v10447_v57 = vadd.f32 %v16326_v26, %v16270_v6 }
 0x7a9   :  { %v10171_v46 = vpop.f32.mrf.mxu0  ;;  %v10440_v22 = vpop.f32.mrf.mxu1 }
 0x7aa   :  { %v10441_v58 = vadd.f32 %v10440_v22, %v10171_v46 }
 0x7ad   :  { %v16273_v49 = vpop.f32.mrf.mxu0  ;;  %v16329_v51 = vpop.f32.mrf.mxu1 }
 0x7af   :  { %v10191_v39 = vpop.f32.mrf.mxu0  ;;  %v10452_v61 = vpop.f32.mrf.mxu1 }
 0x7b3   :  { %v16276_v5 = vpop.f32.mrf.mxu0  ;;  %v16332_v56 = vpop.f32.mrf.mxu1 }
 0x7b4   :  { %v10471_v37 = vadd.f32 %v16332_v56, %v16276_v5 }
 0x7b5   :  { %v10211_v3 = vpop.f32.mrf.mxu0  ;;  %v10464_v43 = vpop.f32.mrf.mxu1 }
 0x7b6   :  { %v10465_v50 = vadd.f32 %v10464_v43, %v10211_v3 }
 0x7b9   :  { %v16279_v27 = vpop.f32.mrf.mxu0  ;;  %v16335_v33 = vpop.f32.mrf.mxu1 }
 0x7ba   :  { %v10483_v6 = vadd.f32 %v16335_v33, %v16279_v27 }
 0x7bb   :  { %v10231_v34 = vpop.f32.mrf.mxu0  ;;  %v10476_v54 = vpop.f32.mrf.mxu1 }
 0x7be   :  { %v16370_v10 = vpop.f32.mrf.mxu0 }
 0x7c0   :  { %v16426_v16 = vpop.f32.mrf.mxu1  ;;  %v10586_v38 = vpop.f32.mrf.mxu0 }
 0x7c2   :  { %v10780_v63 = vpop.f32.mrf.mxu1 }
 0x7c4   :  { %v16373_v1 = vpop.f32.mrf.mxu0 }
 0x7c5   :  { %v10608_v28 = vadd.f32 %v16373_v1, %v10411_v55 }
 0x7c6   :  { %v10600_v62 = vpop.f32.mrf.mxu0 }
 0x7c7   :  { %v16429_v2 = vpop.f32.mrf.mxu1 }
 0x7c9   :  { %v10796_v4 = vpop.f32.mrf.mxu1 }
 0x7ca   :  { %v16376_v7 = vpop.f32.mrf.mxu0 }
 0x7cc   :  { %v10614_v17 = vpop.f32.mrf.mxu0 }
 0x7cd   :  { %v16432_v15 = vpop.f32.mrf.mxu1 }
 0x7cf   :  { %v10812_v36 = vpop.f32.mrf.mxu1 }
 0x7d0   :  { %v16379_v24 = vpop.f32.mrf.mxu0 }
 0x7d2   :  { %v10628_v44 = vpop.f32.mrf.mxu0 }
 0x7d3   :  { %v16435_v48 = vpop.f32.mrf.mxu1  ;;  %v10629_v22 = vadd.f32 %v10628_v44, %v10429_v52 }
 0x7d5   :  { %v10828_v12 = vpop.f32.mrf.mxu1 }
 0x7d6   :  { %v16382_v21 = vpop.f32.mrf.mxu0  ;;  %v21319_v3 = vadd.f32 %v10828_v12, %v10629_v22 }
 0x7d8   :  { %v10642_v25 = vpop.f32.mrf.mxu0 }
 0x7d9   :  { %v16438_v23 = vpop.f32.mrf.mxu1 }
 0x7db   :  { %v10844_v19 = vpop.f32.mrf.mxu1 }
 0x7dc   :  { %v16385_v11 = vpop.f32.mrf.mxu0 }
 0x7de   :  { %v10656_v0 = vpop.f32.mrf.mxu0 }
 0x7df   :  { %v16441_v45 = vpop.f32.mrf.mxu1 }
 0x7e1   :  { %v21307_v20 = vpop.f32.mrf.mxu1 }
 0x7e2   :  { %23308 = vst [vmem:[#allocation61_spill] sm:$0xff] %v21307_v20  ;;  %v16388_v9 = vpop.f32.mrf.mxu0  ;;  %v10594_v20 = vadd.f32 %v16370_v10, %v10399_v40  ;;  %v10587_v10 = vadd.f32 %v10586_v38, %v10393_v59  ;;  %v10477_v38 = vadd.f32 %v10476_v54, %v10231_v34 }
 0x7e3   :  { %v10678_v44 = vadd.f32 %v16388_v9, %v10471_v37 }
 0x7e4   :  { %v10670_v18 = vpop.f32.mrf.mxu0  ;;  %v10789_v47 = vadd.f32 %v16426_v16, %v10594_v20  ;;  %v10781_v59 = vadd.f32 %v10780_v63, %v10587_v10 }
 0x7e5   :  { %v21309_v13 = vpop.f32.mrf.mxu1  ;;  %v10671_v54 = vadd.f32 %v10670_v18, %v10465_v50 }
 0x7e6   :  { %23309 = vst [vmem:[#allocation38_spill] sm:$0xff] %v21309_v13  ;;  %v10405_v13 = vadd.f32 %v10404_v60, %v10111_v41  ;;  %v10459_v41 = vadd.f32 %v16329_v51, %v16273_v49  ;;  %v10453_v60 = vadd.f32 %v10452_v61, %v10191_v39  ;;  %v10805_v51 = vadd.f32 %v16429_v2, %v10608_v28 }
 0x7e7   :  { %v21312_v32 = vpop.f32.mrf.mxu1  ;;  %v10643_v61 = vadd.f32 %v10642_v25, %v10441_v58 }
 0x7e8   :  { %23310 = vst [vmem:[#allocation64_spill] sm:$0xff] %v21312_v32  ;;  %v16391_v35 = vpop.f32.mrf.mxu0  ;;  %v10435_v32 = vadd.f32 %v16323_v53, %v16267_v30  ;;  %v10601_v29 = vadd.f32 %v10600_v62, %v10405_v13  ;;  %v10622_v30 = vadd.f32 %v16376_v7, %v10423_v31  ;;  %v10615_v53 = vadd.f32 %v10614_v17, %v10417_v42 }
 0x7e9   :  { %v10664_v55 = vadd.f32 %v16385_v11, %v10459_v41  ;;  %v21324_v11 = vadd.f32 %v10844_v19, %v10643_v61  ;;  %v10692_v2 = vadd.f32 %v16391_v35, %v10483_v6  ;;  %v23317_v61 = vld [vmem:[#allocation17_spill] sm:$0xff] }
 0x7ea   :  { %v10684_v14 = vpop.f32.mrf.mxu0  ;;  %v10636_v26 = vadd.f32 %v16379_v24, %v10435_v32  ;;  %v10797_v39 = vadd.f32 %v10796_v4, %v10601_v29  ;;  %v10821_v20 = vadd.f32 %v16432_v15, %v10622_v30  ;;  %v10813_v56 = vadd.f32 %v10812_v36, %v10615_v53 }
 0x7eb   :  { %v21315_v40 = vpop.f32.mrf.mxu1  ;;  %v10657_v32 = vadd.f32 %v10656_v0, %v10453_v60  ;;  %v21326_v34 = vadd.f32 %v16441_v45, %v10664_v55  ;;  %v10685_v31 = vadd.f32 %v10684_v14, %v10477_v38  ;;  %v23316_v38 = vld [vmem:[#allocation15_spill] sm:$0xff] }
 0x7ec   :  { %23311 = vst [vmem:[#allocation41_spill] sm:$0xff] %v21315_v40  ;;  %v10650_v40 = vadd.f32 %v16382_v21, %v10447_v57  ;;  %v10837_v62 = vadd.f32 %v16435_v48, %v10636_v26 }
 0x7ed   :  { %v21317_v8 = vpop.f32.mrf.mxu1  ;;  %v23313_v17 = vld [vmem:[#allocation38_spill] sm:$0xff] }
 0x7ee   :  { %v16482_v46 = vpop.f32.mrf.mxu0  ;;  %v21321_v27 = vadd.f32 %v16438_v23, %v10650_v40  ;;  %v23312_v23 = vld [vmem:[#allocation61_spill] sm:$0xff]  ;;  %v21335_v15 = vadd.f32 %v23313_v17, %v10678_v44 }
 0x7ef   :  { %v11026_v49 = vadd.f32 %v16482_v46, %v10789_v47  ;;  %v21332_v7 = vadd.f32 %v23312_v23, %v10657_v32  ;;  %v23314_v57 = vld [vmem:[#allocation64_spill] sm:$0xff] }
 0x7f0   :  { %v16538_v13 = vpop.f32.mrf.mxu1  ;;  %v11019_v5 = vpop.f32.mrf.mxu0  ;;  %v21344_v58 = vadd.f32 %v23314_v57, %v10671_v54 }
 0x7f1   :  { %v11203_v16 = vadd.f32 %v16538_v13, %v11026_v49  ;;  %v11020_v1 = vadd.f32 %v11019_v5, %v10781_v59  ;;  %v21369_v59 = vadd.f32 %v21317_v8, %v10685_v31 }
 0x7f2   :  { %v11196_v24 = vpop.f32.mrf.mxu1  ;;  %v16485_v43 = vpop.f32.mrf.mxu0 }
 0x7f3   :  { %v11294_v21 = vsel %vm1409_vm0, %v11203_v16, 0  ;;  %v11197_v33 = vadd.f32 %v11196_v24, %v11020_v1  ;;  %v11038_v25 = vadd.f32 %v16485_v43, %v10805_v51  ;;  %v23315_v29 = vld [vmem:[#allocation41_spill] sm:$0xff] }
 0x7f4   :  { %v21328_v63 = vand.u32 4294901760, %v11294_v21  ;;  %v16541_v48 = vpop.f32.mrf.mxu1  ;;  %v11031_v12 = vpop.f32.mrf.mxu0  ;;  %v21354_v14 = vadd.f32 %v23315_v29, %v10692_v2 }
 0x7f5   :  { %v11291_v9 = vsel %vm1409_vm0, %v11197_v33, 0  ;;  %v11215_v0 = vadd.f32 %v16541_v48, %v11038_v25  ;;  %v11032_v4 = vadd.f32 %v11031_v12, %v10797_v39 }
 0x7f6   :  { %v21338_v19 = vsub.f32 %v11294_v21, %v21328_v63  ;;  %v21340_v45 = vand.u32 4294901760, %v11291_v9  ;;  %v11208_v18 = vpop.f32.mrf.mxu1  ;;  %v16488_v36 = vpop.f32.mrf.mxu0 }
 0x7f7   :  { %v11300_v35 = vsel %vm1409_vm0, %v11215_v0, 0  ;;  %v11209_v42 = vadd.f32 %v11208_v18, %v11032_v4  ;;  %v11050_v52 = vadd.f32 %v16488_v36, %v10821_v20 }
 0x7f8   :  { %v11417_v10 = vand.u32 4294901760, %v21338_v19  ;;  %v21348_v40 = vsub.f32 %v11291_v9, %v21340_v45  ;;  %v21350_v41 = vand.u32 4294901760, %v11300_v35  ;;  %v16544_v60 = vpop.f32.mrf.mxu1  ;;  %v11043_v28 = vpop.f32.mrf.mxu0  ;;  %16592 = vmatprep.mubr.f32.mxu1 %v21340_v45 }
 0x7f9   :  { %v11297_v37 = vsel %vm1409_vm0, %v11209_v42, 0  ;;  %v11227_v47 = vadd.f32 %v16544_v60, %v11050_v52  ;;  %v11044_v30 = vadd.f32 %v11043_v28, %v10813_v56  ;;  %16593 = vmatmul.mubr.f32.vlgmr.msra.gmra.mxu1 %v21328_v63 }
 0x7fa   :  { %v11418_v53 = vsub.f32 %v21338_v19, %v11417_v10  ;;  %v21362_v50 = vsub.f32 %v11300_v35, %v21350_v41  ;;  %v21364_v6 = vand.u32 4294901760, %v11297_v37  ;;  %v11220_v26 = vpop.f32.mrf.mxu1  ;;  %v16491_v22 = vpop.f32.mrf.mxu0  ;;  %v11407_v46 = vand.u32 4294901760, %v21348_v40  ;;  %16645 = vmatpush3.msra.mxu1 %v23316_v38 }
 0x7fb   :  { %v11306_v49 = vsel %vm1409_vm0, %v11227_v47, 0  ;;  %v11221_v51 = vadd.f32 %v11220_v26, %v11044_v30  ;;  %v11062_v39 = vadd.f32 %v16491_v22, %v10837_v62  ;;  %16646 = vmatprep.subr.mxu1 %v23317_v61  ;;  %v23318_v47 = vld [vmem:[#allocation30_spill] sm:$0xff] }
 0x7fc   :  { %v11419_v55 = vand.u32 4294901760, %v11418_v53  ;;  %v11437_v13 = vand.u32 4294901760, %v21362_v50  ;;  %v21375_v5 = vsub.f32 %v11297_v37, %v21364_v6  ;;  %v21377_v20 = vand.u32 4294901760, %v11306_v49  ;;  %v16547_v56 = vpop.f32.mrf.mxu1  ;;  %v11055_v16 = vpop.f32.mrf.mxu0  ;;  %16595 = vmatprep.mubr.f32.mxu1 %v21364_v6  ;;  %16647 = vmatpush3.msra.mxu1 %v23317_v61 }
 0x7fd   :  { %v11303_v8 = vsel %vm1409_vm0, %v11221_v51, 0  ;;  %v11239_v1 = vadd.f32 %v16547_v56, %v11062_v39  ;;  %v11056_v62 = vadd.f32 %v11055_v16, %v21319_v3  ;;  %16596 = vmatmul.mubr.f32.gmra.mxu1 %v21350_v41  ;;  %v11408_v32 = vsub.f32 %v21348_v40, %v11407_v46  ;;  %16700 = vmatprep.subr.mxu1 %v23316_v38 }
 0x7fe   :  { %v21389_v44 = vsub.f32 %v11306_v49, %v21377_v20  ;;  %v21391_v24 = vand.u32 4294901760, %v11303_v8  ;;  %v11232_v43 = vpop.f32.mrf.mxu1  ;;  %v16494_v21 = vpop.f32.mrf.mxu0  ;;  %v11427_v33 = vand.u32 4294901760, %v21375_v5  ;;  %v11438_v3 = vsub.f32 %v21362_v50, %v11437_v13 }
 0x7ff   :  { %v11312_v25 = vsel %vm1409_vm0, %v11239_v1, 0  ;;  %v11233_v54 = vadd.f32 %v11232_v43, %v11056_v62  ;;  %v11074_v48 = vadd.f32 %v16494_v21, %v21321_v27  ;;  %v11409_v12 = vand.u32 4294901760, %v11408_v32 }
 0x800   :  { %v11457_v2 = vand.u32 4294901760, %v21389_v44  ;;  %v21401_v9 = vsub.f32 %v11303_v8, %v21391_v24  ;;  %v21403_v0 = vand.u32 4294901760, %v11312_v25  ;;  %v16550_v4 = vpop.f32.mrf.mxu1  ;;  %v11067_v23 = vpop.f32.mrf.mxu0  ;;  %16598 = vmatprep.mubr.f32.mxu1 %v21391_v24  ;;  %v11428_v17 = vsub.f32 %v21375_v5, %v11427_v33  ;;  %v23319_v8 = vld [vmem:[#allocation18_spill] sm:$0xff] }
 0x801   :  { %v11309_v18 = vsel %vm1409_vm0, %v11233_v54, 0  ;;  %v11251_v36 = vadd.f32 %v16550_v4, %v11074_v48  ;;  %v11068_v27 = vadd.f32 %v11067_v23, %v21324_v11  ;;  %16564 = vmatprep.mubr.f32.mxu0 %v11409_v12  ;;  %16599 = vmatmul.mubr.f32.gmra.mxu1 %v21377_v20  ;;  %v11439_v31 = vand.u32 4294901760, %v11438_v3 }
 0x802   :  { %v21413_v35 = vsub.f32 %v11312_v25, %v21403_v0  ;;  %v21415_v42 = vand.u32 4294901760, %v11309_v18  ;;  %v11244_v52 = vpop.f32.mrf.mxu1  ;;  %16565 = vmatmul.mubr.f32.vlgmr.msra.gmra.mxu0 %v11419_v55  ;;  %v16497_v57 = vpop.f32.mrf.mxu0  ;;  %v11429_v60 = vand.u32 4294901760, %v11428_v17  ;;  %v11447_v28 = vand.u32 4294901760, %v21401_v9 }
 0x803   :  { %v11318_v29 = vsel %vm1409_vm0, %v11251_v36, 0  ;;  %v11245_v37 = vadd.f32 %v11244_v52, %v11068_v27  ;;  %v11086_v11 = vadd.f32 %v16497_v57, %v21326_v34  ;;  %16617 = vmatpush3.msra.mxu0 %v23318_v47  ;;  %v11458_v30 = vsub.f32 %v21389_v44, %v11457_v2  ;;  %v23320_v57 = vld [vmem:[#allocation16_spill] sm:$0xff] }
 0x804   :  { %v11477_v53 = vand.u32 4294901760, %v21413_v35  ;;  %v21426_v26 = vsub.f32 %v11309_v18, %v21415_v42  ;;  %v21428_v22 = vand.u32 4294901760, %v11318_v29  ;;  %v16553_v49 = vpop.f32.mrf.mxu1  ;;  %v11079_v51 = vpop.f32.mrf.mxu0  ;;  %16567 = vmatprep.mubr.f32.mxu0 %v11429_v60  ;;  %16601 = vmatprep.mubr.f32.mxu1 %v21415_v42  ;;  %v11448_v34 = vsub.f32 %v21401_v9, %v11447_v28 }
 0x805   :  { %v11315_v39 = vsel %vm1409_vm0, %v11245_v37, 0  ;;  %v11263_v55 = vadd.f32 %v16553_v49, %v11086_v11  ;;  %v11080_v56 = vadd.f32 %v11079_v51, %v21332_v7  ;;  %16602 = vmatmul.mubr.f32.gmra.mxu1 %v21403_v0  ;;  %v11459_v16 = vand.u32 4294901760, %v11458_v30  ;;  %16618 = vmatprep.subr.mxu0 %v23319_v8 }
 0x806   :  { %v21439_v1 = vsub.f32 %v11318_v29, %v21428_v22  ;;  %v21441_v62 = vand.u32 4294901760, %v11315_v39  ;;  %v11256_v32 = vpop.f32.mrf.mxu1  ;;  %16568 = vmatmul.mubr.f32.gmra.mxu0 %v11439_v31  ;;  %v16500_v43 = vpop.f32.mrf.mxu0  ;;  %v11449_v21 = vand.u32 4294901760, %v11448_v34  ;;  %v11467_v3 = vand.u32 4294901760, %v21426_v26 }
 0x807   :  { %v11324_v25 = vsel %vm1409_vm0, %v11263_v55, 0  ;;  %v11257_v54 = vadd.f32 %v11256_v32, %v11080_v56  ;;  %v11098_v7 = vadd.f32 %v16500_v43, %v21335_v15  ;;  %v11478_v48 = vsub.f32 %v21413_v35, %v11477_v53  ;;  %16619 = vmatpush3.msra.mxu0 %v23319_v8 }
 0x808   :  { %v11497_v12 = vand.u32 4294901760, %v21439_v1  ;;  %v21452_v4 = vsub.f32 %v11315_v39, %v21441_v62  ;;  %v21454_v23 = vand.u32 4294901760, %v11324_v25  ;;  %v16556_v17 = vpop.f32.mrf.mxu1  ;;  %v11091_v18 = vpop.f32.mrf.mxu0  ;;  %16570 = vmatprep.mubr.f32.mxu0 %v11449_v21  ;;  %16604 = vmatprep.mubr.f32.mxu1 %v21441_v62  ;;  %v11468_v15 = vsub.f32 %v21426_v26, %v11467_v3 }
 0x809   :  { %v11321_v36 = vsel %vm1409_vm0, %v11257_v54, 0  ;;  %v11275_v27 = vadd.f32 %v16556_v17, %v11098_v7  ;;  %v11092_v31 = vadd.f32 %v11091_v18, %v21344_v58  ;;  %16605 = vmatmul.mubr.f32.gmra.mxu1 %v21428_v22  ;;  %v11479_v52 = vand.u32 4294901760, %v11478_v48  ;;  %16672 = vmatprep.subr.mxu0 %v23320_v57 }
 0x80a   :  { %v21465_v60 = vsub.f32 %v11324_v25, %v21454_v23  ;;  %v21467_v29 = vand.u32 4294901760, %v11321_v36  ;;  %v11268_v37 = vpop.f32.mrf.mxu1  ;;  %16571 = vmatmul.mubr.f32.gmra.mxu0 %v11459_v16  ;;  %v16503_v11 = vpop.f32.mrf.mxu0  ;;  %v11469_v47 = vand.u32 4294901760, %v11468_v15  ;;  %v11487_v30 = vand.u32 4294901760, %v21452_v4 }
 0x80b   :  { %v11330_v49 = vsel %vm1409_vm0, %v11275_v27, 0  ;;  %v11269_v51 = vadd.f32 %v11268_v37, %v11092_v31  ;;  %v11110_v58 = vadd.f32 %v16503_v11, %v21354_v14  ;;  %v11498_v34 = vsub.f32 %v21439_v1, %v11497_v12 }
 0x80c   :  { %v11517_v39 = vand.u32 4294901760, %v21465_v60  ;;  %v21477_v55 = vsub.f32 %v11321_v36, %v21467_v29  ;;  %v21479_v56 = vand.u32 4294901760, %v11330_v49  ;;  %v16559_v16 = vpop.f32.mrf.mxu1  ;;  %v11103_v8 = vpop.f32.mrf.mxu0  ;;  %16573 = vmatprep.mubr.f32.mxu0 %v11469_v47  ;;  %16607 = vmatprep.mubr.f32.mxu1 %v21467_v29  ;;  %v11488_v14 = vsub.f32 %v21452_v4, %v11487_v30 }
 0x80d   :  { %v11327_v32 = vsel %vm1409_vm0, %v11269_v51, 0  ;;  %v11287_v43 = vadd.f32 %v16559_v16, %v11110_v58  ;;  %v11104_v21 = vadd.f32 %v11103_v8, %v21369_v59  ;;  %16608 = vmatmul.mubr.f32.gmra.mxu1 %v21454_v23  ;;  %v11499_v36 = vand.u32 4294901760, %v11498_v34 }
 0x80e   :  { %v21489_v25 = vsub.f32 %v11330_v49, %v21479_v56  ;;  %v21491_v54 = vand.u32 4294901760, %v11327_v32  ;;  %v11280_v7 = vpop.f32.mrf.mxu1  ;;  %16574 = vmatmul.mubr.f32.gmra.mxu0 %v11479_v52  ;;  %v11489_v48 = vand.u32 4294901760, %v11488_v14  ;;  %v11507_v17 = vand.u32 4294901760, %v21477_v55 }
 0x80f   :  { %v11336_v18 = vsel %vm1409_vm0, %v11287_v43, 0  ;;  %v11281_v15 = vadd.f32 %v11280_v7, %v11104_v21  ;;  %v11518_v59 = vsub.f32 %v21465_v60, %v11517_v39 }
 0x810   :  { %v11537_v27 = vand.u32 4294901760, %v21489_v25  ;;  %v21500_v31 = vsub.f32 %v11327_v32, %v21491_v54  ;;  %v21502_v37 = vand.u32 4294901760, %v11336_v18  ;;  %16576 = vmatprep.mubr.f32.mxu0 %v11489_v48  ;;  %16610 = vmatprep.mubr.f32.mxu1 %v21491_v54  ;;  %v11508_v52 = vsub.f32 %v21477_v55, %v11507_v17 }
 0x811   :  { %v11333_v11 = vsel %vm1409_vm0, %v11281_v15, 0  ;;  %16611 = vmatmul.mubr.f32.gmra.mxu1 %v21479_v56  ;;  %v11519_v34 = vand.u32 4294901760, %v11518_v59 }
 0x812   :  { %v21509_v47 = vsub.f32 %v11336_v18, %v21502_v37  ;;  %v21511_v49 = vand.u32 4294901760, %v11333_v11  ;;  %16577 = vmatmul.mubr.f32.gmra.mxu0 %v11499_v36  ;;  %v11509_v51 = vand.u32 4294901760, %v11508_v52  ;;  %v11527_v58 = vand.u32 4294901760, %v21500_v31 }
 0x813   :  { %v11538_v32 = vsub.f32 %v21489_v25, %v11537_v27 }
 0x814   :  { %v11557_v16 = vand.u32 4294901760, %v21509_v47  ;;  %v11546_v8 = vsub.f32 %v11333_v11, %v21511_v49  ;;  %16579 = vmatprep.mubr.f32.mxu0 %v11509_v51  ;;  %16613 = vmatprep.mubr.f32.mxu1 %v21511_v49  ;;  %v11528_v14 = vsub.f32 %v21500_v31, %v11527_v58  ;;  %v23347_v11 = vld [vmem:[#allocation103_spill] sm:$0xff]  ;;  %v23348_v51 = vld [vmem:[#allocation118_spill] sm:$0xff] }
 0x815   :  { %16614 = vmatmul.mubr.f32.gmra.mxu1 %v21502_v37  ;;  %v11539_v7 = vand.u32 4294901760, %v11538_v32 }
 0x816   :  { %16580 = vmatmul.mubr.f32.gmra.mxu0 %v11519_v34  ;;  %16648 = vmatprep.mubr.f32.mxu1 %v11407_v46  ;;  %v11529_v43 = vand.u32 4294901760, %v11528_v14  ;;  %v11547_v21 = vand.u32 4294901760, %v11546_v8  ;;  %v11558_v18 = vsub.f32 %v21509_v47, %v11557_v16  ;;  %v23349_v34 = vld [vmem:[#allocation105_spill] sm:$0xff]  ;;  %v23351_v14 = vld [vmem:[#allocation143_spill] sm:$0xff] }
 0x818   :  { %16582 = vmatprep.mubr.f32.mxu0 %v11529_v43  ;;  %v11548_v48 = vsub.f32 %v11546_v8, %v11547_v21  ;;  %v11559_v36 = vand.u32 4294901760, %v11558_v18  ;;  %v23352_v43 = vld [vmem:[#allocation162_spill] sm:$0xff] }
 0x819   :  { %16649 = vmatmul.mubr.f32.vlgmr.msra.gmra.mxu1 %v11417_v10  ;;  %v23321_v10 = vld [vmem:[#allocation19_spill] sm:$0xff] }
 0x81a   :  { %16583 = vmatmul.mubr.f32.gmra.mxu0 %v11539_v7  ;;  %16651 = vmatprep.mubr.f32.mxu1 %v11427_v33  ;;  %v11549_v15 = vand.u32 4294901760, %v11548_v48  ;;  %v23330_v33 = vld [vmem:[#allocation106_spill] sm:$0xff]  ;;  %v23354_v48 = vld [vmem:[#allocation120_spill] sm:$0xff] }
 0x81b   :  { %16701 = vmatpush3.msra.mxu1 %v23316_v38  ;;  %v23326_v38 = vld [vmem:[#allocation40_spill] sm:$0xff] }
 0x81c   :  { %16585 = vmatprep.mubr.f32.mxu0 %v11549_v15  ;;  %16702 = vmatprep.subr.mxu1 %v23317_v61  ;;  %v23355_v15 = vld [vmem:[#allocation122_spill] sm:$0xff] }
 0x81d   :  { %16652 = vmatmul.mubr.f32.gmra.mxu1 %v11437_v13 }
 0x81e   :  { %16586 = vmatmul.mubr.f32.gmra.mxu0 %v11559_v36  ;;  %16654 = vmatprep.mubr.f32.mxu1 %v11447_v28 }
 0x81f   :  { %16620 = vmatprep.mubr.f32.mxu0 %v21348_v40  ;;  %16703 = vmatpush3.msra.mxu1 %v23317_v61  ;;  %v23323_v40 = vld [vmem:[#allocation21_spill] sm:$0xff] }
 0x820   :  { %v23327_v61 = vld [vmem:[#allocation97_spill] sm:$0xff] }
 0x821   :  { %16655 = vmatmul.mubr.f32.gmra.mxu1 %v11457_v2  ;;  %v1787_v13 = vadd.f32 %v23327_v61, %v23326_v38  ;;  %v23359_v38 = vld [vmem:[#allocation164_spill] sm:$0xff] }
 0x822   :  { %16621 = vmatmul.mubr.f32.vlgmr.msra.gmra.mxu0 %v21338_v19  ;;  %16657 = vmatprep.mubr.f32.mxu1 %v11467_v3 }
 0x823   :  { %16623 = vmatprep.mubr.f32.mxu0 %v21375_v5  ;;  %16673 = vmatpush3.msra.mxu0 %v23320_v57  ;;  %v23339_v57 = vld [vmem:[#allocation96_spill] sm:$0xff] }
 0x824   :  { %16674 = vmatprep.subr.mxu0 %v23321_v10 }
 0x825   :  { %16658 = vmatmul.mubr.f32.gmra.mxu1 %v11477_v53  ;;  %16675 = vmatpush3.msra.mxu0 %v23321_v10  ;;  %v23334_v53 = vld [vmem:[#allocation110_spill] sm:$0xff]  ;;  %v23356_v10 = vld [vmem:[#allocation124_spill] sm:$0xff] }
 0x826   :  { %16624 = vmatmul.mubr.f32.gmra.mxu0 %v21362_v50  ;;  %16660 = vmatprep.mubr.f32.mxu1 %v11487_v30  ;;  %v23324_v50 = vld [vmem:[#allocation31_spill] sm:$0xff] }
 0x827   :  { %16626 = vmatprep.mubr.f32.mxu0 %v21401_v9  ;;  %v23331_v9 = vld [vmem:[#allocation108_spill] sm:$0xff] }
 0x829   :  { %16661 = vmatmul.mubr.f32.gmra.mxu1 %v11497_v12  ;;  %v23337_v12 = vld [vmem:[#allocation112_spill] sm:$0xff] }
 0x82a   :  { %16627 = vmatmul.mubr.f32.gmra.mxu0 %v21389_v44  ;;  %16663 = vmatprep.mubr.f32.mxu1 %v11507_v17  ;;  %v23329_v44 = vld [vmem:[#allocation27_spill] sm:$0xff] }
 0x82b   :  { %16629 = vmatprep.mubr.f32.mxu0 %v21426_v26  ;;  %v1957_v26 = vadd.f32 %v23334_v53, %v1787_v13  ;;  %v23344_v17 = vld [vmem:[#allocation99_spill] sm:$0xff] }
 0x82d   :  { %16664 = vmatmul.mubr.f32.gmra.mxu1 %v11517_v39  ;;  %v23341_v39 = vld [vmem:[#allocation145_spill] sm:$0xff] }
 0x82e   :  { %16630 = vmatmul.mubr.f32.gmra.mxu0 %v21413_v35  ;;  %16666 = vmatprep.mubr.f32.mxu1 %v11527_v58  ;;  %v23332_v35 = vld [vmem:[#allocation98_spill] sm:$0xff] }
 0x82f   :  { %16632 = vmatprep.mubr.f32.mxu0 %v21452_v4 }
 0x831   :  { %16667 = vmatmul.mubr.f32.gmra.mxu1 %v11537_v27  ;;  %v23345_v27 = vld [vmem:[#allocation116_spill] sm:$0xff] }
 0x832   :  { %16633 = vmatmul.mubr.f32.gmra.mxu0 %v21439_v1  ;;  %16669 = vmatprep.mubr.f32.mxu1 %v11547_v21  ;;  %v23335_v1 = vld [vmem:[#allocation100_spill] sm:$0xff] }
 0x833   :  { %16635 = vmatprep.mubr.f32.mxu0 %v21477_v55  ;;  %v23342_v55 = vld [vmem:[#allocation148_spill] sm:$0xff] }
 0x835   :  { %16670 = vmatmul.mubr.f32.gmra.mxu1 %v11557_v16  ;;  %v2141_v16 = vadd.f32 %v23349_v34, %v1957_v26  ;;  %v23366_v26 = vld [vmem:[#allocation157_spill] sm:$0xff] }
 0x836   :  { %16636 = vmatmul.mubr.f32.gmra.mxu0 %v21465_v60  ;;  %16704 = vmatprep.mubr.f32.mxu1 %v21340_v45 }
 0x837   :  { %16638 = vmatprep.mubr.f32.mxu0 %v21500_v31 }
 0x839   :  { %16705 = vmatmul.mubr.f32.vlgmr.msra.gmra.mxu1 %v21328_v63 }
 0x83a   :  { %16639 = vmatmul.mubr.f32.gmra.mxu0 %v21489_v25  ;;  %16707 = vmatprep.mubr.f32.mxu1 %v21364_v6 }
 0x83b   :  { %16641 = vmatprep.mubr.f32.mxu0 %v11546_v8  ;;  %v23350_v8 = vld [vmem:[#allocation147_spill] sm:$0xff] }
 0x83c   :  { %v4213_v32 = vadd.f32 %v23351_v14, %v23350_v8  ;;  %v23380_v14 = vld [vmem:[#allocation181_spill] sm:$0xff] }
 0x83d   :  { %16708 = vmatmul.mubr.f32.gmra.mxu1 %v21350_v41 }
 0x83e   :  { %16642 = vmatmul.mubr.f32.gmra.mxu0 %v21509_v47  ;;  %16710 = vmatprep.mubr.f32.mxu1 %v21391_v24  ;;  %v4381_v61 = vadd.f32 %v23359_v38, %v4213_v32  ;;  %v23387_v38 = vld [vmem:[#allocation146_spill] sm:$0xff] }
 0x83f   :  { %16676 = vmatprep.mubr.f32.mxu0 %v21340_v45  ;;  %v23322_v45 = vld [vmem:[#allocation25_spill] sm:$0xff] }
 0x841   :  { %16711 = vmatmul.mubr.f32.gmra.mxu1 %v21377_v20 }
 0x842   :  { %16677 = vmatmul.mubr.f32.vlgmr.msra.gmra.mxu0 %v21328_v63  ;;  %16713 = vmatprep.mubr.f32.mxu1 %v21415_v42 }
 0x843   :  { %16679 = vmatprep.mubr.f32.mxu0 %v21364_v6  ;;  %v23325_v6 = vld [vmem:[#allocation23_spill] sm:$0xff] }
 0x844   :  { %v1775_v46 = vadd.f32 %v23325_v6, %v23324_v50  ;;  %v23358_v6 = vld [vmem:[#allocation109_spill] sm:$0xff] }
 0x845   :  { %16714 = vmatmul.mubr.f32.gmra.mxu1 %v21403_v0 }
 0x846   :  { %16680 = vmatmul.mubr.f32.gmra.mxu0 %v21350_v41  ;;  %16716 = vmatprep.mubr.f32.mxu1 %v21441_v62  ;;  %v1763_v41 = vadd.f32 %v23323_v40, %v23322_v45  ;;  %v23357_v40 = vld [vmem:[#allocation107_spill] sm:$0xff] }
 0x847   :  { %16682 = vmatprep.mubr.f32.mxu0 %v21391_v24 }
 0x848   :  { %v1929_v2 = vadd.f32 %v23330_v33, %v1763_v41 }
 0x849   :  { %16717 = vmatmul.mubr.f32.gmra.mxu1 %v21428_v22 }
 0x84a   :  { %16683 = vmatmul.mubr.f32.gmra.mxu0 %v21377_v20  ;;  %16719 = vmatprep.mubr.f32.mxu1 %v21467_v29  ;;  %v23328_v20 = vld [vmem:[#allocation50_spill] sm:$0xff] }
 0x84b   :  { %16685 = vmatprep.mubr.f32.mxu0 %v21415_v42  ;;  %v1799_v24 = vadd.f32 %v23329_v44, %v23328_v20  ;;  %v23333_v42 = vld [vmem:[#allocation37_spill] sm:$0xff]  ;;  %v23361_v20 = vld [vmem:[#allocation127_spill] sm:$0xff] }
 0x84c   :  { %v1811_v28 = vadd.f32 %v23333_v42, %v23332_v35  ;;  %v2330_v44 = vadd.f32 %v23361_v20, %v2141_v16  ;;  %v23364_v35 = vld [vmem:[#allocation132_spill] sm:$0xff]  ;;  %v23379_v16 = vld [vmem:[#allocation130_spill] sm:$0xff]  ;;  %v23388_v20 = vld [vmem:[#allocation173_spill] sm:$0xff] }
 0x84d   :  { %16720 = vmatmul.mubr.f32.gmra.mxu1 %v21454_v23  ;;  %v1971_v4 = vadd.f32 %v23337_v12, %v1799_v24  ;;  %v23362_v24 = vld [vmem:[#allocation129_spill] sm:$0xff] }
 0x84e   :  { %16686 = vmatmul.mubr.f32.gmra.mxu0 %v21403_v0  ;;  %16722 = vmatprep.mubr.f32.mxu1 %v21491_v54  ;;  %v1943_v0 = vadd.f32 %v23331_v9, %v1775_v46 }
 0x84f   :  { %16688 = vmatprep.mubr.f32.mxu0 %v21441_v62  ;;  %v23336_v62 = vld [vmem:[#allocation43_spill] sm:$0xff]  ;;  %v2157_v41 = vadd.f32 %v23357_v40, %v1971_v4  ;;  %v23384_v40 = vld [vmem:[#allocation150_spill] sm:$0xff] }
 0x850   :  { %v1823_v3 = vadd.f32 %v23336_v62, %v23335_v1  ;;  %v2125_v47 = vadd.f32 %v23347_v11, %v1943_v0  ;;  %v23369_v4 = vld [vmem:[#allocation119_spill] sm:$0xff]  ;;  %v23377_v11 = vld [vmem:[#allocation126_spill] sm:$0xff] }
 0x851   :  { %16723 = vmatmul.mubr.f32.gmra.mxu1 %v21479_v56  ;;  %v2342_v33 = vadd.f32 %v23362_v24, %v2157_v41  ;;  %v23385_v41 = vld [vmem:[#allocation144_spill] sm:$0xff] }
 0x852   :  { %16689 = vmatmul.mubr.f32.gmra.mxu0 %v21428_v22  ;;  %16725 = vmatprep.mubr.f32.mxu1 %v21511_v49  ;;  %v1999_v31 = vadd.f32 %v23345_v27, %v1823_v3  ;;  %v2318_v45 = vadd.f32 %v23356_v10, %v2125_v47  ;;  %v23368_v3 = vld [vmem:[#allocation117_spill] sm:$0xff] }
 0x853   :  { %16691 = vmatprep.mubr.f32.mxu0 %v21467_v29  ;;  %v23340_v29 = vld [vmem:[#allocation114_spill] sm:$0xff]  ;;  %v21676_v47 = vadd.f32 %v23377_v11, %v2342_v33  ;;  %v23383_v10 = vld [vmem:[#allocation137_spill] sm:$0xff] }
 0x854   :  { %v1985_v30 = vadd.f32 %v23340_v29, %v1811_v28  ;;  %v23365_v28 = vld [vmem:[#allocation113_spill] sm:$0xff]  ;;  %v23371_v29 = vld [vmem:[#allocation115_spill] sm:$0xff] }
 0x855   :  { %16726 = vmatmul.mubr.f32.gmra.mxu1 %v21502_v37 }
 0x856   :  { %16692 = vmatmul.mubr.f32.gmra.mxu0 %v21454_v23  ;;  %v23338_v23 = vld [vmem:[#allocation102_spill] sm:$0xff]  ;;  %v2173_v46 = vadd.f32 %v23358_v6, %v1985_v30  ;;  %v4225_v6 = vadd.f32 %v23385_v41, %v23384_v40 }
 0x857   :  { %16694 = vmatprep.mubr.f32.mxu0 %v21491_v54  ;;  %v1835_v60 = vadd.f32 %v23339_v57, %v23338_v23  ;;  %v23343_v54 = vld [vmem:[#allocation104_spill] sm:$0xff]  ;;  %v2481_v23 = vadd.f32 %v23369_v4, %v2318_v45  ;;  %v23370_v57 = vld [vmem:[#allocation135_spill] sm:$0xff] }
 0x858   :  { %v1847_v59 = vadd.f32 %v23344_v17, %v23343_v54  ;;  %v2354_v42 = vadd.f32 %v23364_v35, %v2173_v46  ;;  %v23373_v54 = vld [vmem:[#allocation178_spill] sm:$0xff]  ;;  %v23386_v46 = vld [vmem:[#allocation152_spill] sm:$0xff] }
 0x859   :  { %v2013_v58 = vadd.f32 %v23348_v51, %v1835_v60  ;;  %v23378_v51 = vld [vmem:[#allocation140_spill] sm:$0xff] }
 0x85a   :  { %16695 = vmatmul.mubr.f32.gmra.mxu0 %v21479_v56  ;;  %v4201_v56 = vadd.f32 %v23342_v55, %v23341_v39  ;;  %v2027_v18 = vadd.f32 %v23354_v48, %v1847_v59  ;;  %v23372_v55 = vld [vmem:[#allocation138_spill] sm:$0xff]  ;;  %v23374_v59 = vld [vmem:[#allocation159_spill] sm:$0xff]  ;;  %v21682_v8 = vadd.f32 %v23379_v16, %v2354_v42  ;;  %v21689_v48 = vmul.f32 %v2481_v23, %v2481_v23 }
 0x85b   :  { %16697 = vmatprep.mubr.f32.mxu0 %v21511_v49  ;;  %v2205_v53 = vadd.f32 %v23365_v28, %v2013_v58  ;;  %v4563_v27 = vadd.f32 %v23374_v59, %v4381_v61  ;;  %v4237_v61 = vadd.f32 %v23387_v38, %v23386_v46  ;;  %v23391_v42 = vld [vmem:[#allocation154_spill] sm:$0xff]  ;;  %v23392_v28 = vld [vmem:[#allocation149_spill] sm:$0xff]  ;;  %v23408_v38 = vld [vmem:[#allocation172_spill] sm:$0xff] }
 0x85c   :  { %v4367_v21 = vadd.f32 %v23352_v43, %v4201_v56  ;;  %v2221_v30 = vadd.f32 %v23371_v29, %v2027_v18  ;;  %v23382_v18 = vld [vmem:[#allocation134_spill] sm:$0xff]  ;;  %v23396_v29 = vld [vmem:[#allocation175_spill] sm:$0xff] }
 0x85d   :  { %v2378_v56 = vadd.f32 %v23372_v55, %v2205_v53  ;;  %v4756_v32 = vadd.f32 %v23380_v14, %v4563_v27  ;;  %v4249_v53 = vadd.f32 %v23392_v28, %v23391_v42  ;;  %v23400_v27 = vld [vmem:[#allocation158_spill] sm:$0xff]  ;;  %v23410_v42 = vld [vmem:[#allocation217_spill] sm:$0xff]  ;;  %v23411_v28 = vld [vmem:[#allocation220_spill] sm:$0xff] }
 0x85e   :  { %16698 = vmatmul.mubr.f32.gmra.mxu0 %v21502_v37  ;;  %v23346_v37 = vld [vmem:[#allocation101_spill] sm:$0xff]  ;;  %v4547_v1 = vadd.f32 %v23366_v26, %v4367_v21  ;;  %v2390_v58 = vadd.f32 %v23378_v51, %v2221_v30  ;;  %v23402_v51 = vld [vmem:[#allocation170_spill] sm:$0xff] }
 0x85f   :  { %v2109_v52 = vadd.f32 %v23346_v37, %v1929_v2  ;;  %v23363_v2 = vld [vmem:[#allocation111_spill] sm:$0xff]  ;;  %v23376_v37 = vld [vmem:[#allocation121_spill] sm:$0xff]  ;;  %v21697_v45 = vadd.f32 %v23383_v10, %v2378_v56  ;;  %v4919_v30 = vadd.f32 %v23396_v29, %v4756_v32  ;;  %v23404_v32 = vld [vmem:[#allocation160_spill] sm:$0xff] }
 0x860   :  { %v2189_v9 = vadd.f32 %v23363_v2, %v1999_v31  ;;  %v4744_v17 = vadd.f32 %v23373_v54, %v4547_v1  ;;  %v21712_v2 = vmul.f32 %v21676_v47, %v21676_v47  ;;  %v21723_v1 = vmul.f32 %v21682_v8, %v21682_v8  ;;  %v23398_v54 = vld [vmem:[#allocation156_spill] sm:$0xff] }
 0x861   :  { %v2306_v36 = vadd.f32 %v23355_v15, %v2109_v52  ;;  %v21673_v52 = vadd.f32 %v23376_v37, %v2330_v44  ;;  %v23401_v37 = vld [vmem:[#allocation153_spill] sm:$0xff]  ;;  %v21743_v14 = vmul.f32 %v21697_v45, %v21697_v45 }
 0x862   :  { %v2366_v60 = vadd.f32 %v23370_v57, %v2189_v9  ;;  %v4907_v44 = vadd.f32 %v23388_v20, %v4744_v17  ;;  %v23390_v9 = vld [vmem:[#allocation142_spill] sm:$0xff]  ;;  %v23395_v57 = vld [vmem:[#allocation168_spill] sm:$0xff]  ;;  %v23399_v17 = vld [vmem:[#allocation151_spill] sm:$0xff]  ;;  %v4273_v11 = vadd.f32 %v23401_v37, %v23400_v27 }
 0x863   :  { %v2469_v12 = vadd.f32 %v23368_v3, %v2306_v36  ;;  %v21708_v33 = vmul.f32 %v21673_v52, %v21673_v52  ;;  %v21715_v35 = vadd.f32 %v23390_v9, %v2390_v58  ;;  %v23394_v3 = vld [vmem:[#allocation166_spill] sm:$0xff]  ;;  %v4261_v59 = vadd.f32 %v23399_v17, %v23398_v54  ;;  %v23416_v17 = vld [vmem:[#allocation163_spill] sm:$0xff] }
 0x864   :  { %v21692_v15 = vadd.f32 %v23382_v18, %v2366_v60  ;;  %v4395_v4 = vadd.f32 %v23394_v3, %v4225_v6  ;;  %v4409_v60 = vadd.f32 %v23395_v57, %v4237_v61  ;;  %v4423_v58 = vadd.f32 %v23402_v51, %v4249_v53  ;;  %v23405_v18 = vld [vmem:[#allocation155_spill] sm:$0xff]  ;;  %v23409_v20 = vld [vmem:[#allocation174_spill] sm:$0xff]  ;;  %v23413_v57 = vld [vmem:[#allocation176_spill] sm:$0xff] }
 0x865   :  { %v21687_v21 = vmul.f32 %v2469_v12, %v2469_v12  ;;  %v4285_v10 = vadd.f32 %v23405_v18, %v23404_v32  ;;  %v21747_v40 = vmul.f32 %v4907_v44, %v4907_v44  ;;  %v21749_v41 = vmul.f32 %v4907_v44, %v2469_v12  ;;  %v23415_v12 = vld [vmem:[#allocation161_spill] sm:$0xff]  ;;  %v23420_v18 = vld [vmem:[#allocation215_spill] sm:$0xff] }
 0x866   :  { %v21732_v56 = vmul.f32 %v21692_v15, %v21692_v15  ;;  %v21755_v46 = vmul.f32 %v21715_v35, %v21715_v35  ;;  %v4437_v61 = vadd.f32 %v23408_v38, %v4261_v59  ;;  %v4451_v9 = vadd.f32 %v23409_v20, %v4273_v11  ;;  %v23418_v59 = vld [vmem:[#allocation165_spill] sm:$0xff]  ;;  %v23419_v11 = vld [vmem:[#allocation219_spill] sm:$0xff]  ;;  %v23421_v20 = vld [vmem:[#allocation234_spill] sm:$0xff] }
 0x867   :  { %23406 = vst [vmem:[#allocation66_spill] sm:$0xff] %v21749_v41  ;;  %v6703_v53 = vadd.f32 %v23411_v28, %v23410_v42  ;;  %v4465_v29 = vadd.f32 %v23413_v57, %v4285_v10  ;;  %v21764_v54 = vmul.f32 %v4919_v30, %v2481_v23  ;;  %v4579_v44 = vadd.f32 %v23415_v12, %v4395_v4  ;;  %v23423_v10 = vld [vmem:[#allocation180_spill] sm:$0xff] }
 0x868   :  { %v4595_v27 = vadd.f32 %v23416_v17, %v4409_v60  ;;  %v21770_v51 = vmul.f32 %v4919_v30, %v4919_v30  ;;  %v4611_v32 = vadd.f32 %v23418_v59, %v4423_v58  ;;  %v6715_v38 = vadd.f32 %v23420_v18, %v23419_v11  ;;  %v23424_v60 = vld [vmem:[#allocation186_spill] sm:$0xff]  ;;  %v23426_v17 = vld [vmem:[#allocation167_spill] sm:$0xff]  ;;  %v23427_v59 = vld [vmem:[#allocation169_spill] sm:$0xff] }
 0x869   :  { %23414 = vst [vmem:[#allocation91_spill] sm:$0xff] %v21764_v54  ;;  %v6869_v42 = vadd.f32 %v23421_v20, %v6703_v53  ;;  %v12459_v23 = vmul.f32 2.0, %v23423_v10  ;;  %v12458_v57 = vmul.f32 2.0, %v21749_v41  ;;  %v12538_v4 = vadd.f32 %v21747_v40, %v21687_v21  ;;  %v23428_v11 = vld [vmem:[#allocation222_spill] sm:$0xff]  ;;  %v23429_v18 = vld [vmem:[#allocation216_spill] sm:$0xff]  ;;  %v23432_v10 = vld [vmem:[#allocation185_spill] sm:$0xff] }
 0x86a   :  { %v4768_v12 = vadd.f32 %v23424_v60, %v4579_v44  ;;  %v4627_v58 = vadd.f32 %v23426_v17, %v4437_v61  ;;  %v6727_v53 = vadd.f32 %v23429_v18, %v23428_v11  ;;  %v23430_v20 = vld [vmem:[#allocation236_spill] sm:$0xff]  ;;  %v12461_v41 = vmul.f32 2.0, %v23432_v10  ;;  %v23434_v44 = vld [vmem:[#allocation171_spill] sm:$0xff]  ;;  %v23437_v17 = vld [vmem:[#allocation218_spill] sm:$0xff] }
 0x86b   :  { %v4659_v60 = vadd.f32 %v23434_v44, %v4465_v29  ;;  %v12540_v61 = vadd.f32 %v21770_v51, %v21689_v48  ;;  %v23438_v11 = vld [vmem:[#allocation238_spill] sm:$0xff]  ;;  %v23439_v18 = vld [vmem:[#allocation229_spill] sm:$0xff]  ;;  %v21806_v10 = vadd.f32 0.0001, %v12459_v23 }
 0x86c   :  { %v23443_v29 = vld [vmem:[#allocation177_spill] sm:$0xff] }
 0x86d   :  { %23441 = vst [vmem:[#allocation84_spill] sm:$0xff] %v21806_v10  ;;  %v23455_v10 = vld [vmem:[#allocation223_spill] sm:$0xff] }
 0x8b9   :  { %v21596_v63 = vpop.f32.mrf.mxu1 }
 0x8bb   :  { %v21598_v19 = vpop.f32.mrf.mxu1 }
 0x8bd   :  { %v21606_v5 = vpop.f32.mrf.mxu1 }
 0x8bf   :  { %v21615_v22 = vpop.f32.mrf.mxu1 }
 0x8c1   :  { %v21625_v25 = vpop.f32.mrf.mxu1 }
 0x8c2   :  { %v21632_v49 = vpop.f32.mrf.mxu0 }
 0x8c3   :  { %v21639_v7 = vpop.f32.mrf.mxu1 }
 0x8c4   :  { %23353 = vst [vmem:[#allocation69_spill] sm:$0xff] %v21639_v7  ;;  %v21645_v50 = vpop.f32.mrf.mxu0 }
 0x8c5   :  { %v21649_v13 = vpop.f32.mrf.mxu1 }
 0x8c6   :  { %23360 = vst [vmem:[#allocation48_spill] sm:$0xff] %v21649_v13  ;;  %v21654_v0 = vpop.f32.mrf.mxu0 }
 0x8c7   :  { %v21659_v62 = vpop.f32.mrf.mxu1 }
 0x8c8   :  { %23367 = vst [vmem:[#allocation72_spill] sm:$0xff] %v21659_v62  ;;  %v21665_v39 = vpop.f32.mrf.mxu0 }
 0x8c9   :  { %v21670_v31 = vpop.f32.mrf.mxu1 }
 0x8ca   :  { %23375 = vst [vmem:[#allocation52_spill] sm:$0xff] %v21670_v31  ;;  %v21679_v34 = vpop.f32.mrf.mxu0  ;;  %v23446_v31 = vld [vmem:[#allocation221_spill] sm:$0xff] }
 0x8cb   :  { %v21685_v43 = vpop.f32.mrf.mxu1 }
 0x8cc   :  { %23381 = vst [vmem:[#allocation77_spill] sm:$0xff] %v21685_v43  ;;  %v21694_v36 = vpop.f32.mrf.mxu0  ;;  %v23433_v43 = vld [vmem:[#allocation190_spill] sm:$0xff] }
 0x8cd   :  { %v21704_v24 = vpop.f32.mrf.mxu1 }
 0x8ce   :  { %23389 = vst [vmem:[#allocation57_spill] sm:$0xff] %v21704_v24  ;;  %v21719_v26 = vpop.f32.mrf.mxu0  ;;  %v12460_v24 = vmul.f32 2.0, %v21764_v54  ;;  %v21808_v54 = vadd.f32 0.0001, %v12458_v57  ;;  %v21824_v57 = vadd.f32 0.0001, %v12461_v41 }
 0x8cf   :  { %23393 = vst [vmem:[#allocation80_spill] sm:$0xff] %v21719_v26  ;;  %v21728_v55 = vpop.f32.mrf.mxu1  ;;  %v23481_v26 = vld [vmem:[#allocation192_spill] sm:$0xff] }
 0x8d0   :  { %23397 = vst [vmem:[#allocation60_spill] sm:$0xff] %v21728_v55  ;;  %v21739_v16 = vpop.f32.mrf.mxu0  ;;  %23442 = vst [vmem:[#allocation26_spill] sm:$0xff] %v21808_v54  ;;  %v23453_v54 = vld [vmem:[#allocation183_spill] sm:$0xff] }
 0x8d1   :  { %23403 = vst [vmem:[#allocation85_spill] sm:$0xff] %v21739_v16  ;;  %v21751_v6 = vpop.f32.mrf.mxu1  ;;  %23451 = vst [vmem:[#allocation35_spill] sm:$0xff] %v21824_v57  ;;  %v23464_v57 = vld [vmem:[#allocation225_spill] sm:$0xff]  ;;  %v23476_v16 = vld [vmem:[#allocation247_spill] sm:$0xff] }
 0x8d2   :  { %23407 = vst [vmem:[#allocation88_spill] sm:$0xff] %v21751_v6  ;;  %v21761_v3 = vpop.f32.mrf.mxu0  ;;  %v6883_v6 = vadd.f32 %v23430_v20, %v6715_v38  ;;  %v6897_v38 = vadd.f32 %v23438_v11, %v6727_v53  ;;  %v7049_v20 = vadd.f32 %v23439_v18, %v6869_v42  ;;  %v23448_v11 = vld [vmem:[#allocation250_spill] sm:$0xff]  ;;  %v23449_v18 = vld [vmem:[#allocation231_spill] sm:$0xff] }
 0x8d3   :  { %23412 = vst [vmem:[#allocation68_spill] sm:$0xff] %v21761_v3  ;;  %v21768_v37 = vpop.f32.mrf.mxu1 }
 0x8d4   :  { %23417 = vst [vmem:[#allocation74_spill] sm:$0xff] %v21768_v37  ;;  %v21776_v28 = vpop.f32.mrf.mxu0  ;;  %v4643_v37 = vadd.f32 %v23427_v59, %v4451_v9  ;;  %v23436_v9 = vld [vmem:[#allocation224_spill] sm:$0xff]  ;;  %v7246_v42 = vadd.f32 %v23448_v11, %v7049_v20 }
 0x8d5   :  { %23422 = vst [vmem:[#allocation93_spill] sm:$0xff] %v21776_v28  ;;  %v21783_v30 = vpop.f32.mrf.mxu1  ;;  %v4780_v28 = vadd.f32 %v23433_v43, %v4595_v27  ;;  %v6739_v59 = vadd.f32 %v23437_v17, %v23436_v9  ;;  %v21810_v43 = vadd.f32 0.0001, %v12538_v4  ;;  %v21813_v27 = vadd.f32 %v23443_v29, %v4768_v12  ;;  %v23447_v17 = vld [vmem:[#allocation240_spill] sm:$0xff] }
 0x8d6   :  { %23425 = vst [vmem:[#allocation76_spill] sm:$0xff] %v21783_v30  ;;  %v21790_v55 = vpop.f32.mrf.mxu0  ;;  %v21826_v4 = vadd.f32 0.0001, %v12460_v24  ;;  %v23454_v29 = vld [vmem:[#allocation228_spill] sm:$0xff]  ;;  %v23461_v24 = vld [vmem:[#allocation189_spill] sm:$0xff] }
 0x8d7   :  { %23431 = vst [vmem:[#allocation94_spill] sm:$0xff] %v21790_v55  ;;  %v21796_v30 = vpop.f32.mrf.mxu1  ;;  %v6911_v53 = vadd.f32 %v23447_v17, %v6739_v59  ;;  %v21829_v12 = vadd.f32 %v23453_v54, %v4780_v28  ;;  %v23458_v20 = vld [vmem:[#allocation252_spill] sm:$0xff]  ;;  %v23459_v17 = vld [vmem:[#allocation233_spill] sm:$0xff] }
 0x8d8   :  { %23435 = vst [vmem:[#allocation82_spill] sm:$0xff] %v21796_v30  ;;  %v21804_v55 = vpop.f32.mrf.mxu0  ;;  %v23445_v30 = vld [vmem:[#allocation226_spill] sm:$0xff]  ;;  %23452 = vst [vmem:[#allocation36_spill] sm:$0xff] %v21826_v4  ;;  %v7081_v11 = vadd.f32 %v23459_v17, %v6897_v38  ;;  %v23462_v54 = vld [vmem:[#allocation196_spill] sm:$0xff] }
 0x8d9   :  { %23440 = vst [vmem:[#allocation95_spill] sm:$0xff] %v21804_v55  ;;  %v21815_v44 = vpop.f32.mrf.mxu1  ;;  %v6751_v9 = vadd.f32 %v23446_v31, %v23445_v30  ;;  %v7065_v55 = vadd.f32 %v23449_v18, %v6883_v6  ;;  %v21835_v31 = vadd.f32 0.0001, %v12540_v61  ;;  %v23457_v30 = vld [vmem:[#allocation242_spill] sm:$0xff]  ;;  %v21843_v18 = vmul.f32 2.0, %v23461_v24  ;;  %v23468_v38 = vld [vmem:[#allocation255_spill] sm:$0xff] }
 0x8da   :  { %23444 = vst [vmem:[#allocation28_spill] sm:$0xff] %v21815_v44  ;;  %v21822_v23 = vpop.f32.mrf.mxu0  ;;  %v6763_v44 = vadd.f32 %v23455_v10, %v23454_v29  ;;  %v4792_v28 = vadd.f32 %v23462_v54, %v4611_v32  ;;  %v23463_v4 = vld [vmem:[#allocation230_spill] sm:$0xff]  ;;  %v23465_v29 = vld [vmem:[#allocation244_spill] sm:$0xff]  ;;  %v23469_v17 = vld [vmem:[#allocation235_spill] sm:$0xff]  ;;  %v5022_v32 = vmul.f32 %v21829_v12, %v21829_v12 }
 0x8db   :  { %23450 = vst [vmem:[#allocation34_spill] sm:$0xff] %v21822_v23  ;;  %v21833_v3 = vpop.f32.mrf.mxu1  ;;  %v6925_v59 = vadd.f32 %v23457_v30, %v6751_v9  ;;  %v7258_v6 = vadd.f32 %v23458_v20, %v7065_v55  ;;  %v6775_v10 = vadd.f32 %v23464_v57, %v23463_v4  ;;  %v5020_v9 = vmul.f32 %v21813_v27, %v21813_v27  ;;  %v23467_v55 = vld [vmem:[#allocation245_spill] sm:$0xff]  ;;  %v23472_v4 = vld [vmem:[#allocation232_spill] sm:$0xff] }
 0x8dc   :  { %23456 = vst [vmem:[#allocation39_spill] sm:$0xff] %v21833_v3  ;;  %v21840_v41 = vpop.f32.mrf.mxu0  ;;  %v6939_v3 = vadd.f32 %v23465_v29, %v6763_v44  ;;  %v7409_v30 = vadd.f32 %v23467_v55, %v7246_v42  ;;  %v7270_v20 = vadd.f32 %v23468_v38, %v7081_v11  ;;  %v23471_v54 = vld [vmem:[#allocation201_spill] sm:$0xff]  ;;  %v23473_v44 = vld [vmem:[#allocation227_spill] sm:$0xff] }
 0x8dd   :  { %23460 = vst [vmem:[#allocation42_spill] sm:$0xff] %v21840_v41  ;;  %v21849_v61 = vpop.f32.mrf.mxu1  ;;  %v7097_v41 = vadd.f32 %v23469_v17, %v6911_v53  ;;  %v4804_v57 = vadd.f32 %v23471_v54, %v4627_v58  ;;  %v6787_v29 = vadd.f32 %v23473_v44, %v23472_v4  ;;  %v7421_v42 = vadd.f32 %v23476_v16, %v7258_v6  ;;  %v23477_v55 = vld [vmem:[#allocation257_spill] sm:$0xff]  ;;  %v23479_v17 = vld [vmem:[#allocation271_spill] sm:$0xff]  ;;  %v23482_v54 = vld [vmem:[#allocation206_spill] sm:$0xff] }
 0x8de   :  { %23466 = vst [vmem:[#allocation45_spill] sm:$0xff] %v21849_v61  ;;  %v21856_v24 = vpop.f32.mrf.mxu0  ;;  %v23474_v61 = vld [vmem:[#allocation246_spill] sm:$0xff]  ;;  %v23478_v38 = vld [vmem:[#allocation237_spill] sm:$0xff]  ;;  %v21874_v58 = vadd.f32 %v23481_v26, %v4792_v28  ;;  %v4816_v4 = vadd.f32 %v23482_v54, %v4643_v37  ;;  %v23483_v44 = vld [vmem:[#allocation248_spill] sm:$0xff]  ;;  %v7502_v16 = vsub.f32 %v7409_v30, %v21687_v21 }
 0x8df   :  { %23470 = vst [vmem:[#allocation44_spill] sm:$0xff] %v21856_v24  ;;  %v6953_v23 = vadd.f32 %v23474_v61, %v6775_v10  ;;  %v21864_v62 = vpop.f32.mrf.mxu1  ;;  %v7282_v11 = vadd.f32 %v23477_v55, %v7097_v41  ;;  %v7113_v53 = vadd.f32 %v23478_v38, %v6925_v59  ;;  %v9972_v24 = vsub.f32 %v23479_v17, %v21747_v40  ;;  %v23484_v61 = vld [vmem:[#allocation239_spill] sm:$0xff]  ;;  %v23486_v6 = vld [vmem:[#allocation249_spill] sm:$0xff]  ;;  %v23487_v41 = vld [vmem:[#allocation260_spill] sm:$0xff] }
 0x8e0   :  { %23475 = vst [vmem:[#allocation47_spill] sm:$0xff] %v21864_v62  ;;  %v21871_v13 = vpop.f32.mrf.mxu0  ;;  %v6967_v10 = vadd.f32 %v23483_v44, %v6787_v29  ;;  %v7129_v62 = vadd.f32 %v23484_v61, %v6939_v3  ;;  %v7433_v59 = vadd.f32 %v23486_v6, %v7270_v20  ;;  %v23488_v40 = vld [vmem:[#allocation272_spill] sm:$0xff]  ;;  %v23489_v26 = vld [vmem:[#allocation197_spill] sm:$0xff]  ;;  %v23490_v37 = vld [vmem:[#allocation210_spill] sm:$0xff]  ;;  %v7504_v21 = vsub.f32 %v7421_v42, %v21689_v48 }
 0x8e1   :  { %23480 = vst [vmem:[#allocation51_spill] sm:$0xff] %v21871_v13  ;;  %v21879_v7 = vpop.f32.mrf.mxu1  ;;  %v7294_v55 = vadd.f32 %v23487_v41, %v7113_v53  ;;  %v9974_v38 = vsub.f32 %v23488_v40, %v21770_v51  ;;  %v21889_v28 = vadd.f32 %v23489_v26, %v4804_v57  ;;  %v4828_v29 = vadd.f32 %v23490_v37, %v4659_v60  ;;  %v23491_v54 = vld [vmem:[#allocation263_spill] sm:$0xff]  ;;  %v23492_v44 = vld [vmem:[#allocation241_spill] sm:$0xff]  ;;  %v23494_v30 = vld [vmem:[#allocation254_spill] sm:$0xff] }
 0x8e2   :  { %23485 = vst [vmem:[#allocation53_spill] sm:$0xff] %v21879_v7  ;;  %v21886_v17 = vpop.f32.mrf.mxu0  ;;  %v7306_v3 = vadd.f32 %v23491_v54, %v7129_v62  ;;  %v7145_v61 = vadd.f32 %v23492_v44, %v6953_v23  ;;  %v7445_v20 = vadd.f32 %v23494_v30, %v7282_v11  ;;  %v12570_v53 = vadd.f32 %v9972_v24, %v7502_v16  ;;  %v23495_v6 = vld [vmem:[#allocation274_spill] sm:$0xff]  ;;  %v23496_v40 = vld [vmem:[#allocation204_spill] sm:$0xff]  ;;  %v23498_v23 = vld [vmem:[#allocation243_spill] sm:$0xff] }
 0x8e3   :  { %v21894_v7 = vpop.f32.mrf.mxu1  ;;  %v9976_v51 = vsub.f32 %v23495_v6, %v5020_v9  ;;  %v5024_v57 = vmul.f32 %v21874_v58, %v21874_v58  ;;  %v21904_v60 = vadd.f32 %v23496_v40, %v4816_v4  ;;  %v23497_v62 = vld [vmem:[#allocation266_spill] sm:$0xff]  ;;  %v7161_v37 = vadd.f32 %v23498_v23, %v6967_v10  ;;  %v23501_v16 = vld [vmem:[#allocation276_spill] sm:$0xff]  ;;  %v23502_v4 = vld [vmem:[#allocation211_spill] sm:$0xff] }
 0x8e4   :  { %23493 = vst [vmem:[#allocation54_spill] sm:$0xff] %v21894_v7  ;;  %v21899_v41 = vpop.f32.mrf.mxu0  ;;  %v7318_v26 = vadd.f32 %v23497_v62, %v7145_v61  ;;  %v7506_v48 = vsub.f32 %v7433_v59, %v21708_v33  ;;  %v23500_v42 = vld [vmem:[#allocation258_spill] sm:$0xff]  ;;  %v12572_v11 = vadd.f32 %v9974_v38, %v7504_v21  ;;  %v9978_v44 = vsub.f32 %v23501_v16, %v5022_v32  ;;  %v23504_v10 = vld [vmem:[#allocation268_spill] sm:$0xff] }
 0x8e5   :  { %v21908_v54 = vpop.f32.mrf.mxu1  ;;  %v7457_v24 = vadd.f32 %v23500_v42, %v7294_v55  ;;  %v5026_v6 = vmul.f32 %v21889_v28, %v21889_v28  ;;  %v21918_v40 = vadd.f32 %v23502_v4, %v4828_v29  ;;  %v23503_v61 = vld [vmem:[#allocation262_spill] sm:$0xff]  ;;  %v7330_v23 = vadd.f32 %v23504_v10, %v7161_v37  ;;  %v23508_v37 = vld [vmem:[#allocation265_spill] sm:$0xff] }
 0x8e6   :  { %23499 = vst [vmem:[#allocation56_spill] sm:$0xff] %v21908_v54  ;;  %v21913_v30 = vpop.f32.mrf.mxu0  ;;  %v7469_v62 = vadd.f32 %v23503_v61, %v7306_v3  ;;  %v7508_v59 = vsub.f32 %v7445_v20, %v21712_v2  ;;  %v12586_v55 = vadd.f32 0.0009, %v12570_v53  ;;  %v12574_v38 = vadd.f32 %v9976_v51, %v7506_v48  ;;  %v23506_v21 = vld [vmem:[#allocation46_spill] sm:$0xff]  ;;  %v23510_v48 = vld [vmem:[#allocation49_spill] sm:$0xff] }
 0x8e7   :  { %v21922_v54 = vpop.f32.mrf.mxu1  ;;  %v9980_v42 = vsub.f32 %v23506_v21, %v5024_v57  ;;  %v21930_v7 = vmul.f32 %v21813_v27, %v21673_v52  ;;  %v12542_v29 = vadd.f32 %v5020_v9, %v21708_v33  ;;  %v5028_v3 = vmul.f32 %v21904_v60, %v21904_v60  ;;  %v23511_v9 = vld [vmem:[#allocation270_spill] sm:$0xff] }
 0x8e8   :  { %23505 = vst [vmem:[#allocation59_spill] sm:$0xff] %v21922_v54  ;;  %v21926_v16 = vpop.f32.mrf.mxu0  ;;  %v7481_v4 = vadd.f32 %v23508_v37, %v7318_v26  ;;  %v7510_v20 = vsub.f32 %v7457_v24, %v21723_v1  ;;  %v12588_v53 = vadd.f32 0.0009, %v12572_v11  ;;  %v12576_v51 = vadd.f32 %v9978_v44, %v7508_v59  ;;  %v23513_v44 = vld [vmem:[#allocation24_spill] sm:$0xff] }
 0x8e9   :  { %23507 = vst [vmem:[#allocation62_spill] sm:$0xff] %v21930_v7  ;;  %v21936_v61 = vpop.f32.mrf.mxu1  ;;  %v9982_v10 = vsub.f32 %v23510_v48, %v5026_v6  ;;  %v12544_v52 = vadd.f32 %v5022_v32, %v21712_v2  ;;  %v5030_v33 = vmul.f32 %v21918_v40, %v21918_v40  ;;  %v7512_v27 = vsub.f32 %v7469_v62, %v21732_v56 }
 0x8ea   :  { %23509 = vst [vmem:[#allocation63_spill] sm:$0xff] %v21936_v61  ;;  %v21940_v21 = vpop.f32.mrf.mxu0  ;;  %v7493_v54 = vadd.f32 %v23511_v9, %v7330_v23  ;;  %v12602_v37 = vmul.f32 %v12586_v55, %v21810_v43  ;;  %v12590_v24 = vadd.f32 0.0009, %v12574_v38  ;;  %v12578_v11 = vadd.f32 %v9980_v42, %v7510_v20  ;;  %v23514_v43 = vld [vmem:[#allocation29_spill] sm:$0xff] }
 0x8eb   :  { %v21947_v26 = vpop.f32.mrf.mxu1  ;;  %v9984_v59 = vsub.f32 %v23513_v44, %v5028_v3  ;;  %v12462_v61 = vmul.f32 2.0, %v21930_v7  ;;  %v12558_v2 = vadd.f32 0.0001, %v12542_v29  ;;  %v12546_v32 = vadd.f32 %v5024_v57, %v21723_v1  ;;  %v23515_v29 = vld [vmem:[#allocation273_spill] sm:$0xff] }
 0x8ec   :  { %23512 = vst [vmem:[#allocation65_spill] sm:$0xff] %v21947_v26  ;;  %v21951_v48 = vpop.f32.mrf.mxu0  ;;  %v7514_v13 = vsub.f32 %v7481_v4, %v21743_v14  ;;  %v12604_v23 = vmul.f32 %v12588_v53, %v21835_v31  ;;  %v12592_v9 = vadd.f32 0.0009, %v12576_v51  ;;  %v12580_v26 = vadd.f32 %v9982_v10, %v7512_v27 }
 0x8ed   :  { %v21956_v62 = vpop.f32.mrf.mxu1  ;;  %v9986_v55 = vsub.f32 %v23514_v43, %v5030_v33  ;;  %v12560_v42 = vadd.f32 0.0001, %v12544_v52  ;;  %v12548_v20 = vadd.f32 %v5026_v6, %v21732_v56  ;;  %v7516_v44 = vsub.f32 %v7493_v54, %v21755_v46  ;;  %v23516_v56 = vld [vmem:[#allocation275_spill] sm:$0xff] }
 0x8ee   :  { %v21960_v38 = vpop.f32.mrf.mxu0  ;;  %16737 = vrcp.f32 %v23515_v29  ;;  %v12606_v57 = vmul.f32 %v12590_v24, %v12558_v2  ;;  %v12594_v4 = vadd.f32 0.0009, %v12578_v11  ;;  %v12582_v7 = vadd.f32 %v9984_v59, %v7514_v13  ;;  %v23520_v2 = vld [vmem:[#allocation194_spill] sm:$0xff] }
 0x8ef   :  { %v21965_v1 = vpop.f32.mrf.mxu1  ;;  %16739 = vrcp.f32 %v12602_v37  ;;  %v21971_v53 = vmul.f32 %v21829_v12, %v21676_v47  ;;  %v12562_v51 = vadd.f32 0.0001, %v12546_v32  ;;  %v12550_v10 = vadd.f32 %v5028_v3, %v21743_v14  ;;  %v23519_v14 = vld [vmem:[#allocation278_spill] sm:$0xff] }
 0x8f0   :  { %v21967_v31 = vpop.f32.mrf.mxu0  ;;  %16741 = vrcp.f32 %v23516_v56  ;;  %v12608_v6 = vmul.f32 %v12592_v9, %v12560_v42  ;;  %v12596_v52 = vadd.f32 0.0009, %v12580_v26  ;;  %v12584_v27 = vadd.f32 %v9986_v55, %v7516_v44  ;;  %v23524_v42 = vld [vmem:[#allocation203_spill] sm:$0xff]  ;;  %v23525_v44 = vld [vmem:[#allocation22_spill] sm:$0xff]  ;;  %v23527_v56 = vld [vmem:[#allocation208_spill] sm:$0xff] }
 0x8f1   :  { %v21975_v54 = vpop.f32.mrf.mxu1  ;;  %16743 = vrcp.f32 %v12604_v23  ;;  %v21981_v13 = vmul.f32 %v21874_v58, %v21682_v8  ;;  %v21985_v47 = vmul.f32 %v21889_v28, %v21692_v15  ;;  %v12564_v12 = vadd.f32 0.0001, %v12548_v20  ;;  %v23522_v58 = vld [vmem:[#allocation277_spill] sm:$0xff] }
 0x8f2   :  { %v21977_v37 = vpop.f32.mrf.mxu0  ;;  %16745 = vrcp.f32 %v23519_v14  ;;  %v12552_v24 = vadd.f32 %v5030_v33, %v21755_v46  ;;  %v12610_v26 = vmul.f32 %v12594_v4, %v12562_v51  ;;  %v12598_v11 = vadd.f32 0.0009, %v12582_v7  ;;  %v23523_v7 = vld [vmem:[#allocation199_spill] sm:$0xff] }
 0x8f3   :  { %23517 = vst [vmem:[#allocation67_spill] sm:$0xff] %v21981_v13  ;;  %23518 = vst [vmem:[#allocation70_spill] sm:$0xff] %v21985_v47  ;;  %v21988_v3 = vpop.f32.mrf.mxu1  ;;  %16747 = vrcp.f32 %v12606_v57  ;;  %v12465_v32 = vmul.f32 2.0, %v23520_v2  ;;  %v12464_v8 = vmul.f32 2.0, %v21971_v53  ;;  %v21997_v15 = vmul.f32 %v21904_v60, %v21697_v45 }
 0x8f4   :  { %v21991_v59 = vpop.f32.mrf.mxu0  ;;  %16749 = vrcp.f32 %v23522_v58  ;;  %v12566_v23 = vadd.f32 0.0001, %v12550_v10  ;;  %v12612_v46 = vmul.f32 %v12596_v52, %v12564_v12  ;;  %v12600_v33 = vadd.f32 0.0009, %v12584_v27  ;;  %v23528_v52 = vld [vmem:[#allocation55_spill] sm:$0xff] }
 0x8f5   :  { %23521 = vst [vmem:[#allocation71_spill] sm:$0xff] %v21997_v15  ;;  %v22000_v28 = vpop.f32.mrf.mxu1  ;;  %16751 = vrcp.f32 %v12608_v6  ;;  %v12467_v43 = vmul.f32 2.0, %v23523_v7  ;;  %v12466_v55 = vmul.f32 2.0, %v21981_v13  ;;  %v12469_v20 = vmul.f32 2.0, %v23524_v42 }
 0x8f6   :  { %v22002_v9 = vpop.f32.mrf.mxu0  ;;  %16753 = vrcp.f32 %v23525_v44  ;;  %v12468_v60 = vmul.f32 2.0, %v21985_v47  ;;  %v12568_v29 = vadd.f32 0.0001, %v12552_v24  ;;  %v12614_v57 = vmul.f32 %v12598_v11, %v12566_v23 }
 0x8f7   :  { %v22008_v45 = vpop.f32.mrf.mxu1  ;;  %16755 = vrcp.f32 %v12610_v26  ;;  %v22014_v51 = vadd.f32 0.0001, %v21843_v18  ;;  %v22016_v10 = vadd.f32 0.0001, %v12462_v61  ;;  %v12471_v6 = vmul.f32 2.0, %v23527_v56  ;;  %v23531_v61 = vld [vmem:[#allocation58_spill] sm:$0xff] }
 0x8f8   :  { %23526 = vst [vmem:[#allocation73_spill] sm:$0xff] %v22008_v45  ;;  %v22011_v4 = vpop.f32.mrf.mxu0  ;;  %16757 = vrcp.f32 %v23528_v52  ;;  %v22022_v12 = vadd.f32 0.0001, %v12465_v32  ;;  %v12470_v14 = vmul.f32 2.0, %v21997_v15  ;;  %v12616_v24 = vmul.f32 %v12600_v33, %v12568_v29  ;;  %v23536_v29 = vld [vmem:[#allocation32_spill] sm:$0xff] }
 0x8f9   :  { %v22020_v27 = vpop.f32.mrf.mxu1  ;;  %16759 = vrcp.f32 %v12612_v46  ;;  %v22027_v11 = vadd.f32 0.0001, %v12464_v8  ;;  %v22029_v18 = vadd.f32 0.0001, %v12467_v43  ;;  %v11649_v58 = vadd.f32 %v21596_v63, %v21632_v49  ;;  %v23555_v56 = vld [vmem:[#allocation60_spill] sm:$0xff] }
 0x8fa   :  { %v22025_v26 = vpop.f32.mrf.mxu0  ;;  %16761 = vrcp.f32 %v23531_v61  ;;  %v22038_v32 = vadd.f32 0.0001, %v12466_v55  ;;  %v22040_v52 = vadd.f32 0.0001, %v12469_v20  ;;  %v22042_v46 = vadd.f32 0.0001, %v12468_v60 }
 0x8fb   :  { %23529 = vst [vmem:[#allocation75_spill] sm:$0xff] %v22027_v11  ;;  %23530 = vst [vmem:[#allocation78_spill] sm:$0xff] %v22029_v18  ;;  %v22034_v23 = vpop.f32.mrf.mxu1  ;;  %v22036_v44 = vpop.eup %16737  ;;  %16763 = vrcp.f32 %v12614_v57  ;;  %v22048_v43 = vadd.f32 0.0001, %v12471_v6  ;;  %v11643_v63 = vadd.f32 %v21598_v19, %v21645_v50  ;;  %v11816_v49 = vadd.f32 %v21886_v17, %v11649_v58  ;;  %v23538_v57 = vld [vmem:[#allocation213_spill] sm:$0xff]  ;;  %v23556_v18 = vld [vmem:[#allocation34_spill] sm:$0xff] }
 0x8fc   :  { %23532 = vst [vmem:[#allocation79_spill] sm:$0xff] %v22038_v32  ;;  %23533 = vst [vmem:[#allocation81_spill] sm:$0xff] %v22040_v52  ;;  %v22044_v8 = vpop.f32.mrf.mxu0  ;;  %v22046_v33 = vpop.eup %16739  ;;  %16765 = vrcp.f32 %v23536_v29  ;;  %v22058_v60 = vadd.f32 0.0001, %v12470_v14  ;;  %v22061_v61 = vmul.f32 2.0, %v23538_v57  ;;  %v22065_v6 = vmul.f32 %v21918_v40, %v21715_v35  ;;  %v23541_v40 = vld [vmem:[#allocation69_spill] sm:$0xff] }
 0x8fd   :  { %23534 = vst [vmem:[#allocation83_spill] sm:$0xff] %v22042_v46  ;;  %23535 = vst [vmem:[#allocation86_spill] sm:$0xff] %v22048_v43  ;;  %v22054_v55 = vpop.f32.mrf.mxu1  ;;  %v22056_v20 = vpop.eup %16741  ;;  %16767 = vrcp.f32 %v12616_v24  ;;  %v11661_v19 = vadd.f32 %v21606_v5, %v21654_v0  ;;  %v11655_v50 = vadd.f32 %v21615_v22, %v21665_v39  ;;  %v11673_v17 = vadd.f32 %v21625_v25, %v21679_v34  ;;  %v23545_v5 = vld [vmem:[#allocation72_spill] sm:$0xff]  ;;  %v23548_v34 = vld [vmem:[#allocation93_spill] sm:$0xff] }
 0x8fe   :  { %23537 = vst [vmem:[#allocation87_spill] sm:$0xff] %v22058_v60  ;;  %23539 = vst [vmem:[#allocation89_spill] sm:$0xff] %v22061_v61  ;;  %v22067_v29 = vpop.f32.mrf.mxu0  ;;  %v22069_v43 = vpop.eup %16743  ;;  %v11809_v14 = vadd.f32 %v21899_v41, %v11643_v63  ;;  %v11667_v24 = vadd.f32 %v23541_v40, %v21694_v36  ;;  %v23542_v60 = vld [vmem:[#allocation80_spill] sm:$0xff]  ;;  %v23549_v41 = vld [vmem:[#allocation77_spill] sm:$0xff] }
 0x8ff   :  { %23540 = vst [vmem:[#allocation90_spill] sm:$0xff] %v22065_v6  ;;  %v22078_v58 = vpop.f32.mrf.mxu1  ;;  %v22080_v35 = vpop.eup %16745  ;;  %v23543_v61 = vld [vmem:[#allocation48_spill] sm:$0xff]  ;;  %v23544_v6 = vld [vmem:[#allocation85_spill] sm:$0xff]  ;;  %v11691_v63 = vadd.f32 %v23549_v41, %v23548_v34  ;;  %v11830_v52 = vadd.f32 %v21913_v30, %v11661_v19  ;;  %v11823_v36 = vadd.f32 %v21926_v16, %v11655_v50  ;;  %v11844_v34 = vadd.f32 %v21940_v21, %v11673_v17  ;;  %v23559_v16 = vld [vmem:[#allocation42_spill] sm:$0xff] }
 0x900   :  { %v11685_v46 = vadd.f32 %v23543_v61, %v23542_v60  ;;  %v11679_v0 = vadd.f32 %v23545_v5, %v23544_v6  ;;  %v23546_v57 = vld [vmem:[#allocation68_spill] sm:$0xff]  ;;  %v22090_v15 = vpop.f32.mrf.mxu0  ;;  %v22092_v25 = vpop.eup %16747  ;;  %v23552_v6 = vld [vmem:[#allocation94_spill] sm:$0xff]  ;;  %v23553_v5 = vld [vmem:[#allocation57_spill] sm:$0xff]  ;;  %v11837_v41 = vadd.f32 %v21951_v48, %v11667_v24 }
 0x901   :  { %v23547_v22 = vld [vmem:[#allocation52_spill] sm:$0xff]  ;;  %v22099_v60 = vpop.f32.mrf.mxu1  ;;  %v22101_v61 = vpop.eup %16749  ;;  %v23566_v21 = vld [vmem:[#allocation82_spill] sm:$0xff] }
 0x902   :  { %v11697_v39 = vadd.f32 %v23547_v22, %v23546_v57  ;;  %v23550_v40 = vld [vmem:[#allocation28_spill] sm:$0xff]  ;;  %23551 = vst [vmem:[#allocation92_spill] sm:$0xff] %v22101_v61  ;;  %v11709_v57 = vadd.f32 %v23553_v5, %v23552_v6  ;;  %v23554_v22 = vld [vmem:[#allocation95_spill] sm:$0xff]  ;;  %v16678_v30 = vpop.f32.mrf.mxu0  ;;  %v22110_v19 = vpop.eup %16751  ;;  %v11851_v45 = vadd.f32 %v21967_v31, %v11679_v0  ;;  %v23569_v0 = vld [vmem:[#allocation53_spill] sm:$0xff] }
 0x903   :  { %v11997_v32 = vadd.f32 %v23550_v40, %v11816_v49  ;;  %v11703_v47 = vadd.f32 %v23555_v56, %v23554_v22  ;;  %v23557_v11 = vld [vmem:[#allocation88_spill] sm:$0xff]  ;;  %23558 = vst [vmem:[#allocation33_spill] sm:$0xff] %v22110_v19  ;;  %v23560_v49 = vld [vmem:[#allocation74_spill] sm:$0xff]  ;;  %v23561_v61 = vld [vmem:[#allocation39_spill] sm:$0xff]  ;;  %v22116_v6 = vpop.f32.mrf.mxu1  ;;  %v22118_v5 = vpop.eup %16753  ;;  %v11858_v19 = vadd.f32 %v21960_v38, %v11685_v46  ;;  %v11865_v38 = vadd.f32 %v21991_v59, %v11691_v63 }
 0x904   :  { %v11721_v42 = vadd.f32 %v23557_v11, %v23556_v18  ;;  %v11715_v50 = vadd.f32 %v23560_v49, %v23559_v16  ;;  %v11989_v13 = vadd.f32 %v23561_v61, %v11809_v14  ;;  %23562 = vst [vmem:[#allocation20_spill] sm:$0xff] %v22118_v5  ;;  %v23563_v56 = vld [vmem:[#allocation44_spill] sm:$0xff]  ;;  %v23565_v18 = vld [vmem:[#allocation51_spill] sm:$0xff]  ;;  %v12185_v16 = vpop.f32.mrf.mxu0  ;;  %v22126_v49 = vpop.eup %16755  ;;  %v23567_v14 = vld [vmem:[#allocation45_spill] sm:$0xff]  ;;  %v11886_v31 = vadd.f32 %v22002_v9, %v11709_v57 }
 0x905   :  { %v12192_v40 = vadd.f32 %v16678_v30, %v11997_v32  ;;  %v23564_v22 = vld [vmem:[#allocation76_spill] sm:$0xff]  ;;  %v11727_v17 = vadd.f32 %v23566_v21, %v23565_v18  ;;  %v12013_v24 = vadd.f32 %v23567_v14, %v11830_v52  ;;  %v22130_v61 = vpop.f32.mrf.mxu1  ;;  %v23568_v30 = vld [vmem:[#allocation47_spill] sm:$0xff]  ;;  %v12029_v18 = vadd.f32 %v23569_v0, %v11844_v34 }
 0x906   :  { %v11733_v11 = vadd.f32 %v23564_v22, %v23563_v56  ;;  %v12186_v32 = vadd.f32 %v12185_v16, %v11989_v13  ;;  %v12005_v5 = vadd.f32 %v23568_v30, %v11823_v36  ;;  %v22133_v56 = vpop.eup %16757  ;;  %v11872_v22 = vadd.f32 %v21977_v37, %v11697_v39  ;;  %v16681_v46 = vpop.f32.mrf.mxu0  ;;  %v23570_v13 = vld [vmem:[#allocation180_spill] sm:$0xff]  ;;  %v23571_v36 = vld [vmem:[#allocation54_spill] sm:$0xff]  ;;  %v23573_v57 = vld [vmem:[#allocation59_spill] sm:$0xff] }
 0x907   :  { %v12355_v48 = vadd.f32 %v22020_v27, %v12192_v40  ;;  %v22139_v21 = vpop.eup %16759  ;;  %v12204_v40 = vadd.f32 %v16681_v46, %v12013_v24  ;;  %v22143_v16 = vpop.f32.mrf.mxu1  ;;  %v12021_v14 = vadd.f32 %v23571_v36, %v11837_v41  ;;  %v11879_v37 = vadd.f32 %v22011_v4, %v11703_v47  ;;  %v23572_v39 = vld [vmem:[#allocation56_spill] sm:$0xff]  ;;  %v23576_v36 = vld [vmem:[#allocation65_spill] sm:$0xff] }
 0x908   :  { %v12349_v52 = vadd.f32 %v22034_v23, %v12186_v32  ;;  %v22146_v30 = vpop.eup %16761  ;;  %v11900_v59 = vadd.f32 %v22025_v26, %v11721_v42  ;;  %v12197_v9 = vpop.f32.mrf.mxu0  ;;  %v12045_v63 = vadd.f32 %v23572_v39, %v11858_v19  ;;  %v12037_v34 = vadd.f32 %v23573_v57, %v11851_v45  ;;  %v23574_v23 = vld [vmem:[#allocation66_spill] sm:$0xff]  ;;  %v23575_v42 = vld [vmem:[#allocation63_spill] sm:$0xff] }
 0x909   :  { %v12443_v27 = vsub.f32 %v12355_v48, %v23570_v13  ;;  %v22152_v0 = vpop.eup %16763  ;;  %v12367_v24 = vadd.f32 %v22054_v55, %v12204_v40  ;;  %v12198_v46 = vadd.f32 %v12197_v9, %v12005_v5  ;;  %v16718_v41 = vpop.f32.mrf.mxu1  ;;  %v11893_v47 = vadd.f32 %v22044_v8, %v11715_v50 }
 0x90a   :  { %v12442_v32 = vsub.f32 %v12349_v52, %v23574_v23  ;;  %v22156_v13 = vpop.eup %16765  ;;  %v16684_v4 = vpop.f32.mrf.mxu0  ;;  %v12061_v26 = vadd.f32 %v23575_v42, %v11872_v22  ;;  %v12053_v19 = vadd.f32 %v23576_v36, %v11865_v38  ;;  %v12077_v45 = vadd.f32 %v21956_v62, %v11886_v31  ;;  %v23577_v52 = vld [vmem:[#allocation185_spill] sm:$0xff]  ;;  %v23578_v62 = vld [vmem:[#allocation84_spill] sm:$0xff] }
 0x90b   :  { %v12491_v48 = vmul.f32 2.0, %v12443_v27  ;;  %v22162_v39 = vpop.eup %16767  ;;  %v12445_v23 = vsub.f32 %v12367_v24, %v23577_v52  ;;  %v12361_v55 = vadd.f32 %v22078_v58, %v12198_v46  ;;  %v11914_v5 = vadd.f32 %v22067_v29, %v11733_v11  ;;  %v12396_v8 = vpop.f32.mrf.mxu1 }
 0x90c   :  { %v12490_v57 = vmul.f32 2.0, %v12442_v32  ;;  %v12216_v40 = vadd.f32 %v16684_v4, %v12029_v18  ;;  %v12209_v9 = vpop.f32.mrf.mxu0  ;;  %v22168_v50 = vadd.f32 %v21965_v1, %v11879_v37  ;;  %v22171_v22 = vadd.f32 %v21975_v54, %v11900_v59  ;;  %v23579_v32 = vld [vmem:[#allocation91_spill] sm:$0xff]  ;;  %v23580_v37 = vld [vmem:[#allocation26_spill] sm:$0xff]  ;;  %v23581_v4 = vld [vmem:[#allocation189_spill] sm:$0xff] }
 0x90d   :  { %v12507_v27 = vadd.f32 0.0009, %v12491_v48  ;;  %v12493_v48 = vmul.f32 2.0, %v12445_v23  ;;  %v12444_v42 = vsub.f32 %v12361_v55, %v23579_v32  ;;  %v11907_v24 = vadd.f32 %v22090_v15, %v11727_v17  ;;  %v16721_v52 = vpop.f32.mrf.mxu1  ;;  %v23583_v55 = vld [vmem:[#allocation62_spill] sm:$0xff] }
 0x90e   :  { %v12506_v31 = vadd.f32 0.0009, %v12490_v57  ;;  %v12379_v58 = vadd.f32 %v22099_v60, %v12216_v40  ;;  %v12210_v29 = vadd.f32 %v12209_v9, %v12021_v14  ;;  %v16687_v11 = vpop.f32.mrf.mxu0  ;;  %v22178_v18 = vadd.f32 %v21988_v3, %v11893_v47  ;;  %v23582_v14 = vld [vmem:[#allocation35_spill] sm:$0xff] }
 0x90f   :  { %v12523_v38 = vmul.f32 %v12507_v27, %v23578_v62  ;;  %v12509_v59 = vadd.f32 0.0009, %v12493_v48  ;;  %v12492_v46 = vmul.f32 2.0, %v12444_v42  ;;  %v12228_v57 = vadd.f32 %v16687_v11, %v12045_v63 }
 0x910   :  { %v12522_v54 = vmul.f32 %v12506_v31, %v23580_v37  ;;  %v12447_v36 = vsub.f32 %v12379_v58, %v23581_v4  ;;  %v12373_v27 = vadd.f32 %v22116_v6, %v12210_v29  ;;  %v12221_v15 = vpop.f32.mrf.mxu0  ;;  %v22185_v60 = vadd.f32 %v22000_v28, %v11914_v5  ;;  %v23584_v28 = vld [vmem:[#allocation36_spill] sm:$0xff]  ;;  %v12408_v58 = vpop.f32.mrf.mxu1 }
 0x911   :  { %v12621_v1 = vmul.f32 %v22036_v44, %v12523_v38  ;;  %v12525_v44 = vmul.f32 %v12509_v59, %v23582_v14  ;;  %v12508_v47 = vadd.f32 0.0009, %v12492_v46  ;;  %v12391_v9 = vadd.f32 %v22130_v61, %v12228_v57 }
 0x912   :  { %v12619_v3 = vmul.f32 %v22046_v33, %v12522_v54  ;;  %v12495_v23 = vmul.f32 2.0, %v12447_v36  ;;  %v12446_v40 = vsub.f32 %v12373_v27, %v23583_v55  ;;  %v12222_v62 = vadd.f32 %v12221_v15, %v12037_v34  ;;  %v16690_v6 = vpop.f32.mrf.mxu0 }
 0x913   :  { %v12651_v17 = vsel %vm1409_vm0, %v12621_v1, 0.0  ;;  %v12625_v38 = vmul.f32 %v22056_v20, %v12525_v44  ;;  %v12524_v5 = vmul.f32 %v12508_v47, %v23584_v28  ;;  %v12240_v31 = vadd.f32 %v16690_v6, %v12061_v26  ;;  %v23588_v6 = vld [vmem:[#allocation92_spill] sm:$0xff]  ;;  %v23589_v28 = vld [vmem:[#allocation75_spill] sm:$0xff] }
 0x914   :  { %v12650_v63 = vsel %vm1409_vm0, %v12619_v3, 0.0  ;;  %v12511_v32 = vadd.f32 0.0009, %v12495_v23  ;;  %v12494_v33 = vmul.f32 2.0, %v12446_v40  ;;  %v12449_v42 = vsub.f32 %v12391_v9, %v23520_v2  ;;  %v12233_v29 = vpop.f32.mrf.mxu0 }
 0x915   :  { %v12652_v48 = vadd.f32 %v12651_v17, %v12650_v63  ;;  %v12655_v11 = vsel %vm1409_vm0, %v12625_v38, 0.0  ;;  %v12623_v61 = vmul.f32 %v22069_v43, %v12524_v5  ;;  %v12385_v34 = vadd.f32 %v22143_v16, %v12222_v62 }
 0x916   :  { %v12403_v1 = vadd.f32 %v16718_v41, %v12240_v31  ;;  %v12527_v37 = vmul.f32 %v12511_v32, %v22014_v51  ;;  %v12510_v20 = vadd.f32 0.0009, %v12494_v33  ;;  %v12497_v54 = vmul.f32 2.0, %v12449_v42  ;;  %v16693_v26 = vpop.f32.mrf.mxu0  ;;  %v16724_v41 = vpop.f32.mrf.mxu1 }
 0x917   :  { %v12234_v59 = vadd.f32 %v12233_v29, %v12053_v19  ;;  %v12653_v46 = vsel %vm1409_vm0, %v12623_v61, 0.0  ;;  %v12448_v4 = vsub.f32 %v12385_v34, %v21971_v53  ;;  %v12252_v36 = vadd.f32 %v16693_v26, %v12077_v45  ;;  %v23591_v61 = vld [vmem:[#allocation33_spill] sm:$0xff] }
 0x918   :  { %v12451_v2 = vsub.f32 %v12403_v1, %v23523_v7  ;;  %v12654_v27 = vadd.f32 %v12653_v46, %v12652_v48  ;;  %v12629_v57 = vmul.f32 %v22080_v35, %v12527_v37  ;;  %v12526_v43 = vmul.f32 %v12510_v20, %v22016_v10  ;;  %v12245_v15 = vpop.f32.mrf.mxu0  ;;  %v23585_v7 = vld [vmem:[#allocation73_spill] sm:$0xff]  ;;  %v23586_v35 = vld [vmem:[#allocation67_spill] sm:$0xff]  ;;  %v23592_v37 = vld [vmem:[#allocation20_spill] sm:$0xff] }
 0x919   :  { %v12513_v16 = vadd.f32 0.0009, %v12497_v54  ;;  %v12496_v51 = vmul.f32 2.0, %v12448_v4  ;;  %v12397_v3 = vadd.f32 %v12396_v8, %v12234_v59  ;;  %v12415_v19 = vadd.f32 %v16721_v52, %v12252_v36  ;;  %v23587_v10 = vld [vmem:[#allocation203_spill] sm:$0xff]  ;;  %v12420_v8 = vpop.f32.mrf.mxu1  ;;  %v23593_v59 = vld [vmem:[#allocation70_spill] sm:$0xff]  ;;  %v23594_v46 = vld [vmem:[#allocation208_spill] sm:$0xff] }
 0x91a   :  { %v12499_v17 = vmul.f32 2.0, %v12451_v2  ;;  %v12627_v14 = vmul.f32 %v22092_v25, %v12526_v43  ;;  %v12656_v44 = vadd.f32 %v12655_v11, %v12654_v27  ;;  %v16696_v47 = vpop.f32.mrf.mxu0  ;;  %v12101_v45 = vadd.f32 %v23585_v7, %v11907_v24  ;;  %v23590_v24 = vld [vmem:[#allocation78_spill] sm:$0xff] }
 0x91b   :  { %v12529_v53 = vmul.f32 %v12513_v16, %v22022_v12  ;;  %v12512_v23 = vadd.f32 0.0009, %v12496_v51  ;;  %v12450_v40 = vsub.f32 %v12397_v3, %v23586_v35  ;;  %v12453_v9 = vsub.f32 %v12415_v19, %v23587_v10  ;;  %v16727_v54 = vpop.f32.mrf.mxu1  ;;  %v23598_v10 = vld [vmem:[#allocation213_spill] sm:$0xff] }
 0x91c   :  { %v12515_v55 = vadd.f32 0.0009, %v12499_v17  ;;  %v12657_v62 = vsel %vm1409_vm0, %v12627_v14, 0.0  ;;  %v12246_v52 = vadd.f32 %v12245_v15, %v22168_v50  ;;  %v12264_v25 = vadd.f32 %v16696_v47, %v22171_v22  ;;  %v12257_v38 = vpop.f32.mrf.mxu0  ;;  %v23596_v15 = vld [vmem:[#allocation81_spill] sm:$0xff] }
 0x91d   :  { %v12633_v63 = vmul.f32 %v23588_v6, %v12529_v53  ;;  %v12658_v12 = vadd.f32 %v12657_v62, %v12656_v44  ;;  %v12528_v5 = vmul.f32 %v12512_v23, %v23589_v28  ;;  %v12498_v48 = vmul.f32 2.0, %v12450_v40  ;;  %v12432_v23 = vpop.f32.mrf.mxu1  ;;  %v23597_v40 = vld [vmem:[#allocation71_spill] sm:$0xff]  ;;  %v23599_v6 = vld [vmem:[#allocation90_spill] sm:$0xff] }
 0x91e   :  { %v12531_v31 = vmul.f32 %v12515_v55, %v23590_v24  ;;  %v12659_v32 = vsel %vm1409_vm0, %v12629_v57, 0.0  ;;  %v12501_v33 = vmul.f32 2.0, %v12453_v9  ;;  %v12409_v42 = vadd.f32 %v12408_v58, %v12246_v52  ;;  %v16699_v11 = vpop.f32.mrf.mxu0  ;;  %v23595_v57 = vld [vmem:[#allocation79_spill] sm:$0xff]  ;;  %v23602_v24 = vld [vmem:[#allocation89_spill] sm:$0xff] }
 0x91f   :  { %v12427_v29 = vadd.f32 %v16724_v41, %v12264_v25  ;;  %v12631_v34 = vmul.f32 %v23591_v61, %v12528_v5  ;;  %v12660_v1 = vadd.f32 %v12659_v32, %v12658_v12  ;;  %v12514_v20 = vadd.f32 0.0009, %v12498_v48  ;;  %v23601_v25 = vld [vmem:[#allocation86_spill] sm:$0xff] }
 0x920   :  { %v12637_v50 = vmul.f32 %v23592_v37, %v12531_v31  ;;  %v12517_v22 = vadd.f32 0.0009, %v12501_v33  ;;  %v12452_v26 = vsub.f32 %v12409_v42, %v23593_v59  ;;  %v12258_v2 = vadd.f32 %v12257_v38, %v22178_v18  ;;  %v12269_v36 = vpop.f32.mrf.mxu0 }
 0x921   :  { %v12455_v4 = vsub.f32 %v12427_v29, %v23594_v46  ;;  %v12663_v27 = vsel %vm1409_vm0, %v12633_v63, 0.0  ;;  %v12661_v58 = vsel %vm1409_vm0, %v12631_v34, 0.0  ;;  %v12530_v43 = vmul.f32 %v12514_v20, %v23595_v57  ;;  %v23603_v34 = vld [vmem:[#allocation87_spill] sm:$0xff] }
 0x922   :  { %v12276_v16 = vadd.f32 %v16699_v11, %v22185_v60  ;;  %v12662_v41 = vadd.f32 %v12661_v58, %v12660_v1  ;;  %v12533_v51 = vmul.f32 %v12517_v22, %v23596_v15  ;;  %v12500_v17 = vmul.f32 2.0, %v12452_v26 }
 0x923   :  { %v12503_v3 = vmul.f32 2.0, %v12455_v4  ;;  %v12635_v19 = vmul.f32 %v22126_v49, %v12530_v43  ;;  %v12421_v14 = vadd.f32 %v12420_v8, %v12258_v2  ;;  %v12270_v53 = vadd.f32 %v12269_v36, %v12101_v45  ;;  %v23600_v49 = vld [vmem:[#allocation83_spill] sm:$0xff] }
 0x924   :  { %v12439_v44 = vadd.f32 %v16727_v54, %v12276_v16  ;;  %v12664_v18 = vadd.f32 %v12663_v27, %v12662_v41  ;;  %v12641_v47 = vmul.f32 %v22133_v56, %v12533_v51  ;;  %v12516_v7 = vadd.f32 0.0009, %v12500_v17 }
 0x925   :  { %v12519_v55 = vadd.f32 0.0009, %v12503_v3  ;;  %v12665_v35 = vsel %vm1409_vm0, %v12635_v19, 0.0  ;;  %v12454_v60 = vsub.f32 %v12421_v14, %v23597_v40  ;;  %v12433_v62 = vadd.f32 %v12432_v23, %v12270_v53 }
 0x926   :  { %v12457_v9 = vsub.f32 %v12439_v44, %v23598_v10  ;;  %v12472_v63 = vmul.f32 2.0, %v23599_v6  ;;  %v12666_v52 = vadd.f32 %v12665_v35, %v12664_v18  ;;  %v12532_v8 = vmul.f32 %v12516_v7, %v23600_v49 }
 0x927   :  { %v12535_v45 = vmul.f32 %v12519_v55, %v23601_v25  ;;  %v12667_v38 = vsel %vm1409_vm0, %v12637_v50, 0.0  ;;  %v12502_v56 = vmul.f32 2.0, %v12454_v60  ;;  %v12456_v28 = vsub.f32 %v12433_v62, %v23599_v6 }
 0x928   :  { %v12505_v12 = vmul.f32 2.0, %v12457_v9  ;;  %v12639_v5 = vmul.f32 %v22139_v21, %v12532_v8  ;;  %v12489_v31 = vadd.f32 0.0001, %v23602_v24  ;;  %v12668_v32 = vadd.f32 %v12667_v38, %v12666_v52 }
 0x929   :  { %v12645_v48 = vmul.f32 %v22146_v30, %v12535_v45  ;;  %v12518_v33 = vadd.f32 0.0009, %v12502_v56  ;;  %v12504_v29 = vmul.f32 2.0, %v12456_v28  ;;  %v12488_v11 = vadd.f32 0.0001, %v12472_v63 }
 0x92a   :  { %v12521_v42 = vadd.f32 0.0009, %v12505_v12  ;;  %v12669_v61 = vsel %vm1409_vm0, %v12639_v5, 0.0  ;;  %v12671_v22 = vsel %vm1409_vm0, %v12641_v47, 0.0 }
 0x92b   :  { %v12534_v1 = vmul.f32 %v12518_v33, %v23603_v34  ;;  %v12520_v37 = vadd.f32 0.0009, %v12504_v29  ;;  %v12670_v20 = vadd.f32 %v12669_v61, %v12668_v32  ;;  %v12675_v2 = vsel %vm1409_vm0, %v12645_v48, 0.0 }
 0x92c   :  { %v12537_v50 = vmul.f32 %v12521_v42, %v12489_v31 }
 0x92d   :  { %v12536_v54 = vmul.f32 %v12520_v37, %v12488_v11  ;;  %v12643_v21 = vmul.f32 %v22152_v0, %v12534_v1  ;;  %v12672_v30 = vadd.f32 %v12671_v22, %v12670_v20 }
 0x92e   :  { %v12649_v59 = vmul.f32 %v22156_v13, %v12537_v50 }
 0x92f   :  { %v12647_v26 = vmul.f32 %v22162_v39, %v12536_v54  ;;  %v12673_v46 = vsel %vm1409_vm0, %v12643_v21, 0.0 }
 0x930   :  { %v12674_v4 = vadd.f32 %v12673_v46, %v12672_v30  ;;  %v12679_v57 = vsel %vm1409_vm0, %v12649_v59, 0.0 }
 0x931   :  { %v12677_v36 = vsel %vm1409_vm0, %v12647_v26, 0.0 }
 0x932   :  { %v12676_v27 = vadd.f32 %v12675_v2, %v12674_v4 }
 0x934   :  { %v12678_v58 = vadd.f32 %v12677_v36, %v12676_v27 }
 0x936   :  { %v12680_v43 = vadd.f32 %v12679_v57, %v12678_v58 }
 0x938   :  { %12681 = vadd.xlane.f32.xlu0 %v12680_v43 }
 0x9c1   :  { %v12682_v16 = vpop.xlane.xlu0 %12681 }
 0x9c2   :  { %v12683_v0 = vrot.slane %v12682_v16, 4 }
 0x9c4   :  { %v12684_v41 = vadd.f32 %v12683_v0, %v12682_v16 }
 0x9c6   :  { %v12685_v13 = vrot.slane %v12684_v41, 2 }
 0x9c8   :  { %v12686_v15 = vadd.f32 %v12685_v13, %v12684_v41 }
 0x9ca   :  { %v12687_v51 = vrot.slane %v12686_v15, 1 }
 0x9cc   :  { %v12688_v39 = vadd.f32 %v12687_v51, %v12686_v15 }
 0x9ce   :  { %16728 = vpush %v12688_v39 }
 0x9ff   :  { %s16729_s2 = spop %16728 }
 0xa00   :  { %12691 = sst [smem:[#allocation10]] %s16729_s2 }
 0xa01   :  { %12699 = dma.smem_to_hbm %s16935_s3, 16, %s22257_s4, [#allocation4]  }
 0xa02   :  { %16927 = dma.done.wait [#allocation4], 16  }
 0xa03   :  { %16928 = vsyncadd [#allocation4], 4294967280 }
 0xa04   :  { %12703 = sfence }
 0xa05   :  { %12704 = vsyncpa [#allocation3], 1 }
 0xa06   :  { %12705 = vsyncpa [#allocation6], 1 }
 0xa07   :  { %12706 = vsyncpa [#allocation9], 1 }
 0xa08   :  { %12707 = vsyncpa [#allocation4], 1 }

</bundles_post_ra>
